<compile_context>
chip_gen: v7x
topology: tpu7x:2x2x1
jax: 0.10.0
libtpu: 0.0.40
codegen_flags: <defaults>
</compile_context>

<pallas_src>
import math

import jax
import jax.numpy as jnp
from jax.experimental import pallas as pl
from jax.experimental.pallas import tpu as pltpu

# ----------------------- small, deterministic hyper-params -------------------
N      = 2          # batch
T0     = 16         # Ty / r  (input reduced frames)
N_MELS = 16         # args.n_mels
CS     = 64         # args.Cs
N_MAGS = 128        # args.n_mags  (kept at 128 so the output slab is lane-dense)
T_OUT  = 4 * T0     # two stride-2 transposed convs -> Ty = 4 * (Ty/r)

# Static layer schedule mirroring SSRN.hc_blocks (16 blocks).
#   ("conv1", cin, cout, act)  : 1x1 conv (+ optional ReLU)
#   ("hwy",   c, dilation)     : HighwayConv1d(c, c, 3, dilation)
#   ("deconv", c)              : ConvTranspose1d(c, c, 4, stride=2, padding=1)
LAYERS = (
    ("conv1", N_MELS, CS, "relu"),
    ("hwy", CS, 1), ("hwy", CS, 3),
    ("deconv", CS),
    ("hwy", CS, 1), ("hwy", CS, 3),
    ("deconv", CS),
    ("hwy", CS, 1), ("hwy", CS, 3),
    ("conv1", CS, 2 * CS, None),
    ("hwy", 2 * CS, 1), ("hwy", 2 * CS, 1),
    ("conv1", 2 * CS, N_MAGS, None),
    ("conv1", N_MAGS, N_MAGS, "relu"),
    ("conv1", N_MAGS, N_MAGS, "relu"),
    ("conv1", N_MAGS, N_MAGS, None),
)


# --------------------------------- kernel ------------------------------------
def _shift(x, delta, t_len):
    """x[t + delta] within each batch element of a batch-flattened (N*T, C)
    activation (row = b*t_len + t), zero-padded at batch boundaries."""
    nt, c = x.shape
    d = abs(delta)
    zeros = jnp.zeros((d, c), x.dtype)
    t = jax.lax.broadcasted_iota(jnp.int32, (nt, 1), 0) % t_len
    if delta < 0:                                   # value at t - d
        shifted = jnp.concatenate([zeros, x[: nt - d, :]], axis=0)
        return jnp.where(t >= d, shifted, 0.0)
    else:                                           # value at t + d
        shifted = jnp.concatenate([x[d:, :], zeros], axis=0)
        return jnp.where(t < t_len - d, shifted, 0.0)


def ssrn_kernel(*refs):
    x_ref, p1_ref, p2_ref = refs[0], refs[1], refs[2]
    param_refs = refs[3:-1]
    out_ref = refs[-1]
    perm_refs = (p1_ref, p2_ref)

    x = x_ref[...]                                  # (N*T0, n_mels) f32
    t_len = T0
    perm_idx = 0
    it = iter(param_refs)

    for layer in LAYERS:
        kind = layer[0]
        if kind == "conv1":
            _, _cin, _cout, act = layer
            w = next(it)[...]
            b = next(it)[...]
            x = jnp.dot(x, w, preferred_element_type=jnp.float32) + b
            if act == "relu":
                x = jnp.maximum(x, 0.0)

        elif kind == "hwy":
            _, c, dil = layer
            w = next(it)[...]                       # (3c, 2c)
            b = next(it)[...]                       # (1, 2c)
            taps = jnp.concatenate(
                [_shift(x, -dil, t_len), x, _shift(x, dil, t_len)], axis=-1)
            lin = jnp.dot(taps, w, preferred_element_type=jnp.float32) + b
            gate = jax.nn.sigmoid(lin[:, :c])
            cand = lin[:, c:]
            x = gate * cand + (1.0 - gate) * x

        else:                                       # "deconv" k=4, s=2, p=1
            _, c = layer
            w_even = next(it)[...]                  # (2c, c) = [W3; W1]
            w_odd = next(it)[...]                   # (2c, c) = [W2; W0]
            b = next(it)[...]                       # (1, c)
            prev1 = _shift(x, -1, t_len)
            next1 = _shift(x, 1, t_len)
            y_even = jnp.dot(jnp.concatenate([prev1, x], axis=-1), w_even,
                             preferred_element_type=jnp.float32) + b
            y_odd = jnp.dot(jnp.concatenate([x, next1], axis=-1), w_odd,
                            preferred_element_type=jnp.float32) + b
            stacked = jnp.concatenate([y_even, y_odd], axis=0)  # (2*N*t, c)
            perm = perm_refs[perm_idx][...]
            perm_idx += 1
            # MXU permutation matmul interleaves even/odd frames -> (N*2t, c)
            x = jnp.dot(perm, stacked, preferred_element_type=jnp.float32)
            t_len *= 2

    out_ref[...] = jax.nn.sigmoid(x).astype(out_ref.dtype)   # (N*Ty, n_mags)


# -------------------------------- wrapper -------------------------------------
def _interleave_perm(n, t):
    """P (2nt, 2nt) such that P @ [y_even; y_odd] (batch-flattened) yields the
    batch-flattened (n, 2t, C) interleaved sequence."""
    r = jnp.arange(2 * n * t)
    b = r // (2 * t)
    p = r % (2 * t)
    src = (p % 2) * (n * t) + b * t + (p // 2)
    return (src[:, None] == jnp.arange(2 * n * t)[None, :]).astype(jnp.float32)


def _full_spec(shape):
    nd = len(shape)
    return pl.BlockSpec(shape, lambda *_, _nd=nd: (0,) * _nd)


def _flatten_params(params):
    flat = []
    for layer, p in zip(LAYERS, params):
        if layer[0] == "deconv":
            w = p["w"]                                        # (4, c, c) taps
            flat += [jnp.concatenate([w[3], w[1]], axis=0),   # even frames
                     jnp.concatenate([w[2], w[0]], axis=0),   # odd frames
                     p["b"]]
        else:
            flat += [p["w"], p["b"]]
    return flat


def _cost_estimate(n):
    flops, trans, t = 0, 0, T0
    for layer in LAYERS:
        if layer[0] == "conv1":
            _, cin, cout, _ = layer
            flops += 2 * n * t * cin * cout
        elif layer[0] == "hwy":
            _, c, _ = layer
            flops += 2 * n * t * (3 * c) * (2 * c)
            trans += n * t * c                         # highway gate sigmoids
        else:
            _, c = layer
            flops += 2 * 2 * n * t * (2 * c) * c       # even + odd matmuls
            flops += 2 * (2 * n * t) * (2 * n * t) * c # interleave matmul
            t *= 2
    trans += n * t * N_MAGS                            # final sigmoid
    return int(flops), int(trans)


def ssrn_forward(Y, params):
    """Y: (N, Ty/r, n_mels)  ->  Z: (N, Ty, n_mags)  with Ty = 4*(Ty/r)."""
    n, t0, _ = Y.shape
    x_flat = Y.reshape(n * t0, N_MELS).astype(jnp.float32)
    p1 = _interleave_perm(n, t0)
    p2 = _interleave_perm(n, 2 * t0)
    inputs = [x_flat, p1, p2] + _flatten_params(params)

    out_rows = n * 4 * t0
    flops, trans = _cost_estimate(n)
    bytes_accessed = int(sum(a.size * a.dtype.itemsize for a in inputs)
                         + out_rows * N_MAGS * 4)

    out = pl.pallas_call(
        ssrn_kernel,
        grid=(1,),
        in_specs=[_full_spec(a.shape) for a in inputs],
        out_specs=_full_spec((out_rows, N_MAGS)),
        out_shape=jax.ShapeDtypeStruct((out_rows, N_MAGS), jnp.float32),
        compiler_params=pltpu.CompilerParams(
            dimension_semantics=("arbitrary",)),
        cost_estimate=pl.CostEstimate(
            flops=flops, transcendentals=trans, bytes_accessed=bytes_accessed),
    )(*inputs)
    return out.reshape(n, 4 * t0, N_MAGS)


# ---------------------------- deterministic init -------------------------------
def init_params(key):
    params = []
    keys = jax.random.split(key, 2 * len(LAYERS))
    for i, layer in enumerate(LAYERS):
        kw, kb = keys[2 * i], keys[2 * i + 1]
        if layer[0] == "conv1":
            _, cin, cout, _ = layer
            w = jax.random.normal(kw, (cin, cout), jnp.float32) / math.sqrt(cin)
            b = 0.02 * jax.random.normal(kb, (1, cout), jnp.float32)
        elif layer[0] == "hwy":
            _, c, _ = layer
            w = jax.random.normal(kw, (3 * c, 2 * c), jnp.float32) / math.sqrt(3 * c)
            b = 0.02 * jax.random.normal(kb, (1, 2 * c), jnp.float32)
        else:                                           # deconv: taps k=0..3
            _, c = layer
            w = jax.random.normal(kw, (4, c, c), jnp.float32) / math.sqrt(2 * c)
            b = 0.02 * jax.random.normal(kb, (1, c), jnp.float32)
        params.append(dict(w=w, b=b))
    return params


# ------------------------------ pure-JAX reference ------------------------------
def _mm(a, b):
    return jnp.matmul(a, b, precision=jax.lax.Precision.HIGHEST)


def ssrn_ref(Y, params):
    x = Y.astype(jnp.float32)                           # (N, T, C) channel-last
    for layer, p in zip(LAYERS, params):
        kind = layer[0]
        if kind == "conv1":
            _, _cin, _cout, act = layer
            x = _mm(x, p["w"]) + p["b"]
            if act == "relu":
                x = jnp.maximum(x, 0.0)
        elif kind == "hwy":
            _, c, dil = layer
            t = x.shape[1]
            xp = jnp.pad(x, ((0, 0), (dil, dil), (0, 0)))
            taps = jnp.concatenate(
                [xp[:, 0:t], xp[:, dil:dil + t], xp[:, 2 * dil:2 * dil + t]],
                axis=-1)
            lin = _mm(taps, p["w"]) + p["b"]
            gate = jax.nn.sigmoid(lin[..., :c])
            x = gate * lin[..., c:] + (1.0 - gate) * x
        else:                                           # ConvTranspose1d k4 s2 p1
            _, c = layer
            nb, t, _ = x.shape
            full = jnp.zeros((nb, 2 * (t - 1) + 4, c), jnp.float32)
            pos = 2 * jnp.arange(t)
            for k in range(4):                          # scatter definition
                full = full.at[:, pos + k, :].add(_mm(x, p["w"][k]))
            x = full[:, 1:-1, :] + p["b"]
    return jax.nn.sigmoid(x)


# ----------------------------------- main ---------------------------------------
if __name__ == "__main__":
    key = jax.random.PRNGKey(0)
    k_param, k_y = jax.random.split(key)

    params = init_params(k_param)
    Y = jax.random.normal(k_y, (N, T0, N_MELS), jnp.float32)   # (N, Ty/r, n_mels)

    Z = ssrn_forward(Y, params)
    Z = jax.block_until_ready(Z)

    Z_ref = ssrn_ref(Y, params)
    assert Z.shape == (N, T_OUT, N_MAGS), Z.shape
    max_err = float(jnp.max(jnp.abs(Z - Z_ref)))
    assert jnp.allclose(Z, Z_ref, atol=5e-3, rtol=5e-3), f"max abs err={max_err}"
    print("KERNEL_OK")
</pallas_src>

<mosaic_0001>
module attributes {stable_mosaic.version = 11 : i64} {
  func.func @ssrn_kernel(%arg0: i32, %arg1: memref<32x16xf32, #tpu.memory_space<vmem>>, %arg2: memref<64x64xf32, #tpu.memory_space<vmem>>, %arg3: memref<128x128xf32, #tpu.memory_space<vmem>>, %arg4: memref<16x64xf32, #tpu.memory_space<vmem>>, %arg5: memref<1x64xf32, #tpu.memory_space<vmem>>, %arg6: memref<192x128xf32, #tpu.memory_space<vmem>>, %arg7: memref<1x128xf32, #tpu.memory_space<vmem>>, %arg8: memref<192x128xf32, #tpu.memory_space<vmem>>, %arg9: memref<1x128xf32, #tpu.memory_space<vmem>>, %arg10: memref<128x64xf32, #tpu.memory_space<vmem>>, %arg11: memref<128x64xf32, #tpu.memory_space<vmem>>, %arg12: memref<1x64xf32, #tpu.memory_space<vmem>>, %arg13: memref<192x128xf32, #tpu.memory_space<vmem>>, %arg14: memref<1x128xf32, #tpu.memory_space<vmem>>, %arg15: memref<192x128xf32, #tpu.memory_space<vmem>>, %arg16: memref<1x128xf32, #tpu.memory_space<vmem>>, %arg17: memref<128x64xf32, #tpu.memory_space<vmem>>, %arg18: memref<128x64xf32, #tpu.memory_space<vmem>>, %arg19: memref<1x64xf32, #tpu.memory_space<vmem>>, %arg20: memref<192x128xf32, #tpu.memory_space<vmem>>, %arg21: memref<1x128xf32, #tpu.memory_space<vmem>>, %arg22: memref<192x128xf32, #tpu.memory_space<vmem>>, %arg23: memref<1x128xf32, #tpu.memory_space<vmem>>, %arg24: memref<64x128xf32, #tpu.memory_space<vmem>>, %arg25: memref<1x128xf32, #tpu.memory_space<vmem>>, %arg26: memref<384x256xf32, #tpu.memory_space<vmem>>, %arg27: memref<1x256xf32, #tpu.memory_space<vmem>>, %arg28: memref<384x256xf32, #tpu.memory_space<vmem>>, %arg29: memref<1x256xf32, #tpu.memory_space<vmem>>, %arg30: memref<128x128xf32, #tpu.memory_space<vmem>>, %arg31: memref<1x128xf32, #tpu.memory_space<vmem>>, %arg32: memref<128x128xf32, #tpu.memory_space<vmem>>, %arg33: memref<1x128xf32, #tpu.memory_space<vmem>>, %arg34: memref<128x128xf32, #tpu.memory_space<vmem>>, %arg35: memref<1x128xf32, #tpu.memory_space<vmem>>, %arg36: memref<128x128xf32, #tpu.memory_space<vmem>>, %arg37: memref<1x128xf32, #tpu.memory_space<vmem>>, %arg38: memref<128x128xf32, #tpu.memory_space<vmem>>) attributes {dimension_semantics = [#tpu.dimension_semantics<arbitrary>], iteration_bounds = array<i64: 1>, scalar_prefetch = 0 : i64, scratch_operands = 0 : i64, tpu.core_type = #tpu.core_type<tc>, window_params = [{pipeline_mode = #tpu.pipeline_mode<synchronous>, transform_indices = @transform_0, window_bounds = array<i64: 32, 16>}, {pipeline_mode = #tpu.pipeline_mode<synchronous>, transform_indices = @transform_1, window_bounds = array<i64: 64, 64>}, {pipeline_mode = #tpu.pipeline_mode<synchronous>, transform_indices = @transform_2, window_bounds = array<i64: 128, 128>}, {pipeline_mode = #tpu.pipeline_mode<synchronous>, transform_indices = @transform_3, window_bounds = array<i64: 16, 64>}, {pipeline_mode = #tpu.pipeline_mode<synchronous>, transform_indices = @transform_4, window_bounds = array<i64: 1, 64>}, {pipeline_mode = #tpu.pipeline_mode<synchronous>, transform_indices = @transform_5, window_bounds = array<i64: 192, 128>}, {pipeline_mode = #tpu.pipeline_mode<synchronous>, transform_indices = @transform_6, window_bounds = array<i64: 1, 128>}, {pipeline_mode = #tpu.pipeline_mode<synchronous>, transform_indices = @transform_7, window_bounds = array<i64: 192, 128>}, {pipeline_mode = #tpu.pipeline_mode<synchronous>, transform_indices = @transform_8, window_bounds = array<i64: 1, 128>}, {pipeline_mode = #tpu.pipeline_mode<synchronous>, transform_indices = @transform_9, window_bounds = array<i64: 128, 64>}, {pipeline_mode = #tpu.pipeline_mode<synchronous>, transform_indices = @transform_10, window_bounds = array<i64: 128, 64>}, {pipeline_mode = #tpu.pipeline_mode<synchronous>, transform_indices = @transform_11, window_bounds = array<i64: 1, 64>}, {pipeline_mode = #tpu.pipeline_mode<synchronous>, transform_indices = @transform_12, window_bounds = array<i64: 192, 128>}, {pipeline_mode = #tpu.pipeline_mode<synchronous>, transform_indices = @transform_13, window_bounds = array<i64: 1, 128>}, {pipeline_mode = #tpu.pipeline_mode<synchronous>, transform_indices = @transform_14, window_bounds = array<i64: 192, 128>}, {pipeline_mode = #tpu.pipeline_mode<synchronous>, transform_indices = @transform_15, window_bounds = array<i64: 1, 128>}, {pipeline_mode = #tpu.pipeline_mode<synchronous>, transform_indices = @transform_16, window_bounds = array<i64: 128, 64>}, {pipeline_mode = #tpu.pipeline_mode<synchronous>, transform_indices = @transform_17, window_bounds = array<i64: 128, 64>}, {pipeline_mode = #tpu.pipeline_mode<synchronous>, transform_indices = @transform_18, window_bounds = array<i64: 1, 64>}, {pipeline_mode = #tpu.pipeline_mode<synchronous>, transform_indices = @transform_19, window_bounds = array<i64: 192, 128>}, {pipeline_mode = #tpu.pipeline_mode<synchronous>, transform_indices = @transform_20, window_bounds = array<i64: 1, 128>}, {pipeline_mode = #tpu.pipeline_mode<synchronous>, transform_indices = @transform_21, window_bounds = array<i64: 192, 128>}, {pipeline_mode = #tpu.pipeline_mode<synchronous>, transform_indices = @transform_22, window_bounds = array<i64: 1, 128>}, {pipeline_mode = #tpu.pipeline_mode<synchronous>, transform_indices = @transform_23, window_bounds = array<i64: 64, 128>}, {pipeline_mode = #tpu.pipeline_mode<synchronous>, transform_indices = @transform_24, window_bounds = array<i64: 1, 128>}, {pipeline_mode = #tpu.pipeline_mode<synchronous>, transform_indices = @transform_25, window_bounds = array<i64: 384, 256>}, {pipeline_mode = #tpu.pipeline_mode<synchronous>, transform_indices = @transform_26, window_bounds = array<i64: 1, 256>}, {pipeline_mode = #tpu.pipeline_mode<synchronous>, transform_indices = @transform_27, window_bounds = array<i64: 384, 256>}, {pipeline_mode = #tpu.pipeline_mode<synchronous>, transform_indices = @transform_28, window_bounds = array<i64: 1, 256>}, {pipeline_mode = #tpu.pipeline_mode<synchronous>, transform_indices = @transform_29, window_bounds = array<i64: 128, 128>}, {pipeline_mode = #tpu.pipeline_mode<synchronous>, transform_indices = @transform_30, window_bounds = array<i64: 1, 128>}, {pipeline_mode = #tpu.pipeline_mode<synchronous>, transform_indices = @transform_31, window_bounds = array<i64: 128, 128>}, {pipeline_mode = #tpu.pipeline_mode<synchronous>, transform_indices = @transform_32, window_bounds = array<i64: 1, 128>}, {pipeline_mode = #tpu.pipeline_mode<synchronous>, transform_indices = @transform_33, window_bounds = array<i64: 128, 128>}, {pipeline_mode = #tpu.pipeline_mode<synchronous>, transform_indices = @transform_34, window_bounds = array<i64: 1, 128>}, {pipeline_mode = #tpu.pipeline_mode<synchronous>, transform_indices = @transform_35, window_bounds = array<i64: 128, 128>}, {pipeline_mode = #tpu.pipeline_mode<synchronous>, transform_indices = @transform_36, window_bounds = array<i64: 1, 128>}, {pipeline_mode = #tpu.pipeline_mode<synchronous>, transform_indices = @transform_37, window_bounds = array<i64: 128, 128>}]} {
    %c0 = arith.constant 0 : index
    %c0_0 = arith.constant 0 : index
    %0 = vector.load %arg1[%c0, %c0_0] : memref<32x16xf32, #tpu.memory_space<vmem>>, vector<32x16xf32>
    %c0_1 = arith.constant 0 : index
    %c0_2 = arith.constant 0 : index
    %1 = vector.load %arg4[%c0_1, %c0_2] : memref<16x64xf32, #tpu.memory_space<vmem>>, vector<16x64xf32>
    %c0_3 = arith.constant 0 : index
    %c0_4 = arith.constant 0 : index
    %2 = vector.load %arg5[%c0_3, %c0_4] : memref<1x64xf32, #tpu.memory_space<vmem>>, vector<1x64xf32>
    %cst = arith.constant dense<0.000000e+00> : vector<32x64xf32>
    %3 = tpu.matmul %0, %1, %cst {dimension_numbers = #tpu.dot_dimension_numbers<[1], [0], [0], [1], [0, 0, 1, 1], [], []>} : vector<32x16xf32>, vector<16x64xf32>, vector<32x64xf32> -> vector<32x64xf32>
    %4 = vector.broadcast %2 : vector<1x64xf32> to vector<32x64xf32>
    %5 = arith.addf %3, %4 : vector<32x64xf32>
    %cst_5 = arith.constant 0.000000e+00 : f32
    %6 = vector.broadcast %cst_5 : f32 to vector<32x64xf32>
    %7 = arith.maximumf %5, %6 : vector<32x64xf32>
    %c0_6 = arith.constant 0 : index
    %c0_7 = arith.constant 0 : index
    %8 = vector.load %arg6[%c0_6, %c0_7] : memref<192x128xf32, #tpu.memory_space<vmem>>, vector<192x128xf32>
    %c0_8 = arith.constant 0 : index
    %c0_9 = arith.constant 0 : index
    %9 = vector.load %arg7[%c0_8, %c0_9] : memref<1x128xf32, #tpu.memory_space<vmem>>, vector<1x128xf32>
    %cst_10 = arith.constant 0.000000e+00 : f32
    %10 = vector.broadcast %cst_10 : f32 to vector<1x64xf32>
    %11 = tpu.iota {dimensions = array<i32: 0>} : vector<32x1xi32>
    %c16_i32 = arith.constant 16 : i32
    %c0_i32 = arith.constant 0 : i32
    %12 = arith.cmpi eq, %c16_i32, %c0_i32 : i32
    %c1_i32 = arith.constant 1 : i32
    %13 = arith.select %12, %c1_i32, %c16_i32 : i32
    %14 = vector.broadcast %13 : i32 to vector<32x1xi32>
    %15 = arith.remsi %11, %14 : vector<32x1xi32>
    %c0_i32_11 = arith.constant 0 : i32
    %16 = vector.broadcast %c0_i32_11 : i32 to vector<32x1xi32>
    %17 = arith.cmpi ne, %15, %16 : vector<32x1xi32>
    %c0_i32_12 = arith.constant 0 : i32
    %18 = vector.broadcast %c0_i32_12 : i32 to vector<32x1xi32>
    %19 = arith.cmpi slt, %15, %18 : vector<32x1xi32>
    %c0_i32_13 = arith.constant 0 : i32
    %20 = arith.cmpi slt, %13, %c0_i32_13 : i32
    %21 = vector.broadcast %20 : i1 to vector<32x1xi1>
    %22 = vector.broadcast %21 : vector<32x1xi1> to vector<32x1xi1>
    %23 = arith.xori %19, %22 : vector<32x1xi1>
    %24 = arith.andi %23, %17 : vector<32x1xi1>
    %25 = vector.broadcast %13 : i32 to vector<32x1xi32>
    %26 = arith.addi %15, %25 : vector<32x1xi32>
    %27 = arith.select %24, %26, %15 : vector<32x1xi1>, vector<32x1xi32>
    %28 = vector.extract_strided_slice %7 {offsets = [0, 0], sizes = [31, 64], strides = [1, 1]} : vector<32x64xf32> to vector<31x64xf32>
    %29 = tpu.concatenate %10, %28 in 0 : vector<1x64xf32>, vector<31x64xf32> -> vector<32x64xf32>
    %c1_i32_14 = arith.constant 1 : i32
    %30 = vector.broadcast %c1_i32_14 : i32 to vector<32x1xi32>
    %31 = arith.cmpi sge, %27, %30 : vector<32x1xi32>
    %cst_15 = arith.constant 0.000000e+00 : f32
    %32 = vector.shape_cast %31 : vector<32x1xi1> to vector<32x1xi1>
    %33 = vector.broadcast %32 : vector<32x1xi1> to vector<32x64xi1>
    %34 = vector.broadcast %cst_15 : f32 to vector<32x64xf32>
    %35 = arith.select %33, %29, %34 : vector<32x64xi1>, vector<32x64xf32>
    %cst_16 = arith.constant 0.000000e+00 : f32
    %36 = vector.broadcast %cst_16 : f32 to vector<1x64xf32>
    %37 = tpu.iota {dimensions = array<i32: 0>} : vector<32x1xi32>
    %c16_i32_17 = arith.constant 16 : i32
    %c0_i32_18 = arith.constant 0 : i32
    %38 = arith.cmpi eq, %c16_i32_17, %c0_i32_18 : i32
    %c1_i32_19 = arith.constant 1 : i32
    %39 = arith.select %38, %c1_i32_19, %c16_i32_17 : i32
    %40 = vector.broadcast %39 : i32 to vector<32x1xi32>
    %41 = arith.remsi %37, %40 : vector<32x1xi32>
    %c0_i32_20 = arith.constant 0 : i32
    %42 = vector.broadcast %c0_i32_20 : i32 to vector<32x1xi32>
    %43 = arith.cmpi ne, %41, %42 : vector<32x1xi32>
    %c0_i32_21 = arith.constant 0 : i32
    %44 = vector.broadcast %c0_i32_21 : i32 to vector<32x1xi32>
    %45 = arith.cmpi slt, %41, %44 : vector<32x1xi32>
    %c0_i32_22 = arith.constant 0 : i32
    %46 = arith.cmpi slt, %39, %c0_i32_22 : i32
    %47 = vector.broadcast %46 : i1 to vector<32x1xi1>
    %48 = vector.broadcast %47 : vector<32x1xi1> to vector<32x1xi1>
    %49 = arith.xori %45, %48 : vector<32x1xi1>
    %50 = arith.andi %49, %43 : vector<32x1xi1>
    %51 = vector.broadcast %39 : i32 to vector<32x1xi32>
    %52 = arith.addi %41, %51 : vector<32x1xi32>
    %53 = arith.select %50, %52, %41 : vector<32x1xi1>, vector<32x1xi32>
    %54 = vector.extract_strided_slice %7 {offsets = [1, 0], sizes = [31, 64], strides = [1, 1]} : vector<32x64xf32> to vector<31x64xf32>
    %55 = tpu.concatenate %54, %36 in 0 : vector<31x64xf32>, vector<1x64xf32> -> vector<32x64xf32>
    %c15_i32 = arith.constant 15 : i32
    %56 = vector.broadcast %c15_i32 : i32 to vector<32x1xi32>
    %57 = arith.cmpi slt, %53, %56 : vector<32x1xi32>
    %cst_23 = arith.constant 0.000000e+00 : f32
    %58 = vector.shape_cast %57 : vector<32x1xi1> to vector<32x1xi1>
    %59 = vector.broadcast %58 : vector<32x1xi1> to vector<32x64xi1>
    %60 = vector.broadcast %cst_23 : f32 to vector<32x64xf32>
    %61 = arith.select %59, %55, %60 : vector<32x64xi1>, vector<32x64xf32>
    %62 = tpu.concatenate %35, %7, %61 in 1 : vector<32x64xf32>, vector<32x64xf32>, vector<32x64xf32> -> vector<32x192xf32>
    %cst_24 = arith.constant dense<0.000000e+00> : vector<32x128xf32>
    %63 = tpu.matmul %62, %8, %cst_24 {dimension_numbers = #tpu.dot_dimension_numbers<[1], [0], [0], [1], [0, 0, 1, 1], [], []>} : vector<32x192xf32>, vector<192x128xf32>, vector<32x128xf32> -> vector<32x128xf32>
    %64 = vector.broadcast %9 : vector<1x128xf32> to vector<32x128xf32>
    %65 = arith.addf %63, %64 : vector<32x128xf32>
    %66 = vector.extract_strided_slice %65 {offsets = [0, 0], sizes = [32, 64], strides = [1, 1]} : vector<32x128xf32> to vector<32x64xf32>
    %67 = arith.negf %66 : vector<32x64xf32>
    %68 = math.exp %67 : vector<32x64xf32>
    %cst_25 = arith.constant 1.000000e+00 : f32
    %69 = vector.broadcast %cst_25 : f32 to vector<32x64xf32>
    %70 = arith.addf %69, %68 : vector<32x64xf32>
    %71 = arith.divf %69, %70 : vector<32x64xf32>
    %72 = vector.extract_strided_slice %65 {offsets = [0, 64], sizes = [32, 64], strides = [1, 1]} : vector<32x128xf32> to vector<32x64xf32>
    %73 = arith.mulf %71, %72 : vector<32x64xf32>
    %cst_26 = arith.constant 1.000000e+00 : f32
    %74 = vector.broadcast %cst_26 : f32 to vector<32x64xf32>
    %75 = arith.subf %74, %71 : vector<32x64xf32>
    %76 = arith.mulf %75, %7 : vector<32x64xf32>
    %77 = arith.addf %73, %76 : vector<32x64xf32>
    %c0_27 = arith.constant 0 : index
    %c0_28 = arith.constant 0 : index
    %78 = vector.load %arg8[%c0_27, %c0_28] : memref<192x128xf32, #tpu.memory_space<vmem>>, vector<192x128xf32>
    %c0_29 = arith.constant 0 : index
    %c0_30 = arith.constant 0 : index
    %79 = vector.load %arg9[%c0_29, %c0_30] : memref<1x128xf32, #tpu.memory_space<vmem>>, vector<1x128xf32>
    %cst_31 = arith.constant 0.000000e+00 : f32
    %80 = vector.broadcast %cst_31 : f32 to vector<3x64xf32>
    %81 = tpu.iota {dimensions = array<i32: 0>} : vector<32x1xi32>
    %c16_i32_32 = arith.constant 16 : i32
    %c0_i32_33 = arith.constant 0 : i32
    %82 = arith.cmpi eq, %c16_i32_32, %c0_i32_33 : i32
    %c1_i32_34 = arith.constant 1 : i32
    %83 = arith.select %82, %c1_i32_34, %c16_i32_32 : i32
    %84 = vector.broadcast %83 : i32 to vector<32x1xi32>
    %85 = arith.remsi %81, %84 : vector<32x1xi32>
    %c0_i32_35 = arith.constant 0 : i32
    %86 = vector.broadcast %c0_i32_35 : i32 to vector<32x1xi32>
    %87 = arith.cmpi ne, %85, %86 : vector<32x1xi32>
    %c0_i32_36 = arith.constant 0 : i32
    %88 = vector.broadcast %c0_i32_36 : i32 to vector<32x1xi32>
    %89 = arith.cmpi slt, %85, %88 : vector<32x1xi32>
    %c0_i32_37 = arith.constant 0 : i32
    %90 = arith.cmpi slt, %83, %c0_i32_37 : i32
    %91 = vector.broadcast %90 : i1 to vector<32x1xi1>
    %92 = vector.broadcast %91 : vector<32x1xi1> to vector<32x1xi1>
    %93 = arith.xori %89, %92 : vector<32x1xi1>
    %94 = arith.andi %93, %87 : vector<32x1xi1>
    %95 = vector.broadcast %83 : i32 to vector<32x1xi32>
    %96 = arith.addi %85, %95 : vector<32x1xi32>
    %97 = arith.select %94, %96, %85 : vector<32x1xi1>, vector<32x1xi32>
    %98 = vector.extract_strided_slice %77 {offsets = [0, 0], sizes = [29, 64], strides = [1, 1]} : vector<32x64xf32> to vector<29x64xf32>
    %99 = tpu.concatenate %80, %98 in 0 : vector<3x64xf32>, vector<29x64xf32> -> vector<32x64xf32>
    %c3_i32 = arith.constant 3 : i32
    %100 = vector.broadcast %c3_i32 : i32 to vector<32x1xi32>
    %101 = arith.cmpi sge, %97, %100 : vector<32x1xi32>
    %cst_38 = arith.constant 0.000000e+00 : f32
    %102 = vector.shape_cast %101 : vector<32x1xi1> to vector<32x1xi1>
    %103 = vector.broadcast %102 : vector<32x1xi1> to vector<32x64xi1>
    %104 = vector.broadcast %cst_38 : f32 to vector<32x64xf32>
    %105 = arith.select %103, %99, %104 : vector<32x64xi1>, vector<32x64xf32>
    %cst_39 = arith.constant 0.000000e+00 : f32
    %106 = vector.broadcast %cst_39 : f32 to vector<3x64xf32>
    %107 = tpu.iota {dimensions = array<i32: 0>} : vector<32x1xi32>
    %c16_i32_40 = arith.constant 16 : i32
    %c0_i32_41 = arith.constant 0 : i32
    %108 = arith.cmpi eq, %c16_i32_40, %c0_i32_41 : i32
    %c1_i32_42 = arith.constant 1 : i32
    %109 = arith.select %108, %c1_i32_42, %c16_i32_40 : i32
    %110 = vector.broadcast %109 : i32 to vector<32x1xi32>
    %111 = arith.remsi %107, %110 : vector<32x1xi32>
    %c0_i32_43 = arith.constant 0 : i32
    %112 = vector.broadcast %c0_i32_43 : i32 to vector<32x1xi32>
    %113 = arith.cmpi ne, %111, %112 : vector<32x1xi32>
    %c0_i32_44 = arith.constant 0 : i32
    %114 = vector.broadcast %c0_i32_44 : i32 to vector<32x1xi32>
    %115 = arith.cmpi slt, %111, %114 : vector<32x1xi32>
    %c0_i32_45 = arith.constant 0 : i32
    %116 = arith.cmpi slt, %109, %c0_i32_45 : i32
    %117 = vector.broadcast %116 : i1 to vector<32x1xi1>
    %118 = vector.broadcast %117 : vector<32x1xi1> to vector<32x1xi1>
    %119 = arith.xori %115, %118 : vector<32x1xi1>
    %120 = arith.andi %119, %113 : vector<32x1xi1>
    %121 = vector.broadcast %109 : i32 to vector<32x1xi32>
    %122 = arith.addi %111, %121 : vector<32x1xi32>
    %123 = arith.select %120, %122, %111 : vector<32x1xi1>, vector<32x1xi32>
    %124 = vector.extract_strided_slice %77 {offsets = [3, 0], sizes = [29, 64], strides = [1, 1]} : vector<32x64xf32> to vector<29x64xf32>
    %125 = tpu.concatenate %124, %106 in 0 : vector<29x64xf32>, vector<3x64xf32> -> vector<32x64xf32>
    %c13_i32 = arith.constant 13 : i32
    %126 = vector.broadcast %c13_i32 : i32 to vector<32x1xi32>
    %127 = arith.cmpi slt, %123, %126 : vector<32x1xi32>
    %cst_46 = arith.constant 0.000000e+00 : f32
    %128 = vector.shape_cast %127 : vector<32x1xi1> to vector<32x1xi1>
    %129 = vector.broadcast %128 : vector<32x1xi1> to vector<32x64xi1>
    %130 = vector.broadcast %cst_46 : f32 to vector<32x64xf32>
    %131 = arith.select %129, %125, %130 : vector<32x64xi1>, vector<32x64xf32>
    %132 = tpu.concatenate %105, %77, %131 in 1 : vector<32x64xf32>, vector<32x64xf32>, vector<32x64xf32> -> vector<32x192xf32>
    %cst_47 = arith.constant dense<0.000000e+00> : vector<32x128xf32>
    %133 = tpu.matmul %132, %78, %cst_47 {dimension_numbers = #tpu.dot_dimension_numbers<[1], [0], [0], [1], [0, 0, 1, 1], [], []>} : vector<32x192xf32>, vector<192x128xf32>, vector<32x128xf32> -> vector<32x128xf32>
    %134 = vector.broadcast %79 : vector<1x128xf32> to vector<32x128xf32>
    %135 = arith.addf %133, %134 : vector<32x128xf32>
    %136 = vector.extract_strided_slice %135 {offsets = [0, 0], sizes = [32, 64], strides = [1, 1]} : vector<32x128xf32> to vector<32x64xf32>
    %137 = arith.negf %136 : vector<32x64xf32>
    %138 = math.exp %137 : vector<32x64xf32>
    %cst_48 = arith.constant 1.000000e+00 : f32
    %139 = vector.broadcast %cst_48 : f32 to vector<32x64xf32>
    %140 = arith.addf %139, %138 : vector<32x64xf32>
    %141 = arith.divf %139, %140 : vector<32x64xf32>
    %142 = vector.extract_strided_slice %135 {offsets = [0, 64], sizes = [32, 64], strides = [1, 1]} : vector<32x128xf32> to vector<32x64xf32>
    %143 = arith.mulf %141, %142 : vector<32x64xf32>
    %cst_49 = arith.constant 1.000000e+00 : f32
    %144 = vector.broadcast %cst_49 : f32 to vector<32x64xf32>
    %145 = arith.subf %144, %141 : vector<32x64xf32>
    %146 = arith.mulf %145, %77 : vector<32x64xf32>
    %147 = arith.addf %143, %146 : vector<32x64xf32>
    %c0_50 = arith.constant 0 : index
    %c0_51 = arith.constant 0 : index
    %148 = vector.load %arg10[%c0_50, %c0_51] : memref<128x64xf32, #tpu.memory_space<vmem>>, vector<128x64xf32>
    %c0_52 = arith.constant 0 : index
    %c0_53 = arith.constant 0 : index
    %149 = vector.load %arg11[%c0_52, %c0_53] : memref<128x64xf32, #tpu.memory_space<vmem>>, vector<128x64xf32>
    %c0_54 = arith.constant 0 : index
    %c0_55 = arith.constant 0 : index
    %150 = vector.load %arg12[%c0_54, %c0_55] : memref<1x64xf32, #tpu.memory_space<vmem>>, vector<1x64xf32>
    %cst_56 = arith.constant 0.000000e+00 : f32
    %151 = vector.broadcast %cst_56 : f32 to vector<1x64xf32>
    %152 = tpu.iota {dimensions = array<i32: 0>} : vector<32x1xi32>
    %c16_i32_57 = arith.constant 16 : i32
    %c0_i32_58 = arith.constant 0 : i32
    %153 = arith.cmpi eq, %c16_i32_57, %c0_i32_58 : i32
    %c1_i32_59 = arith.constant 1 : i32
    %154 = arith.select %153, %c1_i32_59, %c16_i32_57 : i32
    %155 = vector.broadcast %154 : i32 to vector<32x1xi32>
    %156 = arith.remsi %152, %155 : vector<32x1xi32>
    %c0_i32_60 = arith.constant 0 : i32
    %157 = vector.broadcast %c0_i32_60 : i32 to vector<32x1xi32>
    %158 = arith.cmpi ne, %156, %157 : vector<32x1xi32>
    %c0_i32_61 = arith.constant 0 : i32
    %159 = vector.broadcast %c0_i32_61 : i32 to vector<32x1xi32>
    %160 = arith.cmpi slt, %156, %159 : vector<32x1xi32>
    %c0_i32_62 = arith.constant 0 : i32
    %161 = arith.cmpi slt, %154, %c0_i32_62 : i32
    %162 = vector.broadcast %161 : i1 to vector<32x1xi1>
    %163 = vector.broadcast %162 : vector<32x1xi1> to vector<32x1xi1>
    %164 = arith.xori %160, %163 : vector<32x1xi1>
    %165 = arith.andi %164, %158 : vector<32x1xi1>
    %166 = vector.broadcast %154 : i32 to vector<32x1xi32>
    %167 = arith.addi %156, %166 : vector<32x1xi32>
    %168 = arith.select %165, %167, %156 : vector<32x1xi1>, vector<32x1xi32>
    %169 = vector.extract_strided_slice %147 {offsets = [0, 0], sizes = [31, 64], strides = [1, 1]} : vector<32x64xf32> to vector<31x64xf32>
    %170 = tpu.concatenate %151, %169 in 0 : vector<1x64xf32>, vector<31x64xf32> -> vector<32x64xf32>
    %c1_i32_63 = arith.constant 1 : i32
    %171 = vector.broadcast %c1_i32_63 : i32 to vector<32x1xi32>
    %172 = arith.cmpi sge, %168, %171 : vector<32x1xi32>
    %cst_64 = arith.constant 0.000000e+00 : f32
    %173 = vector.shape_cast %172 : vector<32x1xi1> to vector<32x1xi1>
    %174 = vector.broadcast %173 : vector<32x1xi1> to vector<32x64xi1>
    %175 = vector.broadcast %cst_64 : f32 to vector<32x64xf32>
    %176 = arith.select %174, %170, %175 : vector<32x64xi1>, vector<32x64xf32>
    %cst_65 = arith.constant 0.000000e+00 : f32
    %177 = vector.broadcast %cst_65 : f32 to vector<1x64xf32>
    %178 = tpu.iota {dimensions = array<i32: 0>} : vector<32x1xi32>
    %c16_i32_66 = arith.constant 16 : i32
    %c0_i32_67 = arith.constant 0 : i32
    %179 = arith.cmpi eq, %c16_i32_66, %c0_i32_67 : i32
    %c1_i32_68 = arith.constant 1 : i32
    %180 = arith.select %179, %c1_i32_68, %c16_i32_66 : i32
    %181 = vector.broadcast %180 : i32 to vector<32x1xi32>
    %182 = arith.remsi %178, %181 : vector<32x1xi32>
    %c0_i32_69 = arith.constant 0 : i32
    %183 = vector.broadcast %c0_i32_69 : i32 to vector<32x1xi32>
    %184 = arith.cmpi ne, %182, %183 : vector<32x1xi32>
    %c0_i32_70 = arith.constant 0 : i32
    %185 = vector.broadcast %c0_i32_70 : i32 to vector<32x1xi32>
    %186 = arith.cmpi slt, %182, %185 : vector<32x1xi32>
    %c0_i32_71 = arith.constant 0 : i32
    %187 = arith.cmpi slt, %180, %c0_i32_71 : i32
    %188 = vector.broadcast %187 : i1 to vector<32x1xi1>
    %189 = vector.broadcast %188 : vector<32x1xi1> to vector<32x1xi1>
    %190 = arith.xori %186, %189 : vector<32x1xi1>
    %191 = arith.andi %190, %184 : vector<32x1xi1>
    %192 = vector.broadcast %180 : i32 to vector<32x1xi32>
    %193 = arith.addi %182, %192 : vector<32x1xi32>
    %194 = arith.select %191, %193, %182 : vector<32x1xi1>, vector<32x1xi32>
    %195 = vector.extract_strided_slice %147 {offsets = [1, 0], sizes = [31, 64], strides = [1, 1]} : vector<32x64xf32> to vector<31x64xf32>
    %196 = tpu.concatenate %195, %177 in 0 : vector<31x64xf32>, vector<1x64xf32> -> vector<32x64xf32>
    %c15_i32_72 = arith.constant 15 : i32
    %197 = vector.broadcast %c15_i32_72 : i32 to vector<32x1xi32>
    %198 = arith.cmpi slt, %194, %197 : vector<32x1xi32>
    %cst_73 = arith.constant 0.000000e+00 : f32
    %199 = vector.shape_cast %198 : vector<32x1xi1> to vector<32x1xi1>
    %200 = vector.broadcast %199 : vector<32x1xi1> to vector<32x64xi1>
    %201 = vector.broadcast %cst_73 : f32 to vector<32x64xf32>
    %202 = arith.select %200, %196, %201 : vector<32x64xi1>, vector<32x64xf32>
    %203 = tpu.concatenate %176, %147 in 1 : vector<32x64xf32>, vector<32x64xf32> -> vector<32x128xf32>
    %cst_74 = arith.constant dense<0.000000e+00> : vector<32x64xf32>
    %204 = tpu.matmul %203, %148, %cst_74 {dimension_numbers = #tpu.dot_dimension_numbers<[1], [0], [0], [1], [0, 0, 1, 1], [], []>} : vector<32x128xf32>, vector<128x64xf32>, vector<32x64xf32> -> vector<32x64xf32>
    %205 = vector.broadcast %150 : vector<1x64xf32> to vector<32x64xf32>
    %206 = arith.addf %204, %205 : vector<32x64xf32>
    %207 = tpu.concatenate %147, %202 in 1 : vector<32x64xf32>, vector<32x64xf32> -> vector<32x128xf32>
    %cst_75 = arith.constant dense<0.000000e+00> : vector<32x64xf32>
    %208 = tpu.matmul %207, %149, %cst_75 {dimension_numbers = #tpu.dot_dimension_numbers<[1], [0], [0], [1], [0, 0, 1, 1], [], []>} : vector<32x128xf32>, vector<128x64xf32>, vector<32x64xf32> -> vector<32x64xf32>
    %209 = vector.broadcast %150 : vector<1x64xf32> to vector<32x64xf32>
    %210 = arith.addf %208, %209 : vector<32x64xf32>
    %211 = tpu.concatenate %206, %210 in 0 : vector<32x64xf32>, vector<32x64xf32> -> vector<64x64xf32>
    %c0_76 = arith.constant 0 : index
    %c0_77 = arith.constant 0 : index
    %212 = vector.load %arg2[%c0_76, %c0_77] : memref<64x64xf32, #tpu.memory_space<vmem>>, vector<64x64xf32>
    %cst_78 = arith.constant dense<0.000000e+00> : vector<64x64xf32>
    %213 = tpu.matmul %212, %211, %cst_78 {dimension_numbers = #tpu.dot_dimension_numbers<[1], [0], [0], [1], [0, 0, 1, 1], [], []>} : vector<64x64xf32>, vector<64x64xf32>, vector<64x64xf32> -> vector<64x64xf32>
    %c0_79 = arith.constant 0 : index
    %c0_80 = arith.constant 0 : index
    %214 = vector.load %arg13[%c0_79, %c0_80] : memref<192x128xf32, #tpu.memory_space<vmem>>, vector<192x128xf32>
    %c0_81 = arith.constant 0 : index
    %c0_82 = arith.constant 0 : index
    %215 = vector.load %arg14[%c0_81, %c0_82] : memref<1x128xf32, #tpu.memory_space<vmem>>, vector<1x128xf32>
    %cst_83 = arith.constant 0.000000e+00 : f32
    %216 = vector.broadcast %cst_83 : f32 to vector<1x64xf32>
    %217 = tpu.iota {dimensions = array<i32: 0>} : vector<64x1xi32>
    %c32_i32 = arith.constant 32 : i32
    %c0_i32_84 = arith.constant 0 : i32
    %218 = arith.cmpi eq, %c32_i32, %c0_i32_84 : i32
    %c1_i32_85 = arith.constant 1 : i32
    %219 = arith.select %218, %c1_i32_85, %c32_i32 : i32
    %220 = vector.broadcast %219 : i32 to vector<64x1xi32>
    %221 = arith.remsi %217, %220 : vector<64x1xi32>
    %c0_i32_86 = arith.constant 0 : i32
    %222 = vector.broadcast %c0_i32_86 : i32 to vector<64x1xi32>
    %223 = arith.cmpi ne, %221, %222 : vector<64x1xi32>
    %c0_i32_87 = arith.constant 0 : i32
    %224 = vector.broadcast %c0_i32_87 : i32 to vector<64x1xi32>
    %225 = arith.cmpi slt, %221, %224 : vector<64x1xi32>
    %c0_i32_88 = arith.constant 0 : i32
    %226 = arith.cmpi slt, %219, %c0_i32_88 : i32
    %227 = vector.broadcast %226 : i1 to vector<64x1xi1>
    %228 = vector.broadcast %227 : vector<64x1xi1> to vector<64x1xi1>
    %229 = arith.xori %225, %228 : vector<64x1xi1>
    %230 = arith.andi %229, %223 : vector<64x1xi1>
    %231 = vector.broadcast %219 : i32 to vector<64x1xi32>
    %232 = arith.addi %221, %231 : vector<64x1xi32>
    %233 = arith.select %230, %232, %221 : vector<64x1xi1>, vector<64x1xi32>
    %234 = vector.extract_strided_slice %213 {offsets = [0, 0], sizes = [63, 64], strides = [1, 1]} : vector<64x64xf32> to vector<63x64xf32>
    %235 = tpu.concatenate %216, %234 in 0 : vector<1x64xf32>, vector<63x64xf32> -> vector<64x64xf32>
    %c1_i32_89 = arith.constant 1 : i32
    %236 = vector.broadcast %c1_i32_89 : i32 to vector<64x1xi32>
    %237 = arith.cmpi sge, %233, %236 : vector<64x1xi32>
    %cst_90 = arith.constant 0.000000e+00 : f32
    %238 = vector.shape_cast %237 : vector<64x1xi1> to vector<64x1xi1>
    %239 = vector.broadcast %238 : vector<64x1xi1> to vector<64x64xi1>
    %240 = vector.broadcast %cst_90 : f32 to vector<64x64xf32>
    %241 = arith.select %239, %235, %240 : vector<64x64xi1>, vector<64x64xf32>
    %cst_91 = arith.constant 0.000000e+00 : f32
    %242 = vector.broadcast %cst_91 : f32 to vector<1x64xf32>
    %243 = tpu.iota {dimensions = array<i32: 0>} : vector<64x1xi32>
    %c32_i32_92 = arith.constant 32 : i32
    %c0_i32_93 = arith.constant 0 : i32
    %244 = arith.cmpi eq, %c32_i32_92, %c0_i32_93 : i32
    %c1_i32_94 = arith.constant 1 : i32
    %245 = arith.select %244, %c1_i32_94, %c32_i32_92 : i32
    %246 = vector.broadcast %245 : i32 to vector<64x1xi32>
    %247 = arith.remsi %243, %246 : vector<64x1xi32>
    %c0_i32_95 = arith.constant 0 : i32
    %248 = vector.broadcast %c0_i32_95 : i32 to vector<64x1xi32>
    %249 = arith.cmpi ne, %247, %248 : vector<64x1xi32>
    %c0_i32_96 = arith.constant 0 : i32
    %250 = vector.broadcast %c0_i32_96 : i32 to vector<64x1xi32>
    %251 = arith.cmpi slt, %247, %250 : vector<64x1xi32>
    %c0_i32_97 = arith.constant 0 : i32
    %252 = arith.cmpi slt, %245, %c0_i32_97 : i32
    %253 = vector.broadcast %252 : i1 to vector<64x1xi1>
    %254 = vector.broadcast %253 : vector<64x1xi1> to vector<64x1xi1>
    %255 = arith.xori %251, %254 : vector<64x1xi1>
    %256 = arith.andi %255, %249 : vector<64x1xi1>
    %257 = vector.broadcast %245 : i32 to vector<64x1xi32>
    %258 = arith.addi %247, %257 : vector<64x1xi32>
    %259 = arith.select %256, %258, %247 : vector<64x1xi1>, vector<64x1xi32>
    %260 = vector.extract_strided_slice %213 {offsets = [1, 0], sizes = [63, 64], strides = [1, 1]} : vector<64x64xf32> to vector<63x64xf32>
    %261 = tpu.concatenate %260, %242 in 0 : vector<63x64xf32>, vector<1x64xf32> -> vector<64x64xf32>
    %c31_i32 = arith.constant 31 : i32
    %262 = vector.broadcast %c31_i32 : i32 to vector<64x1xi32>
    %263 = arith.cmpi slt, %259, %262 : vector<64x1xi32>
    %cst_98 = arith.constant 0.000000e+00 : f32
    %264 = vector.shape_cast %263 : vector<64x1xi1> to vector<64x1xi1>
    %265 = vector.broadcast %264 : vector<64x1xi1> to vector<64x64xi1>
    %266 = vector.broadcast %cst_98 : f32 to vector<64x64xf32>
    %267 = arith.select %265, %261, %266 : vector<64x64xi1>, vector<64x64xf32>
    %268 = tpu.concatenate %241, %213, %267 in 1 : vector<64x64xf32>, vector<64x64xf32>, vector<64x64xf32> -> vector<64x192xf32>
    %cst_99 = arith.constant dense<0.000000e+00> : vector<64x128xf32>
    %269 = tpu.matmul %268, %214, %cst_99 {dimension_numbers = #tpu.dot_dimension_numbers<[1], [0], [0], [1], [0, 0, 1, 1], [], []>} : vector<64x192xf32>, vector<192x128xf32>, vector<64x128xf32> -> vector<64x128xf32>
    %270 = vector.broadcast %215 : vector<1x128xf32> to vector<64x128xf32>
    %271 = arith.addf %269, %270 : vector<64x128xf32>
    %272 = vector.extract_strided_slice %271 {offsets = [0, 0], sizes = [64, 64], strides = [1, 1]} : vector<64x128xf32> to vector<64x64xf32>
    %273 = arith.negf %272 : vector<64x64xf32>
    %274 = math.exp %273 : vector<64x64xf32>
    %cst_100 = arith.constant 1.000000e+00 : f32
    %275 = vector.broadcast %cst_100 : f32 to vector<64x64xf32>
    %276 = arith.addf %275, %274 : vector<64x64xf32>
    %277 = arith.divf %275, %276 : vector<64x64xf32>
    %278 = vector.extract_strided_slice %271 {offsets = [0, 64], sizes = [64, 64], strides = [1, 1]} : vector<64x128xf32> to vector<64x64xf32>
    %279 = arith.mulf %277, %278 : vector<64x64xf32>
    %cst_101 = arith.constant 1.000000e+00 : f32
    %280 = vector.broadcast %cst_101 : f32 to vector<64x64xf32>
    %281 = arith.subf %280, %277 : vector<64x64xf32>
    %282 = arith.mulf %281, %213 : vector<64x64xf32>
    %283 = arith.addf %279, %282 : vector<64x64xf32>
    %c0_102 = arith.constant 0 : index
    %c0_103 = arith.constant 0 : index
    %284 = vector.load %arg15[%c0_102, %c0_103] : memref<192x128xf32, #tpu.memory_space<vmem>>, vector<192x128xf32>
    %c0_104 = arith.constant 0 : index
    %c0_105 = arith.constant 0 : index
    %285 = vector.load %arg16[%c0_104, %c0_105] : memref<1x128xf32, #tpu.memory_space<vmem>>, vector<1x128xf32>
    %cst_106 = arith.constant 0.000000e+00 : f32
    %286 = vector.broadcast %cst_106 : f32 to vector<3x64xf32>
    %287 = tpu.iota {dimensions = array<i32: 0>} : vector<64x1xi32>
    %c32_i32_107 = arith.constant 32 : i32
    %c0_i32_108 = arith.constant 0 : i32
    %288 = arith.cmpi eq, %c32_i32_107, %c0_i32_108 : i32
    %c1_i32_109 = arith.constant 1 : i32
    %289 = arith.select %288, %c1_i32_109, %c32_i32_107 : i32
    %290 = vector.broadcast %289 : i32 to vector<64x1xi32>
    %291 = arith.remsi %287, %290 : vector<64x1xi32>
    %c0_i32_110 = arith.constant 0 : i32
    %292 = vector.broadcast %c0_i32_110 : i32 to vector<64x1xi32>
    %293 = arith.cmpi ne, %291, %292 : vector<64x1xi32>
    %c0_i32_111 = arith.constant 0 : i32
    %294 = vector.broadcast %c0_i32_111 : i32 to vector<64x1xi32>
    %295 = arith.cmpi slt, %291, %294 : vector<64x1xi32>
    %c0_i32_112 = arith.constant 0 : i32
    %296 = arith.cmpi slt, %289, %c0_i32_112 : i32
    %297 = vector.broadcast %296 : i1 to vector<64x1xi1>
    %298 = vector.broadcast %297 : vector<64x1xi1> to vector<64x1xi1>
    %299 = arith.xori %295, %298 : vector<64x1xi1>
    %300 = arith.andi %299, %293 : vector<64x1xi1>
    %301 = vector.broadcast %289 : i32 to vector<64x1xi32>
    %302 = arith.addi %291, %301 : vector<64x1xi32>
    %303 = arith.select %300, %302, %291 : vector<64x1xi1>, vector<64x1xi32>
    %304 = vector.extract_strided_slice %283 {offsets = [0, 0], sizes = [61, 64], strides = [1, 1]} : vector<64x64xf32> to vector<61x64xf32>
    %305 = tpu.concatenate %286, %304 in 0 : vector<3x64xf32>, vector<61x64xf32> -> vector<64x64xf32>
    %c3_i32_113 = arith.constant 3 : i32
    %306 = vector.broadcast %c3_i32_113 : i32 to vector<64x1xi32>
    %307 = arith.cmpi sge, %303, %306 : vector<64x1xi32>
    %cst_114 = arith.constant 0.000000e+00 : f32
    %308 = vector.shape_cast %307 : vector<64x1xi1> to vector<64x1xi1>
    %309 = vector.broadcast %308 : vector<64x1xi1> to vector<64x64xi1>
    %310 = vector.broadcast %cst_114 : f32 to vector<64x64xf32>
    %311 = arith.select %309, %305, %310 : vector<64x64xi1>, vector<64x64xf32>
    %cst_115 = arith.constant 0.000000e+00 : f32
    %312 = vector.broadcast %cst_115 : f32 to vector<3x64xf32>
    %313 = tpu.iota {dimensions = array<i32: 0>} : vector<64x1xi32>
    %c32_i32_116 = arith.constant 32 : i32
    %c0_i32_117 = arith.constant 0 : i32
    %314 = arith.cmpi eq, %c32_i32_116, %c0_i32_117 : i32
    %c1_i32_118 = arith.constant 1 : i32
    %315 = arith.select %314, %c1_i32_118, %c32_i32_116 : i32
    %316 = vector.broadcast %315 : i32 to vector<64x1xi32>
    %317 = arith.remsi %313, %316 : vector<64x1xi32>
    %c0_i32_119 = arith.constant 0 : i32
    %318 = vector.broadcast %c0_i32_119 : i32 to vector<64x1xi32>
    %319 = arith.cmpi ne, %317, %318 : vector<64x1xi32>
    %c0_i32_120 = arith.constant 0 : i32
    %320 = vector.broadcast %c0_i32_120 : i32 to vector<64x1xi32>
    %321 = arith.cmpi slt, %317, %320 : vector<64x1xi32>
    %c0_i32_121 = arith.constant 0 : i32
    %322 = arith.cmpi slt, %315, %c0_i32_121 : i32
    %323 = vector.broadcast %322 : i1 to vector<64x1xi1>
    %324 = vector.broadcast %323 : vector<64x1xi1> to vector<64x1xi1>
    %325 = arith.xori %321, %324 : vector<64x1xi1>
    %326 = arith.andi %325, %319 : vector<64x1xi1>
    %327 = vector.broadcast %315 : i32 to vector<64x1xi32>
    %328 = arith.addi %317, %327 : vector<64x1xi32>
    %329 = arith.select %326, %328, %317 : vector<64x1xi1>, vector<64x1xi32>
    %330 = vector.extract_strided_slice %283 {offsets = [3, 0], sizes = [61, 64], strides = [1, 1]} : vector<64x64xf32> to vector<61x64xf32>
    %331 = tpu.concatenate %330, %312 in 0 : vector<61x64xf32>, vector<3x64xf32> -> vector<64x64xf32>
    %c29_i32 = arith.constant 29 : i32
    %332 = vector.broadcast %c29_i32 : i32 to vector<64x1xi32>
    %333 = arith.cmpi slt, %329, %332 : vector<64x1xi32>
    %cst_122 = arith.constant 0.000000e+00 : f32
    %334 = vector.shape_cast %333 : vector<64x1xi1> to vector<64x1xi1>
    %335 = vector.broadcast %334 : vector<64x1xi1> to vector<64x64xi1>
    %336 = vector.broadcast %cst_122 : f32 to vector<64x64xf32>
    %337 = arith.select %335, %331, %336 : vector<64x64xi1>, vector<64x64xf32>
    %338 = tpu.concatenate %311, %283, %337 in 1 : vector<64x64xf32>, vector<64x64xf32>, vector<64x64xf32> -> vector<64x192xf32>
    %cst_123 = arith.constant dense<0.000000e+00> : vector<64x128xf32>
    %339 = tpu.matmul %338, %284, %cst_123 {dimension_numbers = #tpu.dot_dimension_numbers<[1], [0], [0], [1], [0, 0, 1, 1], [], []>} : vector<64x192xf32>, vector<192x128xf32>, vector<64x128xf32> -> vector<64x128xf32>
    %340 = vector.broadcast %285 : vector<1x128xf32> to vector<64x128xf32>
    %341 = arith.addf %339, %340 : vector<64x128xf32>
    %342 = vector.extract_strided_slice %341 {offsets = [0, 0], sizes = [64, 64], strides = [1, 1]} : vector<64x128xf32> to vector<64x64xf32>
    %343 = arith.negf %342 : vector<64x64xf32>
    %344 = math.exp %343 : vector<64x64xf32>
    %cst_124 = arith.constant 1.000000e+00 : f32
    %345 = vector.broadcast %cst_124 : f32 to vector<64x64xf32>
    %346 = arith.addf %345, %344 : vector<64x64xf32>
    %347 = arith.divf %345, %346 : vector<64x64xf32>
    %348 = vector.extract_strided_slice %341 {offsets = [0, 64], sizes = [64, 64], strides = [1, 1]} : vector<64x128xf32> to vector<64x64xf32>
    %349 = arith.mulf %347, %348 : vector<64x64xf32>
    %cst_125 = arith.constant 1.000000e+00 : f32
    %350 = vector.broadcast %cst_125 : f32 to vector<64x64xf32>
    %351 = arith.subf %350, %347 : vector<64x64xf32>
    %352 = arith.mulf %351, %283 : vector<64x64xf32>
    %353 = arith.addf %349, %352 : vector<64x64xf32>
    %c0_126 = arith.constant 0 : index
    %c0_127 = arith.constant 0 : index
    %354 = vector.load %arg17[%c0_126, %c0_127] : memref<128x64xf32, #tpu.memory_space<vmem>>, vector<128x64xf32>
    %c0_128 = arith.constant 0 : index
    %c0_129 = arith.constant 0 : index
    %355 = vector.load %arg18[%c0_128, %c0_129] : memref<128x64xf32, #tpu.memory_space<vmem>>, vector<128x64xf32>
    %c0_130 = arith.constant 0 : index
    %c0_131 = arith.constant 0 : index
    %356 = vector.load %arg19[%c0_130, %c0_131] : memref<1x64xf32, #tpu.memory_space<vmem>>, vector<1x64xf32>
    %cst_132 = arith.constant 0.000000e+00 : f32
    %357 = vector.broadcast %cst_132 : f32 to vector<1x64xf32>
    %358 = tpu.iota {dimensions = array<i32: 0>} : vector<64x1xi32>
    %c32_i32_133 = arith.constant 32 : i32
    %c0_i32_134 = arith.constant 0 : i32
    %359 = arith.cmpi eq, %c32_i32_133, %c0_i32_134 : i32
    %c1_i32_135 = arith.constant 1 : i32
    %360 = arith.select %359, %c1_i32_135, %c32_i32_133 : i32
    %361 = vector.broadcast %360 : i32 to vector<64x1xi32>
    %362 = arith.remsi %358, %361 : vector<64x1xi32>
    %c0_i32_136 = arith.constant 0 : i32
    %363 = vector.broadcast %c0_i32_136 : i32 to vector<64x1xi32>
    %364 = arith.cmpi ne, %362, %363 : vector<64x1xi32>
    %c0_i32_137 = arith.constant 0 : i32
    %365 = vector.broadcast %c0_i32_137 : i32 to vector<64x1xi32>
    %366 = arith.cmpi slt, %362, %365 : vector<64x1xi32>
    %c0_i32_138 = arith.constant 0 : i32
    %367 = arith.cmpi slt, %360, %c0_i32_138 : i32
    %368 = vector.broadcast %367 : i1 to vector<64x1xi1>
    %369 = vector.broadcast %368 : vector<64x1xi1> to vector<64x1xi1>
    %370 = arith.xori %366, %369 : vector<64x1xi1>
    %371 = arith.andi %370, %364 : vector<64x1xi1>
    %372 = vector.broadcast %360 : i32 to vector<64x1xi32>
    %373 = arith.addi %362, %372 : vector<64x1xi32>
    %374 = arith.select %371, %373, %362 : vector<64x1xi1>, vector<64x1xi32>
    %375 = vector.extract_strided_slice %353 {offsets = [0, 0], sizes = [63, 64], strides = [1, 1]} : vector<64x64xf32> to vector<63x64xf32>
    %376 = tpu.concatenate %357, %375 in 0 : vector<1x64xf32>, vector<63x64xf32> -> vector<64x64xf32>
    %c1_i32_139 = arith.constant 1 : i32
    %377 = vector.broadcast %c1_i32_139 : i32 to vector<64x1xi32>
    %378 = arith.cmpi sge, %374, %377 : vector<64x1xi32>
    %cst_140 = arith.constant 0.000000e+00 : f32
    %379 = vector.shape_cast %378 : vector<64x1xi1> to vector<64x1xi1>
    %380 = vector.broadcast %379 : vector<64x1xi1> to vector<64x64xi1>
    %381 = vector.broadcast %cst_140 : f32 to vector<64x64xf32>
    %382 = arith.select %380, %376, %381 : vector<64x64xi1>, vector<64x64xf32>
    %cst_141 = arith.constant 0.000000e+00 : f32
    %383 = vector.broadcast %cst_141 : f32 to vector<1x64xf32>
    %384 = tpu.iota {dimensions = array<i32: 0>} : vector<64x1xi32>
    %c32_i32_142 = arith.constant 32 : i32
    %c0_i32_143 = arith.constant 0 : i32
    %385 = arith.cmpi eq, %c32_i32_142, %c0_i32_143 : i32
    %c1_i32_144 = arith.constant 1 : i32
    %386 = arith.select %385, %c1_i32_144, %c32_i32_142 : i32
    %387 = vector.broadcast %386 : i32 to vector<64x1xi32>
    %388 = arith.remsi %384, %387 : vector<64x1xi32>
    %c0_i32_145 = arith.constant 0 : i32
    %389 = vector.broadcast %c0_i32_145 : i32 to vector<64x1xi32>
    %390 = arith.cmpi ne, %388, %389 : vector<64x1xi32>
    %c0_i32_146 = arith.constant 0 : i32
    %391 = vector.broadcast %c0_i32_146 : i32 to vector<64x1xi32>
    %392 = arith.cmpi slt, %388, %391 : vector<64x1xi32>
    %c0_i32_147 = arith.constant 0 : i32
    %393 = arith.cmpi slt, %386, %c0_i32_147 : i32
    %394 = vector.broadcast %393 : i1 to vector<64x1xi1>
    %395 = vector.broadcast %394 : vector<64x1xi1> to vector<64x1xi1>
    %396 = arith.xori %392, %395 : vector<64x1xi1>
    %397 = arith.andi %396, %390 : vector<64x1xi1>
    %398 = vector.broadcast %386 : i32 to vector<64x1xi32>
    %399 = arith.addi %388, %398 : vector<64x1xi32>
    %400 = arith.select %397, %399, %388 : vector<64x1xi1>, vector<64x1xi32>
    %401 = vector.extract_strided_slice %353 {offsets = [1, 0], sizes = [63, 64], strides = [1, 1]} : vector<64x64xf32> to vector<63x64xf32>
    %402 = tpu.concatenate %401, %383 in 0 : vector<63x64xf32>, vector<1x64xf32> -> vector<64x64xf32>
    %c31_i32_148 = arith.constant 31 : i32
    %403 = vector.broadcast %c31_i32_148 : i32 to vector<64x1xi32>
    %404 = arith.cmpi slt, %400, %403 : vector<64x1xi32>
    %cst_149 = arith.constant 0.000000e+00 : f32
    %405 = vector.shape_cast %404 : vector<64x1xi1> to vector<64x1xi1>
    %406 = vector.broadcast %405 : vector<64x1xi1> to vector<64x64xi1>
    %407 = vector.broadcast %cst_149 : f32 to vector<64x64xf32>
    %408 = arith.select %406, %402, %407 : vector<64x64xi1>, vector<64x64xf32>
    %409 = tpu.concatenate %382, %353 in 1 : vector<64x64xf32>, vector<64x64xf32> -> vector<64x128xf32>
    %cst_150 = arith.constant dense<0.000000e+00> : vector<64x64xf32>
    %410 = tpu.matmul %409, %354, %cst_150 {dimension_numbers = #tpu.dot_dimension_numbers<[1], [0], [0], [1], [0, 0, 1, 1], [], []>} : vector<64x128xf32>, vector<128x64xf32>, vector<64x64xf32> -> vector<64x64xf32>
    %411 = vector.broadcast %356 : vector<1x64xf32> to vector<64x64xf32>
    %412 = arith.addf %410, %411 : vector<64x64xf32>
    %413 = tpu.concatenate %353, %408 in 1 : vector<64x64xf32>, vector<64x64xf32> -> vector<64x128xf32>
    %cst_151 = arith.constant dense<0.000000e+00> : vector<64x64xf32>
    %414 = tpu.matmul %413, %355, %cst_151 {dimension_numbers = #tpu.dot_dimension_numbers<[1], [0], [0], [1], [0, 0, 1, 1], [], []>} : vector<64x128xf32>, vector<128x64xf32>, vector<64x64xf32> -> vector<64x64xf32>
    %415 = vector.broadcast %356 : vector<1x64xf32> to vector<64x64xf32>
    %416 = arith.addf %414, %415 : vector<64x64xf32>
    %417 = tpu.concatenate %412, %416 in 0 : vector<64x64xf32>, vector<64x64xf32> -> vector<128x64xf32>
    %c0_152 = arith.constant 0 : index
    %c0_153 = arith.constant 0 : index
    %418 = vector.load %arg3[%c0_152, %c0_153] : memref<128x128xf32, #tpu.memory_space<vmem>>, vector<128x128xf32>
    %cst_154 = arith.constant dense<0.000000e+00> : vector<128x64xf32>
    %419 = tpu.matmul %418, %417, %cst_154 {dimension_numbers = #tpu.dot_dimension_numbers<[1], [0], [0], [1], [0, 0, 1, 1], [], []>} : vector<128x128xf32>, vector<128x64xf32>, vector<128x64xf32> -> vector<128x64xf32>
    %c0_155 = arith.constant 0 : index
    %c0_156 = arith.constant 0 : index
    %420 = vector.load %arg20[%c0_155, %c0_156] : memref<192x128xf32, #tpu.memory_space<vmem>>, vector<192x128xf32>
    %c0_157 = arith.constant 0 : index
    %c0_158 = arith.constant 0 : index
    %421 = vector.load %arg21[%c0_157, %c0_158] : memref<1x128xf32, #tpu.memory_space<vmem>>, vector<1x128xf32>
    %cst_159 = arith.constant 0.000000e+00 : f32
    %422 = vector.broadcast %cst_159 : f32 to vector<1x64xf32>
    %423 = tpu.iota {dimensions = array<i32: 0>} : vector<128x1xi32>
    %c64_i32 = arith.constant 64 : i32
    %c0_i32_160 = arith.constant 0 : i32
    %424 = arith.cmpi eq, %c64_i32, %c0_i32_160 : i32
    %c1_i32_161 = arith.constant 1 : i32
    %425 = arith.select %424, %c1_i32_161, %c64_i32 : i32
    %426 = vector.broadcast %425 : i32 to vector<128x1xi32>
    %427 = arith.remsi %423, %426 : vector<128x1xi32>
    %c0_i32_162 = arith.constant 0 : i32
    %428 = vector.broadcast %c0_i32_162 : i32 to vector<128x1xi32>
    %429 = arith.cmpi ne, %427, %428 : vector<128x1xi32>
    %c0_i32_163 = arith.constant 0 : i32
    %430 = vector.broadcast %c0_i32_163 : i32 to vector<128x1xi32>
    %431 = arith.cmpi slt, %427, %430 : vector<128x1xi32>
    %c0_i32_164 = arith.constant 0 : i32
    %432 = arith.cmpi slt, %425, %c0_i32_164 : i32
    %433 = vector.broadcast %432 : i1 to vector<128x1xi1>
    %434 = vector.broadcast %433 : vector<128x1xi1> to vector<128x1xi1>
    %435 = arith.xori %431, %434 : vector<128x1xi1>
    %436 = arith.andi %435, %429 : vector<128x1xi1>
    %437 = vector.broadcast %425 : i32 to vector<128x1xi32>
    %438 = arith.addi %427, %437 : vector<128x1xi32>
    %439 = arith.select %436, %438, %427 : vector<128x1xi1>, vector<128x1xi32>
    %440 = vector.extract_strided_slice %419 {offsets = [0, 0], sizes = [127, 64], strides = [1, 1]} : vector<128x64xf32> to vector<127x64xf32>
    %441 = tpu.concatenate %422, %440 in 0 : vector<1x64xf32>, vector<127x64xf32> -> vector<128x64xf32>
    %c1_i32_165 = arith.constant 1 : i32
    %442 = vector.broadcast %c1_i32_165 : i32 to vector<128x1xi32>
    %443 = arith.cmpi sge, %439, %442 : vector<128x1xi32>
    %cst_166 = arith.constant 0.000000e+00 : f32
    %444 = vector.shape_cast %443 : vector<128x1xi1> to vector<128x1xi1>
    %445 = vector.broadcast %444 : vector<128x1xi1> to vector<128x64xi1>
    %446 = vector.broadcast %cst_166 : f32 to vector<128x64xf32>
    %447 = arith.select %445, %441, %446 : vector<128x64xi1>, vector<128x64xf32>
    %cst_167 = arith.constant 0.000000e+00 : f32
    %448 = vector.broadcast %cst_167 : f32 to vector<1x64xf32>
    %449 = tpu.iota {dimensions = array<i32: 0>} : vector<128x1xi32>
    %c64_i32_168 = arith.constant 64 : i32
    %c0_i32_169 = arith.constant 0 : i32
    %450 = arith.cmpi eq, %c64_i32_168, %c0_i32_169 : i32
    %c1_i32_170 = arith.constant 1 : i32
    %451 = arith.select %450, %c1_i32_170, %c64_i32_168 : i32
    %452 = vector.broadcast %451 : i32 to vector<128x1xi32>
    %453 = arith.remsi %449, %452 : vector<128x1xi32>
    %c0_i32_171 = arith.constant 0 : i32
    %454 = vector.broadcast %c0_i32_171 : i32 to vector<128x1xi32>
    %455 = arith.cmpi ne, %453, %454 : vector<128x1xi32>
    %c0_i32_172 = arith.constant 0 : i32
    %456 = vector.broadcast %c0_i32_172 : i32 to vector<128x1xi32>
    %457 = arith.cmpi slt, %453, %456 : vector<128x1xi32>
    %c0_i32_173 = arith.constant 0 : i32
    %458 = arith.cmpi slt, %451, %c0_i32_173 : i32
    %459 = vector.broadcast %458 : i1 to vector<128x1xi1>
    %460 = vector.broadcast %459 : vector<128x1xi1> to vector<128x1xi1>
    %461 = arith.xori %457, %460 : vector<128x1xi1>
    %462 = arith.andi %461, %455 : vector<128x1xi1>
    %463 = vector.broadcast %451 : i32 to vector<128x1xi32>
    %464 = arith.addi %453, %463 : vector<128x1xi32>
    %465 = arith.select %462, %464, %453 : vector<128x1xi1>, vector<128x1xi32>
    %466 = vector.extract_strided_slice %419 {offsets = [1, 0], sizes = [127, 64], strides = [1, 1]} : vector<128x64xf32> to vector<127x64xf32>
    %467 = tpu.concatenate %466, %448 in 0 : vector<127x64xf32>, vector<1x64xf32> -> vector<128x64xf32>
    %c63_i32 = arith.constant 63 : i32
    %468 = vector.broadcast %c63_i32 : i32 to vector<128x1xi32>
    %469 = arith.cmpi slt, %465, %468 : vector<128x1xi32>
    %cst_174 = arith.constant 0.000000e+00 : f32
    %470 = vector.shape_cast %469 : vector<128x1xi1> to vector<128x1xi1>
    %471 = vector.broadcast %470 : vector<128x1xi1> to vector<128x64xi1>
    %472 = vector.broadcast %cst_174 : f32 to vector<128x64xf32>
    %473 = arith.select %471, %467, %472 : vector<128x64xi1>, vector<128x64xf32>
    %474 = tpu.concatenate %447, %419, %473 in 1 : vector<128x64xf32>, vector<128x64xf32>, vector<128x64xf32> -> vector<128x192xf32>
    %cst_175 = arith.constant dense<0.000000e+00> : vector<128x128xf32>
    %475 = tpu.matmul %474, %420, %cst_175 {dimension_numbers = #tpu.dot_dimension_numbers<[1], [0], [0], [1], [0, 0, 1, 1], [], []>} : vector<128x192xf32>, vector<192x128xf32>, vector<128x128xf32> -> vector<128x128xf32>
    %476 = vector.broadcast %421 : vector<1x128xf32> to vector<128x128xf32>
    %477 = arith.addf %475, %476 : vector<128x128xf32>
    %478 = vector.extract_strided_slice %477 {offsets = [0, 0], sizes = [128, 64], strides = [1, 1]} : vector<128x128xf32> to vector<128x64xf32>
    %479 = arith.negf %478 : vector<128x64xf32>
    %480 = math.exp %479 : vector<128x64xf32>
    %cst_176 = arith.constant 1.000000e+00 : f32
    %481 = vector.broadcast %cst_176 : f32 to vector<128x64xf32>
    %482 = arith.addf %481, %480 : vector<128x64xf32>
    %483 = arith.divf %481, %482 : vector<128x64xf32>
    %484 = vector.extract_strided_slice %477 {offsets = [0, 64], sizes = [128, 64], strides = [1, 1]} : vector<128x128xf32> to vector<128x64xf32>
    %485 = arith.mulf %483, %484 : vector<128x64xf32>
    %cst_177 = arith.constant 1.000000e+00 : f32
    %486 = vector.broadcast %cst_177 : f32 to vector<128x64xf32>
    %487 = arith.subf %486, %483 : vector<128x64xf32>
    %488 = arith.mulf %487, %419 : vector<128x64xf32>
    %489 = arith.addf %485, %488 : vector<128x64xf32>
    %c0_178 = arith.constant 0 : index
    %c0_179 = arith.constant 0 : index
    %490 = vector.load %arg22[%c0_178, %c0_179] : memref<192x128xf32, #tpu.memory_space<vmem>>, vector<192x128xf32>
    %c0_180 = arith.constant 0 : index
    %c0_181 = arith.constant 0 : index
    %491 = vector.load %arg23[%c0_180, %c0_181] : memref<1x128xf32, #tpu.memory_space<vmem>>, vector<1x128xf32>
    %cst_182 = arith.constant 0.000000e+00 : f32
    %492 = vector.broadcast %cst_182 : f32 to vector<3x64xf32>
    %493 = tpu.iota {dimensions = array<i32: 0>} : vector<128x1xi32>
    %c64_i32_183 = arith.constant 64 : i32
    %c0_i32_184 = arith.constant 0 : i32
    %494 = arith.cmpi eq, %c64_i32_183, %c0_i32_184 : i32
    %c1_i32_185 = arith.constant 1 : i32
    %495 = arith.select %494, %c1_i32_185, %c64_i32_183 : i32
    %496 = vector.broadcast %495 : i32 to vector<128x1xi32>
    %497 = arith.remsi %493, %496 : vector<128x1xi32>
    %c0_i32_186 = arith.constant 0 : i32
    %498 = vector.broadcast %c0_i32_186 : i32 to vector<128x1xi32>
    %499 = arith.cmpi ne, %497, %498 : vector<128x1xi32>
    %c0_i32_187 = arith.constant 0 : i32
    %500 = vector.broadcast %c0_i32_187 : i32 to vector<128x1xi32>
    %501 = arith.cmpi slt, %497, %500 : vector<128x1xi32>
    %c0_i32_188 = arith.constant 0 : i32
    %502 = arith.cmpi slt, %495, %c0_i32_188 : i32
    %503 = vector.broadcast %502 : i1 to vector<128x1xi1>
    %504 = vector.broadcast %503 : vector<128x1xi1> to vector<128x1xi1>
    %505 = arith.xori %501, %504 : vector<128x1xi1>
    %506 = arith.andi %505, %499 : vector<128x1xi1>
    %507 = vector.broadcast %495 : i32 to vector<128x1xi32>
    %508 = arith.addi %497, %507 : vector<128x1xi32>
    %509 = arith.select %506, %508, %497 : vector<128x1xi1>, vector<128x1xi32>
    %510 = vector.extract_strided_slice %489 {offsets = [0, 0], sizes = [125, 64], strides = [1, 1]} : vector<128x64xf32> to vector<125x64xf32>
    %511 = tpu.concatenate %492, %510 in 0 : vector<3x64xf32>, vector<125x64xf32> -> vector<128x64xf32>
    %c3_i32_189 = arith.constant 3 : i32
    %512 = vector.broadcast %c3_i32_189 : i32 to vector<128x1xi32>
    %513 = arith.cmpi sge, %509, %512 : vector<128x1xi32>
    %cst_190 = arith.constant 0.000000e+00 : f32
    %514 = vector.shape_cast %513 : vector<128x1xi1> to vector<128x1xi1>
    %515 = vector.broadcast %514 : vector<128x1xi1> to vector<128x64xi1>
    %516 = vector.broadcast %cst_190 : f32 to vector<128x64xf32>
    %517 = arith.select %515, %511, %516 : vector<128x64xi1>, vector<128x64xf32>
    %cst_191 = arith.constant 0.000000e+00 : f32
    %518 = vector.broadcast %cst_191 : f32 to vector<3x64xf32>
    %519 = tpu.iota {dimensions = array<i32: 0>} : vector<128x1xi32>
    %c64_i32_192 = arith.constant 64 : i32
    %c0_i32_193 = arith.constant 0 : i32
    %520 = arith.cmpi eq, %c64_i32_192, %c0_i32_193 : i32
    %c1_i32_194 = arith.constant 1 : i32
    %521 = arith.select %520, %c1_i32_194, %c64_i32_192 : i32
    %522 = vector.broadcast %521 : i32 to vector<128x1xi32>
    %523 = arith.remsi %519, %522 : vector<128x1xi32>
    %c0_i32_195 = arith.constant 0 : i32
    %524 = vector.broadcast %c0_i32_195 : i32 to vector<128x1xi32>
    %525 = arith.cmpi ne, %523, %524 : vector<128x1xi32>
    %c0_i32_196 = arith.constant 0 : i32
    %526 = vector.broadcast %c0_i32_196 : i32 to vector<128x1xi32>
    %527 = arith.cmpi slt, %523, %526 : vector<128x1xi32>
    %c0_i32_197 = arith.constant 0 : i32
    %528 = arith.cmpi slt, %521, %c0_i32_197 : i32
    %529 = vector.broadcast %528 : i1 to vector<128x1xi1>
    %530 = vector.broadcast %529 : vector<128x1xi1> to vector<128x1xi1>
    %531 = arith.xori %527, %530 : vector<128x1xi1>
    %532 = arith.andi %531, %525 : vector<128x1xi1>
    %533 = vector.broadcast %521 : i32 to vector<128x1xi32>
    %534 = arith.addi %523, %533 : vector<128x1xi32>
    %535 = arith.select %532, %534, %523 : vector<128x1xi1>, vector<128x1xi32>
    %536 = vector.extract_strided_slice %489 {offsets = [3, 0], sizes = [125, 64], strides = [1, 1]} : vector<128x64xf32> to vector<125x64xf32>
    %537 = tpu.concatenate %536, %518 in 0 : vector<125x64xf32>, vector<3x64xf32> -> vector<128x64xf32>
    %c61_i32 = arith.constant 61 : i32
    %538 = vector.broadcast %c61_i32 : i32 to vector<128x1xi32>
    %539 = arith.cmpi slt, %535, %538 : vector<128x1xi32>
    %cst_198 = arith.constant 0.000000e+00 : f32
    %540 = vector.shape_cast %539 : vector<128x1xi1> to vector<128x1xi1>
    %541 = vector.broadcast %540 : vector<128x1xi1> to vector<128x64xi1>
    %542 = vector.broadcast %cst_198 : f32 to vector<128x64xf32>
    %543 = arith.select %541, %537, %542 : vector<128x64xi1>, vector<128x64xf32>
    %544 = tpu.concatenate %517, %489, %543 in 1 : vector<128x64xf32>, vector<128x64xf32>, vector<128x64xf32> -> vector<128x192xf32>
    %cst_199 = arith.constant dense<0.000000e+00> : vector<128x128xf32>
    %545 = tpu.matmul %544, %490, %cst_199 {dimension_numbers = #tpu.dot_dimension_numbers<[1], [0], [0], [1], [0, 0, 1, 1], [], []>} : vector<128x192xf32>, vector<192x128xf32>, vector<128x128xf32> -> vector<128x128xf32>
    %546 = vector.broadcast %491 : vector<1x128xf32> to vector<128x128xf32>
    %547 = arith.addf %545, %546 : vector<128x128xf32>
    %548 = vector.extract_strided_slice %547 {offsets = [0, 0], sizes = [128, 64], strides = [1, 1]} : vector<128x128xf32> to vector<128x64xf32>
    %549 = arith.negf %548 : vector<128x64xf32>
    %550 = math.exp %549 : vector<128x64xf32>
    %cst_200 = arith.constant 1.000000e+00 : f32
    %551 = vector.broadcast %cst_200 : f32 to vector<128x64xf32>
    %552 = arith.addf %551, %550 : vector<128x64xf32>
    %553 = arith.divf %551, %552 : vector<128x64xf32>
    %554 = vector.extract_strided_slice %547 {offsets = [0, 64], sizes = [128, 64], strides = [1, 1]} : vector<128x128xf32> to vector<128x64xf32>
    %555 = arith.mulf %553, %554 : vector<128x64xf32>
    %cst_201 = arith.constant 1.000000e+00 : f32
    %556 = vector.broadcast %cst_201 : f32 to vector<128x64xf32>
    %557 = arith.subf %556, %553 : vector<128x64xf32>
    %558 = arith.mulf %557, %489 : vector<128x64xf32>
    %559 = arith.addf %555, %558 : vector<128x64xf32>
    %c0_202 = arith.constant 0 : index
    %c0_203 = arith.constant 0 : index
    %560 = vector.load %arg24[%c0_202, %c0_203] : memref<64x128xf32, #tpu.memory_space<vmem>>, vector<64x128xf32>
    %c0_204 = arith.constant 0 : index
    %c0_205 = arith.constant 0 : index
    %561 = vector.load %arg25[%c0_204, %c0_205] : memref<1x128xf32, #tpu.memory_space<vmem>>, vector<1x128xf32>
    %cst_206 = arith.constant dense<0.000000e+00> : vector<128x128xf32>
    %562 = tpu.matmul %559, %560, %cst_206 {dimension_numbers = #tpu.dot_dimension_numbers<[1], [0], [0], [1], [0, 0, 1, 1], [], []>} : vector<128x64xf32>, vector<64x128xf32>, vector<128x128xf32> -> vector<128x128xf32>
    %563 = vector.broadcast %561 : vector<1x128xf32> to vector<128x128xf32>
    %564 = arith.addf %562, %563 : vector<128x128xf32>
    %c0_207 = arith.constant 0 : index
    %c0_208 = arith.constant 0 : index
    %565 = vector.load %arg26[%c0_207, %c0_208] : memref<384x256xf32, #tpu.memory_space<vmem>>, vector<384x256xf32>
    %c0_209 = arith.constant 0 : index
    %c0_210 = arith.constant 0 : index
    %566 = vector.load %arg27[%c0_209, %c0_210] : memref<1x256xf32, #tpu.memory_space<vmem>>, vector<1x256xf32>
    %cst_211 = arith.constant 0.000000e+00 : f32
    %567 = vector.broadcast %cst_211 : f32 to vector<1x128xf32>
    %568 = tpu.iota {dimensions = array<i32: 0>} : vector<128x1xi32>
    %c64_i32_212 = arith.constant 64 : i32
    %c0_i32_213 = arith.constant 0 : i32
    %569 = arith.cmpi eq, %c64_i32_212, %c0_i32_213 : i32
    %c1_i32_214 = arith.constant 1 : i32
    %570 = arith.select %569, %c1_i32_214, %c64_i32_212 : i32
    %571 = vector.broadcast %570 : i32 to vector<128x1xi32>
    %572 = arith.remsi %568, %571 : vector<128x1xi32>
    %c0_i32_215 = arith.constant 0 : i32
    %573 = vector.broadcast %c0_i32_215 : i32 to vector<128x1xi32>
    %574 = arith.cmpi ne, %572, %573 : vector<128x1xi32>
    %c0_i32_216 = arith.constant 0 : i32
    %575 = vector.broadcast %c0_i32_216 : i32 to vector<128x1xi32>
    %576 = arith.cmpi slt, %572, %575 : vector<128x1xi32>
    %c0_i32_217 = arith.constant 0 : i32
    %577 = arith.cmpi slt, %570, %c0_i32_217 : i32
    %578 = vector.broadcast %577 : i1 to vector<128x1xi1>
    %579 = vector.broadcast %578 : vector<128x1xi1> to vector<128x1xi1>
    %580 = arith.xori %576, %579 : vector<128x1xi1>
    %581 = arith.andi %580, %574 : vector<128x1xi1>
    %582 = vector.broadcast %570 : i32 to vector<128x1xi32>
    %583 = arith.addi %572, %582 : vector<128x1xi32>
    %584 = arith.select %581, %583, %572 : vector<128x1xi1>, vector<128x1xi32>
    %585 = vector.extract_strided_slice %564 {offsets = [0, 0], sizes = [127, 128], strides = [1, 1]} : vector<128x128xf32> to vector<127x128xf32>
    %586 = tpu.concatenate %567, %585 in 0 : vector<1x128xf32>, vector<127x128xf32> -> vector<128x128xf32>
    %c1_i32_218 = arith.constant 1 : i32
    %587 = vector.broadcast %c1_i32_218 : i32 to vector<128x1xi32>
    %588 = arith.cmpi sge, %584, %587 : vector<128x1xi32>
    %cst_219 = arith.constant 0.000000e+00 : f32
    %589 = vector.shape_cast %588 : vector<128x1xi1> to vector<128x1xi1>
    %590 = vector.broadcast %589 : vector<128x1xi1> to vector<128x128xi1>
    %591 = vector.broadcast %cst_219 : f32 to vector<128x128xf32>
    %592 = arith.select %590, %586, %591 : vector<128x128xi1>, vector<128x128xf32>
    %cst_220 = arith.constant 0.000000e+00 : f32
    %593 = vector.broadcast %cst_220 : f32 to vector<1x128xf32>
    %594 = tpu.iota {dimensions = array<i32: 0>} : vector<128x1xi32>
    %c64_i32_221 = arith.constant 64 : i32
    %c0_i32_222 = arith.constant 0 : i32
    %595 = arith.cmpi eq, %c64_i32_221, %c0_i32_222 : i32
    %c1_i32_223 = arith.constant 1 : i32
    %596 = arith.select %595, %c1_i32_223, %c64_i32_221 : i32
    %597 = vector.broadcast %596 : i32 to vector<128x1xi32>
    %598 = arith.remsi %594, %597 : vector<128x1xi32>
    %c0_i32_224 = arith.constant 0 : i32
    %599 = vector.broadcast %c0_i32_224 : i32 to vector<128x1xi32>
    %600 = arith.cmpi ne, %598, %599 : vector<128x1xi32>
    %c0_i32_225 = arith.constant 0 : i32
    %601 = vector.broadcast %c0_i32_225 : i32 to vector<128x1xi32>
    %602 = arith.cmpi slt, %598, %601 : vector<128x1xi32>
    %c0_i32_226 = arith.constant 0 : i32
    %603 = arith.cmpi slt, %596, %c0_i32_226 : i32
    %604 = vector.broadcast %603 : i1 to vector<128x1xi1>
    %605 = vector.broadcast %604 : vector<128x1xi1> to vector<128x1xi1>
    %606 = arith.xori %602, %605 : vector<128x1xi1>
    %607 = arith.andi %606, %600 : vector<128x1xi1>
    %608 = vector.broadcast %596 : i32 to vector<128x1xi32>
    %609 = arith.addi %598, %608 : vector<128x1xi32>
    %610 = arith.select %607, %609, %598 : vector<128x1xi1>, vector<128x1xi32>
    %611 = vector.extract_strided_slice %564 {offsets = [1, 0], sizes = [127, 128], strides = [1, 1]} : vector<128x128xf32> to vector<127x128xf32>
    %612 = tpu.concatenate %611, %593 in 0 : vector<127x128xf32>, vector<1x128xf32> -> vector<128x128xf32>
    %c63_i32_227 = arith.constant 63 : i32
    %613 = vector.broadcast %c63_i32_227 : i32 to vector<128x1xi32>
    %614 = arith.cmpi slt, %610, %613 : vector<128x1xi32>
    %cst_228 = arith.constant 0.000000e+00 : f32
    %615 = vector.shape_cast %614 : vector<128x1xi1> to vector<128x1xi1>
    %616 = vector.broadcast %615 : vector<128x1xi1> to vector<128x128xi1>
    %617 = vector.broadcast %cst_228 : f32 to vector<128x128xf32>
    %618 = arith.select %616, %612, %617 : vector<128x128xi1>, vector<128x128xf32>
    %619 = tpu.concatenate %592, %564, %618 in 1 : vector<128x128xf32>, vector<128x128xf32>, vector<128x128xf32> -> vector<128x384xf32>
    %cst_229 = arith.constant dense<0.000000e+00> : vector<128x256xf32>
    %620 = tpu.matmul %619, %565, %cst_229 {dimension_numbers = #tpu.dot_dimension_numbers<[1], [0], [0], [1], [0, 0, 1, 1], [], []>} : vector<128x384xf32>, vector<384x256xf32>, vector<128x256xf32> -> vector<128x256xf32>
    %621 = vector.broadcast %566 : vector<1x256xf32> to vector<128x256xf32>
    %622 = arith.addf %620, %621 : vector<128x256xf32>
    %623 = vector.extract_strided_slice %622 {offsets = [0, 0], sizes = [128, 128], strides = [1, 1]} : vector<128x256xf32> to vector<128x128xf32>
    %624 = arith.negf %623 : vector<128x128xf32>
    %625 = math.exp %624 : vector<128x128xf32>
    %cst_230 = arith.constant 1.000000e+00 : f32
    %626 = vector.broadcast %cst_230 : f32 to vector<128x128xf32>
    %627 = arith.addf %626, %625 : vector<128x128xf32>
    %628 = arith.divf %626, %627 : vector<128x128xf32>
    %629 = vector.extract_strided_slice %622 {offsets = [0, 128], sizes = [128, 128], strides = [1, 1]} : vector<128x256xf32> to vector<128x128xf32>
    %630 = arith.mulf %628, %629 : vector<128x128xf32>
    %cst_231 = arith.constant 1.000000e+00 : f32
    %631 = vector.broadcast %cst_231 : f32 to vector<128x128xf32>
    %632 = arith.subf %631, %628 : vector<128x128xf32>
    %633 = arith.mulf %632, %564 : vector<128x128xf32>
    %634 = arith.addf %630, %633 : vector<128x128xf32>
    %c0_232 = arith.constant 0 : index
    %c0_233 = arith.constant 0 : index
    %635 = vector.load %arg28[%c0_232, %c0_233] : memref<384x256xf32, #tpu.memory_space<vmem>>, vector<384x256xf32>
    %c0_234 = arith.constant 0 : index
    %c0_235 = arith.constant 0 : index
    %636 = vector.load %arg29[%c0_234, %c0_235] : memref<1x256xf32, #tpu.memory_space<vmem>>, vector<1x256xf32>
    %cst_236 = arith.constant 0.000000e+00 : f32
    %637 = vector.broadcast %cst_236 : f32 to vector<1x128xf32>
    %638 = tpu.iota {dimensions = array<i32: 0>} : vector<128x1xi32>
    %c64_i32_237 = arith.constant 64 : i32
    %c0_i32_238 = arith.constant 0 : i32
    %639 = arith.cmpi eq, %c64_i32_237, %c0_i32_238 : i32
    %c1_i32_239 = arith.constant 1 : i32
    %640 = arith.select %639, %c1_i32_239, %c64_i32_237 : i32
    %641 = vector.broadcast %640 : i32 to vector<128x1xi32>
    %642 = arith.remsi %638, %641 : vector<128x1xi32>
    %c0_i32_240 = arith.constant 0 : i32
    %643 = vector.broadcast %c0_i32_240 : i32 to vector<128x1xi32>
    %644 = arith.cmpi ne, %642, %643 : vector<128x1xi32>
    %c0_i32_241 = arith.constant 0 : i32
    %645 = vector.broadcast %c0_i32_241 : i32 to vector<128x1xi32>
    %646 = arith.cmpi slt, %642, %645 : vector<128x1xi32>
    %c0_i32_242 = arith.constant 0 : i32
    %647 = arith.cmpi slt, %640, %c0_i32_242 : i32
    %648 = vector.broadcast %647 : i1 to vector<128x1xi1>
    %649 = vector.broadcast %648 : vector<128x1xi1> to vector<128x1xi1>
    %650 = arith.xori %646, %649 : vector<128x1xi1>
    %651 = arith.andi %650, %644 : vector<128x1xi1>
    %652 = vector.broadcast %640 : i32 to vector<128x1xi32>
    %653 = arith.addi %642, %652 : vector<128x1xi32>
    %654 = arith.select %651, %653, %642 : vector<128x1xi1>, vector<128x1xi32>
    %655 = vector.extract_strided_slice %634 {offsets = [0, 0], sizes = [127, 128], strides = [1, 1]} : vector<128x128xf32> to vector<127x128xf32>
    %656 = tpu.concatenate %637, %655 in 0 : vector<1x128xf32>, vector<127x128xf32> -> vector<128x128xf32>
    %c1_i32_243 = arith.constant 1 : i32
    %657 = vector.broadcast %c1_i32_243 : i32 to vector<128x1xi32>
    %658 = arith.cmpi sge, %654, %657 : vector<128x1xi32>
    %cst_244 = arith.constant 0.000000e+00 : f32
    %659 = vector.shape_cast %658 : vector<128x1xi1> to vector<128x1xi1>
    %660 = vector.broadcast %659 : vector<128x1xi1> to vector<128x128xi1>
    %661 = vector.broadcast %cst_244 : f32 to vector<128x128xf32>
    %662 = arith.select %660, %656, %661 : vector<128x128xi1>, vector<128x128xf32>
    %cst_245 = arith.constant 0.000000e+00 : f32
    %663 = vector.broadcast %cst_245 : f32 to vector<1x128xf32>
    %664 = tpu.iota {dimensions = array<i32: 0>} : vector<128x1xi32>
    %c64_i32_246 = arith.constant 64 : i32
    %c0_i32_247 = arith.constant 0 : i32
    %665 = arith.cmpi eq, %c64_i32_246, %c0_i32_247 : i32
    %c1_i32_248 = arith.constant 1 : i32
    %666 = arith.select %665, %c1_i32_248, %c64_i32_246 : i32
    %667 = vector.broadcast %666 : i32 to vector<128x1xi32>
    %668 = arith.remsi %664, %667 : vector<128x1xi32>
    %c0_i32_249 = arith.constant 0 : i32
    %669 = vector.broadcast %c0_i32_249 : i32 to vector<128x1xi32>
    %670 = arith.cmpi ne, %668, %669 : vector<128x1xi32>
    %c0_i32_250 = arith.constant 0 : i32
    %671 = vector.broadcast %c0_i32_250 : i32 to vector<128x1xi32>
    %672 = arith.cmpi slt, %668, %671 : vector<128x1xi32>
    %c0_i32_251 = arith.constant 0 : i32
    %673 = arith.cmpi slt, %666, %c0_i32_251 : i32
    %674 = vector.broadcast %673 : i1 to vector<128x1xi1>
    %675 = vector.broadcast %674 : vector<128x1xi1> to vector<128x1xi1>
    %676 = arith.xori %672, %675 : vector<128x1xi1>
    %677 = arith.andi %676, %670 : vector<128x1xi1>
    %678 = vector.broadcast %666 : i32 to vector<128x1xi32>
    %679 = arith.addi %668, %678 : vector<128x1xi32>
    %680 = arith.select %677, %679, %668 : vector<128x1xi1>, vector<128x1xi32>
    %681 = vector.extract_strided_slice %634 {offsets = [1, 0], sizes = [127, 128], strides = [1, 1]} : vector<128x128xf32> to vector<127x128xf32>
    %682 = tpu.concatenate %681, %663 in 0 : vector<127x128xf32>, vector<1x128xf32> -> vector<128x128xf32>
    %c63_i32_252 = arith.constant 63 : i32
    %683 = vector.broadcast %c63_i32_252 : i32 to vector<128x1xi32>
    %684 = arith.cmpi slt, %680, %683 : vector<128x1xi32>
    %cst_253 = arith.constant 0.000000e+00 : f32
    %685 = vector.shape_cast %684 : vector<128x1xi1> to vector<128x1xi1>
    %686 = vector.broadcast %685 : vector<128x1xi1> to vector<128x128xi1>
    %687 = vector.broadcast %cst_253 : f32 to vector<128x128xf32>
    %688 = arith.select %686, %682, %687 : vector<128x128xi1>, vector<128x128xf32>
    %689 = tpu.concatenate %662, %634, %688 in 1 : vector<128x128xf32>, vector<128x128xf32>, vector<128x128xf32> -> vector<128x384xf32>
    %cst_254 = arith.constant dense<0.000000e+00> : vector<128x256xf32>
    %690 = tpu.matmul %689, %635, %cst_254 {dimension_numbers = #tpu.dot_dimension_numbers<[1], [0], [0], [1], [0, 0, 1, 1], [], []>} : vector<128x384xf32>, vector<384x256xf32>, vector<128x256xf32> -> vector<128x256xf32>
    %691 = vector.broadcast %636 : vector<1x256xf32> to vector<128x256xf32>
    %692 = arith.addf %690, %691 : vector<128x256xf32>
    %693 = vector.extract_strided_slice %692 {offsets = [0, 0], sizes = [128, 128], strides = [1, 1]} : vector<128x256xf32> to vector<128x128xf32>
    %694 = arith.negf %693 : vector<128x128xf32>
    %695 = math.exp %694 : vector<128x128xf32>
    %cst_255 = arith.constant 1.000000e+00 : f32
    %696 = vector.broadcast %cst_255 : f32 to vector<128x128xf32>
    %697 = arith.addf %696, %695 : vector<128x128xf32>
    %698 = arith.divf %696, %697 : vector<128x128xf32>
    %699 = vector.extract_strided_slice %692 {offsets = [0, 128], sizes = [128, 128], strides = [1, 1]} : vector<128x256xf32> to vector<128x128xf32>
    %700 = arith.mulf %698, %699 : vector<128x128xf32>
    %cst_256 = arith.constant 1.000000e+00 : f32
    %701 = vector.broadcast %cst_256 : f32 to vector<128x128xf32>
    %702 = arith.subf %701, %698 : vector<128x128xf32>
    %703 = arith.mulf %702, %634 : vector<128x128xf32>
    %704 = arith.addf %700, %703 : vector<128x128xf32>
    %c0_257 = arith.constant 0 : index
    %c0_258 = arith.constant 0 : index
    %705 = vector.load %arg30[%c0_257, %c0_258] : memref<128x128xf32, #tpu.memory_space<vmem>>, vector<128x128xf32>
    %c0_259 = arith.constant 0 : index
    %c0_260 = arith.constant 0 : index
    %706 = vector.load %arg31[%c0_259, %c0_260] : memref<1x128xf32, #tpu.memory_space<vmem>>, vector<1x128xf32>
    %cst_261 = arith.constant dense<0.000000e+00> : vector<128x128xf32>
    %707 = tpu.matmul %704, %705, %cst_261 {dimension_numbers = #tpu.dot_dimension_numbers<[1], [0], [0], [1], [0, 0, 1, 1], [], []>} : vector<128x128xf32>, vector<128x128xf32>, vector<128x128xf32> -> vector<128x128xf32>
    %708 = vector.broadcast %706 : vector<1x128xf32> to vector<128x128xf32>
    %709 = arith.addf %707, %708 : vector<128x128xf32>
    %c0_262 = arith.constant 0 : index
    %c0_263 = arith.constant 0 : index
    %710 = vector.load %arg32[%c0_262, %c0_263] : memref<128x128xf32, #tpu.memory_space<vmem>>, vector<128x128xf32>
    %c0_264 = arith.constant 0 : index
    %c0_265 = arith.constant 0 : index
    %711 = vector.load %arg33[%c0_264, %c0_265] : memref<1x128xf32, #tpu.memory_space<vmem>>, vector<1x128xf32>
    %cst_266 = arith.constant dense<0.000000e+00> : vector<128x128xf32>
    %712 = tpu.matmul %709, %710, %cst_266 {dimension_numbers = #tpu.dot_dimension_numbers<[1], [0], [0], [1], [0, 0, 1, 1], [], []>} : vector<128x128xf32>, vector<128x128xf32>, vector<128x128xf32> -> vector<128x128xf32>
    %713 = vector.broadcast %711 : vector<1x128xf32> to vector<128x128xf32>
    %714 = arith.addf %712, %713 : vector<128x128xf32>
    %cst_267 = arith.constant 0.000000e+00 : f32
    %715 = vector.broadcast %cst_267 : f32 to vector<128x128xf32>
    %716 = arith.maximumf %714, %715 : vector<128x128xf32>
    %c0_268 = arith.constant 0 : index
    %c0_269 = arith.constant 0 : index
    %717 = vector.load %arg34[%c0_268, %c0_269] : memref<128x128xf32, #tpu.memory_space<vmem>>, vector<128x128xf32>
    %c0_270 = arith.constant 0 : index
    %c0_271 = arith.constant 0 : index
    %718 = vector.load %arg35[%c0_270, %c0_271] : memref<1x128xf32, #tpu.memory_space<vmem>>, vector<1x128xf32>
    %cst_272 = arith.constant dense<0.000000e+00> : vector<128x128xf32>
    %719 = tpu.matmul %716, %717, %cst_272 {dimension_numbers = #tpu.dot_dimension_numbers<[1], [0], [0], [1], [0, 0, 1, 1], [], []>} : vector<128x128xf32>, vector<128x128xf32>, vector<128x128xf32> -> vector<128x128xf32>
    %720 = vector.broadcast %718 : vector<1x128xf32> to vector<128x128xf32>
    %721 = arith.addf %719, %720 : vector<128x128xf32>
    %cst_273 = arith.constant 0.000000e+00 : f32
    %722 = vector.broadcast %cst_273 : f32 to vector<128x128xf32>
    %723 = arith.maximumf %721, %722 : vector<128x128xf32>
    %c0_274 = arith.constant 0 : index
    %c0_275 = arith.constant 0 : index
    %724 = vector.load %arg36[%c0_274, %c0_275] : memref<128x128xf32, #tpu.memory_space<vmem>>, vector<128x128xf32>
    %c0_276 = arith.constant 0 : index
    %c0_277 = arith.constant 0 : index
    %725 = vector.load %arg37[%c0_276, %c0_277] : memref<1x128xf32, #tpu.memory_space<vmem>>, vector<1x128xf32>
    %cst_278 = arith.constant dense<0.000000e+00> : vector<128x128xf32>
    %726 = tpu.matmul %723, %724, %cst_278 {dimension_numbers = #tpu.dot_dimension_numbers<[1], [0], [0], [1], [0, 0, 1, 1], [], []>} : vector<128x128xf32>, vector<128x128xf32>, vector<128x128xf32> -> vector<128x128xf32>
    %727 = vector.broadcast %725 : vector<1x128xf32> to vector<128x128xf32>
    %728 = arith.addf %726, %727 : vector<128x128xf32>
    %729 = arith.negf %728 : vector<128x128xf32>
    %730 = math.exp %729 : vector<128x128xf32>
    %cst_279 = arith.constant 1.000000e+00 : f32
    %731 = vector.broadcast %cst_279 : f32 to vector<128x128xf32>
    %732 = arith.addf %731, %730 : vector<128x128xf32>
    %733 = arith.divf %731, %732 : vector<128x128xf32>
    %c0_280 = arith.constant 0 : index
    %c0_281 = arith.constant 0 : index
    %734 = vector.load %arg38[%c0_280, %c0_281] : memref<128x128xf32, #tpu.memory_space<vmem>>, vector<128x128xf32>
    tpu.vector_store %arg38[%c0_280, %c0_281], %733 {strides = array<i32>} : memref<128x128xf32, #tpu.memory_space<vmem>>, vector<128x128xf32>,
    return
  }
  func.func @transform_0(%arg0: i32) -> (i32, i32) {
    %c0_i32 = arith.constant 0 : i32
    %c0_i32_0 = arith.constant 0 : i32
    %c0_i32_1 = arith.constant 0 : i32
    return %c0_i32, %c0_i32_0 : i32, i32
  }
  func.func @transform_1(%arg0: i32) -> (i32, i32) {
    %c0_i32 = arith.constant 0 : i32
    %c0_i32_0 = arith.constant 0 : i32
    %c0_i32_1 = arith.constant 0 : i32
    return %c0_i32, %c0_i32_0 : i32, i32
  }
  func.func @transform_2(%arg0: i32) -> (i32, i32) {
    %c0_i32 = arith.constant 0 : i32
    %c0_i32_0 = arith.constant 0 : i32
    %c0_i32_1 = arith.constant 0 : i32
    return %c0_i32, %c0_i32_0 : i32, i32
  }
  func.func @transform_3(%arg0: i32) -> (i32, i32) {
    %c0_i32 = arith.constant 0 : i32
    %c0_i32_0 = arith.constant 0 : i32
    %c0_i32_1 = arith.constant 0 : i32
    return %c0_i32, %c0_i32_0 : i32, i32
  }
  func.func @transform_4(%arg0: i32) -> (i32, i32) {
    %c0_i32 = arith.constant 0 : i32
    %c0_i32_0 = arith.constant 0 : i32
    %c0_i32_1 = arith.constant 0 : i32
    return %c0_i32, %c0_i32_0 : i32, i32
  }
  func.func @transform_5(%arg0: i32) -> (i32, i32) {
    %c0_i32 = arith.constant 0 : i32
    %c0_i32_0 = arith.constant 0 : i32
    %c0_i32_1 = arith.constant 0 : i32
    return %c0_i32, %c0_i32_0 : i32, i32
  }
  func.func @transform_6(%arg0: i32) -> (i32, i32) {
    %c0_i32 = arith.constant 0 : i32
    %c0_i32_0 = arith.constant 0 : i32
    %c0_i32_1 = arith.constant 0 : i32
    return %c0_i32, %c0_i32_0 : i32, i32
  }
  func.func @transform_7(%arg0: i32) -> (i32, i32) {
    %c0_i32 = arith.constant 0 : i32
    %c0_i32_0 = arith.constant 0 : i32
    %c0_i32_1 = arith.constant 0 : i32
    return %c0_i32, %c0_i32_0 : i32, i32
  }
  func.func @transform_8(%arg0: i32) -> (i32, i32) {
    %c0_i32 = arith.constant 0 : i32
    %c0_i32_0 = arith.constant 0 : i32
    %c0_i32_1 = arith.constant 0 : i32
    return %c0_i32, %c0_i32_0 : i32, i32
  }
  func.func @transform_9(%arg0: i32) -> (i32, i32) {
    %c0_i32 = arith.constant 0 : i32
    %c0_i32_0 = arith.constant 0 : i32
    %c0_i32_1 = arith.constant 0 : i32
    return %c0_i32, %c0_i32_0 : i32, i32
  }
  func.func @transform_10(%arg0: i32) -> (i32, i32) {
    %c0_i32 = arith.constant 0 : i32
    %c0_i32_0 = arith.constant 0 : i32
    %c0_i32_1 = arith.constant 0 : i32
    return %c0_i32, %c0_i32_0 : i32, i32
  }
  func.func @transform_11(%arg0: i32) -> (i32, i32) {
    %c0_i32 = arith.constant 0 : i32
    %c0_i32_0 = arith.constant 0 : i32
    %c0_i32_1 = arith.constant 0 : i32
    return %c0_i32, %c0_i32_0 : i32, i32
  }
  func.func @transform_12(%arg0: i32) -> (i32, i32) {
    %c0_i32 = arith.constant 0 : i32
    %c0_i32_0 = arith.constant 0 : i32
    %c0_i32_1 = arith.constant 0 : i32
    return %c0_i32, %c0_i32_0 : i32, i32
  }
  func.func @transform_13(%arg0: i32) -> (i32, i32) {
    %c0_i32 = arith.constant 0 : i32
    %c0_i32_0 = arith.constant 0 : i32
    %c0_i32_1 = arith.constant 0 : i32
    return %c0_i32, %c0_i32_0 : i32, i32
  }
  func.func @transform_14(%arg0: i32) -> (i32, i32) {
    %c0_i32 = arith.constant 0 : i32
    %c0_i32_0 = arith.constant 0 : i32
    %c0_i32_1 = arith.constant 0 : i32
    return %c0_i32, %c0_i32_0 : i32, i32
  }
  func.func @transform_15(%arg0: i32) -> (i32, i32) {
    %c0_i32 = arith.constant 0 : i32
    %c0_i32_0 = arith.constant 0 : i32
    %c0_i32_1 = arith.constant 0 : i32
    return %c0_i32, %c0_i32_0 : i32, i32
  }
  func.func @transform_16(%arg0: i32) -> (i32, i32) {
    %c0_i32 = arith.constant 0 : i32
    %c0_i32_0 = arith.constant 0 : i32
    %c0_i32_1 = arith.constant 0 : i32
    return %c0_i32, %c0_i32_0 : i32, i32
  }
  func.func @transform_17(%arg0: i32) -> (i32, i32) {
    %c0_i32 = arith.constant 0 : i32
    %c0_i32_0 = arith.constant 0 : i32
    %c0_i32_1 = arith.constant 0 : i32
    return %c0_i32, %c0_i32_0 : i32, i32
  }
  func.func @transform_18(%arg0: i32) -> (i32, i32) {
    %c0_i32 = arith.constant 0 : i32
    %c0_i32_0 = arith.constant 0 : i32
    %c0_i32_1 = arith.constant 0 : i32
    return %c0_i32, %c0_i32_0 : i32, i32
  }
  func.func @transform_19(%arg0: i32) -> (i32, i32) {
    %c0_i32 = arith.constant 0 : i32
    %c0_i32_0 = arith.constant 0 : i32
    %c0_i32_1 = arith.constant 0 : i32
    return %c0_i32, %c0_i32_0 : i32, i32
  }
  func.func @transform_20(%arg0: i32) -> (i32, i32) {
    %c0_i32 = arith.constant 0 : i32
    %c0_i32_0 = arith.constant 0 : i32
    %c0_i32_1 = arith.constant 0 : i32
    return %c0_i32, %c0_i32_0 : i32, i32
  }
  func.func @transform_21(%arg0: i32) -> (i32, i32) {
    %c0_i32 = arith.constant 0 : i32
    %c0_i32_0 = arith.constant 0 : i32
    %c0_i32_1 = arith.constant 0 : i32
    return %c0_i32, %c0_i32_0 : i32, i32
  }
  func.func @transform_22(%arg0: i32) -> (i32, i32) {
    %c0_i32 = arith.constant 0 : i32
    %c0_i32_0 = arith.constant 0 : i32
    %c0_i32_1 = arith.constant 0 : i32
    return %c0_i32, %c0_i32_0 : i32, i32
  }
  func.func @transform_23(%arg0: i32) -> (i32, i32) {
    %c0_i32 = arith.constant 0 : i32
    %c0_i32_0 = arith.constant 0 : i32
    %c0_i32_1 = arith.constant 0 : i32
    return %c0_i32, %c0_i32_0 : i32, i32
  }
  func.func @transform_24(%arg0: i32) -> (i32, i32) {
    %c0_i32 = arith.constant 0 : i32
    %c0_i32_0 = arith.constant 0 : i32
    %c0_i32_1 = arith.constant 0 : i32
    return %c0_i32, %c0_i32_0 : i32, i32
  }
  func.func @transform_25(%arg0: i32) -> (i32, i32) {
    %c0_i32 = arith.constant 0 : i32
    %c0_i32_0 = arith.constant 0 : i32
    %c0_i32_1 = arith.constant 0 : i32
    return %c0_i32, %c0_i32_0 : i32, i32
  }
  func.func @transform_26(%arg0: i32) -> (i32, i32) {
    %c0_i32 = arith.constant 0 : i32
    %c0_i32_0 = arith.constant 0 : i32
    %c0_i32_1 = arith.constant 0 : i32
    return %c0_i32, %c0_i32_0 : i32, i32
  }
  func.func @transform_27(%arg0: i32) -> (i32, i32) {
    %c0_i32 = arith.constant 0 : i32
    %c0_i32_0 = arith.constant 0 : i32
    %c0_i32_1 = arith.constant 0 : i32
    return %c0_i32, %c0_i32_0 : i32, i32
  }
  func.func @transform_28(%arg0: i32) -> (i32, i32) {
    %c0_i32 = arith.constant 0 : i32
    %c0_i32_0 = arith.constant 0 : i32
    %c0_i32_1 = arith.constant 0 : i32
    return %c0_i32, %c0_i32_0 : i32, i32
  }
  func.func @transform_29(%arg0: i32) -> (i32, i32) {
    %c0_i32 = arith.constant 0 : i32
    %c0_i32_0 = arith.constant 0 : i32
    %c0_i32_1 = arith.constant 0 : i32
    return %c0_i32, %c0_i32_0 : i32, i32
  }
  func.func @transform_30(%arg0: i32) -> (i32, i32) {
    %c0_i32 = arith.constant 0 : i32
    %c0_i32_0 = arith.constant 0 : i32
    %c0_i32_1 = arith.constant 0 : i32
    return %c0_i32, %c0_i32_0 : i32, i32
  }
  func.func @transform_31(%arg0: i32) -> (i32, i32) {
    %c0_i32 = arith.constant 0 : i32
    %c0_i32_0 = arith.constant 0 : i32
    %c0_i32_1 = arith.constant 0 : i32
    return %c0_i32, %c0_i32_0 : i32, i32
  }
  func.func @transform_32(%arg0: i32) -> (i32, i32) {
    %c0_i32 = arith.constant 0 : i32
    %c0_i32_0 = arith.constant 0 : i32
    %c0_i32_1 = arith.constant 0 : i32
    return %c0_i32, %c0_i32_0 : i32, i32
  }
  func.func @transform_33(%arg0: i32) -> (i32, i32) {
    %c0_i32 = arith.constant 0 : i32
    %c0_i32_0 = arith.constant 0 : i32
    %c0_i32_1 = arith.constant 0 : i32
    return %c0_i32, %c0_i32_0 : i32, i32
  }
  func.func @transform_34(%arg0: i32) -> (i32, i32) {
    %c0_i32 = arith.constant 0 : i32
    %c0_i32_0 = arith.constant 0 : i32
    %c0_i32_1 = arith.constant 0 : i32
    return %c0_i32, %c0_i32_0 : i32, i32
  }
  func.func @transform_35(%arg0: i32) -> (i32, i32) {
    %c0_i32 = arith.constant 0 : i32
    %c0_i32_0 = arith.constant 0 : i32
    %c0_i32_1 = arith.constant 0 : i32
    return %c0_i32, %c0_i32_0 : i32, i32
  }
  func.func @transform_36(%arg0: i32) -> (i32, i32) {
    %c0_i32 = arith.constant 0 : i32
    %c0_i32_0 = arith.constant 0 : i32
    %c0_i32_1 = arith.constant 0 : i32
    return %c0_i32, %c0_i32_0 : i32, i32
  }
  func.func @transform_37(%arg0: i32) -> (i32, i32) {
    %c0_i32 = arith.constant 0 : i32
    %c0_i32_0 = arith.constant 0 : i32
    %c0_i32_1 = arith.constant 0 : i32
    return %c0_i32, %c0_i32_0 : i32, i32
  }
}

</mosaic_0001>

<bundles_post_ra>
// kernel: tpu_custom_call.1
= control target key start
LH: loop header
LB: loop body
LE: loop exit
PB: predicated region body
PF: predicated region fallthrough
CT: control target
= control target key end

     0   :  { %s10000_s6 = smov 1   ;;  %s10001_s10 = smov 2   ;;  %s12545_s0 = inlined_call_operand.smem [shape: u32[38], index: -1, kind: input, shape index: {}] }
   0x1   :  { %s10067_s5 = sld [smem:[%s12545_s0]]   ;;  %s10002_s14 = smov 3  }
   0x2   :  { %s10072_s9 = sld [smem:[%s12545_s0 + %s10000_s6]]   ;;  %s10003_s18 = smov 4  }
   0x3   :  { %s10077_s13 = sld [smem:[%s12545_s0 + %s10001_s10]]   ;;  %s10004_s22 = smov 5  }
   0x4   :  { %s10082_s17 = sld [smem:[%s12545_s0 + %s10002_s14]]   ;;  %s10005_s26 = smov 6  }
   0x5   :  { %s10087_s21 = sld [smem:[%s12545_s0 + %s10003_s18]]   ;;  %s10006_s30 = smov 7  }
   0x6   :  { %s10092_s25 = sld [smem:[%s12545_s0 + %s10004_s22]]   ;;  %s10007_s4 = smov 8  }
   0x7   :  { %s10097_s29 = sld [smem:[%s12545_s0 + %s10005_s26]]   ;;  %s10008_s10 = smov 9  }
   0x8   :  { %s10102_s3 = sld [smem:[%s12545_s0 + %s10006_s30]]   ;;  %s10009_s15 = smov 10  }
   0x9   :  { %12552 = sst [smem:[#allocation35_spill]] %s10077_s13  ;;  %s10010_s20 = smov 11  }
   0xa   :  { %s10107_s8 = sld [smem:[%s12545_s0 + %s10007_s4]]   ;;  %s10011_s26 = smov 12  }
   0xb   :  { %12553 = sst [smem:[#allocation36_spill]] %s10087_s21  ;;  %s10012_s1 = smov 13  }
   0xc   :  { %s10112_s14 = sld [smem:[%s12545_s0 + %s10008_s10]]   ;;  %s10013_s7 = smov 14  }
   0xd   :  { %12554 = sst [smem:[#allocation37_spill]] %s10097_s29  ;;  %s10015_s22 = smov 16  }
   0xe   :  { %s10117_s19 = sld [smem:[%s12545_s0 + %s10009_s15]]   ;;  %s10014_s15 = smov 15  }
   0xf   :  { %s10122_s24 = sld [smem:[%s12545_s0 + %s10010_s20]]   ;;  %s10016_s28 = smov 17  }
  0x10   :  { %12555 = sst [smem:[#allocation38_spill]] %s10107_s8 }
  0x11   :  { %s10127_s30 = sld [smem:[%s12545_s0 + %s10011_s26]]  }
  0x12   :  { %12556 = sst [smem:[#allocation39_spill]] %s10112_s14 }
  0x13   :  { %s10132_s6 = sld [smem:[%s12545_s0 + %s10012_s1]]  }
  0x14   :  { %12557 = sst [smem:[#allocation40_spill]] %s10117_s19 }
  0x15   :  { %12558 = sst [smem:[#allocation41_spill]] %s10122_s24 }
  0x16   :  { %s10137_s12 = sld [smem:[%s12545_s0 + %s10013_s7]]   ;;  %s10017_s7 = smov 18  }
  0x17   :  { %s10142_s20 = sld [smem:[%s12545_s0 + %s10014_s15]]   ;;  %s10018_s15 = smov 19  }
  0x18   :  { %s10147_s27 = sld [smem:[%s12545_s0 + %s10015_s22]]   ;;  %s10019_s22 = smov 20  }
  0x19   :  { %12559 = sst [smem:[#allocation42_spill]] %s10132_s6 }
  0x1a   :  { %s10152_s4 = sld [smem:[%s12545_s0 + %s10016_s28]]   ;;  %s10020_s28 = smov 21  }
  0x1b   :  { %s10157_s13 = sld [smem:[%s12545_s0 + %s10017_s7]]   ;;  %s10021_s7 = smov 22  }
  0x1d   :  { %12560 = sst [smem:[#allocation43_spill]] %s10142_s20 }
  0x1e   :  { %12561 = sst [smem:[#allocation44_spill]] %s10147_s27 }
  0x1f   :  { %s10162_s20 = sld [smem:[%s12545_s0 + %s10018_s15]]   ;;  %s10022_s15 = smov 23  }
  0x20   :  { %12562 = sst [smem:[#allocation45_spill]] %s10152_s4 }
  0x21   :  { %12563 = sst [smem:[#allocation46_spill]] %s10157_s13 }
  0x22   :  { %s10167_s27 = sld [smem:[%s12545_s0 + %s10019_s22]]   ;;  %s10023_s22 = smov 24  }
  0x23   :  { %s10172_s4 = sld [smem:[%s12545_s0 + %s10020_s28]]   ;;  %s10024_s28 = smov 25  }
  0x24   :  { %s10177_s13 = sld [smem:[%s12545_s0 + %s10021_s7]]   ;;  %s10025_s7 = smov 26  }
  0x25   :  { %s10182_s6 = sld [smem:[%s12545_s0 + %s10022_s15]]   ;;  %s10026_s15 = smov 27  }
  0x26   :  { %s10192_s24 = sld [smem:[%s12545_s0 + %s10024_s28]]   ;;  %s10028_s28 = smov 29  }
  0x27   :  { %s10202_s19 = sld [smem:[%s12545_s0 + %s10026_s15]]   ;;  %s10030_s15 = smov 31  }
  0x28   :  { %12564 = sst [smem:[#allocation47_spill]] %s10167_s27 }
  0x29   :  { %s10187_s27 = sld [smem:[%s12545_s0 + %s10023_s22]]   ;;  %s10027_s22 = smov 28  }
  0x2a   :  { %12565 = sst [smem:[#allocation48_spill]] %s10177_s13 }
  0x2b   :  { %s10197_s13 = sld [smem:[%s12545_s0 + %s10025_s7]]   ;;  %s10029_s7 = smov 30  }
  0x2c   :  { %12567 = sst [smem:[#allocation50_spill]] %s10192_s24 }
  0x2d   :  { %s10212_s24 = sld [smem:[%s12545_s0 + %s10028_s28]]   ;;  %s10032_s28 = smov 33  }
  0x2e   :  { %s10222_s14 = sld [smem:[%s12545_s0 + %s10030_s15]]   ;;  %s10034_s15 = smov 35  }
  0x2f   :  { %12566 = sst [smem:[#allocation49_spill]] %s10187_s27 }
  0x30   :  { %s10207_s27 = sld [smem:[%s12545_s0 + %s10027_s22]]   ;;  %s10031_s22 = smov 32  }
  0x31   :  { %12568 = sst [smem:[#allocation51_spill]] %s10197_s13 }
  0x32   :  { %s10217_s13 = sld [smem:[%s12545_s0 + %s10029_s7]]   ;;  %s10033_s7 = smov 34  }
  0x33   :  { %s10232_s8 = sld [smem:[%s12545_s0 + %s10032_s28]]   ;;  %s10036_s28 = smov 37  }
  0x34   :  { %s10242_s29 = sld [smem:[%s12545_s0 + %s10034_s15]]  }
  0x35   :  { %s10252_s21 = sld [smem:[%s12545_s0 + %s10036_s28]]  }
  0x36   :  { %12569 = sst [smem:[#allocation52_spill]] %s10207_s27 }
  0x37   :  { %s10227_s27 = sld [smem:[%s12545_s0 + %s10031_s22]]   ;;  %s10035_s22 = smov 36  }
  0x38   :  { %12570 = sst [smem:[#allocation53_spill]] %s10217_s13 }
  0x39   :  { %s10237_s13 = sld [smem:[%s12545_s0 + %s10033_s7]]  }
  0x3d   :  { %12571 = sst [smem:[#allocation54_spill]] %s10227_s27 }
  0x3e   :  { %s10247_s27 = sld [smem:[%s12545_s0 + %s10035_s22]]  }
  0x3f   :  { %80 = vsyncpa [#allocation3], 0 }
  0x40   :  { %81 = vsyncpa [#allocation6], 0 }
  0x41   :  { %82 = vsyncpa [#allocation9], 0 }
  0x42   :  { %83 = vsyncpa [#allocation12], 0 }
  0x43   :  { %84 = vsyncpa [#allocation15], 0 }
  0x44   :  { %85 = vsyncpa [#allocation18], 0 }
  0x45   :  { %86 = vsyncpa [#allocation21], 0 }
  0x46   :  { %87 = vsyncpa [#allocation24], 0 }
  0x47   :  { %88 = vsyncpa [#allocation4], 0  ;;  %s10037_s7 = smov [#allocation5]   ;;  %s10038_s11 = smov [#allocation8]  }
  0x48   :  { %s110_s10 = sshll.u32 %s10037_s7, 4  ;;  %s138_s15 = sshll.u32 %s10038_s11, 4  ;;  %s111_s10 = int_to_ptr.vmem [resolvable:$true] %s110_s10  ;;  %s10254_s15 = int_to_ptr.vmem [resolvable:$true] %s138_s15 }
  0x49   :  { %s9652_s0 = scalar_lea.hbm %s10082_s17, 256 }
  0x4a   :  { %p9653_p0 = scmp.ne.s32.totalorder %s10082_s17, %s9652_s0  ;;  %p9656_p1 = scmp.lt.u32.totalorder %s9652_s0, %s10082_s17 }
  0x4c   :  { %p9658_p2 = pnand %p9656_p1, %p9653_p0 }
  0x4e   :  { %9661 = shalt.err (!%p9658_p2)
}
  0x4f   :  { %s9662_s16 = scalar_lea.vmem %s111_s10, 256  ;;  %p9667_p4 = scmp.lt.s32.totalorder %s111_s10, %s111_s10 }
  0x50   :  { %p9663_p3 = scmp.ne.s32.totalorder %s111_s10, %s9662_s16  ;;  %p9668_p5 = scmp.lt.s32.totalorder %s9662_s16, %s9662_s16 }
  0x52   :  { %p9669_p6 = por %p9668_p5, %p9667_p4 }
  0x54   :  { %p9670_p7 = pnand %p9669_p6, %p9663_p3 }
  0x56   :  { %9673 = shalt.err (!%p9670_p7)
}
  0x57   :  { %s10039_s18 = smov 128   ;;  %s10040_s22 = smov 8  }
  0x58   :  { %116 = dma.hbm_to_vmem [thread:$0]  %s10082_s17, 256, %s111_s10, [#allocation6], %s10039_s18, %s10039_s18, %s10040_s22  }
  0x59   :  { %s9674_s23 = scalar_lea.hbm %s10102_s3, 3072 }
  0x5a   :  { %p9675_p8 = scmp.ne.s32.totalorder %s10102_s3, %s9674_s23  ;;  %p9678_p9 = scmp.lt.u32.totalorder %s9674_s23, %s10102_s3 }
  0x5c   :  { %p9680_p10 = pnand %p9678_p9, %p9675_p8 }
  0x5e   :  { %9683 = shalt.err (!%p9680_p10)
}
  0x5f   :  { %s9684_s26 = scalar_lea.vmem %s10254_s15, 3072  ;;  %p9689_p12 = scmp.lt.s32.totalorder %s10254_s15, %s10254_s15 }
  0x60   :  { %p9685_p11 = scmp.ne.s32.totalorder %s10254_s15, %s9684_s26  ;;  %p9690_p13 = scmp.lt.s32.totalorder %s9684_s26, %s9684_s26 }
  0x62   :  { %p9691_p0 = por %p9690_p13, %p9689_p12 }
  0x64   :  { %p9692_p1 = pnand %p9691_p0, %p9685_p11 }
  0x66   :  { %9695 = shalt.err (!%p9692_p1)
}
  0x67   :  { %144 = dma.hbm_to_vmem [thread:$0]  %s10102_s3, 3072, %s10254_s15, [#allocation9], %s10039_s18, %s10039_s18, %s10040_s22  }
  0x68   :  { %s10041_s17 = smov [#allocation11]   ;;  %s10042_s1 = smov [#allocation14]  }
  0x69   :  { %s172_s28 = sshll.u32 %s10041_s17, 4  ;;  %s206_s2 = sshll.u32 %s10042_s1, 4  ;;  %s173_s28 = int_to_ptr.vmem [resolvable:$true] %s172_s28  ;;  %s10275_s2 = int_to_ptr.vmem [resolvable:$true] %s206_s2 }
  0x6a   :  { %s9696_s7 = scalar_lea.hbm %s10137_s12, 3072 }
  0x6b   :  { %p9697_p2 = scmp.ne.s32.totalorder %s10137_s12, %s9696_s7  ;;  %p9700_p3 = scmp.lt.u32.totalorder %s9696_s7, %s10137_s12 }
  0x6d   :  { %p9702_p4 = pnand %p9700_p3, %p9697_p2 }
  0x6f   :  { %9705 = shalt.err (!%p9702_p4)
}
  0x70   :  { %s9706_s10 = scalar_lea.vmem %s173_s28, 3072  ;;  %p9711_p6 = scmp.lt.s32.totalorder %s173_s28, %s173_s28 }
  0x71   :  { %p9707_p5 = scmp.ne.s32.totalorder %s173_s28, %s9706_s10  ;;  %p9712_p7 = scmp.lt.s32.totalorder %s9706_s10, %s9706_s10 }
  0x73   :  { %p9713_p8 = por %p9712_p7, %p9711_p6 }
  0x75   :  { %p9714_p9 = pnand %p9713_p8, %p9707_p5 }
  0x77   :  { %9717 = shalt.err (!%p9714_p9)
}
  0x78   :  { %178 = dma.hbm_to_vmem [thread:$0]  %s10137_s12, 3072, %s173_s28, [#allocation12], %s10039_s18, %s10039_s18, %s10040_s22  }
  0x79   :  { %s9718_s3 = scalar_lea.hbm %s10172_s4, 3072 }
  0x7a   :  { %p9719_p10 = scmp.ne.s32.totalorder %s10172_s4, %s9718_s3  ;;  %p9722_p11 = scmp.lt.u32.totalorder %s9718_s3, %s10172_s4 }
  0x7c   :  { %p9724_p12 = pnand %p9722_p11, %p9719_p10 }
  0x7e   :  { %9727 = shalt.err (!%p9724_p12)
}
  0x7f   :  { %s9728_s11 = scalar_lea.vmem %s10275_s2, 3072  ;;  %p9733_p0 = scmp.lt.s32.totalorder %s10275_s2, %s10275_s2 }
  0x80   :  { %p9729_p13 = scmp.ne.s32.totalorder %s10275_s2, %s9728_s11  ;;  %p9734_p1 = scmp.lt.s32.totalorder %s9728_s11, %s9728_s11 }
  0x82   :  { %p9735_p2 = por %p9734_p1, %p9733_p0 }
  0x84   :  { %p9736_p3 = pnand %p9735_p2, %p9729_p13 }
  0x86   :  { %9739 = shalt.err (!%p9736_p3)
}
  0x87   :  { %212 = dma.hbm_to_vmem [thread:$0]  %s10172_s4, 3072, %s10275_s2, [#allocation15], %s10039_s18, %s10039_s18, %s10040_s22  }
  0x88   :  { %s10043_s12 = smov [#allocation17]   ;;  %s9740_s0 = scalar_lea.hbm %s10202_s19, 12288 }
  0x89   :  { %s238_s15 = sshll.u32 %s10043_s12, 4  ;;  %p9741_p4 = scmp.ne.s32.totalorder %s10202_s19, %s9740_s0  ;;  %s239_s15 = int_to_ptr.vmem [resolvable:$true] %s238_s15 }
  0x8a   :  { %p9744_p5 = scmp.lt.u32.totalorder %s9740_s0, %s10202_s19 }
  0x8c   :  { %p9746_p6 = pnand %p9744_p5, %p9741_p4 }
  0x8e   :  { %9749 = shalt.err (!%p9746_p6)
}
  0x8f   :  { %s9750_s16 = scalar_lea.vmem %s239_s15, 12288  ;;  %p9755_p8 = scmp.lt.s32.totalorder %s239_s15, %s239_s15 }
  0x90   :  { %p9751_p7 = scmp.ne.s32.totalorder %s239_s15, %s9750_s16  ;;  %p9756_p9 = scmp.lt.s32.totalorder %s9750_s16, %s9750_s16 }
  0x92   :  { %p9757_p10 = por %p9756_p9, %p9755_p8 }
  0x94   :  { %p9758_p11 = pnand %p9757_p10, %p9751_p7 }
  0x96   :  { %9761 = shalt.err (!%p9758_p11)
}
  0x97   :  { %s10044_s23 = smov 256   ;;  %s10045_s4 = smov 16  }
  0x98   :  { %244 = dma.hbm_to_vmem [thread:$0]  %s10202_s19, 12288, %s239_s15, [#allocation18], %s10044_s23, %s10044_s23, %s10045_s4  }
  0x99   :  { %s10046_s26 = smov [#allocation20]   ;;  %s10047_s28 = smov [#allocation2]  }
  0x9a   :  { %s266_s17 = sshll.u32 %s10046_s26, 4  ;;  %s96_s1 = sshll.u32 %s10047_s28, 4  ;;  %s267_s17 = int_to_ptr.vmem [resolvable:$true] %s266_s17  ;;  %s97_s1 = int_to_ptr.vmem [resolvable:$true] %s96_s1 }
  0x9b   :  { %s9762_s2 = scalar_lea.hbm %s10222_s14, 2048 }
  0x9c   :  { %p9763_p12 = scmp.ne.s32.totalorder %s10222_s14, %s9762_s2  ;;  %p9766_p13 = scmp.lt.u32.totalorder %s9762_s2, %s10222_s14 }
  0x9e   :  { %p9768_p0 = pnand %p9766_p13, %p9763_p12 }
  0xa0   :  { %9771 = shalt.err (!%p9768_p0)
}
  0xa1   :  { %s9772_s7 = scalar_lea.vmem %s267_s17, 2048  ;;  %p9777_p2 = scmp.lt.s32.totalorder %s267_s17, %s267_s17 }
  0xa2   :  { %p9773_p1 = scmp.ne.s32.totalorder %s267_s17, %s9772_s7  ;;  %p9778_p3 = scmp.lt.s32.totalorder %s9772_s7, %s9772_s7 }
  0xa4   :  { %p9779_p4 = por %p9778_p3, %p9777_p2 }
  0xa6   :  { %p9780_p5 = pnand %p9779_p4, %p9773_p1 }
  0xa8   :  { %9783 = shalt.err (!%p9780_p5)
}
  0xa9   :  { %272 = dma.hbm_to_vmem [thread:$0]  %s10222_s14, 2048, %s267_s17, [#allocation21], %s10039_s18, %s10039_s18, %s10040_s22  }
  0xaa   :  { %s9784_s19 = scalar_lea.hbm %s10072_s9, 1024 }
  0xab   :  { %p9785_p6 = scmp.ne.s32.totalorder %s10072_s9, %s9784_s19  ;;  %p9788_p7 = scmp.lt.u32.totalorder %s9784_s19, %s10072_s9 }
  0xad   :  { %p9790_p8 = pnand %p9788_p7, %p9785_p6 }
  0xaf   :  { %9793 = shalt.err (!%p9790_p8)
}
  0xb0   :  { %s9794_s10 = scalar_lea.vmem %s97_s1, 1024  ;;  %p9799_p10 = scmp.lt.s32.totalorder %s97_s1, %s97_s1 }
  0xb1   :  { %p9795_p9 = scmp.ne.s32.totalorder %s97_s1, %s9794_s10  ;;  %p9800_p11 = scmp.lt.s32.totalorder %s9794_s10, %s9794_s10 }
  0xb3   :  { %p9801_p12 = por %p9800_p11, %p9799_p10 }
  0xb5   :  { %p9802_p13 = pnand %p9801_p12, %p9795_p9 }
  0xb7   :  { %9805 = shalt.err (!%p9802_p13)
}
  0xb8   :  { %102 = dma.hbm_to_vmem [thread:$0]  %s10072_s9, 1024, %s97_s1, [#allocation3], %s10039_s18, %s10039_s18, %s10040_s22  }
  0xb9   :  { %s10048_s14 = smov [#allocation7]   ;;  %s10049_s11 = smov [#allocation10]  }
  0xba   :  { %s124_s3 = sshll.u32 %s10048_s14, 4  ;;  %s158_s12 = sshll.u32 %s10049_s11, 4  ;;  %s125_s3 = int_to_ptr.vmem [resolvable:$true] %s124_s3  ;;  %s159_s12 = int_to_ptr.vmem [resolvable:$true] %s158_s12 }
  0xbb   :  { %s9806_s15 = scalar_lea.hbm %s10092_s25, 3072 }
  0xbc   :  { %p9807_p0 = scmp.ne.s32.totalorder %s10092_s25, %s9806_s15  ;;  %p9810_p1 = scmp.lt.u32.totalorder %s9806_s15, %s10092_s25 }
  0xbe   :  { %p9812_p2 = pnand %p9810_p1, %p9807_p0 }
  0xc0   :  { %9815 = shalt.err (!%p9812_p2)
}
  0xc1   :  { %s9816_s0 = scalar_lea.vmem %s125_s3, 3072  ;;  %p9821_p4 = scmp.lt.s32.totalorder %s125_s3, %s125_s3 }
  0xc2   :  { %p9817_p3 = scmp.ne.s32.totalorder %s125_s3, %s9816_s0  ;;  %p9822_p5 = scmp.lt.s32.totalorder %s9816_s0, %s9816_s0 }
  0xc4   :  { %p9823_p6 = por %p9822_p5, %p9821_p4 }
  0xc6   :  { %p9824_p7 = pnand %p9823_p6, %p9817_p3 }
  0xc8   :  { %9827 = shalt.err (!%p9824_p7)
}
  0xc9   :  { %130 = dma.hbm_to_vmem [thread:$0]  %s10092_s25, 3072, %s125_s3, [#allocation6], %s10039_s18, %s10039_s18, %s10040_s22  }
  0xca   :  { %s9828_s9 = scalar_lea.hbm %s10127_s30, 3072 }
  0xcb   :  { %p9829_p8 = scmp.ne.s32.totalorder %s10127_s30, %s9828_s9  ;;  %p9832_p9 = scmp.lt.u32.totalorder %s9828_s9, %s10127_s30 }
  0xcd   :  { %p9834_p10 = pnand %p9832_p9, %p9829_p8 }
  0xcf   :  { %9837 = shalt.err (!%p9834_p10)
}
  0xd0   :  { %s9838_s16 = scalar_lea.vmem %s159_s12, 3072  ;;  %p9843_p12 = scmp.lt.s32.totalorder %s159_s12, %s159_s12 }
  0xd1   :  { %p9839_p11 = scmp.ne.s32.totalorder %s159_s12, %s9838_s16  ;;  %p9844_p13 = scmp.lt.s32.totalorder %s9838_s16, %s9838_s16 }
  0xd3   :  { %p9845_p0 = por %p9844_p13, %p9843_p12 }
  0xd5   :  { %p9846_p1 = pnand %p9845_p0, %p9839_p11 }
  0xd7   :  { %9849 = shalt.err (!%p9846_p1)
}
  0xd8   :  { %164 = dma.hbm_to_vmem [thread:$0]  %s10127_s30, 3072, %s159_s12, [#allocation9], %s10039_s18, %s10039_s18, %s10040_s22  }
  0xd9   :  { %s10050_s25 = smov [#allocation13]   ;;  %s10051_s4 = smov [#allocation16]  }
  0xda   :  { %s192_s23 = sshll.u32 %s10050_s25, 4  ;;  %s220_s26 = sshll.u32 %s10051_s4, 4  ;;  %s193_s23 = int_to_ptr.vmem [resolvable:$true] %s192_s23  ;;  %s221_s26 = int_to_ptr.vmem [resolvable:$true] %s220_s26 }
  0xdb   :  { %s9850_s17 = scalar_lea.hbm %s10162_s20, 3072 }
  0xdc   :  { %p9851_p2 = scmp.ne.s32.totalorder %s10162_s20, %s9850_s17  ;;  %p9854_p3 = scmp.lt.u32.totalorder %s9850_s17, %s10162_s20 }
  0xde   :  { %p9856_p4 = pnand %p9854_p3, %p9851_p2 }
  0xe0   :  { %9859 = shalt.err (!%p9856_p4)
}
  0xe1   :  { %s9860_s28 = scalar_lea.vmem %s193_s23, 3072  ;;  %p9865_p6 = scmp.lt.s32.totalorder %s193_s23, %s193_s23 }
  0xe2   :  { %p9861_p5 = scmp.ne.s32.totalorder %s193_s23, %s9860_s28  ;;  %p9866_p7 = scmp.lt.s32.totalorder %s9860_s28, %s9860_s28 }
  0xe4   :  { %p9867_p8 = por %p9866_p7, %p9865_p6 }
  0xe6   :  { %p9868_p9 = pnand %p9867_p8, %p9861_p5 }
  0xe8   :  { %9871 = shalt.err (!%p9868_p9)
}
  0xe9   :  { %198 = dma.hbm_to_vmem [thread:$0]  %s10162_s20, 3072, %s193_s23, [#allocation12], %s10039_s18, %s10039_s18, %s10040_s22  }
  0xea   :  { %s9872_s30 = scalar_lea.hbm %s10182_s6, 1024 }
  0xeb   :  { %p9873_p10 = scmp.ne.s32.totalorder %s10182_s6, %s9872_s30  ;;  %p9876_p11 = scmp.lt.u32.totalorder %s9872_s30, %s10182_s6 }
  0xed   :  { %p9878_p12 = pnand %p9876_p11, %p9873_p10 }
  0xef   :  { %9881 = shalt.err (!%p9878_p12)
}
  0xf0   :  { %s9882_s1 = scalar_lea.vmem %s221_s26, 1024  ;;  %p9887_p0 = scmp.lt.s32.totalorder %s221_s26, %s221_s26 }
  0xf1   :  { %p9883_p13 = scmp.ne.s32.totalorder %s221_s26, %s9882_s1  ;;  %p9888_p1 = scmp.lt.s32.totalorder %s9882_s1, %s9882_s1 }
  0xf3   :  { %p9889_p2 = por %p9888_p1, %p9887_p0 }
  0xf5   :  { %p9890_p3 = pnand %p9889_p2, %p9883_p13 }
  0xf7   :  { %9893 = shalt.err (!%p9890_p3)
}
  0xf8   :  { %226 = dma.hbm_to_vmem [thread:$0]  %s10182_s6, 1024, %s221_s26, [#allocation15], %s10039_s18, %s10039_s18, %s10040_s22  }
  0xf9   :  { %s10052_s20 = smov [#allocation19]   ;;  %s10053_s7 = smov [#allocation22]  }
  0xfa   :  { %s252_s2 = sshll.u32 %s10052_s20, 4  ;;  %s280_s19 = sshll.u32 %s10053_s7, 4  ;;  %s253_s2 = int_to_ptr.vmem [resolvable:$true] %s252_s2  ;;  %s281_s19 = int_to_ptr.vmem [resolvable:$true] %s280_s19 }
  0xfb   :  { %s9894_s10 = scalar_lea.hbm %s10212_s24, 2048 }
  0xfc   :  { %p9895_p4 = scmp.ne.s32.totalorder %s10212_s24, %s9894_s10  ;;  %p9898_p5 = scmp.lt.u32.totalorder %s9894_s10, %s10212_s24 }
  0xfe   :  { %p9900_p6 = pnand %p9898_p5, %p9895_p4 }
 0x100   :  { %9903 = shalt.err (!%p9900_p6)
}
 0x101   :  { %s9904_s14 = scalar_lea.vmem %s253_s2, 2048  ;;  %p9909_p8 = scmp.lt.s32.totalorder %s253_s2, %s253_s2 }
 0x102   :  { %p9905_p7 = scmp.ne.s32.totalorder %s253_s2, %s9904_s14  ;;  %p9910_p9 = scmp.lt.s32.totalorder %s9904_s14, %s9904_s14 }
 0x104   :  { %p9911_p10 = por %p9910_p9, %p9909_p8 }
 0x106   :  { %p9912_p11 = pnand %p9911_p10, %p9905_p7 }
 0x108   :  { %9915 = shalt.err (!%p9912_p11)
}
 0x109   :  { %258 = dma.hbm_to_vmem [thread:$0]  %s10212_s24, 2048, %s253_s2, [#allocation18], %s10039_s18, %s10039_s18, %s10040_s22  }
 0x10a   :  { %s9916_s6 = scalar_lea.hbm %s10232_s8, 2048 }
 0x10b   :  { %p9917_p12 = scmp.ne.s32.totalorder %s10232_s8, %s9916_s6  ;;  %p9920_p13 = scmp.lt.u32.totalorder %s9916_s6, %s10232_s8 }
 0x10d   :  { %p9922_p0 = pnand %p9920_p13, %p9917_p12 }
 0x10f   :  { %9925 = shalt.err (!%p9922_p0)
}
 0x110   :  { %s9926_s3 = scalar_lea.vmem %s281_s19, 2048  ;;  %p9931_p2 = scmp.lt.s32.totalorder %s281_s19, %s281_s19 }
 0x111   :  { %p9927_p1 = scmp.ne.s32.totalorder %s281_s19, %s9926_s3  ;;  %p9932_p3 = scmp.lt.s32.totalorder %s9926_s3, %s9926_s3 }
 0x113   :  { %p9933_p4 = por %p9932_p3, %p9931_p2 }
 0x115   :  { %p9934_p5 = pnand %p9933_p4, %p9927_p1 }
 0x117   :  { %9937 = shalt.err (!%p9934_p5)
}
 0x118   :  { %286 = dma.hbm_to_vmem [thread:$0]  %s10232_s8, 2048, %s281_s19, [#allocation21], %s10039_s18, %s10039_s18, %s10040_s22  }
 0x119   :  { %s10054_s24 = smov [#allocation23]   ;;  %s9938_s12 = scalar_lea.hbm %s10242_s29, 2048 }
 0x11a   :  { %s294_s11 = sshll.u32 %s10054_s24, 4  ;;  %p9939_p6 = scmp.ne.s32.totalorder %s10242_s29, %s9938_s12  ;;  %s295_s11 = int_to_ptr.vmem [resolvable:$true] %s294_s11 }
 0x11b   :  { %p9942_p7 = scmp.lt.u32.totalorder %s9938_s12, %s10242_s29 }
 0x11d   :  { %p9944_p8 = pnand %p9942_p7, %p9939_p6 }
 0x11f   :  { %9947 = shalt.err (!%p9944_p8)
}
 0x120   :  { %s9948_s15 = scalar_lea.vmem %s295_s11, 2048  ;;  %p9953_p10 = scmp.lt.s32.totalorder %s295_s11, %s295_s11 }
 0x121   :  { %p9949_p9 = scmp.ne.s32.totalorder %s295_s11, %s9948_s15  ;;  %p9954_p11 = scmp.lt.s32.totalorder %s9948_s15, %s9948_s15 }
 0x123   :  { %p9955_p12 = por %p9954_p11, %p9953_p10 }
 0x125   :  { %p9956_p13 = pnand %p9955_p12, %p9949_p9 }
 0x127   :  { %9959 = shalt.err (!%p9956_p13)
}
 0x128   :  { %300 = dma.hbm_to_vmem [thread:$0]  %s10242_s29, 2048, %s295_s11, [#allocation24], %s10039_s18, %s10039_s18, %s10040_s22  }
 0x129   :  { %9982 = dma.done.wait [#allocation3], 1024  }
 0x12a   :  { %9983 = vsyncadd [#allocation3], 4294966272 }
 0x12b   :  { %9984 = dma.done.wait [#allocation6], 3328  }
 0x12c   :  { %9985 = vsyncadd [#allocation6], 4294963968 }
 0x12d   :  { %9986 = dma.done.wait [#allocation9], 6144  }
 0x12e   :  { %9987 = vsyncadd [#allocation9], 4294961152 }
 0x12f   :  { %9988 = dma.done.wait [#allocation12], 6144  }
 0x130   :  { %9989 = vsyncadd [#allocation12], 4294961152 }
 0x131   :  { %9990 = dma.done.wait [#allocation15], 4096  }
 0x132   :  { %9991 = vsyncadd [#allocation15], 4294963200 }
 0x133   :  { %9992 = dma.done.wait [#allocation18], 14336  }
 0x134   :  { %9993 = vsyncadd [#allocation18], 4294952960 }
 0x135   :  { %9994 = dma.done.wait [#allocation21], 4096  }
 0x136   :  { %9995 = vsyncadd [#allocation21], 4294963200 }
 0x137   :  { %9996 = dma.done.wait [#allocation24], 2048  }
 0x138   :  { %9997 = vsyncadd [#allocation24], 4294965248  ;;  %vm358_vm0 = vcmask 130048   ;;  %v349_v0 = vld [vmem:[#allocation5] sm:$0xff]  ;;  %v350_v1 = vld [vmem:[#allocation5 + $0x8] sm:$0xff]  ;;  %v10055_v10 = vmov 0.0|0.0   ;;  %v485_v60 = vlaneseq }
 0x139   :  { %v345_v2 = vld [vmem:[%s10067_s5] sm:$0xff]  ;;  %v8241_v3 = vpack.c.bf16 %v350_v1, %v349_v0  ;;  %v346_v4 = vld [vmem:[%s10067_s5 + $0x8] sm:$0xff]  ;;  %v347_v5 = vld [vmem:[%s10067_s5 + $0x10] sm:$0xff]  ;;  %8245 = vmatprep.subr.bf16.mxu1 %v10055_v10  ;;  %vm571_vm1 = vcmask 1046528   ;;  %s10056_s29 = smov 64   ;;  %vm612_vm2 = vcmask 523264  }
 0x13a   :  { %7723 = vmatprep.mubr.msk.f32.mxu0 %vm358_vm0, %v345_v2  ;;  %v348_v6 = vld [vmem:[%s10067_s5 + $0x18] sm:$0xff]  ;;  %v460_v7 = vld [vmem:[#allocation7] sm:$0xff]  ;;  %v462_v9 = vld [vmem:[#allocation7 + $0x10] sm:$0xff]  ;;  %s12572_s5 = sld [smem:[#allocation36_spill]]  ;;  %v10401_v61 = vshrl.u32 %v485_v60, 7  ;;  %vm542_vm3 = vcmask 1040384  }
 0x13b   :  { %8242 = vmatprep.subr.bf16.mxu0 %v8241_v3  ;;  %v461_v8 = vld [vmem:[#allocation7 + $0x8] sm:$0xff]  ;;  %v463_v12 = vld [vmem:[#allocation7 + $0x18] sm:$0xff]  ;;  %v464_v14 = vld [vmem:[#allocation7 + $0x20] sm:$0xff]  ;;  %s12579_s8 = sld [smem:[#allocation37_spill]]  ;;  %vm834_vm8 = vcmask 1044480   ;;  %vm805_vm9 = vcmask 1042432  }
 0x13c   :  { %8244 = vmatpush3.bf16.msra.mxu0 %v8241_v3  ;;  %v8246_v11 = vpack.c.bf16 %v461_v8, %v460_v7  ;;  %v8249_v13 = vpack.c.bf16 %v463_v12, %v462_v9  ;;  %v465_v15 = vld [vmem:[#allocation7 + $0x28] sm:$0xff]  ;;  %v466_v17 = vld [vmem:[#allocation7 + $0x30] sm:$0xff]  ;;  %v467_v18 = vld [vmem:[#allocation7 + $0x38] sm:$0xff]  ;;  %v10404_v62 = vadd.s32 8, %v10401_v61  ;;  %v494_v63 = vand.u32 15, %v10401_v61  ;;  %s12582_s0 = sld [smem:[#allocation38_spill]] }
 0x13d   :  { %8281 = vmatprep.subr.bf16.mxu0 %v10055_v10  ;;  %v8252_v16 = vpack.c.bf16 %v465_v15, %v464_v14  ;;  %v8255_v19 = vpack.c.bf16 %v467_v18, %v466_v17  ;;  %v468_v20 = vld [vmem:[#allocation7 + $0x40] sm:$0xff]  ;;  %v469_v21 = vld [vmem:[#allocation7 + $0x48] sm:$0xff]  ;;  %v470_v23 = vld [vmem:[#allocation7 + $0x50] sm:$0xff]  ;;  %v10428_v8 = vadd.s32 24, %v10401_v61  ;;  %s12583_s9 = sld [smem:[#allocation39_spill]]  ;;  %s12584_s16 = sld [smem:[#allocation40_spill]] }
 0x13e   :  { %8247 = vmatpush1.bf16.msra.mxu1 %v8246_v11  ;;  %v8258_v22 = vpack.c.bf16 %v469_v21, %v468_v20  ;;  %v471_v24 = vld [vmem:[#allocation7 + $0x58] sm:$0xff]  ;;  %v472_v26 = vld [vmem:[#allocation7 + $0x60] sm:$0xff]  ;;  %v473_v27 = vld [vmem:[#allocation7 + $0x68] sm:$0xff]  ;;  %v501_v1 = vand.u32 15, %v10404_v62  ;;  %vm10413_vm4 = vcmp.ge.s32.totalorder %v494_v63, 1  ;;  %vm818_vm10 = vcmp.ge.s32.totalorder %v494_v63, 3 }
 0x13f   :  { %7724 = vmatmul.mubr.msk.f32.vlgmr.msra.gmra.mrb[0].mxu0 %vm358_vm0, %v346_v4  ;;  %8248 = vmatprep.subr.bf16.mxu1 %v10055_v10  ;;  %v8261_v25 = vpack.c.bf16 %v471_v24, %v470_v23  ;;  %v8264_v28 = vpack.c.bf16 %v473_v27, %v472_v26  ;;  %v474_v29 = vld [vmem:[#allocation7 + $0x70] sm:$0xff]  ;;  %v475_v30 = vld [vmem:[#allocation7 + $0x78] sm:$0xff]  ;;  %v476_v32 = vld [vmem:[#allocation7 + $0x80] sm:$0xff]  ;;  %v515_v18 = vand.u32 15, %v10428_v8  ;;  %s12585_s25 = sld [smem:[#allocation41_spill]]  ;;  %s12592_s23 = sld [smem:[#allocation42_spill]] }
 0x140   :  { %7726 = vmatprep.mubr.msk.f32.mxu0 %vm358_vm0, %v347_v5  ;;  %v8267_v31 = vpack.c.bf16 %v475_v30, %v474_v29  ;;  %v477_v33 = vld [vmem:[#allocation7 + $0x88] sm:$0xff]  ;;  %v478_v35 = vld [vmem:[#allocation7 + $0x90] sm:$0xff]  ;;  %v479_v36 = vld [vmem:[#allocation7 + $0x98] sm:$0xff]  ;;  %v10418_v5 = vadd.s32 16, %v10401_v61  ;;  %vm10423_vm5 = vcmp.lt.s32.totalorder %v501_v1, 15  ;;  %vm848_vm11 = vcmp.lt.s32.totalorder %v501_v1, 13 }
 0x141   :  { %v8270_v34 = vpack.c.bf16 %v477_v33, %v476_v32  ;;  %v8273_v37 = vpack.c.bf16 %v479_v36, %v478_v35  ;;  %v480_v38 = vld [vmem:[#allocation7 + $0xa0] sm:$0xff]  ;;  %v481_v39 = vld [vmem:[#allocation7 + $0xa8] sm:$0xff]  ;;  %v482_v41 = vld [vmem:[#allocation7 + $0xb0] sm:$0xff]  ;;  %vm10455_vm7 = vcmp.lt.s32.totalorder %v515_v18, 15  ;;  %vm850_vm13 = vcmp.lt.s32.totalorder %v515_v18, 13  ;;  %s12595_s4 = sld [smem:[#allocation43_spill]] }
 0x142   :  { %8250 = vmatpush1.bf16.msra.mxu1 %v8249_v13  ;;  %v8276_v40 = vpack.c.bf16 %v481_v39, %v480_v38  ;;  %v483_v42 = vld [vmem:[#allocation7 + $0xb8] sm:$0xff]  ;;  %v7215_v44 = vld [vmem:[%s12572_s5] ss:$0 sm:$0xff]  ;;  %v508_v15 = vand.u32 15, %v10418_v5  ;;  %s12596_s26 = sld [smem:[#allocation44_spill]]  ;;  %s12597_s17 = sld [smem:[#allocation45_spill]] }
 0x143   :  { %7727 = vmatmul.mubr.msk.f32.gmra.mrb[2].mxu0 %vm358_vm0, %v348_v6  ;;  %8251 = vmatprep.subr.bf16.mxu1 %v10055_v10  ;;  %v8279_v43 = vpack.c.bf16 %v483_v42, %v482_v41  ;;  %v7220_v35 = vld [vmem:[%s12579_s8] ss:$0 sm:$0xff]  ;;  %v776_v42 = vld [vmem:[#allocation8] sm:$0xff]  ;;  %s12598_s28 = sld [smem:[#allocation35_spill]]  ;;  %s12599_s30 = sld [smem:[#allocation46_spill]] }
 0x144   :  { %vm10446_vm6 = vcmp.ge.s32.totalorder %v508_v15, 1  ;;  %vm820_vm12 = vcmp.ge.s32.totalorder %v508_v15, 3  ;;  %s12606_s1 = sld [smem:[#allocation47_spill]]  ;;  %s12609_s20 = sld [smem:[#allocation48_spill]] }
 0x145   :  { %s12610_s2 = sld [smem:[#allocation50_spill]]  ;;  %s12611_s7 = sld [smem:[#allocation49_spill]] }
 0x146   :  { %8253 = vmatpush1.bf16.msra.mxu1 %v8252_v16  ;;  %s12612_s19 = sld [smem:[#allocation51_spill]]  ;;  %s12613_s10 = sld [smem:[#allocation52_spill]] }
 0x147   :  { %8254 = vmatprep.subr.bf16.mxu1 %v10055_v10  ;;  %s12614_s14 = sld [smem:[#allocation53_spill]]  ;;  %s12615_s6 = sld [smem:[#allocation54_spill]] }
 0x14a   :  { %8256 = vmatpush1.bf16.msra.mxu1 %v8255_v19 }
 0x14b   :  { %8257 = vmatprep.subr.bf16.mxu1 %v10055_v10 }
 0x14e   :  { %8259 = vmatpush1.bf16.msra.mxu1 %v8258_v22 }
 0x14f   :  { %8260 = vmatprep.subr.bf16.mxu1 %v10055_v10 }
 0x152   :  { %8262 = vmatpush1.bf16.msra.mxu1 %v8261_v25 }
 0x153   :  { %8263 = vmatprep.subr.bf16.mxu1 %v10055_v10 }
 0x156   :  { %8265 = vmatpush1.bf16.msra.mxu1 %v8264_v28 }
 0x157   :  { %8266 = vmatprep.subr.bf16.mxu1 %v10055_v10 }
 0x15a   :  { %8268 = vmatpush1.bf16.msra.mxu1 %v8267_v31 }
 0x15b   :  { %8269 = vmatprep.subr.bf16.mxu1 %v10055_v10 }
 0x15e   :  { %8271 = vmatpush1.bf16.msra.mxu1 %v8270_v34 }
 0x15f   :  { %8272 = vmatprep.subr.bf16.mxu1 %v10055_v10 }
 0x162   :  { %8274 = vmatpush1.bf16.msra.mxu1 %v8273_v37 }
 0x163   :  { %8275 = vmatprep.subr.bf16.mxu1 %v10055_v10 }
 0x166   :  { %8277 = vmatpush1.bf16.msra.mxu1 %v8276_v40 }
 0x167   :  { %8278 = vmatprep.subr.bf16.mxu1 %v10055_v10 }
 0x16a   :  { %8280 = vmatpush1.bf16.msra.mxu1 %v8279_v43  ;;  %v777_v43 = vld [vmem:[#allocation8 + $0x8] sm:$0xff] }
 0x212   :  { %v7725_v45 = vpop.f32.mrb[0].mxu0 }
 0x213   :  { %v443_v46 = vadd.f32 %v7725_v45, %v7215_v44  ;;  %v437_v47 = vpop.f32.mrb[1].mxu0  ;;  %v8282_v45 = vpack.c.bf16 %v777_v43, %v776_v42 }
 0x214   :  { %v438_v48 = vadd.f32 %v7215_v44, %v437_v47 }
 0x215   :  { %v10381_v49 = vmax.f32 %v443_v46, 0.0  ;;  %v779_v46 = vld [vmem:[#allocation8 + $0x18] sm:$0xff]  ;;  %8283 = vmatpush1.bf16.msra.mxu0 %v8282_v45 }
 0x216   :  { %v10383_v50 = vmax.f32 %v438_v48, 0.0  ;;  %v7728_v51 = vpop.f32.mrb[2].mxu0  ;;  %8284 = vmatprep.subr.bf16.mxu0 %v10055_v10 }
 0x217   :  { %v447_v52 = vpop.f32.mrb[3].mxu0  ;;  %v573_v53 = vrot.slane %v10381_v49, 1  ;;  %v453_v54 = vadd.f32 %v7728_v51, %v7215_v44  ;;  %v544_v12 = vrot.slane %v10381_v49, 7 }
 0x218   :  { %v448_v55 = vadd.f32 %v7215_v44, %v447_v52  ;;  %600 = vrot.lane.b32.xlu0 %v10383_v50, %s10056_s29  ;;  %v572_v56 = vrot.slane %v10383_v50, 1  ;;  %v543_v0 = vrot.slane %v10383_v50, 7  ;;  %v778_v44 = vld [vmem:[#allocation8 + $0x10] sm:$0xff] }
 0x219   :  { %v10393_v59 = vmax.f32 %v453_v54, 0.0  ;;  %v8285_v52 = vpack.c.bf16 %v779_v46, %v778_v44  ;;  %v781_v54 = vld [vmem:[#allocation8 + $0x28] sm:$0xff] }
 0x21a   :  { %v10389_v57 = vmax.f32 %v448_v55, 0.0  ;;  %v574_v58 = vsel %vm571_vm1, %v572_v56, %v573_v53  ;;  %v554_v3 = vsel %vm542_vm3, 0.0, %v543_v0  ;;  %v545_v21 = vsel %vm542_vm3, %v543_v0, %v544_v12  ;;  %v782_v0 = vld [vmem:[#allocation8 + $0x30] sm:$0xff] }
 0x21b   :  { %7221 = vmatprep.mubr.msk.f32.mxu1 %vm612_vm2, %v574_v58  ;;  %v567_v11 = vsel %vm10413_vm4, %v554_v3, 0.0  ;;  %v577_v17 = vrot.slane %v10393_v59, 1  ;;  %v548_v29 = vrot.slane %v10393_v59, 7  ;;  %8286 = vmatpush1.bf16.msra.mxu0 %v8285_v52 }
 0x21c   :  { %604 = vrot.lane.b32.xlu1 %v10389_v57, %s10056_s29  ;;  %602 = vrot.lane.b32.xlu0 %v10381_v49, %s10056_s29  ;;  %v575_v2 = vrot.slane %v10389_v57, 1  ;;  %v546_v13 = vrot.slane %v10389_v57, 7 }
 0x21d   :  { %v583_v26 = vsel %vm571_vm1, %v577_v17, 0.0  ;;  %8287 = vmatprep.subr.bf16.mxu0 %v10055_v10 }
 0x21e   :  { %v576_v6 = vsel %vm571_vm1, %v573_v53, %v575_v2  ;;  %v547_v23 = vsel %vm542_vm3, %v544_v12, %v546_v13  ;;  %v578_v25 = vsel %vm571_vm1, %v575_v2, %v577_v17  ;;  %v599_v32 = vsel %vm10455_vm7, %v583_v26, 0.0  ;;  %v780_v53 = vld [vmem:[#allocation8 + $0x20] sm:$0xff]  ;;  %v783_v2 = vld [vmem:[#allocation8 + $0x38] sm:$0xff]  ;;  %v786_v12 = vld [vmem:[#allocation8 + $0x50] sm:$0xff] }
 0x21f   :  { %v597_v16 = vsel %vm10423_vm5, %v576_v6, 0.0  ;;  %v569_v28 = vsel %vm10446_vm6, %v547_v23, 0.0  ;;  %v549_v33 = vsel %vm542_vm3, %v546_v13, %v548_v29  ;;  %v8288_v60 = vpack.c.bf16 %v781_v54, %v780_v53  ;;  %v784_v6 = vld [vmem:[#allocation8 + $0x40] sm:$0xff]  ;;  %v787_v13 = vld [vmem:[#allocation8 + $0x58] sm:$0xff]  ;;  %v789_v17 = vld [vmem:[#allocation8 + $0x68] sm:$0xff] }
 0x220   :  { %606 = vrot.lane.b32.xlu1 %v10393_v59, %s10056_s29  ;;  %v8291_v3 = vpack.c.bf16 %v783_v2, %v782_v0  ;;  %v792_v23 = vld [vmem:[#allocation8 + $0x80] sm:$0xff]  ;;  %v795_v29 = vld [vmem:[#allocation8 + $0x98] sm:$0xff] }
 0x221   :  { %8289 = vmatpush1.bf16.msra.mxu0 %v8288_v60 }
 0x222   :  { %8290 = vmatprep.subr.bf16.mxu0 %v10055_v10 }
 0x225   :  { %8292 = vmatpush1.bf16.msra.mxu0 %v8291_v3 }
 0x226   :  { %8293 = vmatprep.subr.bf16.mxu0 %v10055_v10 }
 0x28a   :  { %v601_v9 = vpop.permute.xlu0 %600 }
 0x28b   :  { %v613_v14 = vsel %vm612_vm2, %v567_v11, %v601_v9  ;;  %v785_v9 = vld [vmem:[#allocation8 + $0x48] sm:$0xff] }
 0x28c   :  { %700 = vmatmul.mubr.f32.vlgmr.msra.gmra.mrb[0].mxu1 %v613_v14  ;;  %v8294_v11 = vpack.c.bf16 %v785_v9, %v784_v6  ;;  %v8297_v14 = vpack.c.bf16 %v787_v13, %v786_v12 }
 0x28d   :  { %7222 = vmatprep.mubr.msk.f32.mxu1 %vm612_vm2, %v597_v16  ;;  %v788_v16 = vld [vmem:[#allocation8 + $0x60] sm:$0xff] }
 0x28e   :  { %v605_v19 = vpop.permute.xlu1 %604  ;;  %v603_v20 = vpop.permute.xlu0 %602  ;;  %8295 = vmatpush1.bf16.msra.mxu0 %v8294_v11 }
 0x28f   :  { %v614_v22 = vsel %vm612_vm2, %v545_v21, %v603_v20  ;;  %v615_v30 = vsel %vm612_vm2, %v569_v28, %v605_v19  ;;  %8296 = vmatprep.subr.bf16.mxu0 %v10055_v10  ;;  %v8300_v19 = vpack.c.bf16 %v789_v17, %v788_v16  ;;  %v790_v20 = vld [vmem:[#allocation8 + $0x70] sm:$0xff]  ;;  %v791_v21 = vld [vmem:[#allocation8 + $0x78] sm:$0xff] }
 0x290   :  { %705 = vmatmul.mubr.f32.gmra.mrb[2].mxu1 %v614_v22  ;;  %v8303_v22 = vpack.c.bf16 %v791_v21, %v790_v20  ;;  %v794_v28 = vld [vmem:[#allocation8 + $0x90] sm:$0xff] }
 0x291   :  { %7223 = vmatprep.mubr.msk.f32.mxu1 %vm612_vm2, %v578_v25  ;;  %v793_v25 = vld [vmem:[#allocation8 + $0x88] sm:$0xff] }
 0x292   :  { %v607_v31 = vpop.permute.xlu1 %606  ;;  %8298 = vmatpush1.bf16.msra.mxu0 %v8297_v14  ;;  %v8306_v26 = vpack.c.bf16 %v793_v25, %v792_v23 }
 0x293   :  { %v616_v34 = vsel %vm612_vm2, %v549_v33, %v607_v31  ;;  %8299 = vmatprep.subr.bf16.mxu0 %v10055_v10  ;;  %v796_v31 = vld [vmem:[#allocation8 + $0xa0] sm:$0xff] }
 0x294   :  { %710 = vmatmul.mubr.f32.gmra.mrb[4].mxu1 %v615_v30  ;;  %v8309_v30 = vpack.c.bf16 %v795_v29, %v794_v28 }
 0x295   :  { %7224 = vmatprep.mubr.msk.f32.mxu1 %vm612_vm2, %v599_v32  ;;  %v797_v32 = vld [vmem:[#allocation8 + $0xa8] sm:$0xff] }
 0x296   :  { %8301 = vmatpush1.bf16.msra.mxu0 %v8300_v19  ;;  %v8312_v33 = vpack.c.bf16 %v797_v32, %v796_v31 }
 0x297   :  { %8302 = vmatprep.subr.bf16.mxu0 %v10055_v10 }
 0x298   :  { %715 = vmatmul.mubr.f32.gmra.mrb[6].mxu1 %v616_v34  ;;  %v798_v34 = vld [vmem:[#allocation8 + $0xb0] sm:$0xff] }
 0x29a   :  { %8304 = vmatpush1.bf16.msra.mxu0 %v8303_v22 }
 0x29b   :  { %8305 = vmatprep.subr.bf16.mxu0 %v10055_v10 }
 0x29e   :  { %8307 = vmatpush1.bf16.msra.mxu0 %v8306_v26 }
 0x29f   :  { %8308 = vmatprep.subr.bf16.mxu0 %v10055_v10 }
 0x2a2   :  { %8310 = vmatpush1.bf16.msra.mxu0 %v8309_v30 }
 0x2a3   :  { %8311 = vmatprep.subr.bf16.mxu0 %v10055_v10 }
 0x2a6   :  { %8313 = vmatpush1.bf16.msra.mxu0 %v8312_v33 }
 0x2a7   :  { %8314 = vmatprep.subr.bf16.mxu0 %v10055_v10 }
 0x35f   :  { %v701_v36 = vpop.f32.mrb[0].mxu1 }
 0x360   :  { %v10469_v37 = vadd.f32 %v7220_v35, %v701_v36  ;;  %v703_v38 = vpop.f32.mrb[1].mxu1 }
 0x362   :  { %748 = vrot.lane.b32.xlu0 %v10469_v37, %s10056_s29  ;;  %v7225_v38 = vmul.f32 -1.442695, %v10469_v37 }
 0x363   :  { %v706_v39 = vpop.f32.mrb[2].mxu1 }
 0x364   :  { %v10473_v40 = vadd.f32 %v7220_v35, %v706_v39  ;;  %v708_v41 = vpop.f32.mrb[3].mxu1  ;;  %9236 = vpow2.f32 %v7225_v38 }
 0x366   :  { %750 = vrot.lane.b32.xlu1 %v10473_v40, %s10056_s29  ;;  %v7226_v39 = vmul.f32 -1.442695, %v10473_v40 }
 0x367   :  { %v711_v47 = vpop.f32.mrb[4].mxu1 }
 0x368   :  { %v10477_v48 = vadd.f32 %v7220_v35, %v711_v47  ;;  %v713_v51 = vpop.f32.mrb[5].mxu1  ;;  %9238 = vpow2.f32 %v7226_v39 }
 0x36a   :  { %752 = vrot.lane.b32.xlu0 %v10477_v48, %s10056_s29  ;;  %v7227_v41 = vmul.f32 -1.442695, %v10477_v48 }
 0x36b   :  { %v716_v55 = vpop.f32.mrb[6].mxu1 }
 0x36c   :  { %v717_v56 = vadd.f32 %v7220_v35, %v716_v55  ;;  %v718_v58 = vpop.f32.mrb[7].mxu1  ;;  %v799_v35 = vld [vmem:[#allocation8 + $0xb8] sm:$0xff]  ;;  %9240 = vpow2.f32 %v7227_v41 }
 0x36d   :  { %v8315_v36 = vpack.c.bf16 %v799_v35, %v798_v34 }
 0x36e   :  { %754 = vrot.lane.b32.xlu1 %v717_v56, %s10056_s29  ;;  %v7228_v42 = vmul.f32 -1.442695, %v717_v56  ;;  %v9237_v43 = vpop.eup %9236 }
 0x36f   :  { %8316 = vmatpush1.bf16.msra.mxu0 %v8315_v36  ;;  %v732_v44 = vadd.f32 1.0, %v9237_v43 }
 0x370   :  { %9242 = vpow2.f32 %v7228_v42 }
 0x371   :  { %9244 = vrcp.f32 %v732_v44 }
 0x372   :  { %v9239_v45 = vpop.eup %9238 }
 0x373   :  { %v733_v47 = vadd.f32 1.0, %v9239_v45 }
 0x375   :  { %9246 = vrcp.f32 %v733_v47  ;;  %v7229_v47 = vld [vmem:[%s12582_s0] ss:$0 sm:$0xff] }
 0x376   :  { %v9241_v46 = vpop.eup %9240 }
 0x377   :  { %v734_v51 = vadd.f32 1.0, %v9241_v46 }
 0x379   :  { %9248 = vrcp.f32 %v734_v51 }
 0x37a   :  { %v9243_v52 = vpop.eup %9242 }
 0x37b   :  { %v735_v37 = vadd.f32 1.0, %v9243_v52  ;;  %v9245_v53 = vpop.eup %9244 }
 0x37c   :  { %v764_v40 = vsub.f32 1.0, %v9245_v53 }
 0x37d   :  { %9250 = vrcp.f32 %v735_v37 }
 0x37e   :  { %v768_v56 = vmul.f32 %v764_v40, %v10383_v50 }
 0x37f   :  { %v9247_v54 = vpop.eup %9246 }
 0x380   :  { %v765_v60 = vsub.f32 1.0, %v9247_v54 }
 0x382   :  { %v769_v9 = vmul.f32 %v765_v60, %v10381_v49  ;;  %v1039_v60 = vld [vmem:[%s12583_s9 + $0x8] sm:$0xff] }
 0x383   :  { %v9249_v55 = vpop.eup %9248 }
 0x384   :  { %v766_v3 = vsub.f32 1.0, %v9249_v55 }
 0x386   :  { %v770_v14 = vmul.f32 %v766_v3, %v10389_v57 }
 0x387   :  { %v9251_v11 = vpop.eup %9250 }
 0x388   :  { %v767_v50 = vsub.f32 1.0, %v9251_v11 }
 0x38a   :  { %v771_v22 = vmul.f32 %v767_v50, %v10393_v59  ;;  %v1054_v50 = vld [vmem:[%s12584_s16] sm:$0xff] }
 0x3d4   :  { %v749_v48 = vpop.permute.xlu0 %748 }
 0x3d5   :  { %v760_v58 = vmul.f32 %v9245_v53, %v749_v48 }
 0x3d7   :  { %v10497_v0 = vadd.f32 %v768_v56, %v760_v58  ;;  %v1038_v56 = vld [vmem:[%s12583_s9] sm:$0xff] }
 0x3d8   :  { %v751_v2 = vpop.permute.xlu1 %750 }
 0x3d9   :  { %v761_v6 = vmul.f32 %v9247_v54, %v751_v2  ;;  %863 = vrot.lane.b32.xlu0 %v10497_v0, %s10056_s29  ;;  %v835_v17 = vrot.slane %v10497_v0, 3  ;;  %v806_v25 = vrot.slane %v10497_v0, 5  ;;  %v1040_v2 = vld [vmem:[%s12583_s9 + $0x10] sm:$0xff] }
 0x3db   :  { %v10502_v12 = vadd.f32 %v769_v9, %v761_v6  ;;  %v817_v28 = vsel %vm805_vm9, 0.0, %v806_v25  ;;  %v8317_v9 = vpack.c.bf16 %v1039_v60, %v1038_v56  ;;  %v1065_v60 = vld [vmem:[%s12584_s16 + $0x58] sm:$0xff] }
 0x3dc   :  { %v753_v13 = vpop.permute.xlu0 %752  ;;  %v830_v29 = vsel %vm818_vm10, %v817_v28, 0.0  ;;  %v1044_v28 = vld [vmem:[%s12583_s9 + $0x30] sm:$0xff] }
 0x3dd   :  { %v762_v16 = vmul.f32 %v9249_v55, %v753_v13  ;;  %865 = vrot.lane.b32.xlu1 %v10502_v12, %s10056_s29  ;;  %v836_v19 = vrot.slane %v10502_v12, 3  ;;  %v807_v31 = vrot.slane %v10502_v12, 5  ;;  %v1042_v13 = vld [vmem:[%s12583_s9 + $0x20] sm:$0xff]  ;;  %8318 = vmatprep.subr.bf16.mxu1 %v8317_v9 }
 0x3de   :  { %8320 = vmatpush3.bf16.msra.mxu1 %v8317_v9  ;;  %v1066_v9 = vld [vmem:[%s12584_s16 + $0x60] sm:$0xff] }
 0x3df   :  { %v10509_v49 = vadd.f32 %v770_v14, %v762_v16  ;;  %v837_v20 = vsel %vm834_vm8, %v835_v17, %v836_v19  ;;  %v808_v36 = vsel %vm805_vm9, %v806_v25, %v807_v31  ;;  %v1043_v16 = vld [vmem:[%s12583_s9 + $0x28] sm:$0xff] }
 0x3e0   :  { %v755_v21 = vpop.permute.xlu1 %754  ;;  %7230 = vmatprep.mubr.msk.f32.mxu0 %vm612_vm2, %v837_v20  ;;  %v1055_v17 = vld [vmem:[%s12584_s16 + $0x8] sm:$0xff]  ;;  %v1056_v20 = vld [vmem:[%s12584_s16 + $0x10] sm:$0xff]  ;;  %v8325_v25 = vpack.c.bf16 %v1043_v16, %v1042_v13 }
 0x3e1   :  { %v763_v57 = vmul.f32 %v9251_v11, %v755_v21  ;;  %867 = vrot.lane.b32.xlu0 %v10509_v49, %s10056_s29  ;;  %v838_v26 = vrot.slane %v10509_v49, 3  ;;  %v809_v33 = vrot.slane %v10509_v49, 5  ;;  %v1041_v11 = vld [vmem:[%s12583_s9 + $0x18] sm:$0xff] }
 0x3e2   :  { %v8321_v14 = vpack.c.bf16 %v1041_v11, %v1040_v2  ;;  %v1057_v21 = vld [vmem:[%s12584_s16 + $0x18] sm:$0xff]  ;;  %v1067_v11 = vld [vmem:[%s12584_s16 + $0x68] sm:$0xff] }
 0x3e3   :  { %v10516_v23 = vadd.f32 %v771_v22, %v763_v57  ;;  %v839_v59 = vsel %vm834_vm8, %v836_v19, %v838_v26  ;;  %v810_v1 = vsel %vm805_vm9, %v807_v31, %v809_v33  ;;  %v8349_v19 = vpack.c.bf16 %v1055_v17, %v1054_v50  ;;  %v1058_v57 = vld [vmem:[%s12584_s16 + $0x20] sm:$0xff]  ;;  %v1061_v31 = vld [vmem:[%s12584_s16 + $0x38] sm:$0xff] }
 0x3e4   :  { %v860_v34 = vsel %vm848_vm11, %v839_v59, 0.0  ;;  %v832_v42 = vsel %vm820_vm12, %v810_v1, 0.0  ;;  %v8353_v22 = vpack.c.bf16 %v1057_v21, %v1056_v20  ;;  %8322 = vmatprep.subr.bf16.mxu1 %v8321_v14  ;;  %v1045_v59 = vld [vmem:[%s12583_s9 + $0x38] sm:$0xff]  ;;  %v1048_v1 = vld [vmem:[%s12583_s9 + $0x50] sm:$0xff] }
 0x3e5   :  { %869 = vrot.lane.b32.xlu1 %v10516_v23, %s10056_s29  ;;  %v840_v35 = vrot.slane %v10516_v23, 3  ;;  %v811_v43 = vrot.slane %v10516_v23, 5  ;;  %8350 = vmatprep.subr.bf16.mxu0 %v8349_v19  ;;  %v1068_v20 = vld [vmem:[%s12584_s16 + $0x70] sm:$0xff]  ;;  %v1069_v21 = vld [vmem:[%s12584_s16 + $0x78] sm:$0xff] }
 0x3e6   :  { %8324 = vmatpush3.bf16.msra.mxu1 %v8321_v14  ;;  %v8373_v14 = vpack.c.bf16 %v1067_v11, %v1066_v9 }
 0x3e7   :  { %v841_v38 = vsel %vm834_vm8, %v838_v26, %v840_v35  ;;  %v846_v39 = vsel %vm834_vm8, %v840_v35, 0.0  ;;  %v812_v45 = vsel %vm805_vm9, %v809_v33, %v811_v43  ;;  %v1059_v26 = vld [vmem:[%s12584_s16 + $0x28] sm:$0xff]  ;;  %8326 = vmatprep.subr.bf16.mxu1 %v8325_v25  ;;  %v1046_v33 = vld [vmem:[%s12583_s9 + $0x40] sm:$0xff] }
 0x3e8   :  { %v862_v5 = vsel %vm850_vm13, %v846_v39, 0.0  ;;  %v1051_v43 = vld [vmem:[%s12583_s9 + $0x68] sm:$0xff] }
 0x3ea   :  { %8328 = vmatpush3.bf16.msra.mxu1 %v8325_v25 }
 0x44b   :  { %v864_v30 = vpop.permute.xlu0 %863 }
 0x44c   :  { %v875_v32 = vsel %vm612_vm2, %v830_v29, %v864_v30  ;;  %v8357_v29 = vpack.c.bf16 %v1059_v26, %v1058_v57  ;;  %v1060_v30 = vld [vmem:[%s12584_s16 + $0x30] sm:$0xff]  ;;  %v8377_v57 = vpack.c.bf16 %v1069_v21, %v1068_v20 }
 0x44d   :  { %962 = vmatmul.mubr.f32.vlgmr.msra.gmra.mrb[4].mxu0 %v875_v32  ;;  %v8329_v32 = vpack.c.bf16 %v1045_v59, %v1044_v28  ;;  %v8361_v35 = vpack.c.bf16 %v1061_v31, %v1060_v30 }
 0x44e   :  { %7231 = vmatprep.mubr.msk.f32.mxu0 %vm612_vm2, %v860_v34  ;;  %8352 = vmatpush3.bf16.msra.mxu0 %v8349_v19  ;;  %v1047_v34 = vld [vmem:[%s12583_s9 + $0x48] sm:$0xff] }
 0x44f   :  { %v866_v63 = vpop.permute.xlu1 %865  ;;  %8354 = vmatprep.subr.bf16.mxu0 %v8353_v22  ;;  %8330 = vmatprep.subr.bf16.mxu1 %v8329_v32 }
 0x450   :  { %v876_v62 = vsel %vm612_vm2, %v808_v36, %v866_v63  ;;  %v1062_v63 = vld [vmem:[%s12584_s16 + $0x40] sm:$0xff]  ;;  %v1063_v36 = vld [vmem:[%s12584_s16 + $0x48] sm:$0xff]  ;;  %8332 = vmatpush3.bf16.msra.mxu1 %v8329_v32 }
 0x451   :  { %967 = vmatmul.mubr.f32.gmra.mrb[6].mxu0 %v876_v62  ;;  %v8333_v62 = vpack.c.bf16 %v1047_v34, %v1046_v33  ;;  %v8365_v39 = vpack.c.bf16 %v1063_v36, %v1062_v63 }
 0x452   :  { %7232 = vmatprep.mubr.msk.f32.mxu0 %vm612_vm2, %v841_v38  ;;  %8356 = vmatpush3.bf16.msra.mxu0 %v8353_v22  ;;  %v1049_v38 = vld [vmem:[%s12583_s9 + $0x58] sm:$0xff] }
 0x453   :  { %v868_v41 = vpop.permute.xlu0 %867  ;;  %8358 = vmatprep.subr.bf16.mxu0 %v8357_v29  ;;  %8334 = vmatprep.subr.bf16.mxu1 %v8333_v62 }
 0x454   :  { %v877_v44 = vsel %vm612_vm2, %v832_v42, %v868_v41  ;;  %v8337_v41 = vpack.c.bf16 %v1049_v38, %v1048_v1  ;;  %v1050_v42 = vld [vmem:[%s12583_s9 + $0x60] sm:$0xff]  ;;  %8336 = vmatpush3.bf16.msra.mxu1 %v8333_v62 }
 0x455   :  { %972 = vmatmul.mubr.f32.gmra.mrb[8].mxu0 %v877_v44  ;;  %v8341_v44 = vpack.c.bf16 %v1051_v43, %v1050_v42 }
 0x456   :  { %7233 = vmatprep.mubr.msk.f32.mxu0 %vm612_vm2, %v862_v5  ;;  %8360 = vmatpush3.bf16.msra.mxu0 %v8357_v29 }
 0x457   :  { %v870_v15 = vpop.permute.xlu1 %869  ;;  %8362 = vmatprep.subr.bf16.mxu0 %v8361_v35  ;;  %8338 = vmatprep.subr.bf16.mxu1 %v8337_v41 }
 0x458   :  { %v878_v46 = vsel %vm612_vm2, %v812_v45, %v870_v15  ;;  %8340 = vmatpush3.bf16.msra.mxu1 %v8337_v41 }
 0x459   :  { %977 = vmatmul.mubr.f32.gmra.mrb[10].mxu0 %v878_v46  ;;  %8342 = vmatprep.subr.bf16.mxu1 %v8341_v44 }
 0x45a   :  { %8364 = vmatpush3.bf16.msra.mxu0 %v8361_v35 }
 0x45b   :  { %8366 = vmatprep.subr.bf16.mxu0 %v8365_v39 }
 0x45c   :  { %8344 = vmatpush3.bf16.msra.mxu1 %v8341_v44 }
 0x45e   :  { %8368 = vmatpush3.bf16.msra.mxu0 %v8365_v39 }
 0x520   :  { %v963_v18 = vpop.f32.mrb[4].mxu0 }
 0x521   :  { %v10549_v51 = vadd.f32 %v7229_v47, %v963_v18  ;;  %v965_v52 = vpop.f32.mrb[5].mxu0 }
 0x523   :  { %1010 = vrot.lane.b32.xlu0 %v10549_v51, %s10056_s29  ;;  %v7234_v5 = vmul.f32 -1.442695, %v10549_v51 }
 0x524   :  { %v968_v37 = vpop.f32.mrb[6].mxu0 }
 0x525   :  { %v10553_v53 = vadd.f32 %v7229_v47, %v968_v37  ;;  %v970_v40 = vpop.f32.mrb[7].mxu0  ;;  %9252 = vpow2.f32 %v7234_v5 }
 0x527   :  { %1012 = vrot.lane.b32.xlu1 %v10553_v53, %s10056_s29  ;;  %v7235_v15 = vmul.f32 -1.442695, %v10553_v53 }
 0x528   :  { %v973_v54 = vpop.f32.mrb[8].mxu0 }
 0x529   :  { %v10557_v48 = vadd.f32 %v7229_v47, %v973_v54  ;;  %v975_v55 = vpop.f32.mrb[9].mxu0  ;;  %9254 = vpow2.f32 %v7235_v15 }
 0x52a   :  { %v1053_v55 = vld [vmem:[%s12583_s9 + $0x78] sm:$0xff] }
 0x52b   :  { %1014 = vrot.lane.b32.xlu0 %v10557_v48, %s10056_s29  ;;  %v7236_v45 = vmul.f32 -1.442695, %v10557_v48  ;;  %v1052_v48 = vld [vmem:[%s12583_s9 + $0x70] sm:$0xff] }
 0x52c   :  { %v978_v58 = vpop.f32.mrb[10].mxu0  ;;  %v8345_v56 = vpack.c.bf16 %v1053_v55, %v1052_v48 }
 0x52d   :  { %v10564_v3 = vadd.f32 %v7229_v47, %v978_v58  ;;  %v980_v6 = vpop.f32.mrb[11].mxu0  ;;  %9256 = vpow2.f32 %v7236_v45  ;;  %v1064_v58 = vld [vmem:[%s12584_s16 + $0x50] sm:$0xff] }
 0x52e   :  { %8346 = vmatprep.subr.bf16.mxu1 %v8345_v56 }
 0x52f   :  { %1016 = vrot.lane.b32.xlu1 %v10564_v3, %s10056_s29  ;;  %v7237_v46 = vmul.f32 -1.442695, %v10564_v3  ;;  %v9253_v47 = vpop.eup %9252  ;;  %v8369_v3 = vpack.c.bf16 %v1065_v60, %v1064_v58  ;;  %8348 = vmatpush3.bf16.msra.mxu1 %v8345_v56 }
 0x530   :  { %v994_v52 = vadd.f32 1.0, %v9253_v47 }
 0x531   :  { %9258 = vpow2.f32 %v7237_v46  ;;  %8370 = vmatprep.subr.bf16.mxu0 %v8369_v3 }
 0x532   :  { %9260 = vrcp.f32 %v994_v52  ;;  %8372 = vmatpush3.bf16.msra.mxu0 %v8369_v3 }
 0x533   :  { %v9255_v18 = vpop.eup %9254  ;;  %8374 = vmatprep.subr.bf16.mxu0 %v8373_v14 }
 0x534   :  { %v995_v37 = vadd.f32 1.0, %v9255_v18 }
 0x536   :  { %9262 = vrcp.f32 %v995_v37  ;;  %8376 = vmatpush3.bf16.msra.mxu0 %v8373_v14 }
 0x537   :  { %v9257_v40 = vpop.eup %9256  ;;  %8378 = vmatprep.subr.bf16.mxu0 %v8377_v57 }
 0x538   :  { %v996_v51 = vadd.f32 1.0, %v9257_v40 }
 0x53a   :  { %9264 = vrcp.f32 %v996_v51  ;;  %8380 = vmatpush3.bf16.msra.mxu0 %v8377_v57  ;;  %v1319_v57 = vld [vmem:[#allocation2] sm:$0xff] }
 0x53b   :  { %v9259_v53 = vpop.eup %9258  ;;  %8397 = vmatprep.subr.bf16.mxu0 %v10055_v10 }
 0x53c   :  { %v997_v54 = vadd.f32 1.0, %v9259_v53  ;;  %v9261_v2 = vpop.eup %9260 }
 0x53d   :  { %v1026_v16 = vsub.f32 1.0, %v9261_v2 }
 0x53e   :  { %9266 = vrcp.f32 %v997_v54 }
 0x53f   :  { %v1030_v25 = vmul.f32 %v1026_v16, %v10497_v0 }
 0x540   :  { %v9263_v6 = vpop.eup %9262 }
 0x541   :  { %v1027_v50 = vsub.f32 1.0, %v9263_v6 }
 0x543   :  { %v1031_v28 = vmul.f32 %v1027_v50, %v10502_v12 }
 0x544   :  { %v9265_v17 = vpop.eup %9264 }
 0x545   :  { %v1028_v59 = vsub.f32 1.0, %v9265_v17 }
 0x547   :  { %v1032_v34 = vmul.f32 %v1028_v59, %v10509_v49 }
 0x548   :  { %v9267_v29 = vpop.eup %9266 }
 0x549   :  { %v1029_v63 = vsub.f32 1.0, %v9267_v29 }
 0x54b   :  { %v1033_v12 = vmul.f32 %v1029_v63, %v10516_v23 }
 0x595   :  { %v1011_v13 = vpop.permute.xlu0 %1010 }
 0x596   :  { %v1022_v19 = vmul.f32 %v9261_v2, %v1011_v13 }
 0x598   :  { %v1034_v30 = vadd.f32 %v1030_v25, %v1022_v19  ;;  %v7238_v25 = vld [vmem:[%s12585_s25] ss:$0 sm:$0xff] }
 0x599   :  { %v1013_v22 = vpop.permute.xlu1 %1012 }
 0x59a   :  { %v1023_v26 = vmul.f32 %v9263_v6, %v1013_v22  ;;  %v1091_v39 = vrot.slane %v1034_v30, 1  ;;  %v1075_v18 = vrot.slane %v1034_v30, 7 }
 0x59c   :  { %v1035_v31 = vadd.f32 %v1031_v28, %v1023_v26  ;;  %v1086_v52 = vsel %vm542_vm3, 0.0, %v1075_v18 }
 0x59d   :  { %v1015_v32 = vpop.permute.xlu0 %1014  ;;  %v1087_v53 = vsel %vm10413_vm4, %v1086_v52, 0.0  ;;  %v1459_v52 = vld [vmem:[#allocation10 + $0x18] sm:$0xff] }
 0x59e   :  { %v1024_v33 = vmul.f32 %v9265_v17, %v1015_v32  ;;  %v9176_v35 = vpack.i.bf16 %v1035_v31, %v1034_v30  ;;  %v1092_v62 = vrot.slane %v1035_v31, 1  ;;  %v1076_v7 = vrot.slane %v1035_v31, 7 }
 0x5a0   :  { %v1036_v36 = vadd.f32 %v1032_v34, %v1024_v33  ;;  %9177 = vrot.lane.b32.xlu0 %v9176_v35, %s10056_s29  ;;  %v1093_v43 = vsel %vm571_vm1, %v1091_v39, %v1092_v62  ;;  %v1077_v54 = vsel %vm542_vm3, %v1075_v18, %v1076_v7  ;;  %v1458_v18 = vld [vmem:[#allocation10 + $0x10] sm:$0xff] }
 0x5a1   :  { %v1017_v0 = vpop.permute.xlu1 %1016 }
 0x5a2   :  { %v1025_v1 = vmul.f32 %v9267_v29, %v1017_v0  ;;  %v1094_v38 = vrot.slane %v1036_v36, 1  ;;  %v1078_v55 = vrot.slane %v1036_v36, 7 }
 0x5a4   :  { %v1037_v41 = vadd.f32 %v1033_v12, %v1025_v1  ;;  %v1095_v42 = vsel %vm571_vm1, %v1092_v62, %v1094_v38  ;;  %v1079_v56 = vsel %vm542_vm3, %v1076_v7, %v1078_v55 }
 0x5a5   :  { %v1104_v49 = vsel %vm10423_vm5, %v1095_v42, 0.0  ;;  %v1089_v4 = vsel %vm10446_vm6, %v1079_v56, 0.0 }
 0x5a6   :  { %v9181_v44 = vpack.i.bf16 %v1037_v41, %v1036_v36  ;;  %v9186_v5 = vpack.i.bf16 %v1104_v49, %v1093_v43  ;;  %v1096_v15 = vrot.slane %v1037_v41, 1  ;;  %v1080_v58 = vrot.slane %v1037_v41, 7  ;;  %v1320_v43 = vld [vmem:[#allocation2 + $0x8] sm:$0xff]  ;;  %v1321_v49 = vld [vmem:[#allocation2 + $0x10] sm:$0xff] }
 0x5a8   :  { %9182 = vrot.lane.b32.xlu1 %v9181_v44, %s10056_s29  ;;  %9187 = vrot.lane.b32.xlu0 %v9186_v5, %s10056_s29  ;;  %v1097_v23 = vsel %vm571_vm1, %v1094_v38, %v1096_v15  ;;  %v1102_v45 = vsel %vm571_vm1, %v1096_v15, 0.0  ;;  %v1081_v13 = vsel %vm542_vm3, %v1078_v55, %v1080_v58  ;;  %v1322_v44 = vld [vmem:[#allocation2 + $0x18] sm:$0xff]  ;;  %v1323_v5 = vld [vmem:[#allocation2 + $0x20] sm:$0xff]  ;;  %v1324_v15 = vld [vmem:[#allocation2 + $0x28] sm:$0xff] }
 0x5a9   :  { %v1106_v46 = vsel %vm10455_vm7, %v1102_v45, 0.0  ;;  %v1326_v45 = vld [vmem:[#allocation2 + $0x38] sm:$0xff]  ;;  %v1464_v55 = vld [vmem:[#allocation10 + $0x40] sm:$0xff] }
 0x5aa   :  { %v9191_v47 = vpack.i.bf16 %v1106_v46, %v1097_v23  ;;  %v1325_v23 = vld [vmem:[#allocation2 + $0x30] sm:$0xff]  ;;  %v1465_v58 = vld [vmem:[#allocation10 + $0x48] sm:$0xff] }
 0x5ab   :  { %v1456_v46 = vld [vmem:[#allocation10] sm:$0xff]  ;;  %v8410_v56 = vpack.c.bf16 %v1465_v58, %v1464_v55  ;;  %v1489_v58 = vand.u32 31, %v10401_v61 }
 0x5ac   :  { %9192 = vrot.lane.b32.xlu1 %v9191_v47, %s10056_s29  ;;  %v1457_v47 = vld [vmem:[#allocation10 + $0x8] sm:$0xff] }
 0x5ad   :  { %v8398_v7 = vpack.c.bf16 %v1457_v47, %v1456_v46  ;;  %vm10721_vm14 = vcmp.ge.s32.totalorder %v1489_v58, 1  ;;  %vm2037_vm5 = vcmp.ge.s32.totalorder %v1489_v58, 3 }
 0x612   :  { %v9178_v37 = vpop.permute.xlu0 %9177 }
 0x613   :  { %v9180_v40 = vunpack.i.h.bf16 %v9178_v37  ;;  %v9179_v51 = vunpack.i.l.bf16 %v9178_v37  ;;  %v8401_v37 = vpack.c.bf16 %v1459_v52, %v1458_v18 }
 0x615   :  { %v1119_v48 = vsel %vm612_vm2, %v1087_v53, %v9179_v51  ;;  %v1120_v27 = vsel %vm612_vm2, %v1077_v54, %v9180_v40  ;;  %v1460_v40 = vld [vmem:[#allocation10 + $0x20] sm:$0xff]  ;;  %v1461_v51 = vld [vmem:[#allocation10 + $0x28] sm:$0xff]  ;;  %v1462_v54 = vld [vmem:[#allocation10 + $0x30] sm:$0xff] }
 0x616   :  { %7761 = vmatprep.mubr.f32.mxu1 %v1119_v48  ;;  %v8404_v53 = vpack.c.bf16 %v1461_v51, %v1460_v40  ;;  %v1463_v48 = vld [vmem:[#allocation10 + $0x38] sm:$0xff] }
 0x617   :  { %7762 = vmatmul.mubr.f32.vlgmr.msra.gmra.mrb[8].mxu1 %v1120_v27  ;;  %v8407_v27 = vpack.c.bf16 %v1463_v48, %v1462_v54 }
 0x61a   :  { %v9183_v60 = vpop.permute.xlu1 %9182  ;;  %v9188_v2 = vpop.permute.xlu0 %9187 }
 0x61b   :  { %v9185_v3 = vunpack.i.h.bf16 %v9183_v60  ;;  %v9184_v6 = vunpack.i.l.bf16 %v9183_v60  ;;  %v9190_v9 = vunpack.i.h.bf16 %v9188_v2  ;;  %v9189_v11 = vunpack.i.l.bf16 %v9188_v2  ;;  %v1466_v60 = vld [vmem:[#allocation10 + $0x50] sm:$0xff]  ;;  %v1467_v2 = vld [vmem:[#allocation10 + $0x58] sm:$0xff] }
 0x61d   :  { %v1121_v14 = vsel %vm612_vm2, %v1089_v4, %v9184_v6  ;;  %v1230_v16 = vsel %vm612_vm2, %v1034_v30, %v9189_v11  ;;  %v1122_v50 = vsel %vm612_vm2, %v1081_v13, %v9185_v3  ;;  %v1231_v17 = vsel %vm612_vm2, %v1035_v31, %v9190_v9  ;;  %v1468_v6 = vld [vmem:[#allocation10 + $0x60] sm:$0xff]  ;;  %v1469_v9 = vld [vmem:[#allocation10 + $0x68] sm:$0xff]  ;;  %v1470_v4 = vld [vmem:[#allocation10 + $0x70] sm:$0xff] }
 0x61e   :  { %v9193_v19 = vpop.permute.xlu1 %9192  ;;  %7764 = vmatprep.mubr.f32.mxu1 %v1121_v14  ;;  %7799 = vmatprep.mubr.f32.mxu0 %v1230_v16  ;;  %v8413_v3 = vpack.c.bf16 %v1467_v2, %v1466_v60  ;;  %v8416_v11 = vpack.c.bf16 %v1469_v9, %v1468_v6  ;;  %v1471_v13 = vld [vmem:[#allocation10 + $0x78] sm:$0xff]  ;;  %v1472_v16 = vld [vmem:[#allocation10 + $0x80] sm:$0xff] }
 0x61f   :  { %v9195_v20 = vunpack.i.h.bf16 %v9193_v19  ;;  %v9194_v21 = vunpack.i.l.bf16 %v9193_v19  ;;  %7765 = vmatmul.mubr.f32.gmra.mrb[10].mxu1 %v1122_v50  ;;  %7800 = vmatmul.mubr.f32.vlgmr.msra.gmra.mrb[12].mxu0 %v1231_v17  ;;  %v8419_v14 = vpack.c.bf16 %v1471_v13, %v1470_v4  ;;  %v1473_v50 = vld [vmem:[#allocation10 + $0x88] sm:$0xff]  ;;  %v1474_v19 = vld [vmem:[#allocation10 + $0x90] sm:$0xff]  ;;  %v10733_v13 = vadd.s32 32, %v10401_v61 }
 0x620   :  { %7821 = vmatprep.mubr.msk.f32.mxu1 %vm612_vm2, %v1319_v57  ;;  %8399 = vmatpush1.bf16.msra.mxu0 %v8398_v7  ;;  %v8422_v17 = vpack.c.bf16 %v1473_v50, %v1472_v16 }
 0x621   :  { %v1232_v24 = vsel %vm612_vm2, %v1036_v36, %v9194_v21  ;;  %v1233_v22 = vsel %vm612_vm2, %v1037_v41, %v9195_v20  ;;  %8400 = vmatprep.subr.bf16.mxu0 %v10055_v10  ;;  %v1475_v20 = vld [vmem:[#allocation10 + $0x98] sm:$0xff] }
 0x622   :  { %7802 = vmatprep.mubr.f32.mxu0 %v1232_v24  ;;  %v8425_v21 = vpack.c.bf16 %v1475_v20, %v1474_v19  ;;  %v1476_v24 = vld [vmem:[#allocation10 + $0xa0] sm:$0xff] }
 0x623   :  { %7803 = vmatmul.mubr.f32.gmra.mrb[14].mxu0 %v1233_v22  ;;  %v1477_v22 = vld [vmem:[#allocation10 + $0xa8] sm:$0xff] }
 0x624   :  { %8402 = vmatpush1.bf16.msra.mxu0 %v8401_v37  ;;  %v8428_v57 = vpack.c.bf16 %v1477_v22, %v1476_v24 }
 0x625   :  { %8403 = vmatprep.subr.bf16.mxu0 %v10055_v10 }
 0x628   :  { %8405 = vmatpush1.bf16.msra.mxu0 %v8404_v53 }
 0x629   :  { %8406 = vmatprep.subr.bf16.mxu0 %v10055_v10 }
 0x62c   :  { %8408 = vmatpush1.bf16.msra.mxu0 %v8407_v27 }
 0x62d   :  { %8409 = vmatprep.subr.bf16.mxu0 %v10055_v10 }
 0x630   :  { %8411 = vmatpush1.bf16.msra.mxu0 %v8410_v56 }
 0x631   :  { %8412 = vmatprep.subr.bf16.mxu0 %v10055_v10 }
 0x634   :  { %8414 = vmatpush1.bf16.msra.mxu0 %v8413_v3 }
 0x635   :  { %8415 = vmatprep.subr.bf16.mxu0 %v10055_v10 }
 0x638   :  { %8417 = vmatpush1.bf16.msra.mxu0 %v8416_v11  ;;  %v1510_v11 = vand.u32 31, %v10428_v8 }
 0x639   :  { %8418 = vmatprep.subr.bf16.mxu0 %v10055_v10 }
 0x63a   :  { %vm10738_vm15 = vcmp.lt.s32.totalorder %v1510_v11, 31  ;;  %vm2096_vm6 = vcmp.lt.s32.totalorder %v1510_v11, 29 }
 0x63c   :  { %8420 = vmatpush1.bf16.msra.mxu0 %v8419_v14 }
 0x63d   :  { %8421 = vmatprep.subr.bf16.mxu0 %v10055_v10 }
 0x640   :  { %8423 = vmatpush1.bf16.msra.mxu0 %v8422_v17  ;;  %v1517_v17 = vand.u32 31, %v10733_v13 }
 0x641   :  { %8424 = vmatprep.subr.bf16.mxu0 %v10055_v10 }
 0x642   :  { %vm10750_vm0 = vcmp.ge.s32.totalorder %v1517_v17, 1  ;;  %vm2041_vm7 = vcmp.ge.s32.totalorder %v1517_v17, 3 }
 0x644   :  { %8426 = vmatpush1.bf16.msra.mxu0 %v8425_v21 }
 0x645   :  { %8427 = vmatprep.subr.bf16.mxu0 %v10055_v10 }
 0x648   :  { %8429 = vmatpush1.bf16.msra.mxu0 %v8428_v57  ;;  %v10756_v57 = vadd.s32 56, %v10401_v61 }
 0x649   :  { %8430 = vmatprep.subr.bf16.mxu0 %v10055_v10 }
 0x6ea   :  { %v7763_v26 = vpop.f32.mrb[8].mxu1 }
 0x6eb   :  { %v1201_v28 = vadd.f32 %v7763_v26, %v7238_v25  ;;  %v1195_v59 = vpop.f32.mrb[9].mxu1  ;;  %v1479_v26 = vld [vmem:[#allocation10 + $0xb8] sm:$0xff] }
 0x6ec   :  { %v1196_v29 = vadd.f32 %v7238_v25, %v1195_v59 }
 0x6ee   :  { %v8381_v30 = vpack.c.bf16 %v1201_v28, %v1196_v29 }
 0x6f0   :  { %8382 = vmatprep.subr.bf16.mxu1 %v8381_v30 }
 0x6f1   :  { %8384 = vmatpush3.bf16.msra.mxu1 %v8381_v30 }
 0x6f2   :  { %v7766_v31 = vpop.f32.mrb[10].mxu1  ;;  %v7801_v32 = vpop.f32.mrb[12].mxu0 }
 0x6f3   :  { %v1211_v33 = vadd.f32 %v7766_v31, %v7238_v25  ;;  %v1306_v34 = vadd.f32 %v7801_v32, %v7238_v25  ;;  %v1205_v35 = vpop.f32.mrb[11].mxu1  ;;  %v1300_v63 = vpop.f32.mrb[13].mxu0 }
 0x6f4   :  { %v1206_v36 = vadd.f32 %v7238_v25, %v1205_v35  ;;  %v1301_v0 = vadd.f32 %v7238_v25, %v1300_v63 }
 0x6f6   :  { %v8385_v62 = vpack.c.bf16 %v1211_v33, %v1206_v36  ;;  %v8389_v12 = vpack.c.bf16 %v1306_v34, %v1301_v0  ;;  %v7804_v1 = vpop.f32.mrb[14].mxu0 }
 0x6f7   :  { %v1316_v38 = vadd.f32 %v7804_v1, %v7238_v25  ;;  %v1310_v39 = vpop.f32.mrb[15].mxu0 }
 0x6f8   :  { %v1311_v41 = vadd.f32 %v7238_v25, %v1310_v39  ;;  %8386 = vmatprep.subr.bf16.mxu1 %v8385_v62  ;;  %v1478_v25 = vld [vmem:[#allocation10 + $0xb0] sm:$0xff] }
 0x6f9   :  { %8388 = vmatpush3.bf16.msra.mxu1 %v8385_v62  ;;  %v8431_v28 = vpack.c.bf16 %v1479_v26, %v1478_v25 }
 0x6fa   :  { %v8393_v42 = vpack.c.bf16 %v1316_v38, %v1311_v41  ;;  %8390 = vmatprep.subr.bf16.mxu1 %v8389_v12 }
 0x6fb   :  { %8432 = vmatpush1.bf16.msra.mxu0 %v8431_v28 }
 0x6fd   :  { %8392 = vmatpush3.bf16.msra.mxu1 %v8389_v12 }
 0x6fe   :  { %8394 = vmatprep.subr.bf16.mxu1 %v8393_v42 }
 0x701   :  { %8396 = vmatpush3.bf16.msra.mxu1 %v8393_v42 }
 0x702   :  { %8433 = vmatprep.subr.bf16.mxu1 %v10055_v10 }
 0x704   :  { %7822 = vmatmul.mubr.msk.f32.vlgmr.msra.gmra.mrb[12].mxu1 %vm612_vm2, %v1320_v43 }
 0x705   :  { %7824 = vmatprep.mubr.msk.f32.mxu1 %vm612_vm2, %v1321_v49 }
 0x708   :  { %7825 = vmatmul.mubr.msk.f32.gmra.mrb[14].mxu1 %vm612_vm2, %v1322_v44 }
 0x709   :  { %7827 = vmatprep.mubr.msk.f32.mxu1 %vm612_vm2, %v1323_v5 }
 0x70c   :  { %7828 = vmatmul.mubr.msk.f32.gmra.mrb[16].mxu1 %vm612_vm2, %v1324_v15 }
 0x70d   :  { %7830 = vmatprep.mubr.msk.f32.mxu1 %vm612_vm2, %v1325_v23 }
 0x710   :  { %7831 = vmatmul.mubr.msk.f32.gmra.mrb[18].mxu1 %vm612_vm2, %v1326_v45 }
 0x7d7   :  { %v10655_v59 = vpop.f32.mrb[12].mxu1 }
 0x7d8   :  { %v1590_v29 = vrot.slane %v10655_v59, 7  ;;  %v1646_v30 = vrot.slane %v10655_v59, 1  ;;  %1703 = vrot.lane.b32.xlu1 %v10655_v59, %s10056_s29  ;;  %v10661_v31 = vpop.f32.mrb[13].mxu1 }
 0x7d9   :  { %v1589_v32 = vrot.slane %v10661_v31, 7  ;;  %v1645_v33 = vrot.slane %v10661_v31, 1  ;;  %1701 = vrot.lane.b32.xlu0 %v10661_v31, %s10056_s29 }
 0x7db   :  { %v10667_v34 = vpop.f32.mrb[14].mxu1  ;;  %v1647_v35 = vsel %vm571_vm1, %v1645_v33, %v1646_v30  ;;  %v1591_v63 = vsel %vm542_vm3, %v1589_v32, %v1590_v29  ;;  %v1612_v60 = vsel %vm542_vm3, 0.0, %v1589_v32 }
 0x7dc   :  { %v1594_v36 = vrot.slane %v10667_v34, 7  ;;  %v1650_v0 = vrot.slane %v10667_v34, 1  ;;  %7248 = vmatprep.mubr.msk.f32.mxu0 %vm612_vm2, %v1647_v35  ;;  %1707 = vrot.lane.b32.xlu1 %v10667_v34, %s10056_s29  ;;  %v10676_v62 = vpop.f32.mrb[15].mxu1  ;;  %v1637_v3 = vsel %vm10721_vm14, %v1612_v60, 0.0 }
 0x7dd   :  { %v1592_v12 = vrot.slane %v10676_v62, 7  ;;  %v1648_v1 = vrot.slane %v10676_v62, 1  ;;  %1705 = vrot.lane.b32.xlu0 %v10676_v62, %s10056_s29 }
 0x7df   :  { %v10682_v38 = vpop.f32.mrb[16].mxu1  ;;  %v1649_v39 = vsel %vm571_vm1, %v1646_v30, %v1648_v1  ;;  %v1651_v41 = vsel %vm571_vm1, %v1648_v1, %v1650_v0  ;;  %v1593_v42 = vsel %vm542_vm3, %v1590_v29, %v1592_v12  ;;  %v1595_v43 = vsel %vm542_vm3, %v1592_v12, %v1594_v36  ;;  %v10778_v1 = vld [vmem:[%s12592_s23] ss:$0 sm:$0xff] }
 0x7e0   :  { %v1598_v49 = vrot.slane %v10682_v38, 7  ;;  %v1654_v44 = vrot.slane %v10682_v38, 1  ;;  %1711 = vrot.lane.b32.xlu1 %v10682_v38, %s10056_s29  ;;  %v10692_v5 = vpop.f32.mrb[17].mxu1  ;;  %v1538_v29 = vand.u32 31, %v10756_v57 }
 0x7e1   :  { %v1596_v15 = vrot.slane %v10692_v5, 7  ;;  %v1652_v23 = vrot.slane %v10692_v5, 1  ;;  %1709 = vrot.lane.b32.xlu0 %v10692_v5, %s10056_s29 }
 0x7e2   :  { %vm10768_vm4 = vcmp.lt.s32.totalorder %v1538_v29, 31  ;;  %vm2100_vm10 = vcmp.lt.s32.totalorder %v1538_v29, 29 }
 0x7e3   :  { %v10698_v45 = vpop.f32.mrb[18].mxu1  ;;  %v1653_v46 = vsel %vm571_vm1, %v1650_v0, %v1652_v23  ;;  %v1655_v47 = vsel %vm571_vm1, %v1652_v23, %v1654_v44  ;;  %v1597_v18 = vsel %vm542_vm3, %v1594_v36, %v1596_v15  ;;  %v1599_v7 = vsel %vm542_vm3, %v1596_v15, %v1598_v49 }
 0x7e4   :  { %v1602_v52 = vrot.slane %v10698_v45, 7  ;;  %v1658_v37 = vrot.slane %v10698_v45, 1  ;;  %1715 = vrot.lane.b32.xlu1 %v10698_v45, %s10056_s29  ;;  %v10708_v40 = vpop.f32.mrb[19].mxu1  ;;  %v1696_v20 = vsel %vm10738_vm15, %v1653_v46, 0.0  ;;  %v1641_v25 = vsel %vm10750_vm0, %v1597_v18, 0.0 }
 0x7e5   :  { %v1600_v51 = vrot.slane %v10708_v40, 7  ;;  %v1656_v53 = vrot.slane %v10708_v40, 1  ;;  %1713 = vrot.lane.b32.xlu0 %v10708_v40, %s10056_s29 }
 0x7e6   :  { %v1668_v33 = vsel %vm571_vm1, %v1658_v37, 0.0 }
 0x7e7   :  { %v1657_v54 = vsel %vm571_vm1, %v1654_v44, %v1656_v53  ;;  %v1659_v48 = vsel %vm571_vm1, %v1656_v53, %v1658_v37  ;;  %v1601_v27 = vsel %vm542_vm3, %v1598_v49, %v1600_v51  ;;  %v1603_v55 = vsel %vm542_vm3, %v1600_v51, %v1602_v52 }
 0x7e8   :  { %v1700_v0 = vsel %vm10768_vm4, %v1668_v33, 0.0 }
 0x84a   :  { %v1704_v9 = vpop.permute.xlu1 %1703 }
 0x84b   :  { %v1702_v2 = vpop.permute.xlu0 %1701  ;;  %v1726_v4 = vsel %vm612_vm2, %v1591_v63, %v1704_v9 }
 0x84c   :  { %v1725_v6 = vsel %vm612_vm2, %v1637_v3, %v1702_v2 }
 0x84d   :  { %1828 = vmatmul.mubr.f32.vlgmr.msra.gmra.mrb[16].mxu0 %v1725_v6 }
 0x84e   :  { %7249 = vmatprep.mubr.msk.f32.mxu0 %vm612_vm2, %v1649_v39  ;;  %v1708_v19 = vpop.permute.xlu1 %1707 }
 0x84f   :  { %v1706_v14 = vpop.permute.xlu0 %1705  ;;  %v1728_v21 = vsel %vm612_vm2, %v1595_v43, %v1708_v19  ;;  %v1981_v19 = vld [vmem:[#allocation11 + $0x8] sm:$0xff] }
 0x850   :  { %v1727_v50 = vsel %vm612_vm2, %v1593_v42, %v1706_v14 }
 0x851   :  { %1833 = vmatmul.mubr.f32.gmra.mrb[18].mxu0 %v1726_v4 }
 0x852   :  { %7250 = vmatprep.mubr.msk.f32.mxu0 %vm612_vm2, %v1651_v41  ;;  %v1712_v28 = vpop.permute.xlu1 %1711 }
 0x853   :  { %v1710_v22 = vpop.permute.xlu0 %1709  ;;  %v1730_v30 = vsel %vm612_vm2, %v1599_v7, %v1712_v28 }
 0x854   :  { %v1729_v26 = vsel %vm612_vm2, %v1641_v25, %v1710_v22 }
 0x855   :  { %1838 = vmatmul.mubr.f32.gmra.mrb[20].mxu0 %v1727_v50  ;;  %v1980_v50 = vld [vmem:[#allocation11] sm:$0xff] }
 0x856   :  { %7251 = vmatprep.mubr.msk.f32.mxu0 %vm612_vm2, %v1696_v20  ;;  %v1716_v36 = vpop.permute.xlu1 %1715  ;;  %v1982_v20 = vld [vmem:[#allocation11 + $0x10] sm:$0xff]  ;;  %v8434_v25 = vpack.c.bf16 %v1981_v19, %v1980_v50 }
 0x857   :  { %v1714_v32 = vpop.permute.xlu0 %1713  ;;  %v1732_v12 = vsel %vm612_vm2, %v1603_v55, %v1716_v36  ;;  %v1984_v36 = vld [vmem:[#allocation11 + $0x20] sm:$0xff] }
 0x858   :  { %v1731_v63 = vsel %vm612_vm2, %v1601_v27, %v1714_v32  ;;  %8435 = vmatpush1.bf16.msra.mxu1 %v8434_v25 }
 0x859   :  { %1843 = vmatmul.mubr.f32.gmra.mrb[22].mxu0 %v1728_v21  ;;  %8436 = vmatprep.subr.bf16.mxu1 %v10055_v10 }
 0x85a   :  { %7252 = vmatprep.mubr.msk.f32.mxu0 %vm612_vm2, %v1655_v47 }
 0x85d   :  { %1848 = vmatmul.mubr.f32.gmra.mrb[24].mxu0 %v1729_v26  ;;  %v1983_v26 = vld [vmem:[#allocation11 + $0x18] sm:$0xff] }
 0x85e   :  { %7253 = vmatprep.mubr.msk.f32.mxu0 %vm612_vm2, %v1657_v54 }
 0x861   :  { %1853 = vmatmul.mubr.f32.gmra.mrb[26].mxu0 %v1730_v30 }
 0x862   :  { %7254 = vmatprep.mubr.msk.f32.mxu0 %vm612_vm2, %v1659_v48 }
 0x865   :  { %1858 = vmatmul.mubr.f32.gmra.mrb[28].mxu0 %v1731_v63  ;;  %v8437_v63 = vpack.c.bf16 %v1983_v26, %v1982_v20 }
 0x866   :  { %7255 = vmatprep.mubr.msk.f32.mxu0 %vm612_vm2, %v1700_v0  ;;  %v1985_v0 = vld [vmem:[#allocation11 + $0x28] sm:$0xff] }
 0x867   :  { %8438 = vmatpush1.bf16.msra.mxu1 %v8437_v63  ;;  %v1995_v63 = vld [vmem:[#allocation11 + $0x78] sm:$0xff] }
 0x868   :  { %8439 = vmatprep.subr.bf16.mxu1 %v10055_v10 }
 0x869   :  { %1863 = vmatmul.mubr.f32.gmra.mrb[30].mxu0 %v1732_v12 }
 0x920   :  { %v1829_v39 = vpop.f32.mrb[16].mxu0 }
 0x921   :  { %v1830_v41 = vadd.f32 %v10778_v1, %v1829_v39  ;;  %v1831_v42 = vpop.f32.mrb[17].mxu0 }
 0x923   :  { %v7256_v43 = vmul.f32 -1.442695, %v1830_v41  ;;  %1924 = vrot.lane.b32.xlu0 %v1830_v41, %s10056_s29 }
 0x924   :  { %v1834_v49 = vpop.f32.mrb[18].mxu0 }
 0x925   :  { %9268 = vpow2.f32 %v7256_v43  ;;  %v1835_v44 = vadd.f32 %v10778_v1, %v1834_v49  ;;  %v1836_v15 = vpop.f32.mrb[19].mxu0 }
 0x927   :  { %v7257_v23 = vmul.f32 -1.442695, %v1835_v44  ;;  %1926 = vrot.lane.b32.xlu1 %v1835_v44, %s10056_s29 }
 0x928   :  { %v1839_v46 = vpop.f32.mrb[20].mxu0 }
 0x929   :  { %9270 = vpow2.f32 %v7257_v23  ;;  %v1840_v47 = vadd.f32 %v10778_v1, %v1839_v46  ;;  %v1841_v18 = vpop.f32.mrb[21].mxu0  ;;  %v8440_v23 = vpack.c.bf16 %v1985_v0, %v1984_v36  ;;  %v1986_v46 = vld [vmem:[#allocation11 + $0x30] sm:$0xff] }
 0x92b   :  { %v7258_v7 = vmul.f32 -1.442695, %v1840_v47  ;;  %1928 = vrot.lane.b32.xlu0 %v1840_v47, %s10056_s29  ;;  %v1987_v47 = vld [vmem:[#allocation11 + $0x38] sm:$0xff]  ;;  %8441 = vmatpush1.bf16.msra.mxu1 %v8440_v23  ;;  %v1998_v23 = vld [vmem:[#allocation11 + $0x90] sm:$0xff] }
 0x92c   :  { %v1844_v52 = vpop.f32.mrb[22].mxu0  ;;  %8442 = vmatprep.subr.bf16.mxu1 %v10055_v10 }
 0x92d   :  { %9272 = vpow2.f32 %v7258_v7  ;;  %v1845_v37 = vadd.f32 %v10778_v1, %v1844_v52  ;;  %v1846_v51 = vpop.f32.mrb[23].mxu0 }
 0x92f   :  { %v9269_v53 = vpop.eup %9268  ;;  %v7259_v54 = vmul.f32 -1.442695, %v1845_v37  ;;  %1930 = vrot.lane.b32.xlu1 %v1845_v37, %s10056_s29 }
 0x930   :  { %v1892_v48 = vadd.f32 1.0, %v9269_v53  ;;  %v1849_v27 = vpop.f32.mrb[24].mxu0  ;;  %v8443_v53 = vpack.c.bf16 %v1987_v47, %v1986_v46  ;;  %v1999_v46 = vld [vmem:[#allocation11 + $0x98] sm:$0xff] }
 0x931   :  { %9274 = vpow2.f32 %v7259_v54  ;;  %v1850_v55 = vadd.f32 %v10778_v1, %v1849_v27  ;;  %v1851_v60 = vpop.f32.mrb[25].mxu0  ;;  %v1988_v54 = vld [vmem:[#allocation11 + $0x40] sm:$0xff] }
 0x932   :  { %9276 = vrcp.f32 %v1892_v48  ;;  %v1989_v48 = vld [vmem:[#allocation11 + $0x48] sm:$0xff]  ;;  %8444 = vmatpush1.bf16.msra.mxu1 %v8443_v53 }
 0x933   :  { %v9271_v2 = vpop.eup %9270  ;;  %v7260_v3 = vmul.f32 -1.442695, %v1850_v55  ;;  %1932 = vrot.lane.b32.xlu0 %v1850_v55, %s10056_s29  ;;  %8445 = vmatprep.subr.bf16.mxu1 %v10055_v10 }
 0x934   :  { %v1893_v6 = vadd.f32 1.0, %v9271_v2  ;;  %v1854_v9 = vpop.f32.mrb[26].mxu0 }
 0x935   :  { %9278 = vpow2.f32 %v7260_v3  ;;  %v1855_v4 = vadd.f32 %v10778_v1, %v1854_v9  ;;  %v1856_v14 = vpop.f32.mrb[27].mxu0  ;;  %v8446_v3 = vpack.c.bf16 %v1989_v48, %v1988_v54  ;;  %v1991_v9 = vld [vmem:[#allocation11 + $0x58] sm:$0xff]  ;;  %v2002_v54 = vld [vmem:[#allocation11 + $0xb0] sm:$0xff] }
 0x936   :  { %9280 = vrcp.f32 %v1893_v6  ;;  %v1990_v6 = vld [vmem:[#allocation11 + $0x50] sm:$0xff]  ;;  %v2003_v48 = vld [vmem:[#allocation11 + $0xb8] sm:$0xff] }
 0x937   :  { %v9273_v21 = vpop.eup %9272  ;;  %v7261_v22 = vmul.f32 -1.442695, %v1855_v4  ;;  %1934 = vrot.lane.b32.xlu1 %v1855_v4, %s10056_s29  ;;  %8447 = vmatpush1.bf16.msra.mxu1 %v8446_v3  ;;  %v8449_v20 = vpack.c.bf16 %v1991_v9, %v1990_v6 }
 0x938   :  { %v1894_v28 = vadd.f32 1.0, %v9273_v21  ;;  %v1859_v30 = vpop.f32.mrb[28].mxu0  ;;  %8448 = vmatprep.subr.bf16.mxu1 %v10055_v10  ;;  %v1992_v21 = vld [vmem:[#allocation11 + $0x60] sm:$0xff] }
 0x939   :  { %9282 = vpow2.f32 %v7261_v22  ;;  %v1860_v32 = vadd.f32 %v10778_v1, %v1859_v30  ;;  %v1861_v33 = vpop.f32.mrb[29].mxu0  ;;  %v1993_v22 = vld [vmem:[#allocation11 + $0x68] sm:$0xff] }
 0x93a   :  { %9284 = vrcp.f32 %v1894_v28  ;;  %v1994_v33 = vld [vmem:[#allocation11 + $0x70] sm:$0xff] }
 0x93b   :  { %v9275_v12 = vpop.eup %9274  ;;  %v7262_v39 = vmul.f32 -1.442695, %v1860_v32  ;;  %1936 = vrot.lane.b32.xlu0 %v1860_v32, %s10056_s29  ;;  %8450 = vmatpush1.bf16.msra.mxu1 %v8449_v20  ;;  %v8452_v32 = vpack.c.bf16 %v1993_v22, %v1992_v21 }
 0x93c   :  { %v10795_v41 = vpop.eup %9276  ;;  %v1895_v42 = vadd.f32 1.0, %v9275_v12  ;;  %v1864_v43 = vpop.f32.mrb[30].mxu0  ;;  %8451 = vmatprep.subr.bf16.mxu1 %v10055_v10 }
 0x93d   :  { %9286 = vpow2.f32 %v7262_v39  ;;  %v1865_v49 = vadd.f32 %v10778_v1, %v1864_v43  ;;  %v1866_v44 = vpop.f32.mrb[31].mxu0  ;;  %v1956_v15 = vsub.f32 1.0, %v10795_v41  ;;  %v8455_v39 = vpack.c.bf16 %v1995_v63, %v1994_v33 }
 0x93e   :  { %9288 = vrcp.f32 %v1895_v42  ;;  %v1997_v42 = vld [vmem:[#allocation11 + $0x88] sm:$0xff] }
 0x93f   :  { %v9279_v18 = vpop.eup %9278  ;;  %v7263_v7 = vmul.f32 -1.442695, %v1865_v49  ;;  %1938 = vrot.lane.b32.xlu1 %v1865_v49, %s10056_s29  ;;  %v10802_v52 = vmul.f32 %v1956_v15, %v10661_v31  ;;  %8453 = vmatpush1.bf16.msra.mxu1 %v8452_v32 }
 0x940   :  { %v10804_v37 = vpop.eup %9280  ;;  %v1896_v1 = vadd.f32 1.0, %v9279_v18  ;;  %8454 = vmatprep.subr.bf16.mxu1 %v10055_v10 }
 0x941   :  { %9290 = vpow2.f32 %v7263_v7  ;;  %v1957_v51 = vsub.f32 1.0, %v10804_v37  ;;  %v8461_v7 = vpack.c.bf16 %v1999_v46, %v1998_v23 }
 0x942   :  { %9292 = vrcp.f32 %v1896_v1  ;;  %v2000_v1 = vld [vmem:[#allocation11 + $0xa0] sm:$0xff] }
 0x943   :  { %v9283_v27 = vpop.eup %9282  ;;  %v10809_v55 = vmul.f32 %v10655_v59, %v1957_v51  ;;  %8456 = vmatpush1.bf16.msra.mxu1 %v8455_v39  ;;  %v2001_v51 = vld [vmem:[#allocation11 + $0xa8] sm:$0xff] }
 0x944   :  { %v10811_v60 = vpop.eup %9284  ;;  %v1897_v31 = vadd.f32 1.0, %v9283_v27  ;;  %8457 = vmatprep.subr.bf16.mxu1 %v10055_v10  ;;  %v8464_v53 = vpack.c.bf16 %v2001_v51, %v2000_v1  ;;  %v8467_v27 = vpack.c.bf16 %v2003_v48, %v2002_v54 }
 0x945   :  { %v1958_v2 = vsub.f32 1.0, %v10811_v60 }
 0x946   :  { %9294 = vrcp.f32 %v1897_v31 }
 0x947   :  { %v9287_v4 = vpop.eup %9286  ;;  %v10816_v14 = vmul.f32 %v1958_v2, %v10676_v62 }
 0x948   :  { %v10818_v50 = vpop.eup %9288  ;;  %v1898_v59 = vadd.f32 1.0, %v9287_v4 }
 0x949   :  { %v1959_v19 = vsub.f32 1.0, %v10818_v50 }
 0x94a   :  { %9296 = vrcp.f32 %v1898_v59 }
 0x94b   :  { %v9291_v25 = vpop.eup %9290  ;;  %v1967_v26 = vmul.f32 %v10667_v34, %v1959_v19  ;;  %v1996_v34 = vld [vmem:[#allocation11 + $0x80] sm:$0xff] }
 0x94c   :  { %v10823_v28 = vpop.eup %9292  ;;  %v1899_v30 = vadd.f32 1.0, %v9291_v25  ;;  %v8458_v15 = vpack.c.bf16 %v1997_v42, %v1996_v34 }
 0x94d   :  { %v1960_v62 = vsub.f32 1.0, %v10823_v28 }
 0x94e   :  { %9298 = vrcp.f32 %v1899_v30  ;;  %8459 = vmatpush1.bf16.msra.mxu1 %v8458_v15 }
 0x94f   :  { %v1968_v36 = vmul.f32 %v1960_v62, %v10692_v5  ;;  %8460 = vmatprep.subr.bf16.mxu1 %v10055_v10 }
 0x950   :  { %v9295_v0 = vpop.eup %9294 }
 0x951   :  { %v1961_v12 = vsub.f32 1.0, %v9295_v0 }
 0x952   :  { %8462 = vmatpush1.bf16.msra.mxu1 %v8461_v7 }
 0x953   :  { %v1969_v43 = vmul.f32 %v10682_v38, %v1961_v12  ;;  %8463 = vmatprep.subr.bf16.mxu1 %v10055_v10 }
 0x954   :  { %v9297_v49 = vpop.eup %9296 }
 0x955   :  { %v1962_v44 = vsub.f32 1.0, %v9297_v49 }
 0x956   :  { %8465 = vmatpush1.bf16.msra.mxu1 %v8464_v53 }
 0x957   :  { %v1970_v5 = vmul.f32 %v1962_v44, %v10708_v40  ;;  %8466 = vmatprep.subr.bf16.mxu1 %v10055_v10 }
 0x958   :  { %v9299_v47 = vpop.eup %9298 }
 0x959   :  { %v1963_v18 = vsub.f32 1.0, %v9299_v47 }
 0x95a   :  { %8468 = vmatpush1.bf16.msra.mxu1 %v8467_v27 }
 0x95b   :  { %v1971_v38 = vmul.f32 %v10698_v45, %v1963_v18 }
 0x995   :  { %v1925_v40 = vpop.permute.xlu0 %1924 }
 0x996   :  { %v1948_v31 = vmul.f32 %v10795_v41, %v1925_v40 }
 0x998   :  { %v10838_v2 = vadd.f32 %v10802_v52, %v1948_v31 }
 0x999   :  { %v1927_v3 = vpop.permute.xlu1 %1926 }
 0x99a   :  { %v1949_v45 = vmul.f32 %v10804_v37, %v1927_v3  ;;  %2125 = vrot.lane.b32.xlu0 %v10838_v2, %s10056_s29  ;;  %v2069_v41 = vrot.slane %v10838_v2, 3  ;;  %v2013_v63 = vrot.slane %v10838_v2, 5 }
 0x99c   :  { %v10844_v6 = vadd.f32 %v10809_v55, %v1949_v45 }
 0x99d   :  { %v1929_v9 = vpop.permute.xlu0 %1928 }
 0x99e   :  { %v1950_v4 = vmul.f32 %v10811_v60, %v1929_v9  ;;  %2127 = vrot.lane.b32.xlu1 %v10844_v6, %s10056_s29  ;;  %v2070_v52 = vrot.slane %v10844_v6, 3  ;;  %v2014_v34 = vrot.slane %v10844_v6, 5 }
 0x9a0   :  { %v10852_v59 = vadd.f32 %v10816_v14, %v1950_v4  ;;  %v2071_v37 = vsel %vm834_vm8, %v2069_v41, %v2070_v52  ;;  %v2015_v58 = vsel %vm805_vm9, %v2013_v63, %v2014_v34 }
 0x9a1   :  { %v1931_v19 = vpop.permute.xlu1 %1930  ;;  %7265 = vmatprep.mubr.msk.f32.mxu1 %vm612_vm2, %v2071_v37 }
 0x9a2   :  { %v1951_v55 = vmul.f32 %v10818_v50, %v1931_v19  ;;  %2129 = vrot.lane.b32.xlu0 %v10852_v59, %s10056_s29  ;;  %v2016_v23 = vrot.slane %v10852_v59, 5 }
 0x9a4   :  { %v10859_v60 = vadd.f32 %v1967_v26, %v1951_v55  ;;  %v2017_v7 = vsel %vm805_vm9, %v2014_v34, %v2016_v23 }
 0x9a5   :  { %v1933_v20 = vpop.permute.xlu0 %1932 }
 0x9a6   :  { %v1952_v21 = vmul.f32 %v10823_v28, %v1933_v20  ;;  %2131 = vrot.lane.b32.xlu1 %v10859_v60, %s10056_s29  ;;  %v2018_v1 = vrot.slane %v10859_v60, 5 }
 0x9a8   :  { %v10864_v14 = vadd.f32 %v1968_v36, %v1952_v21  ;;  %v2036_v36 = vsel %vm805_vm9, 0.0, %v2013_v63  ;;  %v2019_v27 = vsel %vm805_vm9, %v2016_v23, %v2018_v1 }
 0x9a9   :  { %v1935_v22 = vpop.permute.xlu1 %1934  ;;  %v2061_v12 = vsel %vm2037_vm5, %v2036_v36, 0.0  ;;  %v7264_v36 = vld [vmem:[%s12595_s4] ss:$0 sm:$0xff] }
 0x9aa   :  { %v1953_v25 = vmul.f32 %v9295_v0, %v1935_v22  ;;  %2133 = vrot.lane.b32.xlu0 %v10864_v14, %s10056_s29  ;;  %v2072_v0 = vrot.slane %v10852_v59, 3  ;;  %v2076_v44 = vrot.slane %v10864_v14, 3 }
 0x9ac   :  { %v10868_v30 = vadd.f32 %v1969_v43, %v1953_v25  ;;  %v2073_v43 = vsel %vm834_vm8, %v2070_v52, %v2072_v0 }
 0x9ad   :  { %v1937_v50 = vpop.permute.xlu0 %1936 }
 0x9ae   :  { %v1954_v62 = vmul.f32 %v9297_v49, %v1937_v50  ;;  %2135 = vrot.lane.b32.xlu1 %v10868_v30, %s10056_s29  ;;  %v2074_v49 = vrot.slane %v10859_v60, 3  ;;  %v2078_v54 = vrot.slane %v10868_v30, 3  ;;  %v2022_v9 = vrot.slane %v10868_v30, 5 }
 0x9b0   :  { %v10872_v26 = vadd.f32 %v1970_v5, %v1954_v62  ;;  %v2075_v5 = vsel %vm834_vm8, %v2072_v0, %v2074_v49  ;;  %v2079_v40 = vsel %vm834_vm8, %v2076_v44, %v2078_v54 }
 0x9b1   :  { %v1939_v28 = vpop.permute.xlu1 %1938 }
 0x9b2   :  { %v1955_v32 = vmul.f32 %v9299_v47, %v1939_v28  ;;  %2137 = vrot.lane.b32.xlu0 %v10872_v26, %s10056_s29  ;;  %v2077_v47 = vsel %vm834_vm8, %v2074_v49, %v2076_v44  ;;  %v2080_v31 = vrot.slane %v10872_v26, 3  ;;  %v2024_v37 = vrot.slane %v10872_v26, 5 }
 0x9b3   :  { %v2120_v53 = vsel %vm2096_vm6, %v2077_v47, 0.0 }
 0x9b4   :  { %v10876_v33 = vadd.f32 %v1971_v38, %v1955_v32  ;;  %v2020_v38 = vrot.slane %v10864_v14, 5  ;;  %v2081_v41 = vsel %vm834_vm8, %v2078_v54, %v2080_v31  ;;  %v2025_v22 = vsel %vm805_vm9, %v2022_v9, %v2024_v37 }
 0x9b6   :  { %2139 = vrot.lane.b32.xlu1 %v10876_v33, %s10056_s29  ;;  %v2021_v11 = vsel %vm805_vm9, %v2018_v1, %v2020_v38  ;;  %v2082_v52 = vrot.slane %v10876_v33, 3  ;;  %v2023_v17 = vsel %vm805_vm9, %v2020_v38, %v2022_v9  ;;  %v2026_v25 = vrot.slane %v10876_v33, 5  ;;  %v2408_v9 = vld [vmem:[%s12596_s26 + $0x20] sm:$0xff] }
 0x9b7   :  { %v2065_v45 = vsel %vm2041_vm7, %v2021_v11, 0.0  ;;  %v2405_v11 = vld [vmem:[%s12596_s26 + $0x8] sm:$0xff] }
 0x9b8   :  { %v2083_v55 = vsel %vm834_vm8, %v2080_v31, %v2082_v52  ;;  %v2092_v20 = vsel %vm834_vm8, %v2082_v52, 0.0  ;;  %v2027_v32 = vsel %vm805_vm9, %v2024_v37, %v2026_v25  ;;  %v2421_v52 = vld [vmem:[%s12597_s17 + $0x8] sm:$0xff]  ;;  %v2422_v37 = vld [vmem:[%s12597_s17 + $0x10] sm:$0xff]  ;;  %v2412_v25 = vld [vmem:[%s12596_s26 + $0x40] sm:$0xff] }
 0x9b9   :  { %v2124_v62 = vsel %vm2100_vm10, %v2092_v20, 0.0  ;;  %v2411_v20 = vld [vmem:[%s12596_s26 + $0x38] sm:$0xff] }
 0xa0c   :  { %v2126_v39 = vpop.permute.xlu0 %2125 }
 0xa0d   :  { %v2149_v42 = vsel %vm612_vm2, %v2061_v12, %v2126_v39 }
 0xa0e   :  { %2252 = vmatmul.mubr.f32.vlgmr.msra.gmra.mrb[20].mxu1 %v2149_v42 }
 0xa0f   :  { %7266 = vmatprep.mubr.msk.f32.mxu1 %vm612_vm2, %v2073_v43 }
 0xa10   :  { %v2128_v15 = vpop.permute.xlu1 %2127 }
 0xa11   :  { %v2150_v46 = vsel %vm612_vm2, %v2015_v58, %v2128_v15 }
 0xa12   :  { %2257 = vmatmul.mubr.f32.gmra.mrb[22].mxu1 %v2150_v46 }
 0xa13   :  { %7267 = vmatprep.mubr.msk.f32.mxu1 %vm612_vm2, %v2075_v5 }
 0xa14   :  { %v2130_v18 = vpop.permute.xlu0 %2129 }
 0xa15   :  { %v2151_v51 = vsel %vm612_vm2, %v2017_v7, %v2130_v18 }
 0xa16   :  { %2262 = vmatmul.mubr.f32.gmra.mrb[24].mxu1 %v2151_v51 }
 0xa17   :  { %7268 = vmatprep.mubr.msk.f32.mxu1 %vm612_vm2, %v2120_v53 }
 0xa18   :  { %v2132_v48 = vpop.permute.xlu1 %2131 }
 0xa19   :  { %v2152_v8 = vsel %vm612_vm2, %v2019_v27, %v2132_v48 }
 0xa1a   :  { %2267 = vmatmul.mubr.f32.gmra.mrb[26].mxu1 %v2152_v8  ;;  %v2404_v8 = vld [vmem:[%s12596_s26] sm:$0xff] }
 0xa1b   :  { %7269 = vmatprep.mubr.msk.f32.mxu1 %vm612_vm2, %v2079_v40  ;;  %v2406_v40 = vld [vmem:[%s12596_s26 + $0x10] sm:$0xff]  ;;  %v8469_v31 = vpack.c.bf16 %v2405_v11, %v2404_v8  ;;  %v2425_v11 = vld [vmem:[%s12597_s17 + $0x28] sm:$0xff] }
 0xa1c   :  { %v2134_v3 = vpop.permute.xlu0 %2133 }
 0xa1d   :  { %v2153_v4 = vsel %vm612_vm2, %v2065_v45, %v2134_v3  ;;  %v2407_v3 = vld [vmem:[%s12596_s26 + $0x18] sm:$0xff]  ;;  %8470 = vmatprep.subr.bf16.mxu0 %v8469_v31 }
 0xa1e   :  { %2272 = vmatmul.mubr.f32.gmra.mrb[28].mxu1 %v2153_v4  ;;  %v8473_v45 = vpack.c.bf16 %v2407_v3, %v2406_v40  ;;  %v2409_v4 = vld [vmem:[%s12596_s26 + $0x28] sm:$0xff]  ;;  %8472 = vmatpush3.bf16.msra.mxu0 %v8469_v31 }
 0xa1f   :  { %7270 = vmatprep.mubr.msk.f32.mxu1 %vm612_vm2, %v2081_v41  ;;  %v2420_v41 = vld [vmem:[%s12597_s17] sm:$0xff] }
 0xa20   :  { %v2136_v13 = vpop.permute.xlu1 %2135  ;;  %8474 = vmatprep.subr.bf16.mxu0 %v8473_v45 }
 0xa21   :  { %v2154_v19 = vsel %vm612_vm2, %v2023_v17, %v2136_v13  ;;  %v8477_v13 = vpack.c.bf16 %v2409_v4, %v2408_v9  ;;  %v8501_v17 = vpack.c.bf16 %v2421_v52, %v2420_v41  ;;  %v2427_v9 = vld [vmem:[%s12597_s17 + $0x38] sm:$0xff] }
 0xa22   :  { %2277 = vmatmul.mubr.f32.gmra.mrb[30].mxu1 %v2154_v19  ;;  %v2423_v19 = vld [vmem:[%s12597_s17 + $0x18] sm:$0xff]  ;;  %8476 = vmatpush3.bf16.msra.mxu0 %v8473_v45  ;;  %v2426_v45 = vld [vmem:[%s12597_s17 + $0x30] sm:$0xff] }
 0xa23   :  { %7271 = vmatprep.mubr.msk.f32.mxu1 %vm612_vm2, %v2083_v55  ;;  %v2410_v55 = vld [vmem:[%s12596_s26 + $0x30] sm:$0xff]  ;;  %8502 = vmatprep.subr.bf16.mxu1 %v8501_v17  ;;  %v8513_v52 = vpack.c.bf16 %v2427_v9, %v2426_v45 }
 0xa24   :  { %v2138_v21 = vpop.permute.xlu0 %2137  ;;  %8504 = vmatpush3.bf16.msra.mxu1 %v8501_v17  ;;  %8478 = vmatprep.subr.bf16.mxu0 %v8477_v13 }
 0xa25   :  { %v2155_v50 = vsel %vm612_vm2, %v2025_v22, %v2138_v21  ;;  %v8505_v21 = vpack.c.bf16 %v2423_v19, %v2422_v37  ;;  %v8481_v22 = vpack.c.bf16 %v2411_v20, %v2410_v55  ;;  %v2428_v55 = vld [vmem:[%s12597_s17 + $0x40] sm:$0xff]  ;;  %v2429_v20 = vld [vmem:[%s12597_s17 + $0x48] sm:$0xff] }
 0xa26   :  { %2282 = vmatmul.mubr.f32.gmra.mrb[32].mxu1 %v2155_v50  ;;  %v2413_v50 = vld [vmem:[%s12596_s26 + $0x48] sm:$0xff]  ;;  %8480 = vmatpush3.bf16.msra.mxu0 %v8477_v13 }
 0xa27   :  { %7272 = vmatprep.mubr.msk.f32.mxu1 %vm612_vm2, %v2124_v62  ;;  %8506 = vmatprep.subr.bf16.mxu1 %v8505_v21  ;;  %v8485_v62 = vpack.c.bf16 %v2413_v50, %v2412_v25  ;;  %v8517_v50 = vpack.c.bf16 %v2429_v20, %v2428_v55 }
 0xa28   :  { %v2140_v28 = vpop.permute.xlu1 %2139  ;;  %8508 = vmatpush3.bf16.msra.mxu1 %v8505_v21  ;;  %8482 = vmatprep.subr.bf16.mxu0 %v8481_v22 }
 0xa29   :  { %v2156_v63 = vsel %vm612_vm2, %v2027_v32, %v2140_v28  ;;  %v2414_v28 = vld [vmem:[%s12596_s26 + $0x50] sm:$0xff]  ;;  %v2415_v32 = vld [vmem:[%s12596_s26 + $0x58] sm:$0xff] }
 0xa2a   :  { %2287 = vmatmul.mubr.f32.gmra.mrb[34].mxu1 %v2156_v63  ;;  %8484 = vmatpush3.bf16.msra.mxu0 %v8481_v22  ;;  %v8489_v63 = vpack.c.bf16 %v2415_v32, %v2414_v28 }
 0xa2b   :  { %8486 = vmatprep.subr.bf16.mxu0 %v8485_v62 }
 0xa2e   :  { %8488 = vmatpush3.bf16.msra.mxu0 %v8485_v62 }
 0xa2f   :  { %8490 = vmatprep.subr.bf16.mxu0 %v8489_v63 }
 0xa32   :  { %8492 = vmatpush3.bf16.msra.mxu0 %v8489_v63 }
 0xae1   :  { %v2253_v0 = vpop.f32.mrb[20].mxu1 }
 0xae2   :  { %v10933_v29 = vadd.f32 %v7264_v36, %v2253_v0  ;;  %v2255_v12 = vpop.f32.mrb[21].mxu1  ;;  %v2417_v0 = vld [vmem:[%s12596_s26 + $0x68] sm:$0xff] }
 0xae4   :  { %2348 = vrot.lane.b32.xlu0 %v10933_v29, %s10056_s29 }
 0xae5   :  { %v2258_v39 = vpop.f32.mrb[22].mxu1 }
 0xae6   :  { %v10937_v34 = vadd.f32 %v7264_v36, %v2258_v39  ;;  %v2260_v42 = vpop.f32.mrb[23].mxu1  ;;  %v7273_v39 = vmul.f32 -1.442695, %v10933_v29 }
 0xae8   :  { %2350 = vrot.lane.b32.xlu1 %v10937_v34, %s10056_s29  ;;  %v7274_v42 = vmul.f32 -1.442695, %v10937_v34  ;;  %9300 = vpow2.f32 %v7273_v39 }
 0xae9   :  { %v2263_v43 = vpop.f32.mrb[24].mxu1 }
 0xaea   :  { %v10941_v49 = vadd.f32 %v7264_v36, %v2263_v43  ;;  %v2265_v44 = vpop.f32.mrb[25].mxu1  ;;  %9302 = vpow2.f32 %v7274_v42  ;;  %v2430_v42 = vld [vmem:[%s12597_s17 + $0x50] sm:$0xff] }
 0xaec   :  { %2352 = vrot.lane.b32.xlu0 %v10941_v49, %s10056_s29  ;;  %v7275_v43 = vmul.f32 -1.442695, %v10941_v49 }
 0xaed   :  { %v2268_v15 = vpop.f32.mrb[26].mxu1 }
 0xaee   :  { %v10945_v58 = vadd.f32 %v7264_v36, %v2268_v15  ;;  %v2270_v23 = vpop.f32.mrb[27].mxu1  ;;  %9304 = vpow2.f32 %v7275_v43  ;;  %v2431_v43 = vld [vmem:[%s12597_s17 + $0x58] sm:$0xff] }
 0xaf0   :  { %2354 = vrot.lane.b32.xlu1 %v10945_v58, %s10056_s29  ;;  %v7276_v44 = vmul.f32 -1.442695, %v10945_v58 }
 0xaf1   :  { %v2273_v46 = vpop.f32.mrb[28].mxu1 }
 0xaf2   :  { %v10949_v5 = vadd.f32 %v7264_v36, %v2273_v46  ;;  %v2275_v47 = vpop.f32.mrb[29].mxu1  ;;  %v9301_v15 = vpop.eup %9300  ;;  %9306 = vpow2.f32 %v7276_v44 }
 0xaf3   :  { %v2316_v46 = vadd.f32 1.0, %v9301_v15  ;;  %v8521_v15 = vpack.c.bf16 %v2431_v43, %v2430_v42 }
 0xaf4   :  { %2356 = vrot.lane.b32.xlu0 %v10949_v5, %s10056_s29  ;;  %v9303_v23 = vpop.eup %9302  ;;  %v7277_v47 = vmul.f32 -1.442695, %v10949_v5 }
 0xaf5   :  { %v2278_v18 = vpop.f32.mrb[30].mxu1  ;;  %9308 = vrcp.f32 %v2316_v46 }
 0xaf6   :  { %v10953_v7 = vadd.f32 %v7264_v36, %v2278_v18  ;;  %v2280_v1 = vpop.f32.mrb[31].mxu1  ;;  %9310 = vpow2.f32 %v7277_v47  ;;  %v2432_v47 = vld [vmem:[%s12597_s17 + $0x60] sm:$0xff] }
 0xaf7   :  { %v2317_v1 = vadd.f32 1.0, %v9303_v23 }
 0xaf8   :  { %2358 = vrot.lane.b32.xlu1 %v10953_v7, %s10056_s29  ;;  %v7278_v18 = vmul.f32 -1.442695, %v10953_v7  ;;  %v9305_v34 = vpop.eup %9304 }
 0xaf9   :  { %v2283_v51 = vpop.f32.mrb[32].mxu1 }
 0xafa   :  { %v10957_v38 = vadd.f32 %v7264_v36, %v2283_v51  ;;  %v2285_v53 = vpop.f32.mrb[33].mxu1  ;;  %9312 = vpow2.f32 %v7278_v18  ;;  %v2318_v51 = vadd.f32 1.0, %v9305_v34  ;;  %v2433_v18 = vld [vmem:[%s12597_s17 + $0x68] sm:$0xff] }
 0xafb   :  { %9314 = vrcp.f32 %v2317_v1  ;;  %v2418_v53 = vld [vmem:[%s12596_s26 + $0x70] sm:$0xff] }
 0xafc   :  { %2360 = vrot.lane.b32.xlu0 %v10957_v38, %s10056_s29  ;;  %v7279_v29 = vmul.f32 -1.442695, %v10957_v38  ;;  %v9307_v49 = vpop.eup %9306 }
 0xafd   :  { %v2288_v54 = vpop.f32.mrb[34].mxu1  ;;  %v2319_v5 = vadd.f32 1.0, %v9307_v49 }
 0xafe   :  { %v10961_v48 = vadd.f32 %v7264_v36, %v2288_v54  ;;  %v2290_v27 = vpop.f32.mrb[35].mxu1  ;;  %v2416_v36 = vld [vmem:[%s12596_s26 + $0x60] sm:$0xff]  ;;  %9316 = vpow2.f32 %v7279_v29  ;;  %v2419_v54 = vld [vmem:[%s12596_s26 + $0x78] sm:$0xff]  ;;  %v8525_v29 = vpack.c.bf16 %v2433_v18, %v2432_v47 }
 0xaff   :  { %v8493_v12 = vpack.c.bf16 %v2417_v0, %v2416_v36  ;;  %v9309_v7 = vpop.eup %9308  ;;  %v2424_v27 = vld [vmem:[%s12597_s17 + $0x20] sm:$0xff]  ;;  %v8497_v38 = vpack.c.bf16 %v2419_v54, %v2418_v53 }
 0xb00   :  { %2362 = vrot.lane.b32.xlu1 %v10961_v48, %s10056_s29  ;;  %v7280_v58 = vmul.f32 -1.442695, %v10961_v48  ;;  %v9311_v8 = vpop.eup %9310  ;;  %v8509_v31 = vpack.c.bf16 %v2425_v11, %v2424_v27  ;;  %v2380_v17 = vsub.f32 1.0, %v9309_v7  ;;  %v2434_v27 = vld [vmem:[%s12597_s17 + $0x70] sm:$0xff] }
 0xb01   :  { %8494 = vmatprep.subr.bf16.mxu0 %v8493_v12  ;;  %v2320_v48 = vadd.f32 1.0, %v9311_v8  ;;  %v2435_v8 = vld [vmem:[%s12597_s17 + $0x78] sm:$0xff] }
 0xb02   :  { %8496 = vmatpush3.bf16.msra.mxu0 %v8493_v12  ;;  %9318 = vpow2.f32 %v7280_v58  ;;  %8510 = vmatprep.subr.bf16.mxu1 %v8509_v31  ;;  %v2388_v28 = vmul.f32 %v2380_v17, %v10838_v2 }
 0xb03   :  { %9320 = vrcp.f32 %v2318_v51  ;;  %8498 = vmatprep.subr.bf16.mxu0 %v8497_v38  ;;  %8512 = vmatpush3.bf16.msra.mxu1 %v8509_v31 }
 0xb04   :  { %9322 = vrcp.f32 %v2319_v5  ;;  %v9313_v40 = vpop.eup %9312  ;;  %8514 = vmatprep.subr.bf16.mxu1 %v8513_v52 }
 0xb05   :  { %v9315_v3 = vpop.eup %9314  ;;  %v2321_v4 = vadd.f32 1.0, %v9313_v40  ;;  %9324 = vrcp.f32 %v2320_v48 }
 0xb06   :  { %8500 = vmatpush3.bf16.msra.mxu0 %v8497_v38  ;;  %v2381_v37 = vsub.f32 1.0, %v9315_v3 }
 0xb07   :  { %9326 = vrcp.f32 %v2321_v4  ;;  %8516 = vmatpush3.bf16.msra.mxu1 %v8513_v52 }
 0xb08   :  { %v9317_v13 = vpop.eup %9316  ;;  %v2389_v63 = vmul.f32 %v2381_v37, %v10844_v6  ;;  %8518 = vmatprep.subr.bf16.mxu1 %v8517_v50 }
 0xb09   :  { %v2322_v22 = vadd.f32 1.0, %v9317_v13 }
 0xb0b   :  { %9328 = vrcp.f32 %v2322_v22  ;;  %8520 = vmatpush3.bf16.msra.mxu1 %v8517_v50 }
 0xb0c   :  { %v9319_v21 = vpop.eup %9318  ;;  %8522 = vmatprep.subr.bf16.mxu1 %v8521_v15 }
 0xb0d   :  { %v9321_v62 = vpop.eup %9320  ;;  %v2323_v0 = vadd.f32 1.0, %v9319_v21 }
 0xb0e   :  { %v9323_v36 = vpop.eup %9322  ;;  %v2382_v23 = vsub.f32 1.0, %v9321_v62 }
 0xb0f   :  { %v2383_v6 = vsub.f32 1.0, %v9323_v36  ;;  %9330 = vrcp.f32 %v2323_v0  ;;  %8524 = vmatpush3.bf16.msra.mxu1 %v8521_v15  ;;  %v9325_v34 = vpop.eup %9324 }
 0xb10   :  { %v2390_v49 = vmul.f32 %v2382_v23, %v10852_v59  ;;  %8526 = vmatprep.subr.bf16.mxu1 %v8525_v29  ;;  %v2384_v38 = vsub.f32 1.0, %v9325_v34  ;;  %v8529_v59 = vpack.c.bf16 %v2435_v8, %v2434_v27 }
 0xb11   :  { %v2391_v51 = vmul.f32 %v2383_v6, %v10859_v60  ;;  %v9327_v5 = vpop.eup %9326 }
 0xb12   :  { %v2385_v40 = vsub.f32 1.0, %v9327_v5  ;;  %v2392_v45 = vmul.f32 %v2384_v38, %v10864_v14 }
 0xb13   :  { %8528 = vmatpush3.bf16.msra.mxu1 %v8525_v29 }
 0xb14   :  { %8530 = vmatprep.subr.bf16.mxu1 %v8529_v59  ;;  %v2393_v4 = vmul.f32 %v2385_v40, %v10868_v30 }
 0xb15   :  { %v9329_v31 = vpop.eup %9328 }
 0xb17   :  { %8532 = vmatpush3.bf16.msra.mxu1 %v8529_v59 }
 0xb18   :  { %8565 = vmatprep.subr.bf16.mxu1 %v10055_v10 }
 0xb19   :  { %v9331_v48 = vpop.eup %9330 }
 0xb56   :  { %v2349_v41 = vpop.permute.xlu0 %2348 }
 0xb57   :  { %v2372_v19 = vmul.f32 %v9309_v7, %v2349_v41  ;;  %v2386_v41 = vsub.f32 1.0, %v9329_v31 }
 0xb59   :  { %v11001_v12 = vadd.f32 %v2388_v28, %v2372_v19  ;;  %v2387_v19 = vsub.f32 1.0, %v9331_v48  ;;  %v2394_v14 = vmul.f32 %v2386_v41, %v10872_v26 }
 0xb5a   :  { %v2351_v25 = vpop.permute.xlu1 %2350 }
 0xb5b   :  { %v2373_v32 = vmul.f32 %v9315_v3, %v2351_v25  ;;  %v2477_v21 = vrot.slane %v11001_v12, 1  ;;  %v2445_v16 = vrot.slane %v11001_v12, 7 }
 0xb5d   :  { %v11003_v39 = vadd.f32 %v2389_v63, %v2373_v32  ;;  %v2395_v32 = vmul.f32 %v2387_v19, %v10876_v33 }
 0xb5e   :  { %v2353_v44 = vpop.permute.xlu0 %2352 }
 0xb5f   :  { %v9196_v2 = vpack.i.bf16 %v11003_v39, %v11001_v12  ;;  %v2374_v46 = vmul.f32 %v9321_v62, %v2353_v44  ;;  %v2478_v55 = vrot.slane %v11003_v39, 1 }
 0xb61   :  { %9197 = vrot.lane.b32.xlu0 %v9196_v2, %s10056_s29  ;;  %v11014_v7 = vadd.f32 %v2390_v49, %v2374_v46  ;;  %v2479_v26 = vsel %vm571_vm1, %v2477_v21, %v2478_v55 }
 0xb62   :  { %v2355_v1 = vpop.permute.xlu1 %2354 }
 0xb63   :  { %v2375_v58 = vmul.f32 %v9323_v36, %v2355_v1  ;;  %v2480_v52 = vrot.slane %v11014_v7, 1  ;;  %v2448_v40 = vrot.slane %v11014_v7, 7 }
 0xb65   :  { %v11016_v53 = vadd.f32 %v2391_v51, %v2375_v58  ;;  %v2481_v22 = vsel %vm571_vm1, %v2478_v55, %v2480_v52  ;;  %v2446_v58 = vrot.slane %v11003_v39, 7  ;;  %v2468_v51 = vsel %vm542_vm3, 0.0, %v2445_v16 }
 0xb66   :  { %v2357_v54 = vpop.permute.xlu0 %2356  ;;  %v9216_v36 = vpack.i.bf16 %v2481_v22, %v2479_v26  ;;  %v2469_v8 = vsel %vm10721_vm14, %v2468_v51, 0.0  ;;  %v7281_v51 = vld [vmem:[%s12599_s30] ss:$0 sm:$0xff] }
 0xb67   :  { %v9201_v11 = vpack.i.bf16 %v11016_v53, %v11014_v7  ;;  %v2376_v3 = vmul.f32 %v9325_v34, %v2357_v54  ;;  %v2482_v42 = vrot.slane %v11016_v53, 1  ;;  %v2447_v35 = vsel %vm542_vm3, %v2445_v16, %v2446_v58 }
 0xb69   :  { %9202 = vrot.lane.b32.xlu1 %v9201_v11, %s10056_s29  ;;  %v11027_v13 = vadd.f32 %v2392_v45, %v2376_v3  ;;  %v2483_v18 = vsel %vm571_vm1, %v2480_v52, %v2482_v42 }
 0xb6a   :  { %v2359_v60 = vpop.permute.xlu1 %2358 }
 0xb6b   :  { %v2377_v9 = vmul.f32 %v9327_v5, %v2359_v60  ;;  %v2484_v50 = vrot.slane %v11027_v13, 1 }
 0xb6d   :  { %v11029_v17 = vadd.f32 %v2393_v4, %v2377_v9  ;;  %v2485_v23 = vsel %vm571_vm1, %v2482_v42, %v2484_v50  ;;  %v2452_v4 = vrot.slane %v11027_v13, 7 }
 0xb6e   :  { %v2361_v37 = vpop.permute.xlu0 %2360  ;;  %v2504_v46 = vsel %vm10738_vm15, %v2485_v23, 0.0 }
 0xb6f   :  { %v2378_v20 = vmul.f32 %v9329_v31, %v2361_v37  ;;  %v9206_v30 = vpack.i.bf16 %v11029_v17, %v11027_v13  ;;  %v2486_v62 = vrot.slane %v11029_v17, 1  ;;  %v9221_v1 = vpack.i.bf16 %v2504_v46, %v2483_v18 }
 0xb70   :  { %v2450_v31 = vrot.slane %v11016_v53, 7  ;;  %v2454_v41 = vrot.slane %v11029_v17, 7 }
 0xb71   :  { %v11037_v25 = vadd.f32 %v2394_v14, %v2378_v20  ;;  %9207 = vrot.lane.b32.xlu0 %v9206_v30, %s10056_s29  ;;  %v2487_v44 = vsel %vm571_vm1, %v2484_v50, %v2486_v62 }
 0xb72   :  { %v2363_v28 = vpop.permute.xlu1 %2362  ;;  %v2451_v56 = vsel %vm542_vm3, %v2448_v40, %v2450_v31  ;;  %v2453_v52 = vsel %vm542_vm3, %v2450_v31, %v2452_v4  ;;  %v2455_v14 = vsel %vm542_vm3, %v2452_v4, %v2454_v41 }
 0xb73   :  { %v2379_v63 = vmul.f32 %v9331_v48, %v2363_v28  ;;  %v2488_v0 = vrot.slane %v11037_v25, 1  ;;  %v2449_v48 = vsel %vm542_vm3, %v2446_v58, %v2448_v40  ;;  %v2473_v20 = vsel %vm10750_vm0, %v2453_v52, 0.0  ;;  %v2797_v58 = vld [vmem:[%s12598_s28] sm:$0xff] }
 0xb74   :  { %v2456_v28 = vrot.slane %v11037_v25, 7 }
 0xb75   :  { %v11046_v43 = vadd.f32 %v2395_v32, %v2379_v63  ;;  %9217 = vrot.lane.b32.xlu0 %v9216_v36, %s10056_s29  ;;  %v2489_v15 = vsel %vm571_vm1, %v2486_v62, %v2488_v0 }
 0xb76   :  { %v9226_v2 = vpack.i.bf16 %v2489_v15, %v2487_v44  ;;  %v2457_v44 = vsel %vm542_vm3, %v2454_v41, %v2456_v28 }
 0xb77   :  { %v9211_v33 = vpack.i.bf16 %v11046_v43, %v11037_v25  ;;  %v2490_v6 = vrot.slane %v11046_v43, 1  ;;  %v2458_v32 = vrot.slane %v11046_v43, 7 }
 0xb79   :  { %9212 = vrot.lane.b32.xlu1 %v9211_v33, %s10056_s29  ;;  %9227 = vrot.lane.b32.xlu0 %v9226_v2, %s10056_s29  ;;  %v2500_v47 = vsel %vm571_vm1, %v2490_v6, 0.0  ;;  %v2491_v29 = vsel %vm571_vm1, %v2488_v0, %v2490_v6  ;;  %v2459_v15 = vsel %vm542_vm3, %v2456_v28, %v2458_v32 }
 0xb7a   :  { %v2508_v34 = vsel %vm10768_vm4, %v2500_v47, 0.0 }
 0xb7b   :  { %v9231_v49 = vpack.i.bf16 %v2508_v34, %v2491_v29 }
 0xb7d   :  { %9222 = vrot.lane.b32.xlu1 %v9221_v1, %s10056_s29 }
 0xb81   :  { %9232 = vrot.lane.b32.xlu1 %v9231_v49, %s10056_s29 }
 0xbd3   :  { %v9198_v5 = vpop.permute.xlu0 %9197 }
 0xbd4   :  { %v9200_v54 = vunpack.i.h.bf16 %v9198_v5  ;;  %v9199_v27 = vunpack.i.l.bf16 %v9198_v5 }
 0xbd6   :  { %v2533_v38 = vsel %vm612_vm2, %v2469_v8, %v9199_v27  ;;  %v2534_v11 = vsel %vm612_vm2, %v2447_v35, %v9200_v54 }
 0xbd7   :  { %7865 = vmatprep.mubr.f32.mxu0 %v2533_v38 }
 0xbd8   :  { %7866 = vmatmul.mubr.f32.vlgmr.msra.gmra.mrb[32].mxu0 %v2534_v11 }
 0xbdb   :  { %v9203_v59 = vpop.permute.xlu1 %9202 }
 0xbdc   :  { %v9205_v3 = vunpack.i.h.bf16 %v9203_v59  ;;  %v9204_v60 = vunpack.i.l.bf16 %v9203_v59 }
 0xbde   :  { %v2535_v45 = vsel %vm612_vm2, %v2449_v48, %v9204_v60  ;;  %v2536_v9 = vsel %vm612_vm2, %v2451_v56, %v9205_v3 }
 0xbdf   :  { %7868 = vmatprep.mubr.f32.mxu0 %v2535_v45 }
 0xbe0   :  { %7869 = vmatmul.mubr.f32.gmra.mrb[34].mxu0 %v2536_v9 }
 0xbe3   :  { %v9208_v37 = vpop.permute.xlu0 %9207 }
 0xbe4   :  { %v9210_v19 = vunpack.i.h.bf16 %v9208_v37  ;;  %v9209_v55 = vunpack.i.l.bf16 %v9208_v37 }
 0xbe6   :  { %v2537_v30 = vsel %vm612_vm2, %v2473_v20, %v9209_v55  ;;  %v2538_v21 = vsel %vm612_vm2, %v2455_v14, %v9210_v19 }
 0xbe7   :  { %v9218_v22 = vpop.permute.xlu0 %9217  ;;  %7871 = vmatprep.mubr.f32.mxu0 %v2537_v30 }
 0xbe8   :  { %v9220_v50 = vunpack.i.h.bf16 %v9218_v22  ;;  %v9219_v62 = vunpack.i.l.bf16 %v9218_v22  ;;  %7872 = vmatmul.mubr.f32.gmra.mrb[36].mxu0 %v2538_v21 }
 0xbea   :  { %v2684_v26 = vsel %vm612_vm2, %v11001_v12, %v9219_v62  ;;  %v2685_v24 = vsel %vm612_vm2, %v11003_v39, %v9220_v50 }
 0xbeb   :  { %7909 = vmatprep.mubr.f32.mxu1 %v2684_v26  ;;  %v9213_v63 = vpop.permute.xlu1 %9212  ;;  %v9228_v42 = vpop.permute.xlu0 %9227 }
 0xbec   :  { %v9215_v36 = vunpack.i.h.bf16 %v9213_v63  ;;  %v9214_v0 = vunpack.i.l.bf16 %v9213_v63  ;;  %7910 = vmatmul.mubr.f32.vlgmr.msra.gmra.mrb[36].mxu1 %v2685_v24  ;;  %v9229_v12 = vunpack.i.l.bf16 %v9228_v42  ;;  %v9230_v18 = vunpack.i.h.bf16 %v9228_v42  ;;  %v2798_v42 = vld [vmem:[%s12598_s28 + $0x8] sm:$0xff] }
 0xbee   :  { %v2539_v23 = vsel %vm612_vm2, %v2457_v44, %v9214_v0  ;;  %v2540_v2 = vsel %vm612_vm2, %v2459_v15, %v9215_v36  ;;  %v2688_v34 = vsel %vm612_vm2, %v11027_v13, %v9229_v12  ;;  %v2689_v16 = vsel %vm612_vm2, %v11029_v17, %v9230_v18  ;;  %v2799_v44 = vld [vmem:[%s12598_s28 + $0x10] sm:$0xff]  ;;  %v2800_v15 = vld [vmem:[%s12598_s28 + $0x18] sm:$0xff]  ;;  %v2809_v18 = vld [vmem:[%s12598_s28 + $0x60] sm:$0xff] }
 0xbef   :  { %v9223_v33 = vpop.permute.xlu1 %9222  ;;  %7874 = vmatprep.mubr.f32.mxu0 %v2539_v23  ;;  %v2801_v23 = vld [vmem:[%s12598_s28 + $0x20] sm:$0xff]  ;;  %v2804_v12 = vld [vmem:[%s12598_s28 + $0x38] sm:$0xff] }
 0xbf0   :  { %v9225_v6 = vunpack.i.h.bf16 %v9223_v33  ;;  %v9224_v46 = vunpack.i.l.bf16 %v9223_v33  ;;  %7875 = vmatmul.mubr.f32.gmra.mrb[38].mxu0 %v2540_v2  ;;  %v2802_v2 = vld [vmem:[%s12598_s28 + $0x28] sm:$0xff]  ;;  %v2803_v33 = vld [vmem:[%s12598_s28 + $0x30] sm:$0xff] }
 0xbf1   :  { %7953 = vmatprep.mubr.f32.mxu0 %v2797_v58  ;;  %v2961_v58 = vld [vmem:[#allocation13 + $0x18] sm:$0xff] }
 0xbf2   :  { %v2686_v39 = vsel %vm612_vm2, %v11014_v7, %v9224_v46  ;;  %v2687_v47 = vsel %vm612_vm2, %v11016_v53, %v9225_v6  ;;  %v2805_v6 = vld [vmem:[%s12598_s28 + $0x40] sm:$0xff]  ;;  %v2806_v46 = vld [vmem:[%s12598_s28 + $0x48] sm:$0xff] }
 0xbf3   :  { %7912 = vmatprep.mubr.f32.mxu1 %v2686_v39  ;;  %v9233_v1 = vpop.permute.xlu1 %9232  ;;  %v2807_v39 = vld [vmem:[%s12598_s28 + $0x50] sm:$0xff] }
 0xbf4   :  { %v9234_v29 = vunpack.i.l.bf16 %v9233_v1  ;;  %7913 = vmatmul.mubr.f32.gmra.mrb[38].mxu1 %v2687_v47  ;;  %v9235_v49 = vunpack.i.h.bf16 %v9233_v1  ;;  %v2808_v47 = vld [vmem:[%s12598_s28 + $0x58] sm:$0xff]  ;;  %v2810_v1 = vld [vmem:[%s12598_s28 + $0x68] sm:$0xff] }
 0xbf5   :  { %7915 = vmatprep.mubr.f32.mxu1 %v2688_v34  ;;  %v2812_v34 = vld [vmem:[%s12598_s28 + $0x78] sm:$0xff] }
 0xbf6   :  { %v2690_v7 = vsel %vm612_vm2, %v11037_v25, %v9234_v29  ;;  %v2691_v53 = vsel %vm612_vm2, %v11046_v43, %v9235_v49  ;;  %v2811_v29 = vld [vmem:[%s12598_s28 + $0x70] sm:$0xff] }
 0xbf7   :  { %v2958_v49 = vld [vmem:[#allocation13] sm:$0xff] }
 0xbf8   :  { %7916 = vmatmul.mubr.f32.gmra.mrb[40].mxu1 %v2689_v16  ;;  %v2959_v16 = vld [vmem:[#allocation13 + $0x8] sm:$0xff] }
 0xbf9   :  { %7918 = vmatprep.mubr.f32.mxu1 %v2690_v7  ;;  %v2960_v7 = vld [vmem:[#allocation13 + $0x10] sm:$0xff] }
 0xbfc   :  { %7919 = vmatmul.mubr.f32.gmra.mrb[42].mxu1 %v2691_v53  ;;  %v8566_v53 = vpack.c.bf16 %v2959_v16, %v2958_v49 }
 0xbfe   :  { %8567 = vmatpush1.bf16.msra.mxu1 %v8566_v53 }
 0xbff   :  { %8568 = vmatprep.subr.bf16.mxu1 %v10055_v10 }
 0xcab   :  { %v7867_v5 = vpop.f32.mrb[32].mxu0 }
 0xcac   :  { %v2619_v54 = vadd.f32 %v7867_v5, %v7281_v51  ;;  %v2613_v13 = vpop.f32.mrb[33].mxu0  ;;  %v2962_v5 = vld [vmem:[#allocation13 + $0x20] sm:$0xff] }
 0xcad   :  { %v2614_v27 = vadd.f32 %v7281_v51, %v2613_v13 }
 0xcaf   :  { %v8533_v8 = vpack.c.bf16 %v2619_v54, %v2614_v27  ;;  %v2963_v54 = vld [vmem:[#allocation13 + $0x28] sm:$0xff]  ;;  %v2964_v27 = vld [vmem:[#allocation13 + $0x30] sm:$0xff] }
 0xcb0   :  { %v8572_v13 = vpack.c.bf16 %v2963_v54, %v2962_v5 }
 0xcb1   :  { %8534 = vmatprep.subr.bf16.mxu0 %v8533_v8 }
 0xcb2   :  { %8536 = vmatpush3.bf16.msra.mxu0 %v8533_v8  ;;  %v2965_v8 = vld [vmem:[#allocation13 + $0x38] sm:$0xff] }
 0xcb3   :  { %v7870_v17 = vpop.f32.mrb[34].mxu0 }
 0xcb4   :  { %v2629_v35 = vadd.f32 %v7870_v17, %v7281_v51  ;;  %v2623_v38 = vpop.f32.mrb[35].mxu0  ;;  %v8575_v17 = vpack.c.bf16 %v2965_v8, %v2964_v27 }
 0xcb5   :  { %v2624_v11 = vadd.f32 %v7281_v51, %v2623_v38  ;;  %v2967_v38 = vld [vmem:[#allocation13 + $0x48] sm:$0xff] }
 0xcb7   :  { %v8537_v25 = vpack.c.bf16 %v2629_v35, %v2624_v11  ;;  %v2966_v35 = vld [vmem:[#allocation13 + $0x40] sm:$0xff] }
 0xcb8   :  { %v8578_v11 = vpack.c.bf16 %v2967_v38, %v2966_v35 }
 0xcb9   :  { %8538 = vmatprep.subr.bf16.mxu0 %v8537_v25 }
 0xcba   :  { %8540 = vmatpush3.bf16.msra.mxu0 %v8537_v25  ;;  %v2968_v25 = vld [vmem:[#allocation13 + $0x50] sm:$0xff] }
 0xcbb   :  { %v7873_v40 = vpop.f32.mrb[36].mxu0 }
 0xcbc   :  { %v2639_v43 = vadd.f32 %v7873_v40, %v7281_v51  ;;  %v2633_v31 = vpop.f32.mrb[37].mxu0  ;;  %v2969_v40 = vld [vmem:[#allocation13 + $0x58] sm:$0xff] }
 0xcbd   :  { %v2634_v59 = vadd.f32 %v7281_v51, %v2633_v31  ;;  %v2970_v31 = vld [vmem:[#allocation13 + $0x60] sm:$0xff] }
 0xcbf   :  { %v8541_v3 = vpack.c.bf16 %v2639_v43, %v2634_v59  ;;  %v7911_v60 = vpop.f32.mrb[36].mxu1  ;;  %v8581_v43 = vpack.c.bf16 %v2969_v40, %v2968_v25  ;;  %v2971_v59 = vld [vmem:[#allocation13 + $0x68] sm:$0xff] }
 0xcc0   :  { %v2764_v48 = vadd.f32 %v7911_v60, %v7281_v51  ;;  %v2758_v56 = vpop.f32.mrb[37].mxu1  ;;  %v2972_v60 = vld [vmem:[#allocation13 + $0x70] sm:$0xff] }
 0xcc1   :  { %v2759_v45 = vadd.f32 %v7281_v51, %v2758_v56  ;;  %8542 = vmatprep.subr.bf16.mxu0 %v8541_v3 }
 0xcc2   :  { %8544 = vmatpush3.bf16.msra.mxu0 %v8541_v3  ;;  %v8584_v3 = vpack.c.bf16 %v2971_v59, %v2970_v31 }
 0xcc3   :  { %v8549_v9 = vpack.c.bf16 %v2764_v48, %v2759_v45  ;;  %v7876_v4 = vpop.f32.mrb[38].mxu0  ;;  %v2973_v48 = vld [vmem:[#allocation13 + $0x78] sm:$0xff]  ;;  %v2974_v45 = vld [vmem:[#allocation13 + $0x80] sm:$0xff] }
 0xcc4   :  { %v2649_v41 = vadd.f32 %v7876_v4, %v7281_v51  ;;  %v2643_v52 = vpop.f32.mrb[39].mxu0  ;;  %v8587_v56 = vpack.c.bf16 %v2973_v48, %v2972_v60 }
 0xcc5   :  { %v2644_v37 = vadd.f32 %v7281_v51, %v2643_v52  ;;  %v2977_v52 = vld [vmem:[#allocation13 + $0x98] sm:$0xff] }
 0xcc7   :  { %v8545_v19 = vpack.c.bf16 %v2649_v41, %v2644_v37  ;;  %v7914_v55 = vpop.f32.mrb[38].mxu1  ;;  %v2976_v41 = vld [vmem:[#allocation13 + $0x90] sm:$0xff] }
 0xcc8   :  { %v2774_v20 = vadd.f32 %v7914_v55, %v7281_v51  ;;  %v2768_v14 = vpop.f32.mrb[39].mxu1  ;;  %v8593_v37 = vpack.c.bf16 %v2977_v52, %v2976_v41  ;;  %v2979_v55 = vld [vmem:[#allocation13 + $0xa8] sm:$0xff] }
 0xcc9   :  { %v2769_v30 = vadd.f32 %v7281_v51, %v2768_v14  ;;  %8546 = vmatprep.subr.bf16.mxu0 %v8545_v19  ;;  %v2980_v14 = vld [vmem:[#allocation13 + $0xb0] sm:$0xff] }
 0xcca   :  { %8548 = vmatpush3.bf16.msra.mxu0 %v8545_v19  ;;  %v2978_v19 = vld [vmem:[#allocation13 + $0xa0] sm:$0xff] }
 0xccb   :  { %v8553_v21 = vpack.c.bf16 %v2774_v20, %v2769_v30  ;;  %v7917_v22 = vpop.f32.mrb[40].mxu1  ;;  %8550 = vmatprep.subr.bf16.mxu0 %v8549_v9  ;;  %v8596_v20 = vpack.c.bf16 %v2979_v55, %v2978_v19  ;;  %v2981_v30 = vld [vmem:[#allocation13 + $0xb8] sm:$0xff] }
 0xccc   :  { %v2784_v50 = vadd.f32 %v7917_v22, %v7281_v51  ;;  %v2778_v62 = vpop.f32.mrb[41].mxu1 }
 0xccd   :  { %v2779_v28 = vadd.f32 %v7281_v51, %v2778_v62 }
 0xcce   :  { %8552 = vmatpush3.bf16.msra.mxu0 %v8549_v9  ;;  %v2975_v9 = vld [vmem:[#allocation13 + $0x88] sm:$0xff] }
 0xccf   :  { %v8557_v32 = vpack.c.bf16 %v2784_v50, %v2779_v28  ;;  %v7920_v26 = vpop.f32.mrb[42].mxu1  ;;  %8554 = vmatprep.subr.bf16.mxu0 %v8553_v21  ;;  %v8590_v4 = vpack.c.bf16 %v2975_v9, %v2974_v45 }
 0xcd0   :  { %v2794_v24 = vadd.f32 %v7920_v26, %v7281_v51  ;;  %v2788_v63 = vpop.f32.mrb[43].mxu1 }
 0xcd1   :  { %v2789_v36 = vadd.f32 %v7281_v51, %v2788_v63  ;;  %v8569_v51 = vpack.c.bf16 %v2961_v58, %v2960_v7 }
 0xcd2   :  { %8556 = vmatpush3.bf16.msra.mxu0 %v8553_v21  ;;  %v8599_v21 = vpack.c.bf16 %v2981_v30, %v2980_v14 }
 0xcd3   :  { %v8561_v0 = vpack.c.bf16 %v2794_v24, %v2789_v36  ;;  %8558 = vmatprep.subr.bf16.mxu0 %v8557_v32  ;;  %8570 = vmatpush1.bf16.msra.mxu1 %v8569_v51 }
 0xcd4   :  { %8571 = vmatprep.subr.bf16.mxu1 %v10055_v10 }
 0xcd6   :  { %8560 = vmatpush3.bf16.msra.mxu0 %v8557_v32 }
 0xcd7   :  { %8562 = vmatprep.subr.bf16.mxu0 %v8561_v0  ;;  %8573 = vmatpush1.bf16.msra.mxu1 %v8572_v13 }
 0xcd8   :  { %8574 = vmatprep.subr.bf16.mxu1 %v10055_v10 }
 0xcda   :  { %8564 = vmatpush3.bf16.msra.mxu0 %v8561_v0 }
 0xcdb   :  { %8601 = vmatprep.subr.bf16.mxu0 %v10055_v10  ;;  %8576 = vmatpush1.bf16.msra.mxu1 %v8575_v17 }
 0xcdc   :  { %8577 = vmatprep.subr.bf16.mxu1 %v10055_v10 }
 0xcdd   :  { %7954 = vmatmul.mubr.f32.vlgmr.msra.gmra.mrb[40].mxu0 %v2798_v42 }
 0xcde   :  { %7956 = vmatprep.mubr.f32.mxu0 %v2799_v44 }
 0xcdf   :  { %8579 = vmatpush1.bf16.msra.mxu1 %v8578_v11 }
 0xce0   :  { %8580 = vmatprep.subr.bf16.mxu1 %v10055_v10 }
 0xce1   :  { %7957 = vmatmul.mubr.f32.gmra.mrb[42].mxu0 %v2800_v15 }
 0xce2   :  { %7959 = vmatprep.mubr.f32.mxu0 %v2801_v23 }
 0xce3   :  { %8582 = vmatpush1.bf16.msra.mxu1 %v8581_v43 }
 0xce4   :  { %8583 = vmatprep.subr.bf16.mxu1 %v10055_v10 }
 0xce5   :  { %7960 = vmatmul.mubr.f32.gmra.mrb[44].mxu0 %v2802_v2 }
 0xce6   :  { %7962 = vmatprep.mubr.f32.mxu0 %v2803_v33 }
 0xce7   :  { %8585 = vmatpush1.bf16.msra.mxu1 %v8584_v3 }
 0xce8   :  { %8586 = vmatprep.subr.bf16.mxu1 %v10055_v10 }
 0xce9   :  { %7963 = vmatmul.mubr.f32.gmra.mrb[46].mxu0 %v2804_v12 }
 0xcea   :  { %7965 = vmatprep.mubr.f32.mxu0 %v2805_v6 }
 0xceb   :  { %8588 = vmatpush1.bf16.msra.mxu1 %v8587_v56 }
 0xcec   :  { %8589 = vmatprep.subr.bf16.mxu1 %v10055_v10 }
 0xced   :  { %7966 = vmatmul.mubr.f32.gmra.mrb[48].mxu0 %v2806_v46 }
 0xcee   :  { %7968 = vmatprep.mubr.f32.mxu0 %v2807_v39 }
 0xcef   :  { %8591 = vmatpush1.bf16.msra.mxu1 %v8590_v4 }
 0xcf0   :  { %8592 = vmatprep.subr.bf16.mxu1 %v10055_v10 }
 0xcf1   :  { %7969 = vmatmul.mubr.f32.gmra.mrb[50].mxu0 %v2808_v47 }
 0xcf2   :  { %7971 = vmatprep.mubr.f32.mxu0 %v2809_v18 }
 0xcf3   :  { %8594 = vmatpush1.bf16.msra.mxu1 %v8593_v37 }
 0xcf4   :  { %8595 = vmatprep.subr.bf16.mxu1 %v10055_v10 }
 0xcf5   :  { %7972 = vmatmul.mubr.f32.gmra.mrb[52].mxu0 %v2810_v1 }
 0xcf6   :  { %7974 = vmatprep.mubr.f32.mxu0 %v2811_v29 }
 0xcf7   :  { %8597 = vmatpush1.bf16.msra.mxu1 %v8596_v20 }
 0xcf8   :  { %8598 = vmatprep.subr.bf16.mxu1 %v10055_v10 }
 0xcf9   :  { %7975 = vmatmul.mubr.f32.gmra.mrb[54].mxu0 %v2812_v34 }
 0xcfb   :  { %8600 = vmatpush1.bf16.msra.mxu1 %v8599_v21 }
 0xdb0   :  { %v11139_v22 = vpop.f32.mrb[40].mxu0 }
 0xdb1   :  { %v3200_v50 = vrot.slane %v11139_v22, 7  ;;  %v3312_v62 = vrot.slane %v11139_v22, 1  ;;  %3425 = vrot.lane.b32.xlu1 %v11139_v22, %s10056_s29  ;;  %v11145_v28 = vpop.f32.mrb[41].mxu0 }
 0xdb2   :  { %v3199_v32 = vrot.slane %v11145_v28, 7  ;;  %v3311_v26 = vrot.slane %v11145_v28, 1  ;;  %3423 = vrot.lane.b32.xlu0 %v11145_v28, %s10056_s29 }
 0xdb4   :  { %v11151_v24 = vpop.f32.mrb[42].mxu0  ;;  %v3313_v63 = vsel %vm571_vm1, %v3311_v26, %v3312_v62  ;;  %v11157_v36 = vsel %vm542_vm3, %v3199_v32, %v3200_v50 }
 0xdb5   :  { %v3204_v0 = vrot.slane %v11151_v24, 7  ;;  %v3316_v42 = vrot.slane %v11151_v24, 1  ;;  %7283 = vmatprep.mubr.msk.f32.mxu1 %vm612_vm2, %v3313_v63  ;;  %3429 = vrot.lane.b32.xlu1 %v11151_v24, %s10056_s29  ;;  %v11164_v44 = vpop.f32.mrb[43].mxu0 }
 0xdb6   :  { %v3202_v15 = vrot.slane %v11164_v44, 7  ;;  %v3314_v23 = vrot.slane %v11164_v44, 1  ;;  %3427 = vrot.lane.b32.xlu0 %v11164_v44, %s10056_s29 }
 0xdb8   :  { %v11170_v2 = vpop.f32.mrb[44].mxu0  ;;  %v11173_v33 = vsel %vm571_vm1, %v3312_v62, %v3314_v23  ;;  %v11176_v12 = vsel %vm571_vm1, %v3314_v23, %v3316_v42  ;;  %v11179_v6 = vsel %vm542_vm3, %v3200_v50, %v3202_v15  ;;  %v11182_v46 = vsel %vm542_vm3, %v3202_v15, %v3204_v0 }
 0xdb9   :  { %v3208_v39 = vrot.slane %v11170_v2, 7  ;;  %v3320_v47 = vrot.slane %v11170_v2, 1  ;;  %3433 = vrot.lane.b32.xlu1 %v11170_v2, %s10056_s29  ;;  %v11188_v18 = vpop.f32.mrb[45].mxu0 }
 0xdba   :  { %v3206_v1 = vrot.slane %v11188_v18, 7  ;;  %v3318_v29 = vrot.slane %v11188_v18, 1  ;;  %3431 = vrot.lane.b32.xlu0 %v11188_v18, %s10056_s29 }
 0xdbc   :  { %v11194_v34 = vpop.f32.mrb[46].mxu0  ;;  %v11197_v49 = vsel %vm571_vm1, %v3316_v42, %v3318_v29  ;;  %v11200_v16 = vsel %vm571_vm1, %v3318_v29, %v3320_v47  ;;  %v11203_v7 = vsel %vm542_vm3, %v3204_v0, %v3206_v1  ;;  %v11206_v53 = vsel %vm542_vm3, %v3206_v1, %v3208_v39 }
 0xdbd   :  { %v3212_v58 = vrot.slane %v11194_v34, 7  ;;  %v3324_v51 = vrot.slane %v11194_v34, 1  ;;  %3437 = vrot.lane.b32.xlu1 %v11194_v34, %s10056_s29  ;;  %v11212_v5 = vpop.f32.mrb[47].mxu0 }
 0xdbe   :  { %v3210_v54 = vrot.slane %v11212_v5, 7  ;;  %v3322_v13 = vrot.slane %v11212_v5, 1  ;;  %3435 = vrot.lane.b32.xlu0 %v11212_v5, %s10056_s29 }
 0xdc0   :  { %v11218_v27 = vpop.f32.mrb[48].mxu0  ;;  %v11221_v8 = vsel %vm571_vm1, %v3320_v47, %v3322_v13  ;;  %v11224_v17 = vsel %vm571_vm1, %v3322_v13, %v3324_v51  ;;  %v11227_v35 = vsel %vm542_vm3, %v3208_v39, %v3210_v54  ;;  %v11230_v38 = vsel %vm542_vm3, %v3210_v54, %v3212_v58 }
 0xdc1   :  { %v3216_v11 = vrot.slane %v11218_v27, 7  ;;  %v3328_v25 = vrot.slane %v11218_v27, 1  ;;  %3441 = vrot.lane.b32.xlu1 %v11218_v27, %s10056_s29  ;;  %v11236_v40 = vpop.f32.mrb[49].mxu0 }
 0xdc2   :  { %v3214_v43 = vrot.slane %v11236_v40, 7  ;;  %v3326_v31 = vrot.slane %v11236_v40, 1  ;;  %3439 = vrot.lane.b32.xlu0 %v11236_v40, %s10056_s29 }
 0xdc4   :  { %v11242_v59 = vpop.f32.mrb[50].mxu0  ;;  %v11245_v3 = vsel %vm571_vm1, %v3324_v51, %v3326_v31  ;;  %v11248_v60 = vsel %vm571_vm1, %v3326_v31, %v3328_v25  ;;  %v11251_v48 = vsel %vm542_vm3, %v3212_v58, %v3214_v43  ;;  %v11254_v56 = vsel %vm542_vm3, %v3214_v43, %v3216_v11  ;;  %v5678_v43 = vld [vmem:[#allocation17 + $0x250] sm:$0xff] }
 0xdc5   :  { %v3220_v45 = vrot.slane %v11242_v59, 7  ;;  %v3332_v9 = vrot.slane %v11242_v59, 1  ;;  %3445 = vrot.lane.b32.xlu1 %v11242_v59, %s10056_s29  ;;  %v11260_v4 = vpop.f32.mrb[51].mxu0  ;;  %v3246_v31 = vsel %vm542_vm3, 0.0, %v3199_v32 }
 0xdc6   :  { %v3218_v41 = vrot.slane %v11260_v4, 7  ;;  %v3330_v52 = vrot.slane %v11260_v4, 1  ;;  %3443 = vrot.lane.b32.xlu0 %v11260_v4, %s10056_s29 }
 0xdc8   :  { %v11266_v37 = vpop.f32.mrb[52].mxu0  ;;  %v11269_v19 = vsel %vm571_vm1, %v3328_v25, %v3330_v52  ;;  %v11272_v55 = vsel %vm571_vm1, %v3330_v52, %v3332_v9  ;;  %v11275_v20 = vsel %vm542_vm3, %v3216_v11, %v3218_v41  ;;  %v11278_v14 = vsel %vm542_vm3, %v3218_v41, %v3220_v45 }
 0xdc9   :  { %v3224_v30 = vrot.slane %v11266_v37, 7  ;;  %v3336_v21 = vrot.slane %v11266_v37, 1  ;;  %3449 = vrot.lane.b32.xlu1 %v11266_v37, %s10056_s29  ;;  %v11284_v50 = vpop.f32.mrb[53].mxu0  ;;  %v2995_v25 = vand.u32 63, %v10401_v61 }
 0xdca   :  { %v3222_v62 = vrot.slane %v11284_v50, 7  ;;  %v3334_v26 = vrot.slane %v11284_v50, 1  ;;  %3447 = vrot.lane.b32.xlu0 %v11284_v50, %s10056_s29 }
 0xdcb   :  { %vm11331_vm11 = vcmp.ge.s32.totalorder %v2995_v25, 1  ;;  %vm3999_vm15 = vcmp.ge.s32.totalorder %v2995_v25, 3 }
 0xdcc   :  { %v11290_v63 = vpop.f32.mrb[54].mxu0  ;;  %v11293_v0 = vsel %vm571_vm1, %v3332_v9, %v3334_v26  ;;  %v11296_v42 = vsel %vm571_vm1, %v3334_v26, %v3336_v21  ;;  %v11299_v15 = vsel %vm542_vm3, %v3220_v45, %v3222_v62  ;;  %v11302_v23 = vsel %vm542_vm3, %v3222_v62, %v3224_v30 }
 0xdcd   :  { %v3228_v39 = vrot.slane %v11290_v63, 7  ;;  %v3340_v47 = vrot.slane %v11290_v63, 1  ;;  %3453 = vrot.lane.b32.xlu1 %v11290_v63, %s10056_s29  ;;  %v11308_v1 = vpop.f32.mrb[55].mxu0  ;;  %v3295_v9 = vsel %vm11331_vm11, %v3246_v31, 0.0 }
 0xdce   :  { %v3226_v29 = vrot.slane %v11308_v1, 7  ;;  %v3338_v58 = vrot.slane %v11308_v1, 1  ;;  %3451 = vrot.lane.b32.xlu0 %v11308_v1, %s10056_s29 }
 0xdd0   :  { %v11315_v51 = vsel %vm571_vm1, %v3336_v21, %v3338_v58  ;;  %v11320_v54 = vsel %vm571_vm1, %v3338_v58, %v3340_v47  ;;  %v11323_v13 = vsel %vm542_vm3, %v3224_v30, %v3226_v29  ;;  %v11326_v11 = vsel %vm542_vm3, %v3226_v29, %v3228_v39 }
 0xe23   :  { %v3426_v52 = vpop.permute.xlu1 %3425 }
 0xe24   :  { %v3424_v45 = vpop.permute.xlu0 %3423  ;;  %v3472_v30 = vsel %vm612_vm2, %v11157_v36, %v3426_v52 }
 0xe25   :  { %v3471_v41 = vsel %vm612_vm2, %v3295_v9, %v3424_v45 }
 0xe26   :  { %3606 = vmatmul.mubr.f32.vlgmr.msra.gmra.mrb[44].mxu1 %v3471_v41 }
 0xe27   :  { %7284 = vmatprep.mubr.msk.f32.mxu1 %vm612_vm2, %v11173_v33  ;;  %v3430_v62 = vpop.permute.xlu1 %3429 }
 0xe28   :  { %v3428_v21 = vpop.permute.xlu0 %3427  ;;  %v3474_v26 = vsel %vm612_vm2, %v11182_v46, %v3430_v62  ;;  %v11363_v46 = vadd.s32 64, %v10401_v61 }
 0xe29   :  { %v3473_v32 = vsel %vm612_vm2, %v11179_v6, %v3428_v21  ;;  %v3044_v6 = vand.u32 63, %v10756_v57 }
 0xe2a   :  { %3611 = vmatmul.mubr.f32.gmra.mrb[46].mxu1 %v3472_v30 }
 0xe2b   :  { %7285 = vmatprep.mubr.msk.f32.mxu1 %vm612_vm2, %v11176_v12  ;;  %v3434_v12 = vpop.permute.xlu1 %3433  ;;  %vm11369_vm12 = vcmp.lt.s32.totalorder %v3044_v6, 63  ;;  %vm4118_vm0 = vcmp.lt.s32.totalorder %v3044_v6, 61 }
 0xe2c   :  { %v3432_v33 = vpop.permute.xlu0 %3431  ;;  %v3414_v29 = vsel %vm11369_vm12, %v11245_v3, 0.0 }
 0xe2d   :  { %v3475_v36 = vsel %vm612_vm2, %v11203_v7, %v3432_v33 }
 0xe2e   :  { %3616 = vmatmul.mubr.f32.gmra.mrb[48].mxu1 %v3473_v32 }
 0xe2f   :  { %7286 = vmatprep.mubr.msk.f32.mxu1 %vm612_vm2, %v11197_v49  ;;  %v3476_v49 = vsel %vm612_vm2, %v11206_v53, %v3434_v12  ;;  %v3438_v53 = vpop.permute.xlu1 %3437 }
 0xe30   :  { %v3436_v39 = vpop.permute.xlu0 %3435 }
 0xe31   :  { %v3477_v7 = vsel %vm612_vm2, %v11227_v35, %v3436_v39 }
 0xe32   :  { %3621 = vmatmul.mubr.f32.gmra.mrb[50].mxu1 %v3474_v26 }
 0xe33   :  { %7287 = vmatprep.mubr.msk.f32.mxu1 %vm612_vm2, %v11200_v16  ;;  %v3442_v45 = vpop.permute.xlu1 %3441 }
 0xe34   :  { %v3440_v35 = vpop.permute.xlu0 %3439 }
 0xe36   :  { %3626 = vmatmul.mubr.f32.gmra.mrb[52].mxu1 %v3475_v36 }
 0xe37   :  { %7288 = vmatprep.mubr.msk.f32.mxu1 %vm612_vm2, %v11221_v8  ;;  %v3051_v8 = vand.u32 63, %v11363_v46  ;;  %v3446_v41 = vpop.permute.xlu1 %3445 }
 0xe38   :  { %v3444_v9 = vpop.permute.xlu0 %3443 }
 0xe39   :  { %vm11384_vm13 = vcmp.ge.s32.totalorder %v3051_v8, 1  ;;  %vm4007_vm4 = vcmp.ge.s32.totalorder %v3051_v8, 3 }
 0xe3a   :  { %3631 = vmatmul.mubr.f32.gmra.mrb[54].mxu1 %v3476_v49  ;;  %v3303_v3 = vsel %vm11384_vm13, %v11251_v48, 0.0  ;;  %v3482_v48 = vsel %vm612_vm2, %v11278_v14, %v3446_v41 }
 0xe3b   :  { %7289 = vmatprep.mubr.msk.f32.mxu1 %vm612_vm2, %v11224_v17  ;;  %v3478_v17 = vsel %vm612_vm2, %v11230_v38, %v3438_v53  ;;  %v3479_v31 = vsel %vm612_vm2, %v3303_v3, %v3440_v35  ;;  %v3480_v38 = vsel %vm612_vm2, %v11254_v56, %v3442_v45  ;;  %v11409_v56 = vadd.s32 120, %v10401_v61 }
 0xe3e   :  { %3636 = vmatmul.mubr.f32.gmra.mrb[56].mxu1 %v3477_v7 }
 0xe3f   :  { %7290 = vmatprep.mubr.msk.f32.mxu1 %vm612_vm2, %v3414_v29 }
 0xe42   :  { %3641 = vmatmul.mubr.f32.gmra.mrb[58].mxu1 %v3478_v17 }
 0xe43   :  { %7291 = vmatprep.mubr.msk.f32.mxu1 %vm612_vm2, %v11248_v60  ;;  %v3481_v60 = vsel %vm612_vm2, %v11275_v20, %v3444_v9  ;;  %v3450_v20 = vpop.permute.xlu1 %3449 }
 0xe44   :  { %v3484_v14 = vsel %vm612_vm2, %v11302_v23, %v3450_v20 }
 0xe46   :  { %3646 = vmatmul.mubr.f32.gmra.mrb[60].mxu1 %v3479_v31 }
 0xe47   :  { %7292 = vmatprep.mubr.msk.f32.mxu1 %vm612_vm2, %v11269_v19  ;;  %v3448_v19 = vpop.permute.xlu0 %3447  ;;  %v3454_v30 = vpop.permute.xlu1 %3453 }
 0xe4a   :  { %3651 = vmatmul.mubr.f32.gmra.mrb[62].mxu1 %v3480_v38 }
 0xe4b   :  { %7293 = vmatprep.mubr.msk.f32.mxu1 %vm612_vm2, %v11272_v55  ;;  %v3483_v55 = vsel %vm612_vm2, %v11299_v15, %v3448_v19  ;;  %v3452_v52 = vpop.permute.xlu0 %3451  ;;  %v6346_v15 = vld [vmem:[#allocation19 + $0x40] sm:$0xff] }
 0xe4e   :  { %3656 = vmatmul.mubr.f32.gmra.mrb[64].mxu1 %v3481_v60 }
 0xe4f   :  { %7294 = vmatprep.mubr.msk.f32.mxu1 %vm612_vm2, %v11293_v0  ;;  %v3100_v0 = vand.u32 63, %v11409_v56  ;;  %v4663_v56 = vld [vmem:[#allocation16 + $0x8] sm:$0xff] }
 0xe51   :  { %vm11425_vm14 = vcmp.lt.s32.totalorder %v3100_v0, 63  ;;  %vm4126_vm5 = vcmp.lt.s32.totalorder %v3100_v0, 61  ;;  %v4664_v0 = vld [vmem:[#allocation16 + $0x10] sm:$0xff] }
 0xe52   :  { %3661 = vmatmul.mubr.f32.gmra.mrb[66].mxu1 %v3482_v48 }
 0xe53   :  { %7295 = vmatprep.mubr.msk.f32.mxu1 %vm612_vm2, %v11296_v42  ;;  %v3358_v42 = vsel %vm571_vm1, %v3340_v47, 0.0  ;;  %v11437_v47 = vld [vmem:[%s12606_s1] ss:$0 sm:$0xff] }
 0xe54   :  { %v3422_v23 = vsel %vm11425_vm14, %v3358_v42, 0.0 }
 0xe56   :  { %3666 = vmatmul.mubr.f32.gmra.mrb[68].mxu1 %v3483_v55 }
 0xe57   :  { %7296 = vmatprep.mubr.msk.f32.mxu1 %vm612_vm2, %v11315_v51  ;;  %v3485_v51 = vsel %vm612_vm2, %v11323_v13, %v3452_v52 }
 0xe5a   :  { %3671 = vmatmul.mubr.f32.gmra.mrb[70].mxu1 %v3484_v14 }
 0xe5b   :  { %7297 = vmatprep.mubr.msk.f32.mxu1 %vm612_vm2, %v11320_v54  ;;  %v3486_v54 = vsel %vm612_vm2, %v11326_v11, %v3454_v30 }
 0xe5e   :  { %3676 = vmatmul.mubr.f32.gmra.mrb[72].mxu1 %v3485_v51 }
 0xe5f   :  { %7298 = vmatprep.mubr.msk.f32.mxu1 %vm612_vm2, %v3422_v23 }
 0xe62   :  { %3681 = vmatmul.mubr.f32.gmra.mrb[74].mxu1 %v3486_v54 }
 0xef9   :  { %v3607_v21 = vpop.f32.mrb[44].mxu1 }
 0xefa   :  { %v3608_v32 = vadd.f32 %v11437_v47, %v3607_v21  ;;  %v3609_v62 = vpop.f32.mrb[45].mxu1 }
 0xefc   :  { %v7299_v26 = vmul.f32 -1.442695, %v3608_v32  ;;  %3798 = vrot.lane.b32.xlu0 %v3608_v32, %s10056_s29 }
 0xefd   :  { %v3612_v13 = vpop.f32.mrb[46].mxu1 }
 0xefe   :  { %9332 = vpow2.f32 %v7299_v26  ;;  %v3613_v33 = vadd.f32 %v11437_v47, %v3612_v13  ;;  %v3614_v36 = vpop.f32.mrb[47].mxu1 }
 0xf00   :  { %v7300_v12 = vmul.f32 -1.442695, %v3613_v33  ;;  %3800 = vrot.lane.b32.xlu1 %v3613_v33, %s10056_s29 }
 0xf01   :  { %v3617_v49 = vpop.f32.mrb[48].mxu1 }
 0xf02   :  { %9334 = vpow2.f32 %v7300_v12  ;;  %v3618_v11 = vadd.f32 %v11437_v47, %v3617_v49  ;;  %v3619_v39 = vpop.f32.mrb[49].mxu1 }
 0xf04   :  { %v7301_v7 = vmul.f32 -1.442695, %v3618_v11  ;;  %3802 = vrot.lane.b32.xlu0 %v3618_v11, %s10056_s29 }
 0xf05   :  { %v3622_v53 = vpop.f32.mrb[50].mxu1 }
 0xf06   :  { %9336 = vpow2.f32 %v7301_v7  ;;  %v3623_v29 = vadd.f32 %v11437_v47, %v3622_v53  ;;  %v3624_v17 = vpop.f32.mrb[51].mxu1 }
 0xf08   :  { %v9333_v35 = vpop.eup %9332  ;;  %v7302_v3 = vmul.f32 -1.442695, %v3623_v29  ;;  %3804 = vrot.lane.b32.xlu1 %v3623_v29, %s10056_s29 }
 0xf09   :  { %v3734_v31 = vadd.f32 1.0, %v9333_v35  ;;  %v3627_v45 = vpop.f32.mrb[52].mxu1 }
 0xf0a   :  { %9338 = vpow2.f32 %v7302_v3  ;;  %v3628_v38 = vadd.f32 %v11437_v47, %v3627_v45  ;;  %v3629_v9 = vpop.f32.mrb[53].mxu1 }
 0xf0b   :  { %9340 = vrcp.f32 %v3734_v31 }
 0xf0c   :  { %v9335_v60 = vpop.eup %9334  ;;  %v7303_v41 = vmul.f32 -1.442695, %v3628_v38  ;;  %3806 = vrot.lane.b32.xlu0 %v3628_v38, %s10056_s29 }
 0xf0d   :  { %v3735_v48 = vadd.f32 1.0, %v9335_v60  ;;  %v3632_v19 = vpop.f32.mrb[54].mxu1 }
 0xf0e   :  { %9342 = vpow2.f32 %v7303_v41  ;;  %v3633_v55 = vadd.f32 %v11437_v47, %v3632_v19  ;;  %v3634_v20 = vpop.f32.mrb[55].mxu1 }
 0xf0f   :  { %9344 = vrcp.f32 %v3735_v48 }
 0xf10   :  { %v9337_v14 = vpop.eup %9336  ;;  %v7304_v52 = vmul.f32 -1.442695, %v3633_v55  ;;  %3808 = vrot.lane.b32.xlu1 %v3633_v55, %s10056_s29 }
 0xf11   :  { %v3736_v42 = vadd.f32 1.0, %v9337_v14  ;;  %v3637_v51 = vpop.f32.mrb[56].mxu1 }
 0xf12   :  { %9346 = vpow2.f32 %v7304_v52  ;;  %v3638_v30 = vadd.f32 %v11437_v47, %v3637_v51  ;;  %v3639_v23 = vpop.f32.mrb[57].mxu1 }
 0xf13   :  { %9348 = vrcp.f32 %v3736_v42 }
 0xf14   :  { %v9339_v54 = vpop.eup %9338  ;;  %v7305_v21 = vmul.f32 -1.442695, %v3638_v30  ;;  %3810 = vrot.lane.b32.xlu0 %v3638_v30, %s10056_s29 }
 0xf15   :  { %v11453_v32 = vpop.eup %9340  ;;  %v3737_v62 = vadd.f32 1.0, %v9339_v54  ;;  %v3642_v26 = vpop.f32.mrb[58].mxu1 }
 0xf16   :  { %9350 = vpow2.f32 %v7305_v21  ;;  %v3643_v13 = vadd.f32 %v11437_v47, %v3642_v26  ;;  %v3644_v33 = vpop.f32.mrb[59].mxu1  ;;  %v3862_v36 = vsub.f32 1.0, %v11453_v32 }
 0xf17   :  { %9352 = vrcp.f32 %v3737_v62 }
 0xf18   :  { %v9343_v12 = vpop.eup %9342  ;;  %v7306_v49 = vmul.f32 -1.442695, %v3643_v13  ;;  %3812 = vrot.lane.b32.xlu1 %v3643_v13, %s10056_s29  ;;  %v11459_v11 = vmul.f32 %v3862_v36, %v11145_v28 }
 0xf19   :  { %v11461_v39 = vpop.eup %9344  ;;  %v3738_v7 = vadd.f32 1.0, %v9343_v12  ;;  %v3647_v53 = vpop.f32.mrb[60].mxu1 }
 0xf1a   :  { %9354 = vpow2.f32 %v7306_v49  ;;  %v3648_v29 = vadd.f32 %v11437_v47, %v3647_v53  ;;  %v3649_v17 = vpop.f32.mrb[61].mxu1  ;;  %v3863_v35 = vsub.f32 1.0, %v11461_v39 }
 0xf1b   :  { %9356 = vrcp.f32 %v3738_v7 }
 0xf1c   :  { %v9347_v3 = vpop.eup %9346  ;;  %v7307_v31 = vmul.f32 -1.442695, %v3648_v29  ;;  %3814 = vrot.lane.b32.xlu0 %v3648_v29, %s10056_s29  ;;  %v11467_v45 = vmul.f32 %v11139_v22, %v3863_v35 }
 0xf1d   :  { %v11469_v28 = vpop.eup %9348  ;;  %v3739_v38 = vadd.f32 1.0, %v9347_v3  ;;  %v3652_v9 = vpop.f32.mrb[62].mxu1 }
 0xf1e   :  { %9358 = vpow2.f32 %v7307_v31  ;;  %v3653_v60 = vadd.f32 %v11437_v47, %v3652_v9  ;;  %v3654_v41 = vpop.f32.mrb[63].mxu1  ;;  %v3864_v48 = vsub.f32 1.0, %v11469_v28 }
 0xf1f   :  { %9360 = vrcp.f32 %v3739_v38 }
 0xf20   :  { %v9351_v19 = vpop.eup %9350  ;;  %v7308_v55 = vmul.f32 -1.442695, %v3653_v60  ;;  %3816 = vrot.lane.b32.xlu1 %v3653_v60, %s10056_s29  ;;  %v11475_v20 = vmul.f32 %v3864_v48, %v11164_v44 }
 0xf21   :  { %v11477_v22 = vpop.eup %9352  ;;  %v3740_v14 = vadd.f32 1.0, %v9351_v19  ;;  %v3657_v52 = vpop.f32.mrb[64].mxu1 }
 0xf22   :  { %9362 = vpow2.f32 %v7308_v55  ;;  %v3658_v42 = vadd.f32 %v11437_v47, %v3657_v52  ;;  %v3659_v51 = vpop.f32.mrb[65].mxu1  ;;  %v3865_v30 = vsub.f32 1.0, %v11477_v22  ;;  %v3911_v52 = vld [vmem:[#allocation14 + $0x8] sm:$0xff] }
 0xf23   :  { %9364 = vrcp.f32 %v3740_v14  ;;  %v3910_v14 = vld [vmem:[#allocation14] sm:$0xff] }
 0xf24   :  { %v9355_v23 = vpop.eup %9354  ;;  %v7309_v54 = vmul.f32 -1.442695, %v3658_v42  ;;  %3818 = vrot.lane.b32.xlu0 %v3658_v42, %s10056_s29  ;;  %v11483_v21 = vmul.f32 %v11151_v24, %v3865_v30  ;;  %v3912_v42 = vld [vmem:[#allocation14 + $0x10] sm:$0xff] }
 0xf25   :  { %v11485_v44 = vpop.eup %9356  ;;  %v3741_v62 = vadd.f32 1.0, %v9355_v23  ;;  %v3662_v26 = vpop.f32.mrb[66].mxu1  ;;  %v8602_v23 = vpack.c.bf16 %v3911_v52, %v3910_v14  ;;  %v3917_v14 = vld [vmem:[#allocation14 + $0x38] sm:$0xff] }
 0xf26   :  { %9366 = vpow2.f32 %v7309_v54  ;;  %v3663_v13 = vadd.f32 %v11437_v47, %v3662_v26  ;;  %v3664_v33 = vpop.f32.mrb[67].mxu1  ;;  %v3866_v36 = vsub.f32 1.0, %v11485_v44  ;;  %v3913_v54 = vld [vmem:[#allocation14 + $0x18] sm:$0xff] }
 0xf27   :  { %9368 = vrcp.f32 %v3741_v62  ;;  %8603 = vmatpush1.bf16.msra.mxu0 %v8602_v23 }
 0xf28   :  { %v9359_v12 = vpop.eup %9358  ;;  %v7310_v49 = vmul.f32 -1.442695, %v3663_v13  ;;  %3820 = vrot.lane.b32.xlu1 %v3663_v13, %s10056_s29  ;;  %v11491_v7 = vmul.f32 %v3866_v36, %v11188_v18  ;;  %8604 = vmatprep.subr.bf16.mxu0 %v10055_v10 }
 0xf29   :  { %v11493_v24 = vpop.eup %9360  ;;  %v3742_v53 = vadd.f32 1.0, %v9359_v12  ;;  %v3667_v29 = vpop.f32.mrb[68].mxu1 }
 0xf2a   :  { %9370 = vpow2.f32 %v7310_v49  ;;  %v3668_v17 = vadd.f32 %v11437_v47, %v3667_v29  ;;  %v3669_v35 = vpop.f32.mrb[69].mxu1  ;;  %v3867_v3 = vsub.f32 1.0, %v11493_v24  ;;  %v8605_v49 = vpack.c.bf16 %v3913_v54, %v3912_v42  ;;  %v3918_v54 = vld [vmem:[#allocation14 + $0x40] sm:$0xff] }
 0xf2b   :  { %9372 = vrcp.f32 %v3742_v53  ;;  %v3914_v53 = vld [vmem:[#allocation14 + $0x20] sm:$0xff] }
 0xf2c   :  { %v9363_v31 = vpop.eup %9362  ;;  %v7311_v38 = vmul.f32 -1.442695, %v3668_v17  ;;  %3822 = vrot.lane.b32.xlu0 %v3668_v17, %s10056_s29  ;;  %v11499_v9 = vmul.f32 %v11170_v2, %v3867_v3  ;;  %8606 = vmatpush1.bf16.msra.mxu0 %v8605_v49 }
 0xf2d   :  { %v11501_v18 = vpop.eup %9364  ;;  %v3743_v60 = vadd.f32 1.0, %v9363_v31  ;;  %v3672_v41 = vpop.f32.mrb[70].mxu1  ;;  %8607 = vmatprep.subr.bf16.mxu0 %v10055_v10 }
 0xf2e   :  { %9374 = vpow2.f32 %v7311_v38  ;;  %v3673_v48 = vadd.f32 %v11437_v47, %v3672_v41  ;;  %v3674_v19 = vpop.f32.mrb[71].mxu1  ;;  %v3868_v55 = vsub.f32 1.0, %v11501_v18 }
 0xf2f   :  { %9376 = vrcp.f32 %v3743_v60 }
 0xf30   :  { %v9367_v51 = vpop.eup %9366  ;;  %v7312_v30 = vmul.f32 -1.442695, %v3673_v48  ;;  %3824 = vrot.lane.b32.xlu1 %v3673_v48, %s10056_s29  ;;  %v11507_v2 = vmul.f32 %v3868_v55, %v11212_v5  ;;  %v3915_v5 = vld [vmem:[#allocation14 + $0x28] sm:$0xff]  ;;  %v3916_v55 = vld [vmem:[#allocation14 + $0x30] sm:$0xff] }
 0xf31   :  { %v11509_v62 = vpop.eup %9368  ;;  %v3744_v26 = vadd.f32 1.0, %v9367_v51  ;;  %v3677_v13 = vpop.f32.mrb[72].mxu1  ;;  %v8608_v19 = vpack.c.bf16 %v3915_v5, %v3914_v53  ;;  %v8611_v23 = vpack.c.bf16 %v3917_v14, %v3916_v55  ;;  %v3920_v53 = vld [vmem:[#allocation14 + $0x50] sm:$0xff]  ;;  %v3921_v5 = vld [vmem:[#allocation14 + $0x58] sm:$0xff] }
 0xf32   :  { %9378 = vpow2.f32 %v7312_v30  ;;  %v3678_v33 = vadd.f32 %v11437_v47, %v3677_v13  ;;  %v3679_v36 = vpop.f32.mrb[73].mxu1  ;;  %v3869_v12 = vsub.f32 1.0, %v11509_v62 }
 0xf33   :  { %9380 = vrcp.f32 %v3744_v26  ;;  %8609 = vmatpush1.bf16.msra.mxu0 %v8608_v19  ;;  %v3919_v26 = vld [vmem:[#allocation14 + $0x48] sm:$0xff] }
 0xf34   :  { %v9371_v29 = vpop.eup %9370  ;;  %v7313_v17 = vmul.f32 -1.442695, %v3678_v33  ;;  %3826 = vrot.lane.b32.xlu0 %v3678_v33, %s10056_s29  ;;  %v11516_v35 = vmul.f32 %v11194_v34, %v3869_v12  ;;  %8610 = vmatprep.subr.bf16.mxu0 %v10055_v10  ;;  %v8614_v49 = vpack.c.bf16 %v3919_v26, %v3918_v54 }
 0xf35   :  { %v11518_v3 = vpop.eup %9372  ;;  %v3745_v31 = vadd.f32 1.0, %v9371_v29  ;;  %v3682_v38 = vpop.f32.mrb[74].mxu1 }
 0xf36   :  { %9382 = vpow2.f32 %v7313_v17  ;;  %v3683_v60 = vadd.f32 %v11437_v47, %v3682_v38  ;;  %v3684_v41 = vpop.f32.mrb[75].mxu1  ;;  %v3870_v48 = vsub.f32 1.0, %v11518_v3 }
 0xf37   :  { %9384 = vrcp.f32 %v3745_v31  ;;  %8612 = vmatpush1.bf16.msra.mxu0 %v8611_v23  ;;  %v3922_v41 = vld [vmem:[#allocation14 + $0x60] sm:$0xff] }
 0xf38   :  { %v9375_v52 = vpop.eup %9374  ;;  %v7314_v34 = vmul.f32 -1.442695, %v3683_v60  ;;  %3828 = vrot.lane.b32.xlu1 %v3683_v60, %s10056_s29  ;;  %v11525_v42 = vmul.f32 %v3870_v48, %v11236_v40  ;;  %8613 = vmatprep.subr.bf16.mxu0 %v10055_v10  ;;  %v8617_v60 = vpack.c.bf16 %v3921_v5, %v3920_v53  ;;  %v3923_v48 = vld [vmem:[#allocation14 + $0x68] sm:$0xff]  ;;  %v3928_v5 = vld [vmem:[#allocation14 + $0x90] sm:$0xff] }
 0xf39   :  { %v11527_v51 = vpop.eup %9376  ;;  %v3746_v47 = vadd.f32 1.0, %v9375_v52 }
 0xf3a   :  { %9386 = vpow2.f32 %v7314_v34  ;;  %v3871_v30 = vsub.f32 1.0, %v11527_v51  ;;  %v8620_v34 = vpack.c.bf16 %v3923_v48, %v3922_v41  ;;  %v3930_v41 = vld [vmem:[#allocation14 + $0xa0] sm:$0xff]  ;;  %v3931_v48 = vld [vmem:[#allocation14 + $0xa8] sm:$0xff] }
 0xf3b   :  { %9388 = vrcp.f32 %v3746_v47  ;;  %8615 = vmatpush1.bf16.msra.mxu0 %v8614_v49  ;;  %v3924_v47 = vld [vmem:[#allocation14 + $0x70] sm:$0xff] }
 0xf3c   :  { %v9379_v13 = vpop.eup %9378  ;;  %v11532_v33 = vmul.f32 %v11218_v27, %v3871_v30  ;;  %8616 = vmatprep.subr.bf16.mxu0 %v10055_v10  ;;  %v3925_v30 = vld [vmem:[#allocation14 + $0x78] sm:$0xff] }
 0xf3d   :  { %v11534_v36 = vpop.eup %9380  ;;  %v3747_v40 = vadd.f32 1.0, %v9379_v13  ;;  %v8623_v26 = vpack.c.bf16 %v3925_v30, %v3924_v47  ;;  %v3926_v13 = vld [vmem:[#allocation14 + $0x80] sm:$0xff] }
 0xf3e   :  { %v3872_v12 = vsub.f32 1.0, %v11534_v36 }
 0xf3f   :  { %9390 = vrcp.f32 %v3747_v40  ;;  %8618 = vmatpush1.bf16.msra.mxu0 %v8617_v60  ;;  %v3927_v40 = vld [vmem:[#allocation14 + $0x88] sm:$0xff] }
 0xf40   :  { %v9383_v29 = vpop.eup %9382  ;;  %v11539_v17 = vmul.f32 %v3872_v12, %v11260_v4  ;;  %8619 = vmatprep.subr.bf16.mxu0 %v10055_v10 }
 0xf41   :  { %v11541_v31 = vpop.eup %9384  ;;  %v3748_v27 = vadd.f32 1.0, %v9383_v29  ;;  %v3929_v29 = vld [vmem:[#allocation14 + $0x98] sm:$0xff] }
 0xf42   :  { %v3873_v38 = vsub.f32 1.0, %v11541_v31 }
 0xf43   :  { %9392 = vrcp.f32 %v3748_v27  ;;  %8621 = vmatpush1.bf16.msra.mxu0 %v8620_v34 }
 0xf44   :  { %v9387_v19 = vpop.eup %9386  ;;  %v11546_v55 = vmul.f32 %v11242_v59, %v3873_v38  ;;  %8622 = vmatprep.subr.bf16.mxu0 %v10055_v10 }
 0xf45   :  { %v11548_v14 = vpop.eup %9388  ;;  %v3749_v4 = vadd.f32 1.0, %v9387_v19 }
 0xf46   :  { %v3874_v52 = vsub.f32 1.0, %v11548_v14 }
 0xf47   :  { %9394 = vrcp.f32 %v3749_v4  ;;  %8624 = vmatpush1.bf16.msra.mxu0 %v8623_v26  ;;  %v8632_v4 = vpack.c.bf16 %v3931_v48, %v3930_v41 }
 0xf48   :  { %v11553_v23 = vmul.f32 %v3874_v52, %v11284_v50  ;;  %v8626_v50 = vpack.c.bf16 %v3927_v40, %v3926_v13  ;;  %8625 = vmatprep.subr.bf16.mxu0 %v10055_v10  ;;  %v3932_v52 = vld [vmem:[#allocation14 + $0xb0] sm:$0xff] }
 0xf49   :  { %v11555_v54 = vpop.eup %9390 }
 0xf4a   :  { %v3875_v59 = vsub.f32 1.0, %v11555_v54 }
 0xf4b   :  { %8627 = vmatpush1.bf16.msra.mxu0 %v8626_v50 }
 0xf4c   :  { %v11560_v12 = vmul.f32 %v11266_v37, %v3875_v59  ;;  %v8629_v37 = vpack.c.bf16 %v3929_v29, %v3928_v5  ;;  %8628 = vmatprep.subr.bf16.mxu0 %v10055_v10 }
 0xf4d   :  { %v11562_v49 = vpop.eup %9392 }
 0xf4e   :  { %v3876_v53 = vsub.f32 1.0, %v11562_v49 }
 0xf4f   :  { %8630 = vmatpush1.bf16.msra.mxu0 %v8629_v37 }
 0xf50   :  { %v11567_v27 = vmul.f32 %v3876_v53, %v11308_v1  ;;  %8631 = vmatprep.subr.bf16.mxu0 %v10055_v10  ;;  %v3933_v1 = vld [vmem:[#allocation14 + $0xb8] sm:$0xff] }
 0xf51   :  { %v11569_v38 = vpop.eup %9394  ;;  %v8635_v34 = vpack.c.bf16 %v3933_v1, %v3932_v52 }
 0xf52   :  { %v3877_v60 = vsub.f32 1.0, %v11569_v38 }
 0xf53   :  { %8633 = vmatpush1.bf16.msra.mxu0 %v8632_v4 }
 0xf54   :  { %v11574_v19 = vmul.f32 %v11290_v63, %v3877_v60  ;;  %8634 = vmatprep.subr.bf16.mxu0 %v10055_v10 }
 0xf57   :  { %8636 = vmatpush1.bf16.msra.mxu0 %v8635_v34 }
 0xf6e   :  { %v3799_v47 = vpop.permute.xlu0 %3798 }
 0xf6f   :  { %v3846_v30 = vmul.f32 %v11453_v32, %v3799_v47 }
 0xf71   :  { %v11580_v59 = vadd.f32 %v11459_v11, %v3846_v30 }
 0xf72   :  { %v3801_v26 = vpop.permute.xlu1 %3800 }
 0xf73   :  { %v3847_v63 = vmul.f32 %v11461_v39, %v3801_v26  ;;  %4175 = vrot.lane.b32.xlu0 %v11580_v59, %s10056_s29  ;;  %v4063_v10 = vrot.slane %v11580_v59, 3 }
 0xf75   :  { %v11586_v13 = vadd.f32 %v11467_v45, %v3847_v63 }
 0xf76   :  { %v3803_v40 = vpop.permute.xlu0 %3802 }
 0xf77   :  { %v3848_v53 = vmul.f32 %v11469_v28, %v3803_v40  ;;  %4177 = vrot.lane.b32.xlu1 %v11586_v13, %s10056_s29  ;;  %v4064_v32 = vrot.slane %v11586_v13, 3 }
 0xf79   :  { %v11594_v11 = vadd.f32 %v11475_v20, %v3848_v53  ;;  %v4065_v39 = vsel %vm834_vm8, %v4063_v10, %v4064_v32  ;;  %v3952_v53 = vrot.slane %v11586_v13, 5 }
 0xf7a   :  { %v3805_v50 = vpop.permute.xlu1 %3804  ;;  %7316 = vmatprep.mubr.msk.f32.mxu0 %vm612_vm2, %v4065_v39 }
 0xf7b   :  { %v3849_v45 = vmul.f32 %v11477_v22, %v3805_v50  ;;  %4179 = vrot.lane.b32.xlu0 %v11594_v11, %s10056_s29 }
 0xf7d   :  { %v11604_v28 = vadd.f32 %v11483_v21, %v3849_v45  ;;  %v3954_v45 = vrot.slane %v11594_v11, 5 }
 0xf7e   :  { %v3807_v5 = vpop.permute.xlu0 %3806 }
 0xf7f   :  { %v3850_v29 = vmul.f32 %v11485_v44, %v3807_v5  ;;  %4181 = vrot.lane.b32.xlu1 %v11604_v28, %s10056_s29  ;;  %v4068_v39 = vrot.slane %v11604_v28, 3 }
 0xf81   :  { %v11610_v20 = vadd.f32 %v11491_v7, %v3850_v29 }
 0xf82   :  { %v3809_v60 = vpop.permute.xlu1 %3808 }
 0xf83   :  { %v3851_v37 = vmul.f32 %v11493_v24, %v3809_v60  ;;  %4183 = vrot.lane.b32.xlu0 %v11610_v20, %s10056_s29  ;;  %v4070_v60 = vrot.slane %v11610_v20, 3 }
 0xf85   :  { %v11616_v22 = vadd.f32 %v11499_v9, %v3851_v37 }
 0xf86   :  { %v3811_v21 = vpop.permute.xlu0 %3810 }
 0xf87   :  { %v3852_v41 = vmul.f32 %v11501_v18, %v3811_v21  ;;  %4185 = vrot.lane.b32.xlu1 %v11616_v22, %s10056_s29  ;;  %v3956_v21 = vrot.slane %v11604_v28, 5 }
 0xf89   :  { %v11622_v44 = vadd.f32 %v11507_v2, %v3852_v41 }
 0xf8a   :  { %v3813_v7 = vpop.permute.xlu1 %3812 }
 0xf8b   :  { %v3853_v48 = vmul.f32 %v11509_v62, %v3813_v7  ;;  %4187 = vrot.lane.b32.xlu0 %v11622_v44, %s10056_s29  ;;  %v4071_v7 = vsel %vm834_vm8, %v4068_v39, %v4070_v60 }
 0xf8d   :  { %v11628_v24 = vadd.f32 %v11516_v35, %v3853_v48  ;;  %v4072_v48 = vrot.slane %v11616_v22, 3 }
 0xf8e   :  { %v3815_v9 = vpop.permute.xlu0 %3814 }
 0xf8f   :  { %v3854_v4 = vmul.f32 %v11518_v3, %v3815_v9  ;;  %4189 = vrot.lane.b32.xlu1 %v11628_v24, %s10056_s29 }
 0xf91   :  { %v11634_v18 = vadd.f32 %v11525_v42, %v3854_v4  ;;  %v3957_v4 = vsel %vm805_vm9, %v3954_v45, %v3956_v21 }
 0xf92   :  { %v3817_v2 = vpop.permute.xlu1 %3816 }
 0xf93   :  { %v3855_v52 = vmul.f32 %v11527_v51, %v3817_v2  ;;  %4191 = vrot.lane.b32.xlu0 %v11634_v18, %s10056_s29  ;;  %v3958_v2 = vrot.slane %v11610_v20, 5 }
 0xf95   :  { %v11640_v62 = vadd.f32 %v11532_v33, %v3855_v52 }
 0xf96   :  { %v3819_v35 = vpop.permute.xlu0 %3818 }
 0xf97   :  { %v3856_v1 = vmul.f32 %v11534_v36, %v3819_v35  ;;  %4193 = vrot.lane.b32.xlu1 %v11640_v62, %s10056_s29  ;;  %v4073_v35 = vsel %vm834_vm8, %v4070_v60, %v4072_v48 }
 0xf99   :  { %v11646_v3 = vadd.f32 %v11539_v17, %v3856_v1  ;;  %v4074_v1 = vrot.slane %v11622_v44, 3 }
 0xf9a   :  { %v3821_v42 = vpop.permute.xlu1 %3820 }
 0xf9b   :  { %v3857_v34 = vmul.f32 %v11541_v31, %v3821_v42  ;;  %4195 = vrot.lane.b32.xlu0 %v11646_v3, %s10056_s29 }
 0xf9d   :  { %v11652_v51 = vadd.f32 %v11546_v55, %v3857_v34  ;;  %v3959_v34 = vsel %vm805_vm9, %v3956_v21, %v3958_v2 }
 0xf9e   :  { %v3823_v33 = vpop.permute.xlu0 %3822 }
 0xf9f   :  { %v3858_v47 = vmul.f32 %v11548_v14, %v3823_v33  ;;  %4197 = vrot.lane.b32.xlu1 %v11652_v51, %s10056_s29  ;;  %v3960_v33 = vrot.slane %v11616_v22, 5 }
 0xfa1   :  { %v11658_v36 = vadd.f32 %v11553_v23, %v3858_v47 }
 0xfa2   :  { %v3825_v17 = vpop.permute.xlu1 %3824 }
 0xfa3   :  { %v3859_v30 = vmul.f32 %v11555_v54, %v3825_v17  ;;  %4199 = vrot.lane.b32.xlu0 %v11658_v36, %s10056_s29  ;;  %v4075_v17 = vsel %vm834_vm8, %v4072_v48, %v4074_v1  ;;  %v3970_v48 = vrot.slane %v11646_v3, 5 }
 0xfa5   :  { %v11664_v31 = vadd.f32 %v11560_v12, %v3859_v30  ;;  %v3951_v12 = vrot.slane %v11580_v59, 5  ;;  %v4076_v30 = vrot.slane %v11628_v24, 3 }
 0xfa6   :  { %v3827_v55 = vpop.permute.xlu0 %3826 }
 0xfa7   :  { %v3860_v26 = vmul.f32 %v11562_v49, %v3827_v55  ;;  %4201 = vrot.lane.b32.xlu1 %v11664_v31, %s10056_s29  ;;  %v3998_v49 = vsel %vm805_vm9, 0.0, %v3951_v12  ;;  %v3953_v25 = vsel %vm805_vm9, %v3951_v12, %v3952_v53  ;;  %v4078_v55 = vrot.slane %v11634_v18, 3 }
 0xfa8   :  { %v4047_v40 = vsel %vm3999_vm15, %v3998_v49, 0.0  ;;  %v4077_v49 = vsel %vm834_vm8, %v4074_v1, %v4076_v30  ;;  %v3972_v1 = vrot.slane %v11652_v51, 5 }
 0xfa9   :  { %v11670_v14 = vadd.f32 %v11567_v27, %v3860_v26  ;;  %v4066_v27 = vrot.slane %v11594_v11, 3 }
 0xfaa   :  { %v3829_v23 = vpop.permute.xlu1 %3828 }
 0xfab   :  { %v3861_v63 = vmul.f32 %v11569_v38, %v3829_v23  ;;  %4203 = vrot.lane.b32.xlu0 %v11670_v14, %s10056_s29  ;;  %v4069_v29 = vsel %vm834_vm8, %v4066_v27, %v4068_v39  ;;  %v3961_v23 = vsel %vm805_vm9, %v3958_v2, %v3960_v33  ;;  %v4086_v2 = vrot.slane %v11658_v36, 3 }
 0xfad   :  { %v11676_v54 = vadd.f32 %v11574_v19, %v3861_v63  ;;  %v4067_v19 = vsel %vm834_vm8, %v4064_v32, %v4066_v27  ;;  %v3955_v32 = vsel %vm805_vm9, %v3952_v53, %v3954_v45  ;;  %v3962_v63 = vrot.slane %v11622_v44, 5 }
 0xfae   :  { %v4079_v27 = vsel %vm834_vm8, %v4076_v30, %v4078_v55  ;;  %v3964_v53 = vrot.slane %v11628_v24, 5  ;;  %v3974_v30 = vrot.slane %v11658_v36, 5 }
 0xfaf   :  { %4205 = vrot.lane.b32.xlu1 %v11676_v54, %s10056_s29  ;;  %v4166_v39 = vsel %vm4118_vm0, %v4079_v27, 0.0 }
 0xfb0   :  { %v3965_v45 = vsel %vm805_vm9, %v3962_v63, %v3964_v53 }
 0xfe5   :  { %v4176_v38 = vpop.permute.xlu0 %4175 }
 0xfe6   :  { %v4223_v10 = vsel %vm612_vm2, %v4047_v40, %v4176_v38  ;;  %v3963_v38 = vsel %vm805_vm9, %v3960_v33, %v3962_v63  ;;  %v4088_v33 = vrot.slane %v11664_v31, 3 }
 0xfe7   :  { %4358 = vmatmul.mubr.f32.vlgmr.msra.gmra.mrb[56].mxu0 %v4223_v10 }
 0xfe8   :  { %7317 = vmatprep.mubr.msk.f32.mxu0 %vm612_vm2, %v4067_v19  ;;  %v3966_v19 = vrot.slane %v11634_v18, 5 }
 0xfe9   :  { %v4178_v50 = vpop.permute.xlu1 %4177 }
 0xfea   :  { %v4224_v5 = vsel %vm612_vm2, %v3953_v25, %v4178_v50  ;;  %v4080_v50 = vrot.slane %v11640_v62, 3  ;;  %v3967_v6 = vsel %vm805_vm9, %v3964_v53, %v3966_v19 }
 0xfeb   :  { %4363 = vmatmul.mubr.f32.gmra.mrb[58].mxu0 %v4224_v5 }
 0xfec   :  { %7318 = vmatprep.mubr.msk.f32.mxu0 %vm612_vm2, %v4069_v29  ;;  %v4081_v5 = vsel %vm834_vm8, %v4078_v55, %v4080_v50  ;;  %v4082_v29 = vrot.slane %v11646_v3, 3 }
 0xfed   :  { %v4180_v37 = vpop.permute.xlu0 %4179 }
 0xfee   :  { %v4225_v41 = vsel %vm612_vm2, %v3955_v32, %v4180_v37  ;;  %v4055_v37 = vsel %vm4007_vm4, %v3967_v6, 0.0  ;;  %v3968_v32 = vrot.slane %v11640_v62, 5  ;;  %v3980_v6 = vrot.slane %v11676_v54, 5 }
 0xfef   :  { %4368 = vmatmul.mubr.f32.gmra.mrb[60].mxu0 %v4225_v41  ;;  %v4083_v41 = vsel %vm834_vm8, %v4080_v50, %v4082_v29 }
 0xff0   :  { %7319 = vmatprep.mubr.msk.f32.mxu0 %vm612_vm2, %v4071_v7  ;;  %v4084_v7 = vrot.slane %v11652_v51, 3  ;;  %v3969_v8 = vsel %vm805_vm9, %v3966_v19, %v3968_v32  ;;  %v3978_v19 = vrot.slane %v11670_v14, 5 }
 0xff1   :  { %v4182_v9 = vpop.permute.xlu1 %4181 }
 0xff2   :  { %v4226_v52 = vsel %vm612_vm2, %v3957_v4, %v4182_v9  ;;  %v4085_v4 = vsel %vm834_vm8, %v4082_v29, %v4084_v7 }
 0xff3   :  { %4373 = vmatmul.mubr.f32.gmra.mrb[62].mxu0 %v4226_v52 }
 0xff4   :  { %7320 = vmatprep.mubr.msk.f32.mxu0 %vm612_vm2, %v4073_v35  ;;  %v3971_v35 = vsel %vm805_vm9, %v3968_v32, %v3970_v48 }
 0xff5   :  { %v4184_v42 = vpop.permute.xlu0 %4183 }
 0xff6   :  { %v4227_v47 = vsel %vm612_vm2, %v3959_v34, %v4184_v42  ;;  %v4087_v34 = vsel %vm834_vm8, %v4084_v7, %v4086_v2  ;;  %v4665_v7 = vld [vmem:[#allocation16 + $0x18] sm:$0xff] }
 0xff7   :  { %4378 = vmatmul.mubr.f32.gmra.mrb[64].mxu0 %v4227_v47 }
 0xff8   :  { %7321 = vmatprep.mubr.msk.f32.mxu0 %vm612_vm2, %v4075_v17  ;;  %v3973_v17 = vsel %vm805_vm9, %v3970_v48, %v3972_v1  ;;  %v4667_v48 = vld [vmem:[#allocation16 + $0x28] sm:$0xff] }
 0xff9   :  { %v4186_v26 = vpop.permute.xlu1 %4185 }
 0xffa   :  { %v4228_v12 = vsel %vm612_vm2, %v3961_v23, %v4186_v26  ;;  %v4089_v26 = vsel %vm834_vm8, %v4086_v2, %v4088_v33  ;;  %v4090_v23 = vrot.slane %v11670_v14, 3  ;;  %v4669_v2 = vld [vmem:[#allocation16 + $0x38] sm:$0xff] }
 0xffb   :  { %4383 = vmatmul.mubr.f32.gmra.mrb[66].mxu0 %v4228_v12  ;;  %v3975_v12 = vsel %vm805_vm9, %v3972_v1, %v3974_v30 }
 0xffc   :  { %7322 = vmatprep.mubr.msk.f32.mxu0 %vm612_vm2, %v4077_v49  ;;  %v3976_v49 = vrot.slane %v11664_v31, 5 }
 0xffd   :  { %v4188_v40 = vpop.permute.xlu0 %4187 }
 0xffe   :  { %v4229_v10 = vsel %vm612_vm2, %v3963_v38, %v4188_v40  ;;  %v4091_v40 = vsel %vm834_vm8, %v4088_v33, %v4090_v23  ;;  %v4092_v38 = vrot.slane %v11676_v54, 3 }
 0xfff   :  { %4388 = vmatmul.mubr.f32.gmra.mrb[68].mxu0 %v4229_v10  ;;  %v3977_v10 = vsel %vm805_vm9, %v3974_v30, %v3976_v49 }
0x1000   :  { %7323 = vmatprep.mubr.msk.f32.mxu0 %vm612_vm2, %v4166_v39  ;;  %v4093_v50 = vsel %vm834_vm8, %v4090_v23, %v4092_v38 }
0x1001   :  { %v4190_v25 = vpop.permute.xlu1 %4189 }
0x1002   :  { %v4230_v57 = vsel %vm612_vm2, %v3965_v45, %v4190_v25  ;;  %v4110_v25 = vsel %vm834_vm8, %v4092_v38, 0.0 }
0x1003   :  { %4393 = vmatmul.mubr.f32.gmra.mrb[70].mxu0 %v4230_v57  ;;  %v3979_v57 = vsel %vm805_vm9, %v3976_v49, %v3978_v19  ;;  %v4174_v29 = vsel %vm4126_vm5, %v4110_v25, 0.0 }
0x1004   :  { %7324 = vmatprep.mubr.msk.f32.mxu0 %vm612_vm2, %v4081_v5 }
0x1005   :  { %v4192_v60 = vpop.permute.xlu0 %4191 }
0x1006   :  { %v4231_v21 = vsel %vm612_vm2, %v4055_v37, %v4192_v60  ;;  %v3981_v37 = vsel %vm805_vm9, %v3978_v19, %v3980_v6 }
0x1007   :  { %4398 = vmatmul.mubr.f32.gmra.mrb[72].mxu0 %v4231_v21  ;;  %v4662_v21 = vld [vmem:[#allocation16] sm:$0xff] }
0x1008   :  { %7325 = vmatprep.mubr.msk.f32.mxu0 %vm612_vm2, %v4083_v41  ;;  %v8637_v41 = vpack.c.bf16 %v4663_v56, %v4662_v21 }
0x1009   :  { %v4194_v46 = vpop.permute.xlu1 %4193 }
0x100a   :  { %v4232_v9 = vsel %vm612_vm2, %v3969_v8, %v4194_v46  ;;  %v8641_v46 = vpack.c.bf16 %v4665_v7, %v4664_v0  ;;  %v4666_v8 = vld [vmem:[#allocation16 + $0x20] sm:$0xff]  ;;  %8638 = vmatprep.subr.bf16.mxu1 %v8637_v41 }
0x100b   :  { %4403 = vmatmul.mubr.f32.gmra.mrb[74].mxu0 %v4232_v9  ;;  %8640 = vmatpush3.bf16.msra.mxu1 %v8637_v41  ;;  %v8645_v9 = vpack.c.bf16 %v4667_v48, %v4666_v8 }
0x100c   :  { %7326 = vmatprep.mubr.msk.f32.mxu0 %vm612_vm2, %v4085_v4  ;;  %8642 = vmatprep.subr.bf16.mxu1 %v8641_v46  ;;  %v4668_v4 = vld [vmem:[#allocation16 + $0x30] sm:$0xff] }
0x100d   :  { %v4196_v52 = vpop.permute.xlu0 %4195 }
0x100e   :  { %v4233_v42 = vsel %vm612_vm2, %v3971_v35, %v4196_v52  ;;  %v8649_v52 = vpack.c.bf16 %v4669_v2, %v4668_v4  ;;  %v11783_v35 = vld [vmem:[%s12609_s20] ss:$0 sm:$0xff] }
0x100f   :  { %4408 = vmatmul.mubr.f32.gmra.mrb[76].mxu0 %v4233_v42  ;;  %8644 = vmatpush3.bf16.msra.mxu1 %v8641_v46 }
0x1010   :  { %7327 = vmatprep.mubr.msk.f32.mxu0 %vm612_vm2, %v4087_v34  ;;  %8646 = vmatprep.subr.bf16.mxu1 %v8645_v9 }
0x1011   :  { %v4198_v47 = vpop.permute.xlu1 %4197 }
0x1012   :  { %v4234_v55 = vsel %vm612_vm2, %v3973_v17, %v4198_v47 }
0x1013   :  { %4413 = vmatmul.mubr.f32.gmra.mrb[78].mxu0 %v4234_v55  ;;  %8648 = vmatpush3.bf16.msra.mxu1 %v8645_v9 }
0x1014   :  { %7328 = vmatprep.mubr.msk.f32.mxu0 %vm612_vm2, %v4089_v26  ;;  %8650 = vmatprep.subr.bf16.mxu1 %v8649_v52 }
0x1015   :  { %v4200_v63 = vpop.permute.xlu0 %4199 }
0x1016   :  { %v4235_v27 = vsel %vm612_vm2, %v3975_v12, %v4200_v63 }
0x1017   :  { %4418 = vmatmul.mubr.f32.gmra.mrb[80].mxu0 %v4235_v27  ;;  %8652 = vmatpush3.bf16.msra.mxu1 %v8649_v52 }
0x1018   :  { %7329 = vmatprep.mubr.msk.f32.mxu0 %vm612_vm2, %v4091_v40 }
0x1019   :  { %v4202_v53 = vpop.permute.xlu1 %4201 }
0x101a   :  { %v4236_v39 = vsel %vm612_vm2, %v3977_v10, %v4202_v53 }
0x101b   :  { %4423 = vmatmul.mubr.f32.gmra.mrb[82].mxu0 %v4236_v39 }
0x101c   :  { %7330 = vmatprep.mubr.msk.f32.mxu0 %vm612_vm2, %v4093_v50 }
0x101d   :  { %v4204_v45 = vpop.permute.xlu0 %4203 }
0x101e   :  { %v4237_v5 = vsel %vm612_vm2, %v3979_v57, %v4204_v45 }
0x101f   :  { %4428 = vmatmul.mubr.f32.gmra.mrb[84].mxu0 %v4237_v5 }
0x1020   :  { %7331 = vmatprep.mubr.msk.f32.mxu0 %vm612_vm2, %v4174_v29 }
0x1021   :  { %v4206_v60 = vpop.permute.xlu1 %4205 }
0x1022   :  { %v4238_v32 = vsel %vm612_vm2, %v3981_v37, %v4206_v60 }
0x1023   :  { %4433 = vmatmul.mubr.f32.gmra.mrb[86].mxu0 %v4238_v32 }
0x10ba   :  { %v4359_v1 = vpop.f32.mrb[56].mxu0 }
0x10bb   :  { %v11786_v42 = vadd.f32 %v11783_v35, %v4359_v1  ;;  %v4361_v34 = vpop.f32.mrb[57].mxu0  ;;  %v4871_v1 = vld [vmem:[%s12610_s2 + $0x8] sm:$0xff] }
0x10bc   :  { %v4873_v34 = vld [vmem:[%s12610_s2 + $0x18] sm:$0xff] }
0x10bd   :  { %4550 = vrot.lane.b32.xlu0 %v11786_v42, %s10056_s29 }
0x10be   :  { %v4364_v33 = vpop.f32.mrb[58].mxu0 }
0x10bf   :  { %v11791_v47 = vadd.f32 %v11783_v35, %v4364_v33  ;;  %v4366_v17 = vpop.f32.mrb[59].mxu0  ;;  %v4870_v33 = vld [vmem:[%s12610_s2] sm:$0xff] }
0x10c0   :  { %v8653_v17 = vpack.c.bf16 %v4873_v34, %v4871_v1  ;;  %v4884_v1 = vld [vmem:[%s12610_s2 + $0x70] sm:$0xff]  ;;  %v4887_v34 = vld [vmem:[%s12610_s2 + $0x88] sm:$0xff] }
0x10c1   :  { %4552 = vrot.lane.b32.xlu1 %v11791_v47, %s10056_s29 }
0x10c2   :  { %v4369_v30 = vpop.f32.mrb[60].mxu0  ;;  %8654 = vmatprep.subr.bf16.mxu0 %v8653_v17 }
0x10c3   :  { %v11796_v55 = vadd.f32 %v11783_v35, %v4369_v30  ;;  %v4371_v26 = vpop.f32.mrb[61].mxu0  ;;  %v4872_v30 = vld [vmem:[%s12610_s2 + $0x10] sm:$0xff] }
0x10c4   :  { %v4875_v26 = vld [vmem:[%s12610_s2 + $0x28] sm:$0xff] }
0x10c5   :  { %4554 = vrot.lane.b32.xlu0 %v11796_v55, %s10056_s29 }
0x10c6   :  { %v4374_v23 = vpop.f32.mrb[62].mxu0 }
0x10c7   :  { %v11801_v63 = vadd.f32 %v11783_v35, %v4374_v23  ;;  %v4376_v12 = vpop.f32.mrb[63].mxu0  ;;  %v4877_v23 = vld [vmem:[%s12610_s2 + $0x38] sm:$0xff] }
0x10c9   :  { %4556 = vrot.lane.b32.xlu1 %v11801_v63, %s10056_s29 }
0x10ca   :  { %v4379_v49 = vpop.f32.mrb[64].mxu0 }
0x10cb   :  { %v11806_v27 = vadd.f32 %v11783_v35, %v4379_v49  ;;  %v4381_v40 = vpop.f32.mrb[65].mxu0  ;;  %v8655_v49 = vpack.c.bf16 %v4872_v30, %v4870_v33  ;;  %v4889_v33 = vld [vmem:[%s12610_s2 + $0x98] sm:$0xff]  ;;  %v4886_v30 = vld [vmem:[%s12610_s2 + $0x80] sm:$0xff] }
0x10cc   :  { %v8657_v40 = vpack.c.bf16 %v4877_v23, %v4875_v26  ;;  %v8669_v17 = vpack.c.bf16 %v4889_v33, %v4887_v34  ;;  %v4888_v26 = vld [vmem:[%s12610_s2 + $0x90] sm:$0xff]  ;;  %v4891_v23 = vld [vmem:[%s12610_s2 + $0xa8] sm:$0xff] }
0x10cd   :  { %4558 = vrot.lane.b32.xlu0 %v11806_v27, %s10056_s29  ;;  %8656 = vmatpush1.bf16.msra.mxu0 %v8655_v49  ;;  %v8671_v49 = vpack.c.bf16 %v4888_v26, %v4886_v30  ;;  %v7333_v30 = vmul.f32 -1.442695, %v11791_v47  ;;  %v4907_v26 = vld [vmem:[%s12610_s2 + $0x128] sm:$0xff] }
0x10ce   :  { %v4384_v38 = vpop.f32.mrb[66].mxu0  ;;  %8658 = vmatprep.subr.bf16.mxu0 %v8657_v40 }
0x10cf   :  { %v11811_v53 = vadd.f32 %v11783_v35, %v4384_v38  ;;  %v4386_v10 = vpop.f32.mrb[67].mxu0  ;;  %v4874_v38 = vld [vmem:[%s12610_s2 + $0x20] sm:$0xff] }
0x10d0   :  { %v4876_v10 = vld [vmem:[%s12610_s2 + $0x30] sm:$0xff] }
0x10d1   :  { %4560 = vrot.lane.b32.xlu1 %v11811_v53, %s10056_s29 }
0x10d2   :  { %v4389_v19 = vpop.f32.mrb[68].mxu0 }
0x10d3   :  { %v11816_v39 = vadd.f32 %v11783_v35, %v4389_v19  ;;  %v4391_v50 = vpop.f32.mrb[69].mxu0  ;;  %v4879_v19 = vld [vmem:[%s12610_s2 + $0x48] sm:$0xff] }
0x10d5   :  { %4562 = vrot.lane.b32.xlu0 %v11816_v39, %s10056_s29 }
0x10d6   :  { %v4394_v25 = vpop.f32.mrb[70].mxu0 }
0x10d7   :  { %v11821_v45 = vadd.f32 %v11783_v35, %v4394_v25  ;;  %v4396_v57 = vpop.f32.mrb[71].mxu0 }
0x10d8   :  { %v4881_v57 = vld [vmem:[%s12610_s2 + $0x58] sm:$0xff] }
0x10d9   :  { %4564 = vrot.lane.b32.xlu1 %v11821_v45, %s10056_s29 }
0x10da   :  { %v4399_v6 = vpop.f32.mrb[72].mxu0 }
0x10db   :  { %v11826_v5 = vadd.f32 %v11783_v35, %v4399_v6  ;;  %v4401_v29 = vpop.f32.mrb[73].mxu0  ;;  %v8659_v6 = vpack.c.bf16 %v4876_v10, %v4874_v38  ;;  %v4890_v38 = vld [vmem:[%s12610_s2 + $0xa0] sm:$0xff]  ;;  %v4892_v10 = vld [vmem:[%s12610_s2 + $0xb0] sm:$0xff] }
0x10dc   :  { %v8661_v29 = vpack.c.bf16 %v4881_v57, %v4879_v19  ;;  %v4895_v19 = vld [vmem:[%s12610_s2 + $0xc8] sm:$0xff]  ;;  %v8675_v57 = vpack.c.bf16 %v4892_v10, %v4890_v38  ;;  %v7334_v38 = vmul.f32 -1.442695, %v11796_v55 }
0x10dd   :  { %4566 = vrot.lane.b32.xlu0 %v11826_v5, %s10056_s29  ;;  %8660 = vmatpush1.bf16.msra.mxu0 %v8659_v6  ;;  %v4911_v10 = vld [vmem:[%s12610_s2 + $0x148] sm:$0xff] }
0x10de   :  { %v4404_v60 = vpop.f32.mrb[74].mxu0  ;;  %8662 = vmatprep.subr.bf16.mxu0 %v8661_v29  ;;  %v4894_v29 = vld [vmem:[%s12610_s2 + $0xc0] sm:$0xff] }
0x10df   :  { %v11831_v37 = vadd.f32 %v11783_v35, %v4404_v60  ;;  %v4406_v32 = vpop.f32.mrb[75].mxu0  ;;  %v4878_v60 = vld [vmem:[%s12610_s2 + $0x40] sm:$0xff] }
0x10e0   :  { %v4880_v32 = vld [vmem:[%s12610_s2 + $0x50] sm:$0xff] }
0x10e1   :  { %4568 = vrot.lane.b32.xlu1 %v11831_v37, %s10056_s29 }
0x10e2   :  { %v4409_v21 = vpop.f32.mrb[76].mxu0 }
0x10e3   :  { %v11836_v56 = vadd.f32 %v11783_v35, %v4409_v21  ;;  %v4411_v0 = vpop.f32.mrb[77].mxu0 }
0x10e4   :  { %v4883_v0 = vld [vmem:[%s12610_s2 + $0x68] sm:$0xff] }
0x10e5   :  { %4570 = vrot.lane.b32.xlu0 %v11836_v56, %s10056_s29 }
0x10e6   :  { %v4414_v41 = vpop.f32.mrb[78].mxu0 }
0x10e7   :  { %v11841_v7 = vadd.f32 %v11783_v35, %v4414_v41  ;;  %v4416_v46 = vpop.f32.mrb[79].mxu0  ;;  %v4885_v41 = vld [vmem:[%s12610_s2 + $0x78] sm:$0xff] }
0x10e9   :  { %4572 = vrot.lane.b32.xlu1 %v11841_v7, %s10056_s29 }
0x10ea   :  { %v4419_v8 = vpop.f32.mrb[80].mxu0 }
0x10eb   :  { %v11846_v48 = vadd.f32 %v11783_v35, %v4419_v8  ;;  %v4421_v9 = vpop.f32.mrb[81].mxu0 }
0x10ec   :  { %v8663_v9 = vpack.c.bf16 %v4880_v32, %v4878_v60  ;;  %v4896_v60 = vld [vmem:[%s12610_s2 + $0xd0] sm:$0xff]  ;;  %v4899_v32 = vld [vmem:[%s12610_s2 + $0xe8] sm:$0xff] }
0x10ed   :  { %4574 = vrot.lane.b32.xlu0 %v11846_v48, %s10056_s29 }
0x10ee   :  { %v4424_v4 = vpop.f32.mrb[82].mxu0  ;;  %8664 = vmatpush1.bf16.msra.mxu0 %v8663_v9  ;;  %v4900_v9 = vld [vmem:[%s12610_s2 + $0xf0] sm:$0xff] }
0x10ef   :  { %v11851_v2 = vadd.f32 %v11783_v35, %v4424_v4  ;;  %v4426_v52 = vpop.f32.mrb[83].mxu0  ;;  %v8665_v4 = vpack.c.bf16 %v4885_v41, %v4883_v0  ;;  %v8679_v0 = vpack.c.bf16 %v4896_v60, %v4894_v29  ;;  %v7335_v29 = vmul.f32 -1.442695, %v11801_v63  ;;  %v4915_v60 = vld [vmem:[%s12610_s2 + $0x168] sm:$0xff] }
0x10f0   :  { %v4882_v52 = vld [vmem:[%s12610_s2 + $0x60] sm:$0xff] }
0x10f1   :  { %4576 = vrot.lane.b32.xlu1 %v11851_v2, %s10056_s29  ;;  %8666 = vmatprep.subr.bf16.mxu0 %v8665_v4  ;;  %v7332_v4 = vmul.f32 -1.442695, %v11786_v42 }
0x10f2   :  { %v4429_v12 = vpop.f32.mrb[84].mxu0 }
0x10f3   :  { %v11865_v50 = vadd.f32 %v11783_v35, %v4429_v12  ;;  %v4431_v25 = vpop.f32.mrb[85].mxu0  ;;  %v4893_v12 = vld [vmem:[%s12610_s2 + $0xb8] sm:$0xff]  ;;  %9396 = vpow2.f32 %v7332_v4  ;;  %v4919_v4 = vld [vmem:[%s12610_s2 + $0x188] sm:$0xff] }
0x10f4   :  { %v8673_v40 = vpack.c.bf16 %v4893_v12, %v4891_v23  ;;  %v4897_v25 = vld [vmem:[%s12610_s2 + $0xd8] sm:$0xff]  ;;  %9398 = vpow2.f32 %v7333_v30  ;;  %v7337_v30 = vmul.f32 -1.442695, %v11811_v53 }
0x10f5   :  { %4578 = vrot.lane.b32.xlu0 %v11865_v50, %s10056_s29  ;;  %v8677_v6 = vpack.c.bf16 %v4897_v25, %v4895_v19  ;;  %v4909_v23 = vld [vmem:[%s12610_s2 + $0x138] sm:$0xff]  ;;  %9400 = vpow2.f32 %v7334_v38  ;;  %v4924_v38 = vld [vmem:[%s12610_s2 + $0x1b0] sm:$0xff] }
0x10f6   :  { %v4434_v21 = vpop.f32.mrb[86].mxu0  ;;  %v8689_v12 = vpack.c.bf16 %v4909_v23, %v4907_v26  ;;  %v4913_v19 = vld [vmem:[%s12610_s2 + $0x158] sm:$0xff]  ;;  %9402 = vpow2.f32 %v7335_v29  ;;  %v4923_v26 = vld [vmem:[%s12610_s2 + $0x1a8] sm:$0xff]  ;;  %v4926_v29 = vld [vmem:[%s12610_s2 + $0x1c0] sm:$0xff] }
0x10f7   :  { %v11875_v46 = vadd.f32 %v11783_v35, %v4434_v21  ;;  %v4436_v8 = vpop.f32.mrb[87].mxu0  ;;  %v8667_v35 = vpack.c.bf16 %v4884_v1, %v4882_v52  ;;  %v4901_v21 = vld [vmem:[%s12610_s2 + $0xf8] sm:$0xff]  ;;  %v4903_v52 = vld [vmem:[%s12610_s2 + $0x108] sm:$0xff]  ;;  %v8693_v25 = vpack.c.bf16 %v4913_v19, %v4911_v10  ;;  %v7338_v10 = vmul.f32 -1.442695, %v11816_v39 }
0x10f8   :  { %v8681_v41 = vpack.c.bf16 %v4901_v21, %v4899_v32  ;;  %v4898_v8 = vld [vmem:[%s12610_s2 + $0xe0] sm:$0xff]  ;;  %v4905_v1 = vld [vmem:[%s12610_s2 + $0x118] sm:$0xff]  ;;  %v4927_v19 = vld [vmem:[%s12610_s2 + $0x1c8] sm:$0xff] }
0x10f9   :  { %4580 = vrot.lane.b32.xlu1 %v11875_v46, %s10056_s29  ;;  %8668 = vmatpush1.bf16.msra.mxu0 %v8667_v35  ;;  %v8683_v34 = vpack.c.bf16 %v4900_v9, %v4898_v8  ;;  %v8685_v33 = vpack.c.bf16 %v4905_v1, %v4903_v52  ;;  %v4902_v35 = vld [vmem:[%s12610_s2 + $0x100] sm:$0xff]  ;;  %v4917_v32 = vld [vmem:[%s12610_s2 + $0x178] sm:$0xff]  ;;  %v4916_v8 = vld [vmem:[%s12610_s2 + $0x170] sm:$0xff]  ;;  %v7336_v9 = vmul.f32 -1.442695, %v11806_v27 }
0x10fa   :  { %8670 = vmatprep.subr.bf16.mxu0 %v8669_v17  ;;  %v4904_v17 = vld [vmem:[%s12610_s2 + $0x110] sm:$0xff]  ;;  %v4921_v52 = vld [vmem:[%s12610_s2 + $0x198] sm:$0xff] }
0x10fb   :  { %v8687_v42 = vpack.c.bf16 %v4904_v17, %v4902_v35  ;;  %v4918_v35 = vld [vmem:[%s12610_s2 + $0x180] sm:$0xff]  ;;  %v4920_v17 = vld [vmem:[%s12610_s2 + $0x190] sm:$0xff]  ;;  %9404 = vpow2.f32 %v7336_v9  ;;  %v4925_v23 = vld [vmem:[%s12610_s2 + $0x1b8] sm:$0xff] }
0x10fd   :  { %8672 = vmatpush1.bf16.msra.mxu0 %v8671_v49  ;;  %v4906_v49 = vld [vmem:[%s12610_s2 + $0x120] sm:$0xff]  ;;  %v9397_v21 = vpop.eup %9396 }
0x10fe   :  { %8674 = vmatprep.subr.bf16.mxu0 %v8673_v40  ;;  %v4908_v40 = vld [vmem:[%s12610_s2 + $0x130] sm:$0xff]  ;;  %v4486_v1 = vadd.f32 1.0, %v9397_v21  ;;  %v9399_v63 = vpop.eup %9398 }
0x10ff   :  { %v8691_v47 = vpack.c.bf16 %v4908_v40, %v4906_v49  ;;  %v4487_v27 = vadd.f32 1.0, %v9399_v63  ;;  %v8705_v49 = vpack.c.bf16 %v4925_v23, %v4923_v26  ;;  %v4922_v40 = vld [vmem:[%s12610_s2 + $0x1a0] sm:$0xff] }
0x1100   :  { %9406 = vrcp.f32 %v4486_v1  ;;  %v7341_v1 = vmul.f32 -1.442695, %v11831_v37 }
0x1101   :  { %8676 = vmatpush1.bf16.msra.mxu0 %v8675_v57  ;;  %v4910_v57 = vld [vmem:[%s12610_s2 + $0x140] sm:$0xff]  ;;  %9408 = vpow2.f32 %v7337_v30 }
0x1102   :  { %8678 = vmatprep.subr.bf16.mxu0 %v8677_v6  ;;  %v4912_v6 = vld [vmem:[%s12610_s2 + $0x150] sm:$0xff]  ;;  %9410 = vrcp.f32 %v4487_v27 }
0x1103   :  { %v8695_v55 = vpack.c.bf16 %v4912_v6, %v4910_v57  ;;  %v8707_v57 = vpack.c.bf16 %v4924_v38, %v4922_v40  ;;  %9412 = vpow2.f32 %v7338_v10 }
0x1105   :  { %8680 = vmatpush1.bf16.msra.mxu0 %v8679_v0  ;;  %v8697_v0 = vpack.c.bf16 %v4917_v32, %v4915_v60  ;;  %v4928_v60 = vld [vmem:[%s12610_s2 + $0x1d0] sm:$0xff]  ;;  %v7339_v32 = vmul.f32 -1.442695, %v11821_v45 }
0x1106   :  { %8682 = vmatprep.subr.bf16.mxu0 %v8681_v41  ;;  %v4914_v41 = vld [vmem:[%s12610_s2 + $0x160] sm:$0xff] }
0x1109   :  { %8684 = vmatpush1.bf16.msra.mxu0 %v8683_v34  ;;  %v8699_v34 = vpack.c.bf16 %v4916_v8, %v4914_v41  ;;  %v7340_v41 = vmul.f32 -1.442695, %v11826_v5  ;;  %v7342_v5 = vmul.f32 -1.442695, %v11836_v56 }
0x110a   :  { %8686 = vmatprep.subr.bf16.mxu0 %v8685_v33  ;;  %v8701_v33 = vpack.c.bf16 %v4921_v52, %v4919_v4 }
0x110d   :  { %8688 = vmatpush1.bf16.msra.mxu0 %v8687_v42  ;;  %v9401_v42 = vpop.eup %9400 }
0x110e   :  { %8690 = vmatprep.subr.bf16.mxu0 %v8689_v12  ;;  %v8703_v12 = vpack.c.bf16 %v4920_v17, %v4918_v35  ;;  %v4488_v53 = vadd.f32 1.0, %v9401_v42 }
0x1110   :  { %9414 = vrcp.f32 %v4488_v53 }
0x1111   :  { %8692 = vmatpush1.bf16.msra.mxu0 %v8691_v47  ;;  %v4929_v47 = vld [vmem:[%s12610_s2 + $0x1d8] sm:$0xff]  ;;  %9416 = vpow2.f32 %v7339_v32 }
0x1112   :  { %8694 = vmatprep.subr.bf16.mxu0 %v8693_v25  ;;  %v9403_v25 = vpop.eup %9402  ;;  %v8709_v6 = vpack.c.bf16 %v4929_v47, %v4927_v19 }
0x1113   :  { %v4489_v21 = vadd.f32 1.0, %v9403_v25 }
0x1115   :  { %8696 = vmatpush1.bf16.msra.mxu0 %v8695_v55  ;;  %v9405_v55 = vpop.eup %9404  ;;  %9418 = vrcp.f32 %v4489_v21 }
0x1116   :  { %8698 = vmatprep.subr.bf16.mxu0 %v8697_v0  ;;  %v8711_v0 = vpack.c.bf16 %v4928_v60, %v4926_v29  ;;  %v9407_v39 = vpop.eup %9406  ;;  %v4490_v8 = vadd.f32 1.0, %v9405_v55  ;;  %9420 = vpow2.f32 %v7340_v41 }
0x1117   :  { %v9409_v9 = vpop.eup %9408  ;;  %v4614_v4 = vsub.f32 1.0, %v9407_v39 }
0x1118   :  { %v9411_v52 = vpop.eup %9410  ;;  %9422 = vrcp.f32 %v4490_v8  ;;  %v4491_v45 = vadd.f32 1.0, %v9409_v9 }
0x1119   :  { %8700 = vmatpush1.bf16.msra.mxu0 %v8699_v34  ;;  %v9413_v34 = vpop.eup %9412  ;;  %v4615_v17 = vsub.f32 1.0, %v9411_v52  ;;  %9424 = vpow2.f32 %v7341_v1 }
0x111a   :  { %8702 = vmatprep.subr.bf16.mxu0 %v8701_v33  ;;  %v4630_v33 = vmul.f32 %v4614_v4, %v11580_v59  ;;  %v9415_v30 = vpop.eup %9414  ;;  %9426 = vrcp.f32 %v4491_v45  ;;  %v4492_v23 = vadd.f32 1.0, %v9413_v34  ;;  %v7343_v59 = vmul.f32 -1.442695, %v11841_v7 }
0x111b   :  { %v9417_v42 = vpop.eup %9416  ;;  %v4631_v37 = vmul.f32 %v4615_v17, %v11586_v13  ;;  %9428 = vpow2.f32 %v7342_v5  ;;  %v7344_v13 = vmul.f32 -1.442695, %v11846_v48 }
0x111c   :  { %9430 = vrcp.f32 %v4492_v23  ;;  %v4493_v10 = vadd.f32 1.0, %v9417_v42 }
0x111d   :  { %8704 = vmatpush1.bf16.msra.mxu0 %v8703_v12  ;;  %9432 = vpow2.f32 %v7343_v59 }
0x111e   :  { %8706 = vmatprep.subr.bf16.mxu0 %v8705_v49  ;;  %v4616_v49 = vsub.f32 1.0, %v9415_v30  ;;  %9434 = vrcp.f32 %v4493_v10 }
0x111f   :  { %v9419_v40 = vpop.eup %9418  ;;  %9436 = vpow2.f32 %v7344_v13 }
0x1120   :  { %v9421_v56 = vpop.eup %9420  ;;  %v4632_v47 = vmul.f32 %v4616_v49, %v11594_v11  ;;  %v4617_v25 = vsub.f32 1.0, %v9419_v40 }
0x1121   :  { %8708 = vmatpush1.bf16.msra.mxu0 %v8707_v57  ;;  %v4494_v29 = vadd.f32 1.0, %v9421_v56 }
0x1122   :  { %8710 = vmatprep.subr.bf16.mxu0 %v8709_v6  ;;  %v9423_v57 = vpop.eup %9422  ;;  %v4633_v21 = vmul.f32 %v4617_v25, %v11604_v28  ;;  %v7346_v28 = vmul.f32 -1.442695, %v11865_v50 }
0x1123   :  { %v9425_v7 = vpop.eup %9424  ;;  %v4618_v55 = vsub.f32 1.0, %v9423_v57  ;;  %9438 = vrcp.f32 %v4494_v29 }
0x1124   :  { %v9427_v11 = vpop.eup %9426  ;;  %v4495_v41 = vadd.f32 1.0, %v9425_v7 }
0x1125   :  { %8712 = vmatpush1.bf16.msra.mxu0 %v8711_v0  ;;  %v7345_v0 = vmul.f32 -1.442695, %v11851_v2  ;;  %v9429_v48 = vpop.eup %9428  ;;  %v4634_v9 = vmul.f32 %v4618_v55, %v11610_v20 }
0x1126   :  { %v9431_v1 = vpop.eup %9430 }
0x1127   :  { %9440 = vpow2.f32 %v7345_v0  ;;  %v9433_v2 = vpop.eup %9432  ;;  %v4620_v17 = vsub.f32 1.0, %v9431_v1 }
0x1128   :  { %9442 = vrcp.f32 %v4495_v41  ;;  %v9435_v20 = vpop.eup %9434 }
0x1129   :  { %9444 = vpow2.f32 %v7346_v28  ;;  %v9437_v50 = vpop.eup %9436 }
0x112a   :  { %v4498_v49 = vadd.f32 1.0, %v9437_v50 }
0x112f   :  { %v4551_v63 = vpop.permute.xlu0 %4550 }
0x1130   :  { %v4598_v35 = vmul.f32 %v9407_v39, %v4551_v63  ;;  %v4496_v63 = vadd.f32 1.0, %v9429_v48 }
0x1132   :  { %v4646_v26 = vadd.f32 %v4630_v33, %v4598_v35  ;;  %9446 = vrcp.f32 %v4496_v63 }
0x1133   :  { %v4553_v27 = vpop.permute.xlu1 %4552 }
0x1134   :  { %v4599_v12 = vmul.f32 %v9411_v52, %v4553_v27  ;;  %7993 = vmatprep.mubr.msk.f32.mxu1 %vm612_vm2, %v4646_v26  ;;  %v4619_v52 = vsub.f32 1.0, %v9427_v11  ;;  %v4497_v26 = vadd.f32 1.0, %v9433_v2  ;;  %v4636_v27 = vmul.f32 %v4620_v17, %v11622_v44 }
0x1136   :  { %v4647_v38 = vadd.f32 %v4631_v37, %v4599_v12  ;;  %v4635_v35 = vmul.f32 %v4619_v52, %v11616_v22  ;;  %v4621_v12 = vsub.f32 1.0, %v9435_v20  ;;  %v9439_v37 = vpop.eup %9438 }
0x1137   :  { %v4555_v19 = vpop.permute.xlu0 %4554  ;;  %v9441_v59 = vpop.eup %9440  ;;  %v4622_v10 = vsub.f32 1.0, %v9439_v37 }
0x1138   :  { %v4600_v53 = vmul.f32 %v9415_v30, %v4555_v19  ;;  %7994 = vmatmul.mubr.msk.f32.vlgmr.msra.gmra.mrb[76].mxu1 %vm612_vm2, %v4647_v38  ;;  %v7347_v30 = vmul.f32 -1.442695, %v11875_v46  ;;  %v4637_v46 = vmul.f32 %v4621_v12, %v11628_v24  ;;  %v9443_v19 = vpop.eup %9442  ;;  %v4499_v44 = vadd.f32 1.0, %v9441_v59 }
0x1139   :  { %v4638_v25 = vmul.f32 %v4622_v10, %v11634_v18  ;;  %v4623_v13 = vsub.f32 1.0, %v9443_v19 }
0x113a   :  { %v4648_v6 = vadd.f32 %v4632_v47, %v4600_v53  ;;  %9448 = vpow2.f32 %v7347_v30  ;;  %v9445_v53 = vpop.eup %9444 }
0x113b   :  { %v4557_v60 = vpop.permute.xlu1 %4556  ;;  %9450 = vrcp.f32 %v4497_v26 }
0x113c   :  { %v4601_v32 = vmul.f32 %v9419_v40, %v4557_v60  ;;  %7996 = vmatprep.mubr.msk.f32.mxu1 %vm612_vm2, %v4648_v6  ;;  %9452 = vrcp.f32 %v4498_v49  ;;  %v9447_v6 = vpop.eup %9446  ;;  %v4500_v60 = vadd.f32 1.0, %v9445_v53 }
0x113d   :  { %9454 = vrcp.f32 %v4499_v44  ;;  %v4624_v55 = vsub.f32 1.0, %v9447_v6  ;;  %v11980_v44 = vld [vmem:[%s12611_s7] ss:$0 sm:$0xff] }
0x113e   :  { %v4649_v39 = vadd.f32 %v4633_v21, %v4601_v32  ;;  %v4639_v21 = vmul.f32 %v4623_v13, %v11640_v62  ;;  %9456 = vrcp.f32 %v4500_v60  ;;  %v4941_v60 = vld [vmem:[%s12610_s2 + $0x238] sm:$0xff] }
0x113f   :  { %v4559_v8 = vpop.permute.xlu0 %4558  ;;  %v4640_v41 = vmul.f32 %v4624_v55, %v11646_v3  ;;  %v5604_v55 = vld [vmem:[#allocation17] sm:$0xff] }
0x1140   :  { %v4602_v4 = vmul.f32 %v9423_v57, %v4559_v8  ;;  %7997 = vmatmul.mubr.msk.f32.gmra.mrb[78].mxu1 %vm612_vm2, %v4649_v39 }
0x1142   :  { %v4650_v45 = vadd.f32 %v4634_v9, %v4602_v4 }
0x1143   :  { %v4561_v34 = vpop.permute.xlu1 %4560 }
0x1144   :  { %v4603_v33 = vmul.f32 %v9427_v11, %v4561_v34  ;;  %7999 = vmatprep.mubr.msk.f32.mxu1 %vm612_vm2, %v4650_v45  ;;  %v9449_v7 = vpop.eup %9448 }
0x1145   :  { %v9451_v11 = vpop.eup %9450  ;;  %v4501_v18 = vadd.f32 1.0, %v9449_v7  ;;  %v4940_v7 = vld [vmem:[%s12610_s2 + $0x230] sm:$0xff] }
0x1146   :  { %v4651_v5 = vadd.f32 %v4635_v35, %v4603_v33  ;;  %v4625_v48 = vsub.f32 1.0, %v9451_v11  ;;  %v9453_v9 = vpop.eup %9452 }
0x1147   :  { %v4563_v23 = vpop.permute.xlu0 %4562  ;;  %9458 = vrcp.f32 %v4501_v18  ;;  %v4626_v28 = vsub.f32 1.0, %v9453_v9  ;;  %v9455_v45 = vpop.eup %9454 }
0x1148   :  { %v4604_v42 = vmul.f32 %v9431_v1, %v4563_v23  ;;  %8000 = vmatmul.mubr.msk.f32.gmra.mrb[80].mxu1 %vm612_vm2, %v4651_v5  ;;  %v4641_v62 = vmul.f32 %v4625_v48, %v11652_v51  ;;  %v4627_v33 = vsub.f32 1.0, %v9455_v45  ;;  %v9457_v35 = vpop.eup %9456 }
0x1149   :  { %v4642_v2 = vmul.f32 %v4626_v28, %v11658_v36  ;;  %v4628_v51 = vsub.f32 1.0, %v9457_v35 }
0x114a   :  { %v4652_v22 = vadd.f32 %v4636_v27, %v4604_v42  ;;  %v4643_v5 = vmul.f32 %v4627_v33, %v11664_v31 }
0x114b   :  { %v4565_v40 = vpop.permute.xlu1 %4564  ;;  %v4644_v27 = vmul.f32 %v4628_v51, %v11670_v14  ;;  %v4933_v14 = vld [vmem:[%s12610_s2 + $0x1f8] sm:$0xff]  ;;  %v4942_v51 = vld [vmem:[%s12610_s2 + $0x240] sm:$0xff] }
0x114c   :  { %v4605_v38 = vmul.f32 %v9435_v20, %v4565_v40  ;;  %8002 = vmatprep.mubr.msk.f32.mxu1 %vm612_vm2, %v4652_v22  ;;  %v4931_v40 = vld [vmem:[%s12610_s2 + $0x1e8] sm:$0xff] }
0x114d   :  { %v8713_v59 = vpack.c.bf16 %v4933_v14, %v4931_v40  ;;  %v5616_v14 = vld [vmem:[#allocation17 + $0x60] sm:$0xff] }
0x114e   :  { %v4653_v56 = vadd.f32 %v4637_v46, %v4605_v38  ;;  %v4930_v38 = vld [vmem:[%s12610_s2 + $0x1e0] sm:$0xff]  ;;  %v4932_v46 = vld [vmem:[%s12610_s2 + $0x1f0] sm:$0xff] }
0x114f   :  { %v4567_v47 = vpop.permute.xlu0 %4566  ;;  %v8715_v10 = vpack.c.bf16 %v4932_v46, %v4930_v38  ;;  %8714 = vmatprep.subr.bf16.mxu0 %v8713_v59  ;;  %v5618_v59 = vld [vmem:[#allocation17 + $0x70] sm:$0xff] }
0x1150   :  { %v4606_v57 = vmul.f32 %v9439_v37, %v4567_v47  ;;  %8003 = vmatmul.mubr.msk.f32.gmra.mrb[82].mxu1 %vm612_vm2, %v4653_v56  ;;  %v4946_v46 = vld [vmem:[%s12610_s2 + $0x260] sm:$0xff] }
0x1151   :  { %v9459_v26 = vpop.eup %9458  ;;  %8716 = vmatpush1.bf16.msra.mxu0 %v8715_v10  ;;  %v4948_v10 = vld [vmem:[%s12610_s2 + $0x270] sm:$0xff] }
0x1152   :  { %v4654_v29 = vadd.f32 %v4638_v25, %v4606_v57  ;;  %v4629_v42 = vsub.f32 1.0, %v9459_v26  ;;  %v4934_v25 = vld [vmem:[%s12610_s2 + $0x200] sm:$0xff]  ;;  %v4936_v57 = vld [vmem:[%s12610_s2 + $0x210] sm:$0xff] }
0x1153   :  { %v4569_v24 = vpop.permute.xlu1 %4568 }
0x1154   :  { %v4607_v32 = vmul.f32 %v9443_v19, %v4569_v24  ;;  %8005 = vmatprep.mubr.msk.f32.mxu1 %vm612_vm2, %v4654_v29  ;;  %v4645_v22 = vmul.f32 %v4629_v42, %v11676_v54  ;;  %v4935_v54 = vld [vmem:[%s12610_s2 + $0x208] sm:$0xff]  ;;  %v4937_v19 = vld [vmem:[%s12610_s2 + $0x218] sm:$0xff]  ;;  %v4938_v24 = vld [vmem:[%s12610_s2 + $0x220] sm:$0xff] }
0x1155   :  { %v8717_v56 = vpack.c.bf16 %v4937_v19, %v4935_v54  ;;  %v4939_v29 = vld [vmem:[%s12610_s2 + $0x228] sm:$0xff] }
0x1156   :  { %v4655_v0 = vadd.f32 %v4639_v21, %v4607_v32  ;;  %v5605_v32 = vld [vmem:[#allocation17 + $0x8] sm:$0xff]  ;;  %v5607_v21 = vld [vmem:[#allocation17 + $0x18] sm:$0xff]  ;;  %v8721_v48 = vpack.c.bf16 %v4941_v60, %v4939_v29  ;;  %v8763_v29 = vpack.c.bf16 %v5618_v59, %v5616_v14 }
0x1157   :  { %v4571_v39 = vpop.permute.xlu0 %4570  ;;  %8718 = vmatprep.subr.bf16.mxu0 %v8717_v56  ;;  %v8749_v18 = vpack.c.bf16 %v5607_v21, %v5605_v32  ;;  %v4951_v54 = vld [vmem:[%s12610_s2 + $0x288] sm:$0xff]  ;;  %v5622_v32 = vld [vmem:[#allocation17 + $0x90] sm:$0xff] }
0x1158   :  { %v4608_v8 = vmul.f32 %v9447_v6, %v4571_v39  ;;  %8006 = vmatmul.mubr.msk.f32.gmra.mrb[84].mxu1 %vm612_vm2, %v4655_v0  ;;  %v8719_v0 = vpack.c.bf16 %v4936_v57, %v4934_v25  ;;  %v5606_v39 = vld [vmem:[#allocation17 + $0x10] sm:$0xff]  ;;  %v5621_v25 = vld [vmem:[#allocation17 + $0x88] sm:$0xff]  ;;  %v5623_v57 = vld [vmem:[#allocation17 + $0x98] sm:$0xff] }
0x1159   :  { %8750 = vmatprep.subr.bf16.mxu1 %v8749_v18  ;;  %v4955_v18 = vld [vmem:[%s12610_s2 + $0x2a8] sm:$0xff] }
0x115a   :  { %v4656_v4 = vadd.f32 %v4640_v41, %v4608_v8  ;;  %v5609_v41 = vld [vmem:[#allocation17 + $0x28] sm:$0xff]  ;;  %v5611_v8 = vld [vmem:[#allocation17 + $0x38] sm:$0xff] }
0x115b   :  { %v4573_v52 = vpop.permute.xlu1 %4572 }
0x115c   :  { %v4609_v1 = vmul.f32 %v9451_v11, %v4573_v52  ;;  %8008 = vmatprep.mubr.msk.f32.mxu1 %vm612_vm2, %v4656_v4  ;;  %v8751_v4 = vpack.c.bf16 %v5606_v39, %v5604_v55  ;;  %v8753_v52 = vpack.c.bf16 %v5611_v8, %v5609_v41  ;;  %v8765_v39 = vpack.c.bf16 %v5623_v57, %v5621_v25  ;;  %v4964_v25 = vld [vmem:[%s12610_s2 + $0x2f0] sm:$0xff] }
0x115e   :  { %v4657_v63 = vadd.f32 %v4641_v62, %v4609_v1  ;;  %v5608_v1 = vld [vmem:[#allocation17 + $0x20] sm:$0xff]  ;;  %v5610_v62 = vld [vmem:[#allocation17 + $0x30] sm:$0xff]  ;;  %8752 = vmatpush1.bf16.msra.mxu1 %v8751_v4  ;;  %v5625_v4 = vld [vmem:[#allocation17 + $0xa8] sm:$0xff] }
0x115f   :  { %v4575_v34 = vpop.permute.xlu0 %4574  ;;  %8754 = vmatprep.subr.bf16.mxu1 %v8753_v52  ;;  %v5627_v52 = vld [vmem:[#allocation17 + $0xb8] sm:$0xff] }
0x1160   :  { %v4610_v3 = vmul.f32 %v9453_v9, %v4575_v34  ;;  %8009 = vmatmul.mubr.msk.f32.gmra.mrb[86].mxu1 %vm612_vm2, %v4657_v63  ;;  %v4943_v9 = vld [vmem:[%s12610_s2 + $0x248] sm:$0xff]  ;;  %v4945_v63 = vld [vmem:[%s12610_s2 + $0x258] sm:$0xff] }
0x1161   :  { %v5613_v34 = vld [vmem:[#allocation17 + $0x48] sm:$0xff] }
0x1162   :  { %v4658_v17 = vadd.f32 %v4642_v2, %v4610_v3  ;;  %v5615_v2 = vld [vmem:[#allocation17 + $0x58] sm:$0xff]  ;;  %v8755_v3 = vpack.c.bf16 %v5610_v62, %v5608_v1 }
0x1163   :  { %v4577_v20 = vpop.permute.xlu1 %4576 }
0x1164   :  { %v4611_v30 = vmul.f32 %v9455_v45, %v4577_v20  ;;  %8011 = vmatprep.mubr.msk.f32.mxu1 %vm612_vm2, %v4658_v17  ;;  %v5612_v17 = vld [vmem:[#allocation17 + $0x40] sm:$0xff]  ;;  %v5614_v20 = vld [vmem:[#allocation17 + $0x50] sm:$0xff]  ;;  %8756 = vmatpush1.bf16.msra.mxu1 %v8755_v3 }
0x1165   :  { %v4956_v3 = vld [vmem:[%s12610_s2 + $0x2b0] sm:$0xff] }
0x1166   :  { %v4659_v23 = vadd.f32 %v4643_v5, %v4611_v30  ;;  %v8725_v5 = vpack.c.bf16 %v4945_v63, %v4943_v9  ;;  %v4957_v9 = vld [vmem:[%s12610_s2 + $0x2b8] sm:$0xff]  ;;  %v5626_v63 = vld [vmem:[#allocation17 + $0xb0] sm:$0xff] }
0x1167   :  { %v4579_v50 = vpop.permute.xlu0 %4578 }
0x1168   :  { %v4612_v36 = vmul.f32 %v9457_v35, %v4579_v50  ;;  %8012 = vmatmul.mubr.msk.f32.gmra.mrb[88].mxu1 %vm612_vm2, %v4659_v23  ;;  %v8723_v35 = vpack.c.bf16 %v4940_v7, %v4938_v24  ;;  %v4947_v23 = vld [vmem:[%s12610_s2 + $0x268] sm:$0xff]  ;;  %v8757_v50 = vpack.c.bf16 %v5615_v2, %v5613_v34  ;;  %v8731_v24 = vpack.c.bf16 %v4948_v10, %v4946_v46  ;;  %v5620_v7 = vld [vmem:[#allocation17 + $0x80] sm:$0xff]  ;;  %v4954_v2 = vld [vmem:[%s12610_s2 + $0x2a0] sm:$0xff] }
0x1169   :  { %v8767_v1 = vpack.c.bf16 %v5622_v32, %v5620_v7  ;;  %v8737_v34 = vpack.c.bf16 %v4957_v9, %v4955_v18  ;;  %v4963_v46 = vld [vmem:[%s12610_s2 + $0x2e8] sm:$0xff]  ;;  %v4965_v10 = vld [vmem:[%s12610_s2 + $0x2f8] sm:$0xff] }
0x116a   :  { %v4660_v12 = vadd.f32 %v4644_v27, %v4612_v36  ;;  %8758 = vmatprep.subr.bf16.mxu1 %v8757_v50  ;;  %v8739_v50 = vpack.c.bf16 %v4956_v3, %v4954_v2 }
0x116b   :  { %v4581_v31 = vpop.permute.xlu1 %4580 }
0x116c   :  { %v4613_v37 = vmul.f32 %v9459_v26, %v4581_v31  ;;  %8014 = vmatprep.mubr.msk.f32.mxu1 %vm612_vm2, %v4660_v12  ;;  %v4944_v26 = vld [vmem:[%s12610_s2 + $0x250] sm:$0xff]  ;;  %v4949_v12 = vld [vmem:[%s12610_s2 + $0x278] sm:$0xff] }
0x116d   :  { %v5617_v31 = vld [vmem:[#allocation17 + $0x68] sm:$0xff]  ;;  %v8727_v40 = vpack.c.bf16 %v4944_v26, %v4942_v51  ;;  %v8729_v38 = vpack.c.bf16 %v4949_v12, %v4947_v23  ;;  %v5631_v51 = vld [vmem:[#allocation17 + $0xd8] sm:$0xff]  ;;  %v5630_v12 = vld [vmem:[#allocation17 + $0xd0] sm:$0xff] }
0x116e   :  { %v4661_v49 = vadd.f32 %v4645_v22, %v4613_v37  ;;  %v5619_v37 = vld [vmem:[#allocation17 + $0x78] sm:$0xff]  ;;  %v8759_v22 = vpack.c.bf16 %v5614_v20, %v5612_v17 }
0x116f   :  { %v8761_v19 = vpack.c.bf16 %v5619_v37, %v5617_v31 }
0x1170   :  { %8015 = vmatmul.mubr.msk.f32.gmra.mrb[90].mxu1 %vm612_vm2, %v4661_v49 }
0x1171   :  { %8760 = vmatpush1.bf16.msra.mxu1 %v8759_v22  ;;  %v4958_v22 = vld [vmem:[%s12610_s2 + $0x2c0] sm:$0xff] }
0x1172   :  { %8762 = vmatprep.subr.bf16.mxu1 %v8761_v19 }
0x1175   :  { %8764 = vmatpush1.bf16.msra.mxu1 %v8763_v29 }
0x1176   :  { %8766 = vmatprep.subr.bf16.mxu1 %v8765_v39 }
0x1179   :  { %8768 = vmatpush1.bf16.msra.mxu1 %v8767_v1 }
0x120b   :  { %v7995_v47 = vpop.f32.mrb[76].mxu1 }
0x120c   :  { %v4791_v53 = vpop.f32.mrb[77].mxu1  ;;  %v11985_v13 = vadd.f32 %v7995_v47, %v11980_v44 }
0x120d   :  { %v11988_v6 = vadd.f32 %v11980_v44, %v4791_v53  ;;  %v4953_v53 = vld [vmem:[%s12610_s2 + $0x298] sm:$0xff] }
0x120e   :  { %v4984_v45 = vrot.slane %v11985_v13, 7  ;;  %v8733_v55 = vpack.c.bf16 %v4953_v53, %v4951_v54  ;;  %v4962_v53 = vld [vmem:[%s12610_s2 + $0x2e0] sm:$0xff] }
0x120f   :  { %v4983_v11 = vrot.slane %v11988_v6, 7  ;;  %5186 = vmatprep.mubr.f32.mxu0 %v11988_v6 }
0x1211   :  { %v5030_v28 = vsel %vm542_vm3, 0.0, %v4983_v11  ;;  %v4985_v42 = vsel %vm542_vm3, %v4983_v11, %v4984_v45  ;;  %v4950_v11 = vld [vmem:[%s12610_s2 + $0x280] sm:$0xff] }
0x1212   :  { %7365 = vmatmul.mubr.msk.f32.vlgmr.msra.gmra.mrb[88].mxu0 %vm11331_vm11, %v5030_v28 }
0x1213   :  { %8720 = vmatpush1.bf16.msra.mxu0 %v8719_v0  ;;  %v7998_v33 = vpop.f32.mrb[78].mxu1  ;;  %5192 = vmatprep.mubr.f32.mxu0 %v11985_v13  ;;  %v4952_v0 = vld [vmem:[%s12610_s2 + $0x290] sm:$0xff] }
0x1214   :  { %v4801_v30 = vpop.f32.mrb[79].mxu1  ;;  %8722 = vmatprep.subr.bf16.mxu0 %v8721_v48  ;;  %v12007_v36 = vadd.f32 %v7998_v33, %v11980_v44  ;;  %v8735_v28 = vpack.c.bf16 %v4952_v0, %v4950_v11  ;;  %v4959_v33 = vld [vmem:[%s12610_s2 + $0x2c8] sm:$0xff] }
0x1215   :  { %v12010_v27 = vadd.f32 %v11980_v44, %v4801_v30  ;;  %v4961_v30 = vld [vmem:[%s12610_s2 + $0x2d8] sm:$0xff] }
0x1216   :  { %5193 = vmatmul.mubr.f32.gmra.mrb[90].mxu0 %v4985_v42  ;;  %v4988_v47 = vrot.slane %v12007_v36, 7  ;;  %v5628_v42 = vld [vmem:[#allocation17 + $0xc0] sm:$0xff]  ;;  %v8741_v37 = vpack.c.bf16 %v4961_v30, %v4959_v33 }
0x1217   :  { %5198 = vmatprep.mubr.f32.mxu0 %v12010_v27  ;;  %v4986_v49 = vrot.slane %v12010_v27, 7  ;;  %8724 = vmatpush1.bf16.msra.mxu0 %v8723_v35  ;;  %v8769_v35 = vpack.c.bf16 %v5627_v52, %v5625_v4  ;;  %v8775_v54 = vpack.c.bf16 %v5630_v12, %v5628_v42  ;;  %v5048_v12 = vrot.slane %v11985_v13, 1 }
0x1218   :  { %8726 = vmatprep.subr.bf16.mxu0 %v8725_v5  ;;  %v5629_v5 = vld [vmem:[#allocation17 + $0xc8] sm:$0xff] }
0x1219   :  { %v4987_v56 = vsel %vm542_vm3, %v4984_v45, %v4986_v49  ;;  %v4989_v48 = vsel %vm542_vm3, %v4986_v49, %v4988_v47  ;;  %v5624_v45 = vld [vmem:[#allocation17 + $0xa0] sm:$0xff]  ;;  %8770 = vmatprep.subr.bf16.mxu1 %v8769_v35 }
0x121a   :  { %5199 = vmatmul.mubr.f32.gmra.mrb[92].mxu0 %v4987_v56  ;;  %v8771_v26 = vpack.c.bf16 %v5626_v63, %v5624_v45  ;;  %v4960_v49 = vld [vmem:[%s12610_s2 + $0x2d0] sm:$0xff] }
0x121b   :  { %v8001_v60 = vpop.f32.mrb[80].mxu1  ;;  %5204 = vmatprep.mubr.f32.mxu0 %v12007_v36  ;;  %8728 = vmatpush1.bf16.msra.mxu0 %v8727_v40  ;;  %v8773_v40 = vpack.c.bf16 %v5631_v51, %v5629_v5  ;;  %v8743_v56 = vpack.c.bf16 %v4960_v49, %v4958_v22  ;;  %v5050_v49 = vrot.slane %v12010_v27, 1 }
0x121c   :  { %v4811_v21 = vpop.f32.mrb[81].mxu1  ;;  %8730 = vmatprep.subr.bf16.mxu0 %v8729_v38  ;;  %v12027_v41 = vadd.f32 %v8001_v60, %v11980_v44  ;;  %8772 = vmatpush1.bf16.msra.mxu1 %v8771_v26 }
0x121d   :  { %v12030_v8 = vadd.f32 %v11980_v44, %v4811_v21  ;;  %8774 = vmatprep.subr.bf16.mxu1 %v8773_v40  ;;  %v5051_v40 = vsel %vm571_vm1, %v5048_v12, %v5050_v49 }
0x121e   :  { %5205 = vmatmul.mubr.f32.gmra.mrb[94].mxu0 %v4989_v48  ;;  %v4992_v20 = vrot.slane %v12027_v41, 7 }
0x121f   :  { %5210 = vmatprep.mubr.f32.mxu0 %v12030_v8  ;;  %v4990_v62 = vrot.slane %v12030_v8, 7  ;;  %8732 = vmatpush1.bf16.msra.mxu0 %v8731_v24  ;;  %v8747_v24 = vpack.c.bf16 %v4964_v25, %v4962_v53 }
0x1220   :  { %8734 = vmatprep.subr.bf16.mxu0 %v8733_v55  ;;  %8776 = vmatpush1.bf16.msra.mxu1 %v8775_v54 }
0x1221   :  { %v4991_v17 = vsel %vm542_vm3, %v4988_v47, %v4990_v62  ;;  %v4993_v38 = vsel %vm542_vm3, %v4990_v62, %v4992_v20  ;;  %v8745_v47 = vpack.c.bf16 %v4965_v10, %v4963_v46  ;;  %v5054_v10 = vrot.slane %v12030_v8, 1 }
0x1222   :  { %5211 = vmatmul.mubr.f32.gmra.mrb[96].mxu0 %v4991_v17 }
0x1223   :  { %v8004_v23 = vpop.f32.mrb[82].mxu1  ;;  %5216 = vmatprep.mubr.f32.mxu0 %v12027_v41  ;;  %8736 = vmatpush1.bf16.msra.mxu0 %v8735_v28 }
0x1224   :  { %v4821_v31 = vpop.f32.mrb[83].mxu1  ;;  %8738 = vmatprep.subr.bf16.mxu0 %v8737_v34  ;;  %v12046_v14 = vadd.f32 %v8004_v23, %v11980_v44 }
0x1225   :  { %v12049_v59 = vadd.f32 %v11980_v44, %v4821_v31  ;;  %v5047_v31 = vrot.slane %v11988_v6, 1 }
0x1226   :  { %5217 = vmatmul.mubr.f32.gmra.mrb[98].mxu0 %v4993_v38  ;;  %v4996_v29 = vrot.slane %v12046_v14, 7  ;;  %v5052_v38 = vrot.slane %v12007_v36, 1  ;;  %v5060_v25 = vrot.slane %v12046_v14, 1 }
0x1227   :  { %5222 = vmatprep.mubr.f32.mxu0 %v12049_v59  ;;  %v4994_v19 = vrot.slane %v12049_v59, 7  ;;  %8740 = vmatpush1.bf16.msra.mxu0 %v8739_v50  ;;  %v5049_v22 = vsel %vm571_vm1, %v5047_v31, %v5048_v12  ;;  %v5636_v12 = vld [vmem:[#allocation17 + $0x100] sm:$0xff]  ;;  %v5638_v31 = vld [vmem:[#allocation17 + $0x110] sm:$0xff] }
0x1228   :  { %8742 = vmatprep.subr.bf16.mxu0 %v8741_v37  ;;  %v10057_v37 = vmov 0.0   ;;  %v5053_v46 = vsel %vm571_vm1, %v5050_v49, %v5052_v38  ;;  %v5055_v54 = vsel %vm571_vm1, %v5052_v38, %v5054_v10  ;;  %v5643_v49 = vld [vmem:[#allocation17 + $0x138] sm:$0xff]  ;;  %v5640_v38 = vld [vmem:[#allocation17 + $0x120] sm:$0xff] }
0x1229   :  { %v4995_v57 = vsel %vm542_vm3, %v4992_v20, %v4994_v19  ;;  %v4997_v55 = vsel %vm542_vm3, %v4994_v19, %v4996_v29  ;;  %v5056_v19 = vrot.slane %v12027_v41, 1 }
0x122a   :  { %5223 = vmatmul.mubr.f32.gmra.mrb[100].mxu0 %v4995_v57 }
0x122b   :  { %v8007_v60 = vpop.f32.mrb[84].mxu1  ;;  %5228 = vmatprep.mubr.f32.mxu0 %v12046_v14  ;;  %8744 = vmatpush1.bf16.msra.mxu0 %v8743_v56  ;;  %v5057_v56 = vsel %vm571_vm1, %v5054_v10, %v5056_v19 }
0x122c   :  { %v4831_v7 = vpop.f32.mrb[85].mxu1  ;;  %8746 = vmatprep.subr.bf16.mxu0 %v8745_v47  ;;  %v12062_v32 = vadd.f32 %v8007_v60, %v11980_v44  ;;  %v5058_v47 = vrot.slane %v12049_v59, 1 }
0x122d   :  { %v12065_v21 = vadd.f32 %v11980_v44, %v4831_v7 }
0x122e   :  { %5229 = vmatmul.mubr.f32.gmra.mrb[102].mxu0 %v4997_v55  ;;  %v5000_v18 = vrot.slane %v12062_v32, 7  ;;  %v5059_v53 = vsel %vm571_vm1, %v5056_v19, %v5058_v47  ;;  %v5061_v57 = vsel %vm571_vm1, %v5058_v47, %v5060_v25  ;;  %v5647_v19 = vld [vmem:[#allocation17 + $0x158] sm:$0xff]  ;;  %v5644_v47 = vld [vmem:[#allocation17 + $0x140] sm:$0xff] }
0x122f   :  { %5234 = vmatprep.mubr.f32.mxu0 %v12065_v21  ;;  %v4998_v11 = vrot.slane %v12065_v21, 7  ;;  %8748 = vmatpush1.bf16.msra.mxu0 %v8747_v24  ;;  %v5064_v24 = vrot.slane %v12062_v32, 1 }
0x1231   :  { %v4999_v0 = vsel %vm542_vm3, %v4996_v29, %v4998_v11  ;;  %v5001_v52 = vsel %vm542_vm3, %v4998_v11, %v5000_v18  ;;  %v5062_v29 = vrot.slane %v12065_v21, 1 }
0x1232   :  { %7366 = vmatmul.mubr.msk.f32.gmra.mrb[104].mxu0 %vm11384_vm13, %v4999_v0 }
0x1233   :  { %v8010_v39 = vpop.f32.mrb[86].mxu1  ;;  %5240 = vmatprep.mubr.f32.mxu0 %v12062_v32  ;;  %v5063_v60 = vsel %vm571_vm1, %v5060_v25, %v5062_v29  ;;  %v5065_v7 = vsel %vm571_vm1, %v5062_v29, %v5064_v24  ;;  %v5651_v29 = vld [vmem:[#allocation17 + $0x178] sm:$0xff] }
0x1234   :  { %v4841_v48 = vpop.f32.mrb[87].mxu1  ;;  %v12076_v9 = vadd.f32 %v8010_v39, %v11980_v44 }
0x1235   :  { %v12079_v4 = vadd.f32 %v11980_v44, %v4841_v48 }
0x1236   :  { %5241 = vmatmul.mubr.f32.gmra.mrb[106].mxu0 %v5001_v52  ;;  %v5004_v28 = vrot.slane %v12076_v9, 7  ;;  %v5068_v0 = vrot.slane %v12076_v9, 1 }
0x1237   :  { %5246 = vmatprep.mubr.f32.mxu0 %v12079_v4  ;;  %v5002_v1 = vrot.slane %v12079_v4, 7  ;;  %v5066_v55 = vrot.slane %v12079_v4, 1 }
0x1239   :  { %v5003_v62 = vsel %vm542_vm3, %v5000_v18, %v5002_v1  ;;  %v5005_v3 = vsel %vm542_vm3, %v5002_v1, %v5004_v28  ;;  %v5067_v11 = vsel %vm571_vm1, %v5064_v24, %v5066_v55  ;;  %v5069_v18 = vsel %vm571_vm1, %v5066_v55, %v5068_v0  ;;  %v5648_v24 = vld [vmem:[#allocation17 + $0x160] sm:$0xff] }
0x123a   :  { %5247 = vmatmul.mubr.f32.gmra.mrb[108].mxu0 %v5003_v62 }
0x123b   :  { %v8013_v45 = vpop.f32.mrb[88].mxu1  ;;  %5252 = vmatprep.mubr.f32.mxu0 %v12076_v9 }
0x123c   :  { %v4851_v63 = vpop.f32.mrb[89].mxu1  ;;  %v12088_v34 = vadd.f32 %v8013_v45, %v11980_v44 }
0x123d   :  { %v12091_v2 = vadd.f32 %v11980_v44, %v4851_v63 }
0x123e   :  { %5253 = vmatmul.mubr.f32.gmra.mrb[110].mxu0 %v5005_v3  ;;  %v5008_v17 = vrot.slane %v12088_v34, 7  ;;  %v5072_v52 = vrot.slane %v12088_v34, 1 }
0x123f   :  { %5258 = vmatprep.mubr.f32.mxu0 %v12091_v2  ;;  %v5006_v33 = vrot.slane %v12091_v2, 7  ;;  %v5070_v39 = vrot.slane %v12091_v2, 1 }
0x1241   :  { %v5007_v35 = vsel %vm542_vm3, %v5004_v28, %v5006_v33  ;;  %v5009_v26 = vsel %vm542_vm3, %v5006_v33, %v5008_v17  ;;  %v5071_v48 = vsel %vm571_vm1, %v5068_v0, %v5070_v39  ;;  %v5073_v1 = vsel %vm571_vm1, %v5070_v39, %v5072_v52  ;;  %v5633_v33 = vld [vmem:[#allocation17 + $0xe8] sm:$0xff]  ;;  %v5655_v0 = vld [vmem:[#allocation17 + $0x198] sm:$0xff]  ;;  %v5652_v39 = vld [vmem:[#allocation17 + $0x180] sm:$0xff] }
0x1242   :  { %5259 = vmatmul.mubr.f32.gmra.mrb[112].mxu0 %v5007_v35  ;;  %v5635_v35 = vld [vmem:[#allocation17 + $0xf8] sm:$0xff] }
0x1243   :  { %v8016_v20 = vpop.f32.mrb[90].mxu1  ;;  %5264 = vmatprep.mubr.f32.mxu0 %v12088_v34 }
0x1244   :  { %v4861_v30 = vpop.f32.mrb[91].mxu1  ;;  %v12100_v5 = vadd.f32 %v8016_v20, %v11980_v44  ;;  %v5632_v20 = vld [vmem:[#allocation17 + $0xe0] sm:$0xff] }
0x1245   :  { %v12103_v51 = vadd.f32 %v11980_v44, %v4861_v30  ;;  %v5634_v30 = vld [vmem:[#allocation17 + $0xf0] sm:$0xff] }
0x1246   :  { %5265 = vmatmul.mubr.f32.gmra.mrb[114].mxu0 %v5009_v26  ;;  %v5012_v42 = vrot.slane %v12100_v5, 7  ;;  %v5076_v45 = vrot.slane %v12100_v5, 1  ;;  %v8779_v26 = vpack.c.bf16 %v5634_v30, %v5632_v20  ;;  %v5660_v20 = vld [vmem:[#allocation17 + $0x1c0] sm:$0xff]  ;;  %v5662_v30 = vld [vmem:[#allocation17 + $0x1d0] sm:$0xff] }
0x1247   :  { %5270 = vmatprep.mubr.f32.mxu0 %v12103_v51  ;;  %v5010_v23 = vrot.slane %v12103_v51, 7  ;;  %v5074_v62 = vrot.slane %v12103_v51, 1 }
0x1248   :  { %v5094_v3 = vsel %vm571_vm1, %v5076_v45, 0.0 }
0x1249   :  { %v5011_v50 = vsel %vm542_vm3, %v5008_v17, %v5010_v23  ;;  %v5013_v44 = vsel %vm542_vm3, %v5010_v23, %v5012_v42  ;;  %v5075_v28 = vsel %vm571_vm1, %v5072_v52, %v5074_v62  ;;  %v5077_v63 = vsel %vm571_vm1, %v5074_v62, %v5076_v45  ;;  %v5637_v23 = vld [vmem:[#allocation17 + $0x108] sm:$0xff]  ;;  %v5659_v62 = vld [vmem:[#allocation17 + $0x1b8] sm:$0xff]  ;;  %v5656_v45 = vld [vmem:[#allocation17 + $0x1a0] sm:$0xff] }
0x124a   :  { %5271 = vmatmul.mubr.f32.gmra.mrb[116].mxu0 %v5011_v50  ;;  %v8777_v17 = vpack.c.bf16 %v5635_v35, %v5633_v33  ;;  %v5639_v50 = vld [vmem:[#allocation17 + $0x118] sm:$0xff]  ;;  %v5661_v33 = vld [vmem:[#allocation17 + $0x1c8] sm:$0xff] }
0x124b   :  { %5276 = vmatprep.mubr.f32.mxu0 %v12100_v5  ;;  %v8781_v42 = vpack.c.bf16 %v5639_v50, %v5637_v23  ;;  %v5663_v35 = vld [vmem:[#allocation17 + $0x1d8] sm:$0xff]  ;;  %v5665_v23 = vld [vmem:[#allocation17 + $0x1e8] sm:$0xff] }
0x124c   :  { %8778 = vmatprep.subr.bf16.mxu1 %v8777_v17  ;;  %v8805_v17 = vpack.c.bf16 %v5663_v35, %v5661_v33  ;;  %v5667_v50 = vld [vmem:[#allocation17 + $0x1f8] sm:$0xff] }
0x124d   :  { %8780 = vmatpush1.bf16.msra.mxu1 %v8779_v26  ;;  %v8807_v26 = vpack.c.bf16 %v5662_v30, %v5660_v20 }
0x124e   :  { %5277 = vmatmul.mubr.f32.gmra.mrb[118].mxu0 %v5013_v44  ;;  %v8783_v44 = vpack.c.bf16 %v5638_v31, %v5636_v12  ;;  %8782 = vmatprep.subr.bf16.mxu1 %v8781_v42  ;;  %v8809_v42 = vpack.c.bf16 %v5667_v50, %v5665_v23  ;;  %v5664_v12 = vld [vmem:[#allocation17 + $0x1e0] sm:$0xff]  ;;  %v5666_v31 = vld [vmem:[#allocation17 + $0x1f0] sm:$0xff] }
0x124f   :  { %5347 = vmatprep.mubr.f32.mxu0 %v10057_v37 }
0x1251   :  { %8784 = vmatpush1.bf16.msra.mxu1 %v8783_v44  ;;  %v8811_v44 = vpack.c.bf16 %v5666_v31, %v5664_v12 }
0x1252   :  { %5348 = vmatmul.mubr.f32.vlgmr.msra.gmra.mrb[88].mxu0 %v5049_v22  ;;  %v5641_v22 = vld [vmem:[#allocation17 + $0x128] sm:$0xff] }
0x1253   :  { %5353 = vmatprep.mubr.f32.mxu0 %v10057_v37 }
0x1256   :  { %5354 = vmatmul.mubr.f32.gmra.mrb[90].mxu0 %v5051_v40  ;;  %v8785_v40 = vpack.c.bf16 %v5643_v49, %v5641_v22  ;;  %v5669_v22 = vld [vmem:[#allocation17 + $0x208] sm:$0xff]  ;;  %v5671_v49 = vld [vmem:[#allocation17 + $0x218] sm:$0xff] }
0x1257   :  { %5359 = vmatprep.mubr.f32.mxu0 %v10057_v37 }
0x1258   :  { %8786 = vmatprep.subr.bf16.mxu1 %v8785_v40  ;;  %v8813_v40 = vpack.c.bf16 %v5671_v49, %v5669_v22 }
0x125a   :  { %5360 = vmatmul.mubr.f32.gmra.mrb[92].mxu0 %v5053_v46  ;;  %v5642_v46 = vld [vmem:[#allocation17 + $0x130] sm:$0xff] }
0x125b   :  { %5365 = vmatprep.mubr.f32.mxu0 %v10057_v37  ;;  %v8787_v10 = vpack.c.bf16 %v5642_v46, %v5640_v38  ;;  %v5114_v38 = vsub.s32 0, %v10401_v61  ;;  %v4966_v46 = vld [vmem:[%s12612_s19] sm:$0x3] }
0x125d   :  { %8788 = vmatpush1.bf16.msra.mxu1 %v8787_v10  ;;  %v12168_v10 = vrot.slane %v4966_v46, %v5114_v38 }
0x125e   :  { %5366 = vmatmul.mubr.f32.gmra.mrb[94].mxu0 %v5055_v54  ;;  %v5645_v54 = vld [vmem:[#allocation17 + $0x148] sm:$0xff] }
0x125f   :  { %5371 = vmatprep.mubr.f32.mxu0 %v10057_v37 }
0x1262   :  { %5372 = vmatmul.mubr.f32.gmra.mrb[96].mxu0 %v5057_v56  ;;  %v8789_v56 = vpack.c.bf16 %v5647_v19, %v5645_v54 }
0x1263   :  { %5377 = vmatprep.mubr.f32.mxu0 %v10057_v37 }
0x1264   :  { %8790 = vmatprep.subr.bf16.mxu1 %v8789_v56 }
0x1266   :  { %5378 = vmatmul.mubr.f32.gmra.mrb[98].mxu0 %v5059_v53  ;;  %v5646_v53 = vld [vmem:[#allocation17 + $0x150] sm:$0xff] }
0x1267   :  { %5383 = vmatprep.mubr.f32.mxu0 %v10057_v37  ;;  %v8791_v25 = vpack.c.bf16 %v5646_v53, %v5644_v47 }
0x1269   :  { %8792 = vmatpush1.bf16.msra.mxu1 %v8791_v25 }
0x126a   :  { %5384 = vmatmul.mubr.f32.gmra.mrb[100].mxu0 %v5061_v57  ;;  %v5649_v57 = vld [vmem:[#allocation17 + $0x168] sm:$0xff] }
0x126b   :  { %5389 = vmatprep.mubr.f32.mxu0 %v10057_v37 }
0x126e   :  { %7367 = vmatmul.mubr.msk.f32.gmra.mrb[102].mxu0 %vm11369_vm12, %v5063_v60  ;;  %v8793_v60 = vpack.c.bf16 %v5651_v29, %v5649_v57 }
0x126f   :  { %5395 = vmatprep.mubr.f32.mxu0 %v10057_v37 }
0x1270   :  { %8794 = vmatprep.subr.bf16.mxu1 %v8793_v60 }
0x1272   :  { %5396 = vmatmul.mubr.f32.gmra.mrb[104].mxu0 %v5065_v7  ;;  %v5650_v7 = vld [vmem:[#allocation17 + $0x170] sm:$0xff] }
0x1273   :  { %5401 = vmatprep.mubr.f32.mxu0 %v10057_v37  ;;  %v8795_v55 = vpack.c.bf16 %v5650_v7, %v5648_v24 }
0x1275   :  { %8796 = vmatpush1.bf16.msra.mxu1 %v8795_v55 }
0x1276   :  { %5402 = vmatmul.mubr.f32.gmra.mrb[106].mxu0 %v5067_v11  ;;  %v5653_v11 = vld [vmem:[#allocation17 + $0x188] sm:$0xff] }
0x1277   :  { %5407 = vmatprep.mubr.f32.mxu0 %v10057_v37 }
0x127a   :  { %5408 = vmatmul.mubr.f32.gmra.mrb[108].mxu0 %v5069_v18  ;;  %v8797_v18 = vpack.c.bf16 %v5655_v0, %v5653_v11 }
0x127b   :  { %5413 = vmatprep.mubr.f32.mxu0 %v10057_v37 }
0x127c   :  { %8798 = vmatprep.subr.bf16.mxu1 %v8797_v18 }
0x127e   :  { %5414 = vmatmul.mubr.f32.gmra.mrb[110].mxu0 %v5071_v48  ;;  %v5654_v48 = vld [vmem:[#allocation17 + $0x190] sm:$0xff] }
0x127f   :  { %5419 = vmatprep.mubr.f32.mxu0 %v10057_v37  ;;  %v8799_v52 = vpack.c.bf16 %v5654_v48, %v5652_v39 }
0x1281   :  { %8800 = vmatpush1.bf16.msra.mxu1 %v8799_v52 }
0x1282   :  { %5420 = vmatmul.mubr.f32.gmra.mrb[112].mxu0 %v5073_v1  ;;  %v5657_v1 = vld [vmem:[#allocation17 + $0x1a8] sm:$0xff] }
0x1283   :  { %5425 = vmatprep.mubr.f32.mxu0 %v10057_v37 }
0x1286   :  { %5426 = vmatmul.mubr.f32.gmra.mrb[114].mxu0 %v5075_v28  ;;  %v8801_v28 = vpack.c.bf16 %v5659_v62, %v5657_v1 }
0x1287   :  { %5431 = vmatprep.mubr.f32.mxu0 %v10057_v37 }
0x1288   :  { %8802 = vmatprep.subr.bf16.mxu1 %v8801_v28 }
0x128a   :  { %5432 = vmatmul.mubr.f32.gmra.mrb[116].mxu0 %v5077_v63  ;;  %v5658_v63 = vld [vmem:[#allocation17 + $0x1b0] sm:$0xff] }
0x128b   :  { %5437 = vmatprep.mubr.f32.mxu0 %v10057_v37 }
0x128e   :  { %7368 = vmatmul.mubr.msk.f32.gmra.mrb[118].mxu0 %vm11425_vm14, %v5094_v3  ;;  %v8803_v3 = vpack.c.bf16 %v5658_v63, %v5656_v45  ;;  %v5118_v63 = vsub.s32 1, %v10401_v61 }
0x1290   :  { %8804 = vmatpush1.bf16.msra.mxu1 %v8803_v3 }
0x1291   :  { %8806 = vmatprep.subr.bf16.mxu1 %v8805_v17 }
0x1294   :  { %8808 = vmatpush1.bf16.msra.mxu1 %v8807_v26  ;;  %v12187_v26 = vrot.slane %v4966_v46, %v5118_v63 }
0x1295   :  { %8810 = vmatprep.subr.bf16.mxu1 %v8809_v42 }
0x1298   :  { %8812 = vmatpush1.bf16.msra.mxu1 %v8811_v44 }
0x1299   :  { %8814 = vmatprep.subr.bf16.mxu1 %v8813_v40 }
0x1325   :  { %v5349_v54 = vpop.f32.mrb[88].mxu0 }
0x1326   :  { %v8989_v19 = vadd.f32 %v5349_v54, %v12168_v10  ;;  %v5351_v56 = vpop.f32.mrb[89].mxu0 }
0x1327   :  { %v8990_v22 = vadd.f32 %v5351_v56, %v12187_v26 }
0x1328   :  { %v7369_v47 = vmul.f32 -1.442695, %v8989_v19 }
0x1329   :  { %v5355_v53 = vpop.f32.mrb[90].mxu0 }
0x132a   :  { %9460 = vpow2.f32 %v7369_v47  ;;  %v8991_v25 = vadd.f32 %v5355_v53, %v12168_v10  ;;  %v5357_v57 = vpop.f32.mrb[91].mxu0 }
0x132c   :  { %v7370_v29 = vmul.f32 -1.442695, %v8991_v25 }
0x132d   :  { %v5361_v60 = vpop.f32.mrb[92].mxu0 }
0x132e   :  { %9462 = vpow2.f32 %v7370_v29  ;;  %v8993_v24 = vadd.f32 %v5361_v60, %v12168_v10  ;;  %v12173_v7 = vpop.f32.mrb[93].mxu0 }
0x1330   :  { %v7371_v55 = vmul.f32 -1.442695, %v8993_v24  ;;  %v8992_v24 = vadd.f32 %v5357_v57, %v12187_v26 }
0x1331   :  { %v5367_v11 = vpop.f32.mrb[94].mxu0 }
0x1332   :  { %9464 = vpow2.f32 %v7371_v55  ;;  %v8995_v0 = vadd.f32 %v5367_v11, %v12168_v10  ;;  %v12176_v18 = vpop.f32.mrb[95].mxu0 }
0x1334   :  { %v9461_v39 = vpop.eup %9460  ;;  %v7372_v48 = vmul.f32 -1.442695, %v8995_v0 }
0x1335   :  { %v5492_v52 = vadd.f32 1.0, %v9461_v39  ;;  %v5373_v1 = vpop.f32.mrb[96].mxu0  ;;  %v5668_v39 = vld [vmem:[#allocation17 + $0x200] sm:$0xff] }
0x1336   :  { %9466 = vpow2.f32 %v7372_v48  ;;  %v8997_v62 = vadd.f32 %v5373_v1, %v12168_v10  ;;  %v12179_v28 = vpop.f32.mrb[97].mxu0 }
0x1337   :  { %9468 = vrcp.f32 %v5492_v52 }
0x1338   :  { %v9463_v45 = vpop.eup %9462  ;;  %v7373_v3 = vmul.f32 -1.442695, %v8997_v62 }
0x1339   :  { %v5493_v33 = vadd.f32 1.0, %v9463_v45  ;;  %v5379_v35 = vpop.f32.mrb[98].mxu0  ;;  %v5670_v45 = vld [vmem:[#allocation17 + $0x210] sm:$0xff] }
0x133a   :  { %9470 = vpow2.f32 %v7373_v3  ;;  %v8999_v17 = vadd.f32 %v5379_v35, %v12168_v10  ;;  %v12183_v20 = vpop.f32.mrb[99].mxu0  ;;  %v5673_v3 = vld [vmem:[#allocation17 + $0x228] sm:$0xff] }
0x133b   :  { %9472 = vrcp.f32 %v5493_v33  ;;  %v5675_v33 = vld [vmem:[#allocation17 + $0x238] sm:$0xff] }
0x133c   :  { %v9465_v30 = vpop.eup %9464  ;;  %v7374_v23 = vmul.f32 -1.442695, %v8999_v17  ;;  %v8994_v17 = vadd.f32 %v12173_v7, %v12187_v26  ;;  %v5674_v7 = vld [vmem:[#allocation17 + $0x230] sm:$0xff] }
0x133d   :  { %v5494_v50 = vadd.f32 1.0, %v9465_v30  ;;  %v5385_v42 = vpop.f32.mrb[100].mxu0 }
0x133e   :  { %9474 = vpow2.f32 %v7374_v23  ;;  %v9001_v12 = vadd.f32 %v5385_v42, %v12168_v10  ;;  %v12190_v31 = vpop.f32.mrb[101].mxu0 }
0x133f   :  { %9476 = vrcp.f32 %v5494_v50 }
0x1340   :  { %v9467_v44 = vpop.eup %9466  ;;  %v7375_v49 = vmul.f32 -1.442695, %v9001_v12 }
0x1341   :  { %v9469_v40 = vpop.eup %9468  ;;  %v5495_v54 = vadd.f32 1.0, %v9467_v44  ;;  %v5391_v19 = vpop.f32.mrb[102].mxu0  ;;  %v8815_v44 = vpack.c.bf16 %v5670_v45, %v5668_v39  ;;  %v5676_v45 = vld [vmem:[#allocation17 + $0x240] sm:$0xff] }
0x1342   :  { %v5540_v47 = vmul.f32 %v9469_v40, %v8990_v22  ;;  %v5556_v53 = vsub.f32 1.0, %v9469_v40  ;;  %9478 = vpow2.f32 %v7375_v49  ;;  %v9003_v46 = vadd.f32 %v5391_v19, %v12168_v10  ;;  %v12194_v25 = vpop.f32.mrb[103].mxu0  ;;  %v5672_v49 = vld [vmem:[#allocation17 + $0x220] sm:$0xff] }
0x1343   :  { %9480 = vrcp.f32 %v5495_v54  ;;  %v8817_v22 = vpack.c.bf16 %v5675_v33, %v5673_v3 }
0x1344   :  { %v9471_v29 = vpop.eup %9470  ;;  %v5572_v60 = vmul.f32 %v5556_v53, %v11988_v6  ;;  %v7376_v55 = vmul.f32 -1.442695, %v9003_v46  ;;  %v5677_v53 = vld [vmem:[#allocation17 + $0x248] sm:$0xff]  ;;  %v5679_v46 = vld [vmem:[#allocation17 + $0x258] sm:$0xff] }
0x1345   :  { %v9473_v11 = vpop.eup %9472  ;;  %v5496_v56 = vadd.f32 1.0, %v9471_v29  ;;  %v5397_v0 = vpop.f32.mrb[104].mxu0  ;;  %v8996_v29 = vadd.f32 %v12176_v18, %v12187_v26  ;;  %v8819_v18 = vpack.c.bf16 %v5674_v7, %v5672_v49 }
0x1346   :  { %v12198_v48 = vadd.f32 %v5572_v60, %v5540_v47  ;;  %v5541_v52 = vmul.f32 %v9473_v11, %v8992_v24  ;;  %v5557_v1 = vsub.f32 1.0, %v9473_v11  ;;  %9482 = vpow2.f32 %v7376_v55  ;;  %v12200_v62 = vpop.f32.mrb[105].mxu0 }
0x1347   :  { %9484 = vrcp.f32 %v5496_v56  ;;  %v9005_v6 = vadd.f32 %v5397_v0, %v12168_v10 }
0x1348   :  { %v9475_v35 = vpop.eup %9474  ;;  %v5573_v57 = vmul.f32 %v5557_v1, %v11985_v13  ;;  %5920 = vmatprep.mubr.f32.mxu1 %v12198_v48  ;;  %v5717_v30 = vrot.slane %v12198_v48, 7  ;;  %v8821_v1 = vpack.c.bf16 %v5679_v46, %v5677_v53  ;;  %v5680_v53 = vld [vmem:[#allocation17 + $0x260] sm:$0xff] }
0x1349   :  { %v9477_v23 = vpop.eup %9476  ;;  %v5497_v50 = vadd.f32 1.0, %v9475_v35  ;;  %v7377_v42 = vmul.f32 -1.442695, %v9005_v6  ;;  %v5403_v12 = vpop.f32.mrb[106].mxu0  ;;  %v5681_v35 = vld [vmem:[#allocation17 + $0x268] sm:$0xff] }
0x134a   :  { %v12208_v40 = vadd.f32 %v5573_v57, %v5541_v52  ;;  %v5542_v54 = vmul.f32 %v9477_v23, %v8994_v17  ;;  %v5558_v19 = vsub.f32 1.0, %v9477_v23  ;;  %v9007_v13 = vadd.f32 %v5403_v12, %v12168_v10  ;;  %v12211_v47 = vpop.f32.mrb[107].mxu0  ;;  %v5683_v57 = vld [vmem:[#allocation17 + $0x278] sm:$0xff] }
0x134b   :  { %9486 = vrcp.f32 %v5497_v50  ;;  %v5764_v60 = vsel %vm542_vm3, 0.0, %v5717_v30  ;;  %v8998_v12 = vadd.f32 %v12179_v28, %v12187_v26  ;;  %v8825_v7 = vpack.c.bf16 %v5683_v57, %v5681_v35  ;;  %v5686_v35 = vld [vmem:[#allocation17 + $0x290] sm:$0xff] }
0x134c   :  { %v9479_v24 = vpop.eup %9478  ;;  %v5574_v55 = vmul.f32 %v5558_v19, %v12010_v27  ;;  %9488 = vpow2.f32 %v7377_v42  ;;  %v7378_v11 = vmul.f32 -1.442695, %v9007_v13  ;;  %7385 = vmatmul.mubr.msk.f32.vlgmr.msra.gmra.mrb[92].mxu1 %vm11331_vm11, %v5764_v60  ;;  %v5718_v56 = vrot.slane %v12208_v40, 7  ;;  %v5682_v60 = vld [vmem:[#allocation17 + $0x270] sm:$0xff] }
0x134d   :  { %v9481_v0 = vpop.eup %9480  ;;  %v5498_v39 = vadd.f32 1.0, %v9479_v24  ;;  %8816 = vmatpush1.bf16.msra.mxu1 %v8815_v44  ;;  %5926 = vmatprep.mubr.f32.mxu1 %v12208_v40  ;;  %v5409_v52 = vpop.f32.mrb[108].mxu0  ;;  %v8823_v13 = vpack.c.bf16 %v5678_v43, %v5676_v45  ;;  %v5685_v24 = vld [vmem:[#allocation17 + $0x288] sm:$0xff]  ;;  %v5684_v43 = vld [vmem:[#allocation17 + $0x280] sm:$0xff] }
0x134e   :  { %v12221_v3 = vadd.f32 %v5574_v55, %v5542_v54  ;;  %v5543_v33 = vmul.f32 %v9481_v0, %v8996_v29  ;;  %v5559_v27 = vsub.f32 1.0, %v9481_v0  ;;  %9490 = vpow2.f32 %v7378_v11  ;;  %v12223_v6 = vpop.f32.mrb[109].mxu0  ;;  %8818 = vmatprep.subr.bf16.mxu1 %v8817_v22  ;;  %v5687_v55 = vld [vmem:[#allocation17 + $0x298] sm:$0xff] }
0x134f   :  { %9492 = vrcp.f32 %v5498_v39  ;;  %v9009_v17 = vadd.f32 %v5409_v52, %v12168_v10  ;;  %v5719_v23 = vsel %vm542_vm3, %v5717_v30, %v5718_v56  ;;  %v9000_v11 = vadd.f32 %v12183_v20, %v12187_v26 }
0x1350   :  { %v9483_v50 = vpop.eup %9482  ;;  %v5575_v42 = vmul.f32 %v5559_v27, %v12007_v36  ;;  %5927 = vmatmul.mubr.f32.gmra.mrb[94].mxu1 %v5719_v23  ;;  %v5720_v44 = vrot.slane %v12221_v3, 7  ;;  %v8829_v27 = vpack.c.bf16 %v5687_v55, %v5685_v24  ;;  %v5689_v23 = vld [vmem:[#allocation17 + $0x2a8] sm:$0xff] }
0x1351   :  { %v9485_v49 = vpop.eup %9484  ;;  %v5499_v54 = vadd.f32 1.0, %v9483_v50  ;;  %v7379_v22 = vmul.f32 -1.442695, %v9009_v17  ;;  %5932 = vmatprep.mubr.f32.mxu1 %v12221_v3  ;;  %v5415_v19 = vpop.f32.mrb[110].mxu0  ;;  %8820 = vmatpush1.bf16.msra.mxu1 %v8819_v18  ;;  %v5691_v50 = vld [vmem:[#allocation17 + $0x2b8] sm:$0xff] }
0x1352   :  { %v12232_v30 = vadd.f32 %v5575_v42, %v5543_v33  ;;  %v5544_v46 = vmul.f32 %v9485_v49, %v8998_v12  ;;  %v5560_v36 = vsub.f32 1.0, %v9485_v49  ;;  %v9011_v29 = vadd.f32 %v5415_v19, %v12168_v10  ;;  %v12235_v28 = vpop.f32.mrb[111].mxu0  ;;  %8822 = vmatprep.subr.bf16.mxu1 %v8821_v1 }
0x1353   :  { %9494 = vrcp.f32 %v5499_v54  ;;  %v5721_v0 = vsel %vm542_vm3, %v5718_v56, %v5720_v44  ;;  %v8827_v33 = vpack.c.bf16 %v5682_v60, %v5680_v53  ;;  %v9002_v19 = vadd.f32 %v12190_v31, %v12187_v26 }
0x1354   :  { %v5576_v39 = vmul.f32 %v5560_v36, %v12030_v8  ;;  %9496 = vpow2.f32 %v7379_v22  ;;  %v7380_v52 = vmul.f32 -1.442695, %v9011_v29  ;;  %5933 = vmatmul.mubr.f32.gmra.mrb[96].mxu1 %v5721_v0  ;;  %v5722_v18 = vrot.slane %v12232_v30, 7  ;;  %v5690_v0 = vld [vmem:[#allocation17 + $0x2b0] sm:$0xff] }
0x1355   :  { %v9487_v45 = vpop.eup %9486  ;;  %5938 = vmatprep.mubr.f32.mxu1 %v12232_v30  ;;  %v5421_v1 = vpop.f32.mrb[112].mxu0  ;;  %8824 = vmatpush1.bf16.msra.mxu1 %v8823_v13  ;;  %v8831_v53 = vpack.c.bf16 %v5686_v35, %v5684_v43  ;;  %v8833_v60 = vpack.c.bf16 %v5691_v50, %v5689_v23  ;;  %v5692_v23 = vld [vmem:[#allocation17 + $0x2c0] sm:$0xff]  ;;  %v5694_v50 = vld [vmem:[#allocation17 + $0x2d0] sm:$0xff] }
0x1356   :  { %v9489_v20 = vpop.eup %9488  ;;  %v12243_v57 = vadd.f32 %v5576_v39, %v5544_v46  ;;  %v5545_v56 = vmul.f32 %v9487_v45, %v9000_v11  ;;  %v5561_v17 = vsub.f32 1.0, %v9487_v45  ;;  %9498 = vpow2.f32 %v7380_v52  ;;  %v12245_v8 = vpop.f32.mrb[113].mxu0  ;;  %8826 = vmatprep.subr.bf16.mxu1 %v8825_v7  ;;  %v5693_v39 = vld [vmem:[#allocation17 + $0x2c8] sm:$0xff]  ;;  %v5695_v52 = vld [vmem:[#allocation17 + $0x2d8] sm:$0xff] }
0x1357   :  { %v5500_v42 = vadd.f32 1.0, %v9489_v20  ;;  %v9013_v12 = vadd.f32 %v5421_v1, %v12168_v10  ;;  %v5723_v49 = vsel %vm542_vm3, %v5720_v44, %v5722_v18  ;;  %v5688_v44 = vld [vmem:[#allocation17 + $0x2a0] sm:$0xff]  ;;  %v9004_v45 = vadd.f32 %v12194_v25, %v12187_v26 }
0x1358   :  { %v9491_v54 = vpop.eup %9490  ;;  %v5577_v22 = vmul.f32 %v5561_v17, %v12027_v41  ;;  %5939 = vmatmul.mubr.f32.gmra.mrb[98].mxu1 %v5723_v49  ;;  %v5724_v13 = vrot.slane %v12243_v57, 7  ;;  %v8837_v17 = vpack.c.bf16 %v5695_v52, %v5693_v39  ;;  %v5697_v49 = vld [vmem:[#allocation17 + $0x2e8] sm:$0xff]  ;;  %v5696_v52 = vld [vmem:[#allocation17 + $0x2e0] sm:$0xff] }
0x1359   :  { %v9493_v46 = vpop.eup %9492  ;;  %9500 = vrcp.f32 %v5500_v42  ;;  %v5501_v7 = vadd.f32 1.0, %v9491_v54  ;;  %v7381_v36 = vmul.f32 -1.442695, %v9013_v12  ;;  %5944 = vmatprep.mubr.f32.mxu1 %v12243_v57  ;;  %v5427_v29 = vpop.f32.mrb[114].mxu0  ;;  %8828 = vmatpush1.bf16.msra.mxu1 %v8827_v33  ;;  %v5699_v54 = vld [vmem:[#allocation17 + $0x2f8] sm:$0xff] }
0x135a   :  { %v12254_v24 = vadd.f32 %v5577_v22, %v5545_v56  ;;  %v5546_v41 = vmul.f32 %v9493_v46, %v9002_v19  ;;  %v5562_v55 = vsub.f32 1.0, %v9493_v46  ;;  %v9015_v31 = vadd.f32 %v5427_v29, %v12168_v10  ;;  %v12257_v11 = vpop.f32.mrb[115].mxu0  ;;  %8830 = vmatprep.subr.bf16.mxu1 %v8829_v27 }
0x135b   :  { %9502 = vrcp.f32 %v5501_v7  ;;  %v5725_v1 = vsel %vm542_vm3, %v5722_v18, %v5724_v13  ;;  %v8835_v56 = vpack.c.bf16 %v5690_v0, %v5688_v44  ;;  %v8839_v29 = vpack.c.bf16 %v5694_v50, %v5692_v23 }
0x135c   :  { %v5578_v33 = vmul.f32 %v5562_v55, %v12049_v59  ;;  %9504 = vpow2.f32 %v7381_v36  ;;  %v7382_v43 = vmul.f32 -1.442695, %v9015_v31  ;;  %5945 = vmatmul.mubr.f32.gmra.mrb[100].mxu1 %v5725_v1  ;;  %v5726_v35 = vrot.slane %v12254_v24, 7 }
0x135d   :  { %v9495_v20 = vpop.eup %9494  ;;  %5950 = vmatprep.mubr.f32.mxu1 %v12254_v24  ;;  %v5433_v27 = vpop.f32.mrb[116].mxu0  ;;  %8832 = vmatpush1.bf16.msra.mxu1 %v8831_v53  ;;  %v8841_v55 = vpack.c.bf16 %v5699_v54, %v5697_v49 }
0x135e   :  { %v9497_v25 = vpop.eup %9496  ;;  %v12265_v42 = vadd.f32 %v5578_v33, %v5546_v41  ;;  %v5547_v18 = vmul.f32 %v9495_v20, %v9004_v45  ;;  %v5563_v12 = vsub.f32 1.0, %v9495_v20  ;;  %9506 = vpow2.f32 %v7382_v43  ;;  %v12267_v59 = vpop.f32.mrb[117].mxu0  ;;  %8834 = vmatprep.subr.bf16.mxu1 %v8833_v60  ;;  %v5698_v45 = vld [vmem:[#allocation17 + $0x2f0] sm:$0xff] }
0x135f   :  { %v5502_v22 = vadd.f32 1.0, %v9497_v25  ;;  %v9017_v19 = vadd.f32 %v5433_v27, %v12168_v10  ;;  %v5727_v53 = vsel %vm542_vm3, %v5724_v13, %v5726_v35  ;;  %v9006_v13 = vadd.f32 %v12200_v62, %v12187_v26 }
0x1360   :  { %v9499_v46 = vpop.eup %9498  ;;  %v5579_v7 = vmul.f32 %v5563_v12, %v12046_v14  ;;  %5951 = vmatmul.mubr.f32.gmra.mrb[102].mxu1 %v5727_v53  ;;  %v5728_v36 = vrot.slane %v12265_v42, 7  ;;  %v9008_v33 = vadd.f32 %v12211_v47, %v12187_v26 }
0x1361   :  { %9508 = vrcp.f32 %v5502_v22  ;;  %v5503_v44 = vadd.f32 1.0, %v9499_v46  ;;  %v7383_v41 = vmul.f32 -1.442695, %v9017_v19  ;;  %5956 = vmatprep.mubr.f32.mxu1 %v12265_v42  ;;  %v5439_v60 = vpop.f32.mrb[118].mxu0  ;;  %8836 = vmatpush1.bf16.msra.mxu1 %v8835_v56  ;;  %v9012_v46 = vadd.f32 %v12235_v28, %v12187_v26 }
0x1362   :  { %v12274_v31 = vadd.f32 %v5579_v7, %v5547_v18  ;;  %v9019_v0 = vadd.f32 %v5439_v60, %v12168_v10  ;;  %v12279_v14 = vpop.f32.mrb[119].mxu0  ;;  %v5729_v39 = vsel %vm542_vm3, %v5726_v35, %v5728_v36  ;;  %8838 = vmatprep.subr.bf16.mxu1 %v8837_v17  ;;  %v8843_v35 = vpack.c.bf16 %v5698_v45, %v5696_v52 }
0x1363   :  { %v9501_v1 = vpop.eup %9500  ;;  %9510 = vrcp.f32 %v5503_v44 }
0x1364   :  { %v5548_v43 = vmul.f32 %v9501_v1, %v9006_v13  ;;  %v5564_v20 = vsub.f32 1.0, %v9501_v1  ;;  %9512 = vpow2.f32 %v7383_v41  ;;  %v7384_v27 = vmul.f32 -1.442695, %v9019_v0  ;;  %5957 = vmatmul.mubr.f32.gmra.mrb[104].mxu1 %v5729_v39 }
0x1365   :  { %v9503_v62 = vpop.eup %9502  ;;  %5962 = vmatprep.mubr.f32.mxu1 %v12274_v31  ;;  %v5730_v10 = vrot.slane %v12274_v31, 7  ;;  %8840 = vmatpush1.bf16.msra.mxu1 %v8839_v29 }
0x1366   :  { %v9505_v56 = vpop.eup %9504  ;;  %v5580_v17 = vmul.f32 %v5564_v20, %v12065_v21  ;;  %v5549_v23 = vmul.f32 %v9503_v62, %v9008_v33  ;;  %v5565_v50 = vsub.f32 1.0, %v9503_v62  ;;  %9514 = vpow2.f32 %v7384_v27  ;;  %8842 = vmatprep.subr.bf16.mxu1 %v8841_v55 }
0x1367   :  { %v5504_v47 = vadd.f32 1.0, %v9505_v56  ;;  %v5731_v25 = vsel %vm542_vm3, %v5728_v36, %v5730_v10  ;;  %v9010_v21 = vadd.f32 %v12223_v6, %v12187_v26 }
0x1368   :  { %v9507_v18 = vpop.eup %9506  ;;  %v12288_v12 = vadd.f32 %v5580_v17, %v5548_v43  ;;  %v5581_v49 = vmul.f32 %v5565_v50, %v12062_v32  ;;  %5963 = vmatmul.mubr.f32.gmra.mrb[106].mxu1 %v5731_v25  ;;  %v9016_v43 = vadd.f32 %v12257_v11, %v12187_v26 }
0x1369   :  { %9516 = vrcp.f32 %v5504_v47  ;;  %v5505_v54 = vadd.f32 1.0, %v9507_v18  ;;  %8844 = vmatpush1.bf16.msra.mxu1 %v8843_v35  ;;  %v9018_v47 = vadd.f32 %v12267_v59, %v12187_v26  ;;  %v9020_v18 = vadd.f32 %v12279_v14, %v12187_v26 }
0x136a   :  { %v12291_v22 = vadd.f32 %v5581_v49, %v5549_v23  ;;  %5968 = vmatprep.mubr.f32.mxu1 %v12288_v12  ;;  %v5732_v19 = vrot.slane %v12288_v12, 7 }
0x136b   :  { %v9509_v53 = vpop.eup %9508  ;;  %9518 = vrcp.f32 %v5505_v54 }
0x136c   :  { %v5550_v7 = vmul.f32 %v9509_v53, %v9010_v21  ;;  %v5566_v32 = vsub.f32 1.0, %v9509_v53  ;;  %v5733_v36 = vsel %vm542_vm3, %v5730_v10, %v5732_v19  ;;  %v5734_v29 = vrot.slane %v12291_v22, 7 }
0x136d   :  { %v9511_v44 = vpop.eup %9510  ;;  %7386 = vmatmul.mubr.msk.f32.gmra.mrb[108].mxu1 %vm11384_vm13, %v5733_v36 }
0x136e   :  { %v9513_v6 = vpop.eup %9512  ;;  %v5582_v41 = vmul.f32 %v5566_v32, %v12079_v4  ;;  %v5551_v60 = vmul.f32 %v9511_v44, %v9012_v46  ;;  %v5567_v55 = vsub.f32 1.0, %v9511_v44  ;;  %5974 = vmatprep.mubr.f32.mxu1 %v12291_v22  ;;  %v5735_v28 = vsel %vm542_vm3, %v5732_v19, %v5734_v29 }
0x136f   :  { %v5506_v13 = vadd.f32 1.0, %v9513_v6  ;;  %v9014_v4 = vadd.f32 %v12245_v8, %v12187_v26  ;;  %v5782_v6 = vrot.slane %v12208_v40, 1 }
0x1370   :  { %v9515_v0 = vpop.eup %9514  ;;  %v12306_v39 = vadd.f32 %v5582_v41, %v5550_v7  ;;  %v5583_v52 = vmul.f32 %v5567_v55, %v12076_v9 }
0x1371   :  { %9520 = vrcp.f32 %v5506_v13  ;;  %v5507_v45 = vadd.f32 1.0, %v9515_v0  ;;  %5975 = vmatmul.mubr.f32.gmra.mrb[110].mxu1 %v5735_v28  ;;  %v5786_v28 = vrot.slane %v12232_v30, 1  ;;  %v5788_v0 = vrot.slane %v12243_v57, 1 }
0x1372   :  { %v12309_v58 = vadd.f32 %v5583_v52, %v5551_v60  ;;  %5980 = vmatprep.mubr.f32.mxu1 %v12306_v39  ;;  %v5736_v1 = vrot.slane %v12306_v39, 7  ;;  %v5784_v60 = vrot.slane %v12221_v3, 1 }
0x1373   :  { %v9517_v33 = vpop.eup %9516  ;;  %9522 = vrcp.f32 %v5507_v45  ;;  %v5789_v52 = vsel %vm571_vm1, %v5786_v28, %v5788_v0  ;;  %v5790_v45 = vrot.slane %v12254_v24, 1 }
0x1374   :  { %v5552_v20 = vmul.f32 %v9517_v33, %v9014_v4  ;;  %v5568_v27 = vsub.f32 1.0, %v9517_v33  ;;  %v5737_v9 = vsel %vm542_vm3, %v5734_v29, %v5736_v1  ;;  %v5738_v62 = vrot.slane %v12309_v58, 7 }
0x1375   :  { %v9519_v10 = vpop.eup %9518  ;;  %5981 = vmatmul.mubr.f32.gmra.mrb[112].mxu1 %v5737_v9  ;;  %v5785_v55 = vsel %vm571_vm1, %v5782_v6, %v5784_v60  ;;  %v5787_v13 = vsel %vm571_vm1, %v5784_v60, %v5786_v28  ;;  %v5791_v4 = vsel %vm571_vm1, %v5788_v0, %v5790_v45  ;;  %v6349_v60 = vld [vmem:[#allocation19 + $0x58] sm:$0xff]  ;;  %v6350_v28 = vld [vmem:[#allocation19 + $0x60] sm:$0xff] }
0x1376   :  { %v5584_v35 = vmul.f32 %v5568_v27, %v12091_v2  ;;  %v5553_v8 = vmul.f32 %v9519_v10, %v9016_v43  ;;  %v5569_v56 = vsub.f32 1.0, %v9519_v10  ;;  %5986 = vmatprep.mubr.f32.mxu1 %v12309_v58  ;;  %v5739_v17 = vsel %vm542_vm3, %v5736_v1, %v5738_v62 }
0x1377   :  { %v5792_v1 = vrot.slane %v12265_v42, 1  ;;  %v5794_v43 = vrot.slane %v12274_v31, 1  ;;  %v5796_v27 = vrot.slane %v12288_v12, 1 }
0x1378   :  { %v12322_v23 = vadd.f32 %v5584_v35, %v5552_v20  ;;  %v5585_v11 = vmul.f32 %v5569_v56, %v12088_v34  ;;  %v5800_v35 = vrot.slane %v12306_v39, 1  ;;  %v5802_v56 = vrot.slane %v12309_v58, 1 }
0x1379   :  { %5987 = vmatmul.mubr.f32.gmra.mrb[114].mxu1 %v5739_v17  ;;  %v5793_v33 = vsel %vm571_vm1, %v5790_v45, %v5792_v1  ;;  %v5795_v20 = vsel %vm571_vm1, %v5792_v1, %v5794_v43  ;;  %v5797_v9 = vsel %vm571_vm1, %v5794_v43, %v5796_v27  ;;  %v6353_v45 = vld [vmem:[#allocation19 + $0x78] sm:$0xff]  ;;  %v6506_v1 = vld [vmem:[#allocation20] sm:$0xff] }
0x137a   :  { %v12325_v50 = vadd.f32 %v5585_v11, %v5553_v8  ;;  %5992 = vmatprep.mubr.f32.mxu1 %v12322_v23  ;;  %v5740_v2 = vrot.slane %v12322_v23, 7  ;;  %v5803_v17 = vsel %vm571_vm1, %v5800_v35, %v5802_v56  ;;  %v5804_v16 = vrot.slane %v12322_v23, 1 }
0x137b   :  { %v9521_v25 = vpop.eup %9520 }
0x137c   :  { %v5554_v49 = vmul.f32 %v9521_v25, %v9018_v47  ;;  %v5570_v54 = vsub.f32 1.0, %v9521_v25  ;;  %v5741_v21 = vsel %vm542_vm3, %v5738_v62, %v5740_v2  ;;  %v5742_v34 = vrot.slane %v12325_v50, 7 }
0x137d   :  { %v9523_v19 = vpop.eup %9522  ;;  %5993 = vmatmul.mubr.f32.gmra.mrb[116].mxu1 %v5741_v21  ;;  %v5798_v62 = vrot.slane %v12291_v22, 1  ;;  %v5805_v11 = vsel %vm571_vm1, %v5802_v56, %v5804_v16  ;;  %v5806_v47 = vrot.slane %v12325_v50, 1 }
0x137e   :  { %v5586_v53 = vmul.f32 %v5570_v54, %v12103_v51  ;;  %v5555_v46 = vmul.f32 %v9523_v19, %v9020_v18  ;;  %v5571_v59 = vsub.f32 1.0, %v9523_v19  ;;  %5998 = vmatprep.mubr.f32.mxu1 %v12325_v50  ;;  %v5743_v7 = vsel %vm542_vm3, %v5740_v2, %v5742_v34  ;;  %v6339_v19 = vld [vmem:[#allocation19 + $0x8] sm:$0xff] }
0x137f   :  { %v5799_v10 = vsel %vm571_vm1, %v5796_v27, %v5798_v62  ;;  %v5801_v8 = vsel %vm571_vm1, %v5798_v62, %v5800_v35  ;;  %v5807_v2 = vsel %vm571_vm1, %v5804_v16, %v5806_v47 }
0x1380   :  { %v12338_v32 = vadd.f32 %v5586_v53, %v5554_v49  ;;  %v5587_v26 = vmul.f32 %v5571_v59, %v12100_v5  ;;  %v5781_v5 = vrot.slane %v12198_v48, 1  ;;  %v6341_v59 = vld [vmem:[#allocation19 + $0x18] sm:$0xff] }
0x1381   :  { %5999 = vmatmul.mubr.f32.gmra.mrb[118].mxu1 %v5743_v7 }
0x1382   :  { %v12341_v14 = vadd.f32 %v5587_v26, %v5555_v46  ;;  %6004 = vmatprep.mubr.f32.mxu1 %v12338_v32  ;;  %v5744_v36 = vrot.slane %v12338_v32, 7  ;;  %v5783_v41 = vsel %vm571_vm1, %v5781_v5, %v5782_v6  ;;  %v5808_v25 = vrot.slane %v12338_v32, 1  ;;  %v6340_v46 = vld [vmem:[#allocation19 + $0x10] sm:$0xff]  ;;  %v6342_v26 = vld [vmem:[#allocation19 + $0x20] sm:$0xff]  ;;  %v6347_v6 = vld [vmem:[#allocation19 + $0x48] sm:$0xff] }
0x1383   :  { %v8849_v7 = vpack.c.bf16 %v6341_v59, %v6340_v46  ;;  %v8861_v5 = vpack.c.bf16 %v6347_v6, %v6346_v15 }
0x1384   :  { %v5745_v29 = vsel %vm542_vm3, %v5742_v34, %v5744_v36  ;;  %v5746_v51 = vrot.slane %v12341_v14, 7  ;;  %v5809_v18 = vsel %vm571_vm1, %v5806_v47, %v5808_v25  ;;  %v5810_v49 = vrot.slane %v12341_v14, 1  ;;  %v6338_v34 = vld [vmem:[#allocation19] sm:$0xff] }
0x1385   :  { %6005 = vmatmul.mubr.f32.gmra.mrb[120].mxu1 %v5745_v29  ;;  %v8845_v53 = vpack.c.bf16 %v6339_v19, %v6338_v34 }
0x1386   :  { %6010 = vmatprep.mubr.f32.mxu1 %v12341_v14  ;;  %v5747_v44 = vsel %vm542_vm3, %v5744_v36, %v5746_v51  ;;  %v5811_v54 = vsel %vm571_vm1, %v5808_v25, %v5810_v49  ;;  %v5828_v21 = vsel %vm571_vm1, %v5810_v49, 0.0  ;;  %v6343_v36 = vld [vmem:[#allocation19 + $0x28] sm:$0xff]  ;;  %v6345_v51 = vld [vmem:[#allocation19 + $0x38] sm:$0xff] }
0x1387   :  { %8846 = vmatprep.subr.bf16.mxu0 %v8845_v53  ;;  %v8853_v29 = vpack.c.bf16 %v6343_v36, %v6342_v26 }
0x1388   :  { %8848 = vmatpush3.bf16.msra.mxu0 %v8845_v53 }
0x1389   :  { %6011 = vmatmul.mubr.f32.gmra.mrb[122].mxu1 %v5747_v44  ;;  %8850 = vmatprep.subr.bf16.mxu0 %v8849_v7 }
0x138a   :  { %6081 = vmatprep.mubr.f32.mxu1 %v10057_v37 }
0x138c   :  { %8852 = vmatpush3.bf16.msra.mxu0 %v8849_v7 }
0x138d   :  { %6082 = vmatmul.mubr.f32.vlgmr.msra.gmra.mrb[92].mxu1 %v5783_v41  ;;  %8854 = vmatprep.subr.bf16.mxu0 %v8853_v29  ;;  %v6348_v41 = vld [vmem:[#allocation19 + $0x50] sm:$0xff] }
0x138e   :  { %6087 = vmatprep.mubr.f32.mxu1 %v10057_v37 }
0x1390   :  { %8856 = vmatpush3.bf16.msra.mxu0 %v8853_v29 }
0x1391   :  { %6088 = vmatmul.mubr.f32.gmra.mrb[94].mxu1 %v5785_v55  ;;  %v8865_v55 = vpack.c.bf16 %v6349_v60, %v6348_v41 }
0x1392   :  { %6093 = vmatprep.mubr.f32.mxu1 %v10057_v37 }
0x1395   :  { %6094 = vmatmul.mubr.f32.gmra.mrb[96].mxu1 %v5787_v13  ;;  %v6351_v13 = vld [vmem:[#allocation19 + $0x68] sm:$0xff] }
0x1396   :  { %6099 = vmatprep.mubr.f32.mxu1 %v10057_v37  ;;  %v8869_v0 = vpack.c.bf16 %v6351_v13, %v6350_v28 }
0x1399   :  { %6100 = vmatmul.mubr.f32.gmra.mrb[98].mxu1 %v5789_v52  ;;  %v6352_v52 = vld [vmem:[#allocation19 + $0x70] sm:$0xff] }
0x139a   :  { %6105 = vmatprep.mubr.f32.mxu1 %v10057_v37 }
0x139d   :  { %6106 = vmatmul.mubr.f32.gmra.mrb[100].mxu1 %v5791_v4  ;;  %v8873_v4 = vpack.c.bf16 %v6353_v45, %v6352_v52 }
0x139e   :  { %6111 = vmatprep.mubr.f32.mxu1 %v10057_v37 }
0x13a1   :  { %6112 = vmatmul.mubr.f32.gmra.mrb[102].mxu1 %v5793_v33  ;;  %v6507_v33 = vld [vmem:[#allocation20 + $0x8] sm:$0xff] }
0x13a2   :  { %6117 = vmatprep.mubr.f32.mxu1 %v10057_v37  ;;  %v12401_v43 = vpack.c.bf16 %v6507_v33, %v6506_v1 }
0x13a5   :  { %6118 = vmatmul.mubr.f32.gmra.mrb[104].mxu1 %v5795_v20  ;;  %v5700_v20 = vld [vmem:[%s12613_s10] sm:$0x3] }
0x13a6   :  { %6123 = vmatprep.mubr.f32.mxu1 %v10057_v37  ;;  %v12407_v27 = vrot.slane %v5700_v20, %v5114_v38 }
0x13a9   :  { %7387 = vmatmul.mubr.msk.f32.gmra.mrb[106].mxu1 %vm11369_vm12, %v5797_v9 }
0x13aa   :  { %6129 = vmatprep.mubr.f32.mxu1 %v10057_v37 }
0x13ad   :  { %6130 = vmatmul.mubr.f32.gmra.mrb[108].mxu1 %v5799_v10 }
0x13ae   :  { %6135 = vmatprep.mubr.f32.mxu1 %v10057_v37 }
0x13b1   :  { %6136 = vmatmul.mubr.f32.gmra.mrb[110].mxu1 %v5801_v8 }
0x13b2   :  { %6141 = vmatprep.mubr.f32.mxu1 %v10057_v37 }
0x13b5   :  { %6142 = vmatmul.mubr.f32.gmra.mrb[112].mxu1 %v5803_v17 }
0x13b6   :  { %6147 = vmatprep.mubr.f32.mxu1 %v10057_v37 }
0x13b9   :  { %6148 = vmatmul.mubr.f32.gmra.mrb[114].mxu1 %v5805_v11 }
0x13ba   :  { %6153 = vmatprep.mubr.f32.mxu1 %v10057_v37 }
0x13bd   :  { %6154 = vmatmul.mubr.f32.gmra.mrb[116].mxu1 %v5807_v2 }
0x13be   :  { %6159 = vmatprep.mubr.f32.mxu1 %v10057_v37 }
0x13c1   :  { %6160 = vmatmul.mubr.f32.gmra.mrb[118].mxu1 %v5809_v18 }
0x13c2   :  { %6165 = vmatprep.mubr.f32.mxu1 %v10057_v37 }
0x13c5   :  { %6166 = vmatmul.mubr.f32.gmra.mrb[120].mxu1 %v5811_v54 }
0x13c6   :  { %6171 = vmatprep.mubr.f32.mxu1 %v10057_v37  ;;  %v6344_v37 = vld [vmem:[#allocation19 + $0x30] sm:$0xff] }
0x13c7   :  { %v8857_v44 = vpack.c.bf16 %v6345_v51, %v6344_v37 }
0x13c9   :  { %7388 = vmatmul.mubr.msk.f32.gmra.mrb[122].mxu1 %vm11425_vm14, %v5828_v21  ;;  %8858 = vmatprep.subr.bf16.mxu0 %v8857_v44 }
0x13ca   :  { %8860 = vmatpush3.bf16.msra.mxu0 %v8857_v44  ;;  %v12423_v44 = vrot.slane %v5700_v20, %v5118_v63 }
0x13cb   :  { %8862 = vmatprep.subr.bf16.mxu0 %v8861_v5 }
0x13ce   :  { %8864 = vmatpush3.bf16.msra.mxu0 %v8861_v5 }
0x13cf   :  { %8866 = vmatprep.subr.bf16.mxu0 %v8865_v55 }
0x13d2   :  { %8868 = vmatpush3.bf16.msra.mxu0 %v8865_v55 }
0x13d3   :  { %8870 = vmatprep.subr.bf16.mxu0 %v8869_v0 }
0x13d6   :  { %8872 = vmatpush3.bf16.msra.mxu0 %v8869_v0 }
0x13d7   :  { %8874 = vmatprep.subr.bf16.mxu0 %v8873_v4 }
0x13da   :  { %8876 = vmatpush3.bf16.msra.mxu0 %v8873_v4 }
0x13db   :  { %8878 = vmatprep.subr.bf16.mxu0 %v12401_v43 }
0x1460   :  { %v6083_v9 = vpop.f32.mrb[92].mxu1 }
0x1461   :  { %v9021_v62 = vadd.f32 %v6083_v9, %v12407_v27  ;;  %v6085_v10 = vpop.f32.mrb[93].mxu1 }
0x1462   :  { %v9022_v28 = vadd.f32 %v6085_v10, %v12423_v44 }
0x1463   :  { %v7389_v35 = vmul.f32 -1.442695, %v9021_v62 }
0x1464   :  { %v6089_v8 = vpop.f32.mrb[94].mxu1 }
0x1465   :  { %9524 = vpow2.f32 %v7389_v35  ;;  %v9023_v56 = vadd.f32 %v6089_v8, %v12407_v27  ;;  %v6091_v17 = vpop.f32.mrb[95].mxu1 }
0x1466   :  { %v9024_v20 = vadd.f32 %v6091_v17, %v12423_v44 }
0x1467   :  { %v7390_v16 = vmul.f32 -1.442695, %v9023_v56 }
0x1468   :  { %v6095_v11 = vpop.f32.mrb[96].mxu1 }
0x1469   :  { %9526 = vpow2.f32 %v7390_v16  ;;  %v9025_v47 = vadd.f32 %v6095_v11, %v12407_v27  ;;  %v6097_v2 = vpop.f32.mrb[97].mxu1 }
0x146b   :  { %v7391_v25 = vmul.f32 -1.442695, %v9025_v47 }
0x146c   :  { %v6101_v18 = vpop.f32.mrb[98].mxu1 }
0x146d   :  { %9528 = vpow2.f32 %v7391_v25  ;;  %v9027_v38 = vadd.f32 %v6101_v18, %v12407_v27  ;;  %v12413_v49 = vpop.f32.mrb[99].mxu1  ;;  %v6508_v25 = vld [vmem:[#allocation20 + $0x10] sm:$0xff]  ;;  %v6509_v18 = vld [vmem:[#allocation20 + $0x18] sm:$0xff] }
0x146f   :  { %v9525_v54 = vpop.eup %9524  ;;  %v7392_v21 = vmul.f32 -1.442695, %v9027_v38 }
0x1470   :  { %v6226_v34 = vadd.f32 1.0, %v9525_v54  ;;  %v6107_v19 = vpop.f32.mrb[100].mxu1 }
0x1471   :  { %9530 = vpow2.f32 %v7392_v21  ;;  %v9029_v53 = vadd.f32 %v6107_v19, %v12407_v27  ;;  %v12416_v46 = vpop.f32.mrb[101].mxu1  ;;  %v9026_v21 = vadd.f32 %v6097_v2, %v12423_v44  ;;  %v9028_v2 = vadd.f32 %v12413_v49, %v12423_v44  ;;  %v6513_v49 = vld [vmem:[#allocation20 + $0x38] sm:$0xff] }
0x1472   :  { %9532 = vrcp.f32 %v6226_v34 }
0x1473   :  { %v9527_v59 = vpop.eup %9526  ;;  %v7393_v7 = vmul.f32 -1.442695, %v9029_v53 }
0x1474   :  { %v6227_v26 = vadd.f32 1.0, %v9527_v59  ;;  %v6113_v36 = vpop.f32.mrb[102].mxu1  ;;  %v8881_v59 = vpack.c.bf16 %v6509_v18, %v6508_v25  ;;  %v6514_v18 = vld [vmem:[#allocation20 + $0x40] sm:$0xff] }
0x1475   :  { %9534 = vpow2.f32 %v7393_v7  ;;  %v9031_v29 = vadd.f32 %v6113_v36, %v12407_v27  ;;  %v12419_v37 = vpop.f32.mrb[103].mxu1 }
0x1476   :  { %9536 = vrcp.f32 %v6227_v26 }
0x1477   :  { %v9529_v51 = vpop.eup %9528  ;;  %v7394_v15 = vmul.f32 -1.442695, %v9031_v29 }
0x1478   :  { %v6228_v6 = vadd.f32 1.0, %v9529_v51  ;;  %v6119_v5 = vpop.f32.mrb[104].mxu1  ;;  %v6510_v51 = vld [vmem:[#allocation20 + $0x20] sm:$0xff] }
0x1479   :  { %9538 = vpow2.f32 %v7394_v15  ;;  %v9033_v41 = vadd.f32 %v6119_v5, %v12407_v27  ;;  %v12426_v60 = vpop.f32.mrb[105].mxu1  ;;  %v6511_v15 = vld [vmem:[#allocation20 + $0x28] sm:$0xff] }
0x147a   :  { %9540 = vrcp.f32 %v6228_v6 }
0x147b   :  { %v9531_v55 = vpop.eup %9530  ;;  %v7395_v13 = vmul.f32 -1.442695, %v9033_v41 }
0x147c   :  { %v9533_v0 = vpop.eup %9532  ;;  %v6229_v52 = vadd.f32 1.0, %v9531_v55  ;;  %v6125_v45 = vpop.f32.mrb[106].mxu1 }
0x147d   :  { %v6274_v4 = vmul.f32 %v9533_v0, %v9022_v28  ;;  %9542 = vpow2.f32 %v7395_v13  ;;  %v9035_v61 = vadd.f32 %v6125_v45, %v12407_v27  ;;  %v12430_v63 = vpop.f32.mrb[107].mxu1  ;;  %v6290_v1 = vsub.f32 1.0, %v9533_v0 }
0x147e   :  { %9544 = vrcp.f32 %v6229_v52  ;;  %v8885_v0 = vpack.c.bf16 %v6511_v15, %v6510_v51  ;;  %v6516_v51 = vld [vmem:[#allocation20 + $0x50] sm:$0xff]  ;;  %v6517_v15 = vld [vmem:[#allocation20 + $0x58] sm:$0xff] }
0x147f   :  { %v9535_v33 = vpop.eup %9534  ;;  %v7396_v9 = vmul.f32 -1.442695, %v9035_v61  ;;  %v6306_v62 = vmul.f32 %v6290_v1, %v12198_v48  ;;  %v6512_v1 = vld [vmem:[#allocation20 + $0x30] sm:$0xff] }
0x1480   :  { %v9537_v35 = vpop.eup %9536  ;;  %v6230_v10 = vadd.f32 1.0, %v9535_v33  ;;  %v6131_v8 = vpop.f32.mrb[108].mxu1 }
0x1481   :  { %v6275_v56 = vmul.f32 %v9537_v35, %v9024_v20  ;;  %v6291_v16 = vsub.f32 1.0, %v9537_v35  ;;  %9546 = vpow2.f32 %v7396_v9  ;;  %v9037_v11 = vadd.f32 %v6131_v8, %v12407_v27  ;;  %v12435_v47 = vpop.f32.mrb[109].mxu1 }
0x1482   :  { %9548 = vrcp.f32 %v6230_v10  ;;  %v6322_v38 = vadd.f32 %v6306_v62, %v6274_v4  ;;  %v9030_v9 = vadd.f32 %v12416_v46, %v12423_v44  ;;  %v8889_v8 = vpack.c.bf16 %v6513_v49, %v6512_v1  ;;  %v6519_v1 = vld [vmem:[#allocation20 + $0x68] sm:$0xff] }
0x1483   :  { %v9539_v54 = vpop.eup %9538  ;;  %v6307_v17 = vmul.f32 %v6291_v16, %v12208_v40  ;;  %v7397_v48 = vmul.f32 -1.442695, %v9037_v11 }
0x1484   :  { %v9541_v34 = vpop.eup %9540  ;;  %v6231_v19 = vadd.f32 1.0, %v9539_v54  ;;  %8049 = vmatprep.mubr.f32.mxu0 %v6322_v38  ;;  %v6137_v53 = vpop.f32.mrb[110].mxu1  ;;  %v6515_v38 = vld [vmem:[#allocation20 + $0x48] sm:$0xff] }
0x1485   :  { %v6323_v7 = vadd.f32 %v6307_v17, %v6275_v56  ;;  %v6276_v26 = vmul.f32 %v9541_v34, %v9026_v21  ;;  %9550 = vpow2.f32 %v7397_v48  ;;  %v9039_v36 = vadd.f32 %v6137_v53, %v12407_v27  ;;  %v12440_v29 = vpop.f32.mrb[111].mxu1 }
0x1486   :  { %9552 = vrcp.f32 %v6231_v19  ;;  %v6292_v6 = vsub.f32 1.0, %v9541_v34  ;;  %v8893_v53 = vpack.c.bf16 %v6515_v38, %v6514_v18 }
0x1487   :  { %v9543_v40 = vpop.eup %9542  ;;  %v7398_v5 = vmul.f32 -1.442695, %v9039_v36  ;;  %8050 = vmatmul.mubr.f32.vlgmr.msra.gmra.mrb[120].mxu0 %v6323_v7 }
0x1488   :  { %v9545_v41 = vpop.eup %9544  ;;  %v6232_v55 = vadd.f32 1.0, %v9543_v40  ;;  %v6143_v28 = vpop.f32.mrb[112].mxu1  ;;  %v6308_v13 = vmul.f32 %v6292_v6, %v12221_v3  ;;  %8880 = vmatpush3.bf16.msra.mxu0 %v12401_v43  ;;  %v9034_v40 = vadd.f32 %v12426_v60, %v12423_v44 }
0x1489   :  { %v6277_v52 = vmul.f32 %v9545_v41, %v9028_v2  ;;  %9554 = vpow2.f32 %v7398_v5  ;;  %v9041_v45 = vadd.f32 %v6143_v28, %v12407_v27  ;;  %v12447_v4 = vpop.f32.mrb[113].mxu1  ;;  %v6293_v61 = vsub.f32 1.0, %v9545_v41  ;;  %8882 = vmatprep.subr.bf16.mxu0 %v8881_v59 }
0x148a   :  { %9556 = vrcp.f32 %v6232_v55  ;;  %v6324_v33 = vadd.f32 %v6308_v13, %v6276_v26  ;;  %v8897_v28 = vpack.c.bf16 %v6517_v15, %v6516_v51 }
0x148b   :  { %v9547_v20 = vpop.eup %9546  ;;  %v7399_v3 = vmul.f32 -1.442695, %v9041_v45  ;;  %v6309_v43 = vmul.f32 %v6293_v61, %v12232_v30  ;;  %v9032_v30 = vadd.f32 %v12419_v37, %v12423_v44  ;;  %v6518_v61 = vld [vmem:[#allocation20 + $0x60] sm:$0xff] }
0x148c   :  { %v9549_v62 = vpop.eup %9548  ;;  %v6233_v35 = vadd.f32 1.0, %v9547_v20  ;;  %8052 = vmatprep.mubr.f32.mxu0 %v6324_v33  ;;  %v6149_v10 = vpop.f32.mrb[114].mxu1  ;;  %8884 = vmatpush3.bf16.msra.mxu0 %v8881_v59 }
0x148d   :  { %v6278_v56 = vmul.f32 %v9549_v62, %v9030_v9  ;;  %9558 = vpow2.f32 %v7399_v3  ;;  %v9043_v16 = vadd.f32 %v6149_v10, %v12407_v27  ;;  %v12453_v11 = vpop.f32.mrb[115].mxu1  ;;  %v6325_v25 = vadd.f32 %v6309_v43, %v6277_v52  ;;  %8886 = vmatprep.subr.bf16.mxu0 %v8885_v0 }
0x148e   :  { %9560 = vrcp.f32 %v6233_v35  ;;  %v6294_v46 = vsub.f32 1.0, %v9549_v62  ;;  %v8901_v62 = vpack.c.bf16 %v6519_v1, %v6518_v61 }
0x148f   :  { %v9551_v54 = vpop.eup %9550  ;;  %v7400_v17 = vmul.f32 -1.442695, %v9043_v16  ;;  %8053 = vmatmul.mubr.f32.gmra.mrb[122].mxu0 %v6325_v25  ;;  %v9038_v25 = vadd.f32 %v12435_v47, %v12423_v44  ;;  %v9040_v47 = vadd.f32 %v12440_v29, %v12423_v44 }
0x1490   :  { %v9553_v21 = vpop.eup %9552  ;;  %v6234_v48 = vadd.f32 1.0, %v9551_v54  ;;  %v6155_v34 = vpop.f32.mrb[116].mxu1  ;;  %v6310_v19 = vmul.f32 %v6294_v46, %v12243_v57  ;;  %8888 = vmatpush3.bf16.msra.mxu0 %v8885_v0 }
0x1491   :  { %v6279_v59 = vmul.f32 %v9553_v21, %v9032_v30  ;;  %9562 = vpow2.f32 %v7400_v17  ;;  %v9045_v7 = vadd.f32 %v6155_v34, %v12407_v27  ;;  %v12459_v26 = vpop.f32.mrb[117].mxu1  ;;  %v6295_v36 = vsub.f32 1.0, %v9553_v21  ;;  %8890 = vmatprep.subr.bf16.mxu0 %v8889_v8 }
0x1492   :  { %9564 = vrcp.f32 %v6234_v48  ;;  %v6326_v37 = vadd.f32 %v6310_v19, %v6278_v56  ;;  %v9046_v61 = vadd.f32 %v12459_v26, %v12423_v44 }
0x1493   :  { %v9555_v6 = vpop.eup %9554  ;;  %v7401_v2 = vmul.f32 -1.442695, %v9045_v7  ;;  %v6311_v57 = vmul.f32 %v6295_v36, %v12254_v24  ;;  %v9036_v24 = vadd.f32 %v12430_v63, %v12423_v44 }
0x1494   :  { %v9557_v5 = vpop.eup %9556  ;;  %v6235_v41 = vadd.f32 1.0, %v9555_v6  ;;  %8055 = vmatprep.mubr.f32.mxu0 %v6326_v37  ;;  %v6161_v55 = vpop.f32.mrb[118].mxu1  ;;  %8892 = vmatpush3.bf16.msra.mxu0 %v8889_v8  ;;  %v9042_v37 = vadd.f32 %v12447_v4, %v12423_v44 }
0x1495   :  { %v6280_v13 = vmul.f32 %v9557_v5, %v9034_v40  ;;  %9566 = vpow2.f32 %v7401_v2  ;;  %v9047_v0 = vadd.f32 %v6161_v55, %v12407_v27  ;;  %v12465_v52 = vpop.f32.mrb[119].mxu1  ;;  %v6327_v45 = vadd.f32 %v6311_v57, %v6279_v59  ;;  %8894 = vmatprep.subr.bf16.mxu0 %v8893_v53 }
0x1496   :  { %9568 = vrcp.f32 %v6235_v41  ;;  %v6296_v60 = vsub.f32 1.0, %v9557_v5  ;;  %v9044_v41 = vadd.f32 %v12453_v11, %v12423_v44 }
0x1497   :  { %v9559_v49 = vpop.eup %9558  ;;  %v7402_v33 = vmul.f32 -1.442695, %v9047_v0  ;;  %8056 = vmatmul.mubr.f32.gmra.mrb[124].mxu0 %v6327_v45 }
0x1498   :  { %v9561_v20 = vpop.eup %9560  ;;  %v6236_v9 = vadd.f32 1.0, %v9559_v49  ;;  %v6167_v3 = vpop.f32.mrb[120].mxu1  ;;  %v6312_v43 = vmul.f32 %v6296_v60, %v12265_v42  ;;  %8896 = vmatpush3.bf16.msra.mxu0 %v8893_v53 }
0x1499   :  { %v6281_v35 = vmul.f32 %v9561_v20, %v9036_v24  ;;  %9570 = vpow2.f32 %v7402_v33  ;;  %v9049_v10 = vadd.f32 %v6167_v3, %v12407_v27  ;;  %v12471_v8 = vpop.f32.mrb[121].mxu1  ;;  %v6297_v56 = vsub.f32 1.0, %v9561_v20  ;;  %8898 = vmatprep.subr.bf16.mxu0 %v8897_v28 }
0x149a   :  { %9572 = vrcp.f32 %v6236_v9  ;;  %v6328_v16 = vadd.f32 %v6312_v43, %v6280_v13  ;;  %v9050_v26 = vadd.f32 %v12471_v8, %v12423_v44 }
0x149b   :  { %v9563_v63 = vpop.eup %9562  ;;  %v7403_v18 = vmul.f32 -1.442695, %v9049_v10  ;;  %v6313_v38 = vmul.f32 %v6297_v56, %v12274_v31 }
0x149c   :  { %v9565_v42 = vpop.eup %9564  ;;  %v6237_v46 = vadd.f32 1.0, %v9563_v63  ;;  %8058 = vmatprep.mubr.f32.mxu0 %v6328_v16  ;;  %v6173_v54 = vpop.f32.mrb[122].mxu1  ;;  %8900 = vmatpush3.bf16.msra.mxu0 %v8897_v28 }
0x149d   :  { %v6282_v30 = vmul.f32 %v9565_v42, %v9038_v25  ;;  %9574 = vpow2.f32 %v7403_v18  ;;  %v9051_v17 = vadd.f32 %v6173_v54, %v12407_v27  ;;  %v6175_v21 = vpop.f32.mrb[123].mxu1  ;;  %v6329_v48 = vadd.f32 %v6313_v38, %v6281_v35  ;;  %8902 = vmatprep.subr.bf16.mxu0 %v8901_v62 }
0x149e   :  { %9576 = vrcp.f32 %v6237_v46  ;;  %v6298_v34 = vsub.f32 1.0, %v9565_v42  ;;  %v9052_v63 = vadd.f32 %v6175_v21, %v12423_v44  ;;  %v6520_v46 = vld [vmem:[#allocation20 + $0x70] sm:$0xff] }
0x149f   :  { %v9567_v19 = vpop.eup %9566  ;;  %v7404_v53 = vmul.f32 -1.442695, %v9051_v17  ;;  %8059 = vmatmul.mubr.f32.gmra.mrb[126].mxu0 %v6329_v48  ;;  %v6691_v17 = vld [vmem:[#allocation22 + $0x8] sm:$0xff]  ;;  %v6693_v48 = vld [vmem:[#allocation22 + $0x18] sm:$0xff] }
0x14a0   :  { %v9569_v31 = vpop.eup %9568  ;;  %v6238_v59 = vadd.f32 1.0, %v9567_v19  ;;  %v6314_v7 = vmul.f32 %v6298_v34, %v12288_v12  ;;  %8904 = vmatpush3.bf16.msra.mxu0 %v8901_v62  ;;  %v6694_v34 = vld [vmem:[#allocation22 + $0x20] sm:$0xff]  ;;  %v6695_v19 = vld [vmem:[#allocation22 + $0x28] sm:$0xff] }
0x14a1   :  { %v6283_v36 = vmul.f32 %v9569_v31, %v9040_v47  ;;  %9578 = vpow2.f32 %v7404_v53  ;;  %v6299_v51 = vsub.f32 1.0, %v9569_v31  ;;  %v8917_v47 = vpack.c.bf16 %v6695_v19, %v6694_v34  ;;  %v6697_v53 = vld [vmem:[#allocation22 + $0x38] sm:$0xff]  ;;  %v6883_v34 = vld [vmem:[#allocation23 + $0x48] sm:$0xff] }
0x14a2   :  { %9580 = vrcp.f32 %v6238_v59  ;;  %v6330_v27 = vadd.f32 %v6314_v7, %v6282_v30  ;;  %v6690_v30 = vld [vmem:[#allocation22] sm:$0xff]  ;;  %v6699_v7 = vld [vmem:[#allocation22 + $0x48] sm:$0xff] }
0x14a3   :  { %v9571_v15 = vpop.eup %9570  ;;  %v6315_v6 = vmul.f32 %v6299_v51, %v12291_v22  ;;  %v8909_v21 = vpack.c.bf16 %v6691_v17, %v6690_v30  ;;  %v6698_v59 = vld [vmem:[#allocation22 + $0x40] sm:$0xff]  ;;  %v6700_v51 = vld [vmem:[#allocation22 + $0x50] sm:$0xff]  ;;  %v6879_v30 = vld [vmem:[#allocation23 + $0x28] sm:$0xff] }
0x14a4   :  { %v9573_v40 = vpop.eup %9572  ;;  %v6239_v29 = vadd.f32 1.0, %v9571_v15  ;;  %8061 = vmatprep.mubr.f32.mxu0 %v6330_v27  ;;  %v6701_v27 = vld [vmem:[#allocation22 + $0x58] sm:$0xff] }
0x14a5   :  { %v6284_v2 = vmul.f32 %v9573_v40, %v9042_v37  ;;  %v6331_v57 = vadd.f32 %v6315_v6, %v6283_v36  ;;  %v6300_v5 = vsub.f32 1.0, %v9573_v40  ;;  %8910 = vmatprep.subr.bf16.mxu1 %v8909_v21  ;;  %v8925_v36 = vpack.c.bf16 %v6699_v7, %v6698_v59  ;;  %v6702_v37 = vld [vmem:[#allocation22 + $0x60] sm:$0xff]  ;;  %v6703_v6 = vld [vmem:[#allocation22 + $0x68] sm:$0xff] }
0x14a6   :  { %9582 = vrcp.f32 %v6239_v29  ;;  %8912 = vmatpush3.bf16.msra.mxu1 %v8909_v21  ;;  %v8929_v15 = vpack.c.bf16 %v6701_v27, %v6700_v51  ;;  %v8933_v40 = vpack.c.bf16 %v6703_v6, %v6702_v37  ;;  %v7405_v29 = vld [vmem:[%s12614_s14] ss:$0 sm:$0xff]  ;;  %v6881_v21 = vld [vmem:[#allocation23 + $0x38] sm:$0xff]  ;;  %v6887_v59 = vld [vmem:[#allocation23 + $0x68] sm:$0xff] }
0x14a7   :  { %v9575_v12 = vpop.eup %9574  ;;  %8062 = vmatmul.mubr.f32.gmra.mrb[128].mxu0 %v6331_v57  ;;  %v6316_v55 = vmul.f32 %v6300_v5, %v12306_v39  ;;  %v9048_v39 = vadd.f32 %v12465_v52, %v12423_v44  ;;  %v6692_v44 = vld [vmem:[#allocation22 + $0x10] sm:$0xff] }
0x14a8   :  { %v9577_v28 = vpop.eup %9576  ;;  %v6240_v13 = vadd.f32 1.0, %v9575_v12 }
0x14a9   :  { %v6285_v0 = vmul.f32 %v9577_v28, %v9044_v41  ;;  %v6332_v4 = vadd.f32 %v6316_v55, %v6284_v2  ;;  %v6301_v45 = vsub.f32 1.0, %v9577_v28 }
0x14aa   :  { %9584 = vrcp.f32 %v6240_v13 }
0x14ab   :  { %v9579_v22 = vpop.eup %9578  ;;  %8064 = vmatprep.mubr.f32.mxu0 %v6332_v4  ;;  %v6317_v1 = vmul.f32 %v6301_v45, %v12309_v58 }
0x14ac   :  { %v9581_v60 = vpop.eup %9580  ;;  %v6241_v49 = vadd.f32 1.0, %v9579_v22 }
0x14ad   :  { %v6286_v24 = vmul.f32 %v9581_v60, %v9046_v61  ;;  %v6333_v11 = vadd.f32 %v6317_v1, %v6285_v0  ;;  %v6302_v33 = vsub.f32 1.0, %v9581_v60 }
0x14ae   :  { %9586 = vrcp.f32 %v6241_v49 }
0x14af   :  { %8065 = vmatmul.mubr.f32.gmra.mrb[130].mxu0 %v6333_v11  ;;  %v6318_v20 = vmul.f32 %v6302_v33, %v12322_v23 }
0x14b0   :  { %v9583_v9 = vpop.eup %9582 }
0x14b1   :  { %v6287_v3 = vmul.f32 %v9583_v9, %v9048_v39  ;;  %v6334_v43 = vadd.f32 %v6318_v20, %v6286_v24  ;;  %v6303_v62 = vsub.f32 1.0, %v9583_v9 }
0x14b3   :  { %8067 = vmatprep.mubr.f32.mxu0 %v6334_v43  ;;  %v6319_v58 = vmul.f32 %v6303_v62, %v12325_v50  ;;  %v6521_v50 = vld [vmem:[#allocation20 + $0x78] sm:$0xff] }
0x14b4   :  { %v9585_v35 = vpop.eup %9584  ;;  %v8905_v54 = vpack.c.bf16 %v6521_v50, %v6520_v46  ;;  %v6877_v46 = vld [vmem:[#allocation23 + $0x18] sm:$0xff] }
0x14b5   :  { %v6288_v10 = vmul.f32 %v9585_v35, %v9050_v26  ;;  %v6335_v56 = vadd.f32 %v6319_v58, %v6287_v3  ;;  %v6304_v16 = vsub.f32 1.0, %v9585_v35 }
0x14b6   :  { %8906 = vmatprep.subr.bf16.mxu0 %v8905_v54 }
0x14b7   :  { %8068 = vmatmul.mubr.f32.gmra.mrb[132].mxu0 %v6335_v56  ;;  %v6320_v52 = vmul.f32 %v6304_v16, %v12338_v32  ;;  %v8913_v32 = vpack.c.bf16 %v6693_v48, %v6692_v44  ;;  %v6880_v44 = vld [vmem:[#allocation23 + $0x30] sm:$0xff] }
0x14b8   :  { %v9587_v23 = vpop.eup %9586  ;;  %8908 = vmatpush3.bf16.msra.mxu0 %v8905_v54  ;;  %v6878_v54 = vld [vmem:[#allocation23 + $0x20] sm:$0xff]  ;;  %v8953_v48 = vpack.c.bf16 %v6881_v21, %v6880_v44  ;;  %v7407_v44 = vld [vmem:[%s10237_s13] ss:$0 sm:$0xff]  ;;  %s10058_s13 = smov [#allocation25]  }
0x14b9   :  { %v6289_v25 = vmul.f32 %v9587_v23, %v9052_v63  ;;  %v6336_v18 = vadd.f32 %v6320_v52, %v6288_v10  ;;  %v6305_v38 = vsub.f32 1.0, %v9587_v23  ;;  %8914 = vmatprep.subr.bf16.mxu1 %v8913_v32  ;;  %v6704_v52 = vld [vmem:[#allocation22 + $0x70] sm:$0xff]  ;;  %v6705_v23 = vld [vmem:[#allocation22 + $0x78] sm:$0xff]  ;;  %v8949_v17 = vpack.c.bf16 %v6879_v30, %v6878_v54 }
0x14ba   :  { %8916 = vmatpush3.bf16.msra.mxu1 %v8913_v32  ;;  %v6882_v32 = vld [vmem:[#allocation23 + $0x40] sm:$0xff]  ;;  %v6888_v54 = vld [vmem:[#allocation23 + $0x70] sm:$0xff]  ;;  %v6889_v30 = vld [vmem:[#allocation23 + $0x78] sm:$0xff] }
0x14bb   :  { %8070 = vmatprep.mubr.f32.mxu0 %v6336_v18  ;;  %v6321_v42 = vmul.f32 %v6305_v38, %v12341_v14  ;;  %v6696_v14 = vld [vmem:[#allocation22 + $0x30] sm:$0xff]  ;;  %8918 = vmatprep.subr.bf16.mxu1 %v8917_v47  ;;  %v6874_v18 = vld [vmem:[#allocation23] sm:$0xff]  ;;  %v6875_v38 = vld [vmem:[#allocation23 + $0x8] sm:$0xff]  ;;  %v8957_v19 = vpack.c.bf16 %v6883_v34, %v6882_v32 }
0x14bc   :  { %v8921_v31 = vpack.c.bf16 %v6697_v53, %v6696_v14  ;;  %v6885_v14 = vld [vmem:[#allocation23 + $0x58] sm:$0xff] }
0x14bd   :  { %v6337_v8 = vadd.f32 %v6321_v42, %v6289_v25  ;;  %v8937_v25 = vpack.c.bf16 %v6705_v23, %v6704_v52  ;;  %v6876_v42 = vld [vmem:[#allocation23 + $0x10] sm:$0xff] }
0x14be   :  { %8920 = vmatpush3.bf16.msra.mxu1 %v8917_v47  ;;  %v8945_v50 = vpack.c.bf16 %v6877_v46, %v6876_v42  ;;  %v6884_v47 = vld [vmem:[#allocation23 + $0x50] sm:$0xff] }
0x14bf   :  { %8071 = vmatmul.mubr.f32.gmra.mrb[134].mxu0 %v6337_v8  ;;  %8922 = vmatprep.subr.bf16.mxu1 %v8921_v31  ;;  %v8941_v8 = vpack.c.bf16 %v6875_v38, %v6874_v18  ;;  %v8961_v53 = vpack.c.bf16 %v6885_v14, %v6884_v47 }
0x14c1   :  { %8942 = vmatprep.subr.bf16.mxu0 %v8941_v8 }
0x14c2   :  { %8924 = vmatpush3.bf16.msra.mxu1 %v8921_v31  ;;  %v6886_v31 = vld [vmem:[#allocation23 + $0x60] sm:$0xff] }
0x14c3   :  { %8926 = vmatprep.subr.bf16.mxu1 %v8925_v36  ;;  %v8965_v7 = vpack.c.bf16 %v6887_v59, %v6886_v31 }
0x14c6   :  { %8928 = vmatpush3.bf16.msra.mxu1 %v8925_v36  ;;  %v12500_v36 = vld [vmem:[%s12615_s6] ss:$0 sm:$0xff] }
0x14c7   :  { %8930 = vmatprep.subr.bf16.mxu1 %v8929_v15 }
0x14ca   :  { %8932 = vmatpush3.bf16.msra.mxu1 %v8929_v15 }
0x14cb   :  { %8934 = vmatprep.subr.bf16.mxu1 %v8933_v40 }
0x14ce   :  { %8936 = vmatpush3.bf16.msra.mxu1 %v8933_v40 }
0x14cf   :  { %8938 = vmatprep.subr.bf16.mxu1 %v8937_v25 }
0x14d2   :  { %8940 = vmatpush3.bf16.msra.mxu1 %v8937_v25 }
0x14d3   :  { %8973 = vmatprep.subr.bf16.mxu1 %v8941_v8 }
0x155a   :  { %v8051_v2 = vpop.f32.mrb[120].mxu0 }
0x155b   :  { %v6427_v57 = vpop.f32.mrb[121].mxu0  ;;  %v6433_v12 = vadd.f32 %v8051_v2, %v7405_v29 }
0x155c   :  { %v6428_v5 = vadd.f32 %v7405_v29, %v6427_v57 }
0x155e   :  { %8105 = vmatprep.mubr.f32.mxu0 %v6428_v5 }
0x155f   :  { %8106 = vmatmul.mubr.f32.vlgmr.msra.gmra.mrb[136].mxu0 %v6433_v12 }
0x1560   :  { %8944 = vmatpush3.bf16.msra.mxu0 %v8941_v8 }
0x1561   :  { %8946 = vmatprep.subr.bf16.mxu0 %v8945_v50 }
0x1562   :  { %v8054_v41 = vpop.f32.mrb[122].mxu0 }
0x1563   :  { %v6437_v55 = vpop.f32.mrb[123].mxu0  ;;  %v6443_v13 = vadd.f32 %v8054_v41, %v7405_v29 }
0x1564   :  { %v6438_v28 = vadd.f32 %v7405_v29, %v6437_v55  ;;  %8948 = vmatpush3.bf16.msra.mxu0 %v8945_v50 }
0x1565   :  { %8950 = vmatprep.subr.bf16.mxu0 %v8949_v17 }
0x1566   :  { %8108 = vmatprep.mubr.f32.mxu0 %v6438_v28 }
0x1567   :  { %8109 = vmatmul.mubr.f32.gmra.mrb[138].mxu0 %v6443_v13 }
0x1568   :  { %8952 = vmatpush3.bf16.msra.mxu0 %v8949_v17 }
0x1569   :  { %8954 = vmatprep.subr.bf16.mxu0 %v8953_v48 }
0x156a   :  { %v8057_v0 = vpop.f32.mrb[124].mxu0 }
0x156b   :  { %v6447_v4 = vpop.f32.mrb[125].mxu0  ;;  %v6453_v22 = vadd.f32 %v8057_v0, %v7405_v29 }
0x156c   :  { %v6448_v45 = vadd.f32 %v7405_v29, %v6447_v4  ;;  %8956 = vmatpush3.bf16.msra.mxu0 %v8953_v48 }
0x156d   :  { %8958 = vmatprep.subr.bf16.mxu0 %v8957_v19 }
0x156e   :  { %8111 = vmatprep.mubr.f32.mxu0 %v6448_v45 }
0x156f   :  { %8112 = vmatmul.mubr.f32.gmra.mrb[140].mxu0 %v6453_v22 }
0x1570   :  { %8960 = vmatpush3.bf16.msra.mxu0 %v8957_v19 }
0x1571   :  { %8962 = vmatprep.subr.bf16.mxu0 %v8961_v53 }
0x1572   :  { %v8060_v61 = vpop.f32.mrb[126].mxu0 }
0x1573   :  { %v6457_v1 = vpop.f32.mrb[127].mxu0  ;;  %v6463_v49 = vadd.f32 %v8060_v61, %v7405_v29 }
0x1574   :  { %v6458_v60 = vadd.f32 %v7405_v29, %v6457_v1  ;;  %8964 = vmatpush3.bf16.msra.mxu0 %v8961_v53 }
0x1575   :  { %8966 = vmatprep.subr.bf16.mxu0 %v8965_v7 }
0x1576   :  { %8114 = vmatprep.mubr.f32.mxu0 %v6458_v60 }
0x1577   :  { %8115 = vmatmul.mubr.f32.gmra.mrb[142].mxu0 %v6463_v49 }
0x1578   :  { %8968 = vmatpush3.bf16.msra.mxu0 %v8965_v7 }
0x157a   :  { %v8063_v24 = vpop.f32.mrb[128].mxu0 }
0x157b   :  { %v6467_v11 = vpop.f32.mrb[129].mxu0  ;;  %v6473_v39 = vadd.f32 %v8063_v24, %v7405_v29 }
0x157c   :  { %v6468_v33 = vadd.f32 %v7405_v29, %v6467_v11 }
0x157e   :  { %8117 = vmatprep.mubr.f32.mxu0 %v6468_v33 }
0x157f   :  { %8118 = vmatmul.mubr.f32.gmra.mrb[144].mxu0 %v6473_v39 }
0x1582   :  { %v8066_v20 = vpop.f32.mrb[130].mxu0 }
0x1583   :  { %v6477_v9 = vpop.f32.mrb[131].mxu0  ;;  %v6483_v43 = vadd.f32 %v8066_v20, %v7405_v29 }
0x1584   :  { %v6478_v3 = vadd.f32 %v7405_v29, %v6477_v9 }
0x1586   :  { %8120 = vmatprep.mubr.f32.mxu0 %v6478_v3 }
0x1587   :  { %8121 = vmatmul.mubr.f32.gmra.mrb[146].mxu0 %v6483_v43 }
0x158a   :  { %v8069_v62 = vpop.f32.mrb[132].mxu0 }
0x158b   :  { %v6487_v26 = vpop.f32.mrb[133].mxu0  ;;  %v6493_v35 = vadd.f32 %v8069_v62, %v7405_v29 }
0x158c   :  { %v6488_v58 = vadd.f32 %v7405_v29, %v6487_v26 }
0x158e   :  { %8123 = vmatprep.mubr.f32.mxu0 %v6488_v58 }
0x158f   :  { %8124 = vmatmul.mubr.f32.gmra.mrb[148].mxu0 %v6493_v35 }
0x1592   :  { %v8072_v10 = vpop.f32.mrb[134].mxu0 }
0x1593   :  { %v6497_v56 = vpop.f32.mrb[135].mxu0  ;;  %v6503_v63 = vadd.f32 %v8072_v10, %v7405_v29 }
0x1594   :  { %v6498_v16 = vadd.f32 %v7405_v29, %v6497_v56 }
0x1596   :  { %8126 = vmatprep.mubr.f32.mxu0 %v6498_v16 }
0x1597   :  { %8127 = vmatmul.mubr.f32.gmra.mrb[150].mxu0 %v6503_v63 }
0x1632   :  { %v8107_v51 = vpop.f32.mrb[136].mxu0 }
0x1633   :  { %v6601_v27 = vadd.f32 %v8107_v51, %v12500_v36  ;;  %v6595_v15 = vpop.f32.mrb[137].mxu0 }
0x1634   :  { %v6596_v37 = vadd.f32 %v12500_v36, %v6595_v15 }
0x1635   :  { %v6675_v40 = vmax.f32 %v6601_v27, 0.0 }
0x1636   :  { %v6674_v6 = vmax.f32 %v6596_v37, 0.0 }
0x1638   :  { %8161 = vmatprep.mubr.f32.mxu1 %v6674_v6 }
0x1639   :  { %8162 = vmatmul.mubr.f32.vlgmr.msra.gmra.mrb[124].mxu1 %v6675_v40 }
0x163a   :  { %v8110_v29 = vpop.f32.mrb[138].mxu0  ;;  %8981 = vmatpush3.bf16.msra.mxu1 %v8941_v8 }
0x163b   :  { %v6611_v2 = vadd.f32 %v8110_v29, %v12500_v36  ;;  %v6605_v57 = vpop.f32.mrb[139].mxu0  ;;  %8974 = vmatprep.subr.bf16.mxu1 %v8945_v50 }
0x163c   :  { %v6606_v5 = vadd.f32 %v12500_v36, %v6605_v57 }
0x163d   :  { %v6677_v41 = vmax.f32 %v6611_v2, 0.0 }
0x163e   :  { %v6676_v12 = vmax.f32 %v6606_v5, 0.0  ;;  %8982 = vmatpush3.bf16.msra.mxu1 %v8945_v50 }
0x163f   :  { %8975 = vmatprep.subr.bf16.mxu1 %v8949_v17 }
0x1640   :  { %8164 = vmatprep.mubr.f32.mxu1 %v6676_v12 }
0x1641   :  { %8165 = vmatmul.mubr.f32.gmra.mrb[126].mxu1 %v6677_v41 }
0x1642   :  { %v8113_v55 = vpop.f32.mrb[140].mxu0  ;;  %8983 = vmatpush3.bf16.msra.mxu1 %v8949_v17  ;;  %v8969_v17 = vpack.c.bf16 %v6889_v30, %v6888_v54 }
0x1643   :  { %v6621_v28 = vadd.f32 %v8113_v55, %v12500_v36  ;;  %v6615_v13 = vpop.f32.mrb[141].mxu0  ;;  %8976 = vmatprep.subr.bf16.mxu1 %v8953_v48 }
0x1644   :  { %v6616_v0 = vadd.f32 %v12500_v36, %v6615_v13  ;;  %8970 = vmatprep.subr.bf16.mxu0 %v8969_v17 }
0x1645   :  { %v6679_v45 = vmax.f32 %v6621_v28, 0.0  ;;  %8972 = vmatpush3.bf16.msra.mxu0 %v8969_v17 }
0x1646   :  { %v6678_v4 = vmax.f32 %v6616_v0, 0.0  ;;  %8984 = vmatpush3.bf16.msra.mxu1 %v8953_v48 }
0x1647   :  { %8977 = vmatprep.subr.bf16.mxu1 %v8957_v19 }
0x1648   :  { %8167 = vmatprep.mubr.f32.mxu1 %v6678_v4 }
0x1649   :  { %8168 = vmatmul.mubr.f32.gmra.mrb[128].mxu1 %v6679_v45 }
0x164a   :  { %v8116_v22 = vpop.f32.mrb[142].mxu0  ;;  %8985 = vmatpush3.bf16.msra.mxu1 %v8957_v19 }
0x164b   :  { %v6631_v61 = vadd.f32 %v8116_v22, %v12500_v36  ;;  %v6625_v1 = vpop.f32.mrb[143].mxu0  ;;  %8978 = vmatprep.subr.bf16.mxu1 %v8961_v53 }
0x164c   :  { %v6626_v60 = vadd.f32 %v12500_v36, %v6625_v1 }
0x164d   :  { %v6681_v24 = vmax.f32 %v6631_v61, 0.0 }
0x164e   :  { %v6680_v49 = vmax.f32 %v6626_v60, 0.0  ;;  %8986 = vmatpush3.bf16.msra.mxu1 %v8961_v53 }
0x164f   :  { %8979 = vmatprep.subr.bf16.mxu1 %v8965_v7 }
0x1650   :  { %8170 = vmatprep.mubr.f32.mxu1 %v6680_v49 }
0x1651   :  { %8171 = vmatmul.mubr.f32.gmra.mrb[130].mxu1 %v6681_v24 }
0x1652   :  { %v8119_v11 = vpop.f32.mrb[144].mxu0  ;;  %8987 = vmatpush3.bf16.msra.mxu1 %v8965_v7 }
0x1653   :  { %v6641_v33 = vadd.f32 %v8119_v11, %v12500_v36  ;;  %v6635_v39 = vpop.f32.mrb[145].mxu0  ;;  %8980 = vmatprep.subr.bf16.mxu1 %v8969_v17 }
0x1654   :  { %v6636_v20 = vadd.f32 %v12500_v36, %v6635_v39 }
0x1655   :  { %v6683_v3 = vmax.f32 %v6641_v33, 0.0 }
0x1656   :  { %v6682_v9 = vmax.f32 %v6636_v20, 0.0  ;;  %8988 = vmatpush3.bf16.msra.mxu1 %v8969_v17 }
0x1658   :  { %8173 = vmatprep.mubr.f32.mxu1 %v6682_v9 }
0x1659   :  { %8174 = vmatmul.mubr.f32.gmra.mrb[132].mxu1 %v6683_v3 }
0x165a   :  { %v8122_v43 = vpop.f32.mrb[146].mxu0 }
0x165b   :  { %v6651_v62 = vadd.f32 %v8122_v43, %v12500_v36  ;;  %v6645_v26 = vpop.f32.mrb[147].mxu0 }
0x165c   :  { %v6646_v58 = vadd.f32 %v12500_v36, %v6645_v26 }
0x165d   :  { %v6685_v10 = vmax.f32 %v6651_v62, 0.0 }
0x165e   :  { %v6684_v35 = vmax.f32 %v6646_v58, 0.0 }
0x1660   :  { %8176 = vmatprep.mubr.f32.mxu1 %v6684_v35 }
0x1661   :  { %8177 = vmatmul.mubr.f32.gmra.mrb[134].mxu1 %v6685_v10 }
0x1662   :  { %v8125_v56 = vpop.f32.mrb[148].mxu0 }
0x1663   :  { %v6661_v16 = vadd.f32 %v8125_v56, %v12500_v36  ;;  %v6655_v63 = vpop.f32.mrb[149].mxu0  ;;  %v12520_v56 = vld [vmem:[%s10247_s27] ss:$0 sm:$0xff]  ;;  %s7159_s27 = sshll.u32 %s10058_s13, 4  ;;  %s7160_s27 = int_to_ptr.vmem [resolvable:$true] %s7159_s27 }
0x1664   :  { %v6656_v52 = vadd.f32 %v12500_v36, %v6655_v63  ;;  %s9960_s3 = scalar_lea.vmem %s7160_s27, 2048  ;;  %p9965_p1 = scmp.lt.s32.totalorder %s7160_s27, %s7160_s27 }
0x1665   :  { %v6687_v25 = vmax.f32 %v6661_v16, 0.0  ;;  %p9961_p0 = scmp.ne.s32.totalorder %s7160_s27, %s9960_s3  ;;  %p9966_p2 = scmp.lt.s32.totalorder %s9960_s3, %s9960_s3 }
0x1666   :  { %v6686_v23 = vmax.f32 %v6656_v52, 0.0 }
0x1667   :  { %p9967_p3 = por %p9966_p2, %p9965_p1 }
0x1668   :  { %8179 = vmatprep.mubr.f32.mxu1 %v6686_v23 }
0x1669   :  { %8180 = vmatmul.mubr.f32.gmra.mrb[136].mxu1 %v6687_v25  ;;  %p9968_p4 = pnand %p9967_p3, %p9961_p0 }
0x166a   :  { %v8128_v18 = vpop.f32.mrb[150].mxu0 }
0x166b   :  { %v6671_v38 = vadd.f32 %v8128_v18, %v12500_v36  ;;  %v6665_v42 = vpop.f32.mrb[151].mxu0 }
0x166c   :  { %v6666_v8 = vadd.f32 %v12500_v36, %v6665_v42 }
0x166d   :  { %v6689_v50 = vmax.f32 %v6671_v38, 0.0 }
0x166e   :  { %v6688_v46 = vmax.f32 %v6666_v8, 0.0 }
0x1670   :  { %8182 = vmatprep.mubr.f32.mxu1 %v6688_v46 }
0x1671   :  { %8183 = vmatmul.mubr.f32.gmra.mrb[138].mxu1 %v6689_v50 }
0x170c   :  { %v8163_v21 = vpop.f32.mrb[124].mxu1 }
0x170d   :  { %v6785_v48 = vadd.f32 %v8163_v21, %v7407_v44  ;;  %v6779_v32 = vpop.f32.mrb[125].mxu1 }
0x170e   :  { %v6780_v34 = vadd.f32 %v7407_v44, %v6779_v32 }
0x170f   :  { %v6859_v47 = vmax.f32 %v6785_v48, 0.0 }
0x1710   :  { %v6858_v19 = vmax.f32 %v6780_v34, 0.0 }
0x1712   :  { %8217 = vmatprep.mubr.f32.mxu0 %v6858_v19 }
0x1713   :  { %8218 = vmatmul.mubr.f32.vlgmr.msra.gmra.mrb[152].mxu0 %v6859_v47 }
0x1714   :  { %v8166_v14 = vpop.f32.mrb[126].mxu1 }
0x1715   :  { %v6795_v53 = vadd.f32 %v8166_v14, %v7407_v44  ;;  %v6789_v31 = vpop.f32.mrb[127].mxu1 }
0x1716   :  { %v6790_v59 = vadd.f32 %v7407_v44, %v6789_v31 }
0x1717   :  { %v6861_v36 = vmax.f32 %v6795_v53, 0.0 }
0x1718   :  { %v6860_v7 = vmax.f32 %v6790_v59, 0.0 }
0x171a   :  { %8220 = vmatprep.mubr.f32.mxu0 %v6860_v7 }
0x171b   :  { %8221 = vmatmul.mubr.f32.gmra.mrb[154].mxu0 %v6861_v36 }
0x171c   :  { %v8169_v51 = vpop.f32.mrb[128].mxu1 }
0x171d   :  { %v6805_v27 = vadd.f32 %v8169_v51, %v7407_v44  ;;  %v6799_v15 = vpop.f32.mrb[129].mxu1 }
0x171e   :  { %v6800_v37 = vadd.f32 %v7407_v44, %v6799_v15 }
0x171f   :  { %v6863_v40 = vmax.f32 %v6805_v27, 0.0 }
0x1720   :  { %v6862_v6 = vmax.f32 %v6800_v37, 0.0 }
0x1722   :  { %8223 = vmatprep.mubr.f32.mxu0 %v6862_v6 }
0x1723   :  { %8224 = vmatmul.mubr.f32.gmra.mrb[156].mxu0 %v6863_v40 }
0x1724   :  { %v8172_v29 = vpop.f32.mrb[130].mxu1 }
0x1725   :  { %v6815_v2 = vadd.f32 %v8172_v29, %v7407_v44  ;;  %v6809_v57 = vpop.f32.mrb[131].mxu1 }
0x1726   :  { %v6810_v5 = vadd.f32 %v7407_v44, %v6809_v57 }
0x1727   :  { %v6865_v41 = vmax.f32 %v6815_v2, 0.0 }
0x1728   :  { %v6864_v12 = vmax.f32 %v6810_v5, 0.0 }
0x172a   :  { %8226 = vmatprep.mubr.f32.mxu0 %v6864_v12 }
0x172b   :  { %8227 = vmatmul.mubr.f32.gmra.mrb[158].mxu0 %v6865_v41 }
0x172c   :  { %v8175_v55 = vpop.f32.mrb[132].mxu1 }
0x172d   :  { %v6825_v28 = vadd.f32 %v8175_v55, %v7407_v44  ;;  %v6819_v13 = vpop.f32.mrb[133].mxu1 }
0x172e   :  { %v6820_v0 = vadd.f32 %v7407_v44, %v6819_v13 }
0x172f   :  { %v6867_v45 = vmax.f32 %v6825_v28, 0.0 }
0x1730   :  { %v6866_v4 = vmax.f32 %v6820_v0, 0.0 }
0x1732   :  { %8229 = vmatprep.mubr.f32.mxu0 %v6866_v4 }
0x1733   :  { %8230 = vmatmul.mubr.f32.gmra.mrb[160].mxu0 %v6867_v45 }
0x1734   :  { %v8178_v22 = vpop.f32.mrb[134].mxu1 }
0x1735   :  { %v6835_v61 = vadd.f32 %v8178_v22, %v7407_v44  ;;  %v6829_v1 = vpop.f32.mrb[135].mxu1 }
0x1736   :  { %v6830_v60 = vadd.f32 %v7407_v44, %v6829_v1 }
0x1737   :  { %v6869_v24 = vmax.f32 %v6835_v61, 0.0 }
0x1738   :  { %v6868_v49 = vmax.f32 %v6830_v60, 0.0 }
0x173a   :  { %8232 = vmatprep.mubr.f32.mxu0 %v6868_v49 }
0x173b   :  { %8233 = vmatmul.mubr.f32.gmra.mrb[162].mxu0 %v6869_v24 }
0x173c   :  { %v8181_v11 = vpop.f32.mrb[136].mxu1 }
0x173d   :  { %v6845_v33 = vadd.f32 %v8181_v11, %v7407_v44  ;;  %v6839_v39 = vpop.f32.mrb[137].mxu1 }
0x173e   :  { %v6840_v20 = vadd.f32 %v7407_v44, %v6839_v39 }
0x173f   :  { %v6871_v3 = vmax.f32 %v6845_v33, 0.0 }
0x1740   :  { %v6870_v9 = vmax.f32 %v6840_v20, 0.0 }
0x1742   :  { %8235 = vmatprep.mubr.f32.mxu1 %v6870_v9 }
0x1743   :  { %8236 = vmatmul.mubr.f32.vlgmr.msra.gmra.mrb[140].mxu1 %v6871_v3 }
0x1744   :  { %v8184_v43 = vpop.f32.mrb[138].mxu1 }
0x1745   :  { %v6855_v62 = vadd.f32 %v8184_v43, %v7407_v44  ;;  %v6849_v26 = vpop.f32.mrb[139].mxu1 }
0x1746   :  { %v6850_v58 = vadd.f32 %v7407_v44, %v6849_v26 }
0x1747   :  { %v6873_v10 = vmax.f32 %v6855_v62, 0.0 }
0x1748   :  { %v6872_v35 = vmax.f32 %v6850_v58, 0.0 }
0x174a   :  { %8238 = vmatprep.mubr.f32.mxu1 %v6872_v35 }
0x174b   :  { %8239 = vmatmul.mubr.f32.gmra.mrb[142].mxu1 %v6873_v10 }
0x17e6   :  { %v8219_v16 = vpop.f32.mrb[152].mxu0 }
0x17e7   :  { %v6969_v63 = vadd.f32 %v8219_v16, %v12520_v56  ;;  %v6963_v52 = vpop.f32.mrb[153].mxu0 }
0x17e8   :  { %v6964_v23 = vadd.f32 %v12520_v56, %v6963_v52 }
0x17e9   :  { %v7410_v25 = vmul.f32 -1.442695, %v6969_v63 }
0x17ea   :  { %v7409_v18 = vmul.f32 -1.442695, %v6964_v23 }
0x17eb   :  { %9588 = vpow2.f32 %v7410_v25 }
0x17ec   :  { %9590 = vpow2.f32 %v7409_v18 }
0x17ee   :  { %v8222_v38 = vpop.f32.mrb[154].mxu0 }
0x17ef   :  { %v6979_v42 = vadd.f32 %v8222_v38, %v12520_v56  ;;  %v6973_v8 = vpop.f32.mrb[155].mxu0 }
0x17f0   :  { %v6974_v46 = vadd.f32 %v12520_v56, %v6973_v8 }
0x17f1   :  { %v7412_v50 = vmul.f32 -1.442695, %v6979_v42 }
0x17f2   :  { %v7411_v54 = vmul.f32 -1.442695, %v6974_v46 }
0x17f3   :  { %9592 = vpow2.f32 %v7412_v50 }
0x17f4   :  { %9594 = vpow2.f32 %v7411_v54 }
0x17f5   :  { %v9589_v30 = vpop.eup %9588 }
0x17f6   :  { %v9591_v17 = vpop.eup %9590  ;;  %v7091_v44 = vadd.f32 1.0, %v9589_v30  ;;  %v8225_v21 = vpop.f32.mrb[156].mxu0 }
0x17f7   :  { %v7090_v48 = vadd.f32 1.0, %v9591_v17  ;;  %v6989_v32 = vadd.f32 %v8225_v21, %v12520_v56  ;;  %v6983_v34 = vpop.f32.mrb[157].mxu0 }
0x17f8   :  { %9596 = vrcp.f32 %v7091_v44  ;;  %v6984_v19 = vadd.f32 %v12520_v56, %v6983_v34 }
0x17f9   :  { %9598 = vrcp.f32 %v7090_v48  ;;  %v7414_v47 = vmul.f32 -1.442695, %v6989_v32 }
0x17fa   :  { %v7413_v14 = vmul.f32 -1.442695, %v6984_v19 }
0x17fb   :  { %9600 = vpow2.f32 %v7414_v47 }
0x17fc   :  { %9602 = vpow2.f32 %v7413_v14 }
0x17fd   :  { %v9593_v53 = vpop.eup %9592 }
0x17fe   :  { %v9595_v31 = vpop.eup %9594  ;;  %v7093_v59 = vadd.f32 1.0, %v9593_v53  ;;  %v8228_v7 = vpop.f32.mrb[158].mxu0 }
0x17ff   :  { %v7092_v36 = vadd.f32 1.0, %v9595_v31  ;;  %v6999_v51 = vadd.f32 %v8228_v7, %v12520_v56  ;;  %v6993_v27 = vpop.f32.mrb[159].mxu0 }
0x1800   :  { %9604 = vrcp.f32 %v7093_v59  ;;  %v6994_v15 = vadd.f32 %v12520_v56, %v6993_v27 }
0x1801   :  { %9606 = vrcp.f32 %v7092_v36  ;;  %v7416_v37 = vmul.f32 -1.442695, %v6999_v51 }
0x1802   :  { %v9597_v6 = vpop.eup %9596  ;;  %v7415_v40 = vmul.f32 -1.442695, %v6994_v15 }
0x1803   :  { %v9599_v29 = vpop.eup %9598  ;;  %7139 = vst [vmem:[#allocation25 + $0x8] sm:$0xff] %v9597_v6  ;;  %9608 = vpow2.f32 %v7416_v37 }
0x1804   :  { %7138 = vst [vmem:[#allocation25] sm:$0xff] %v9599_v29  ;;  %9610 = vpow2.f32 %v7415_v40 }
0x1805   :  { %v9601_v2 = vpop.eup %9600 }
0x1806   :  { %v9603_v57 = vpop.eup %9602  ;;  %v7095_v5 = vadd.f32 1.0, %v9601_v2  ;;  %v8231_v12 = vpop.f32.mrb[160].mxu0 }
0x1807   :  { %v7094_v41 = vadd.f32 1.0, %v9603_v57  ;;  %v7009_v55 = vadd.f32 %v8231_v12, %v12520_v56  ;;  %v7003_v28 = vpop.f32.mrb[161].mxu0 }
0x1808   :  { %9612 = vrcp.f32 %v7095_v5  ;;  %v7004_v13 = vadd.f32 %v12520_v56, %v7003_v28 }
0x1809   :  { %9614 = vrcp.f32 %v7094_v41  ;;  %v7418_v0 = vmul.f32 -1.442695, %v7009_v55 }
0x180a   :  { %v9605_v4 = vpop.eup %9604  ;;  %v7417_v45 = vmul.f32 -1.442695, %v7004_v13 }
0x180b   :  { %v9607_v22 = vpop.eup %9606  ;;  %7141 = vst [vmem:[#allocation25 + $0x18] sm:$0xff] %v9605_v4  ;;  %9616 = vpow2.f32 %v7418_v0 }
0x180c   :  { %7140 = vst [vmem:[#allocation25 + $0x10] sm:$0xff] %v9607_v22  ;;  %9618 = vpow2.f32 %v7417_v45 }
0x180d   :  { %v9609_v61 = vpop.eup %9608 }
0x180e   :  { %v9611_v1 = vpop.eup %9610  ;;  %v7097_v60 = vadd.f32 1.0, %v9609_v61  ;;  %v8234_v49 = vpop.f32.mrb[162].mxu0 }
0x180f   :  { %v7096_v24 = vadd.f32 1.0, %v9611_v1  ;;  %v7019_v11 = vadd.f32 %v8234_v49, %v12520_v56  ;;  %v7013_v33 = vpop.f32.mrb[163].mxu0 }
0x1810   :  { %9620 = vrcp.f32 %v7097_v60  ;;  %v7014_v39 = vadd.f32 %v12520_v56, %v7013_v33 }
0x1811   :  { %9622 = vrcp.f32 %v7096_v24  ;;  %v7420_v20 = vmul.f32 -1.442695, %v7019_v11 }
0x1812   :  { %v9613_v9 = vpop.eup %9612  ;;  %v7419_v3 = vmul.f32 -1.442695, %v7014_v39 }
0x1813   :  { %v9615_v43 = vpop.eup %9614  ;;  %7143 = vst [vmem:[#allocation25 + $0x28] sm:$0xff] %v9613_v9  ;;  %9624 = vpow2.f32 %v7420_v20 }
0x1814   :  { %7142 = vst [vmem:[#allocation25 + $0x20] sm:$0xff] %v9615_v43  ;;  %9626 = vpow2.f32 %v7419_v3 }
0x1815   :  { %v9617_v62 = vpop.eup %9616 }
0x1816   :  { %v9619_v26 = vpop.eup %9618  ;;  %v7099_v58 = vadd.f32 1.0, %v9617_v62  ;;  %v8237_v35 = vpop.f32.mrb[140].mxu1 }
0x1817   :  { %v7098_v10 = vadd.f32 1.0, %v9619_v26  ;;  %v7029_v16 = vadd.f32 %v8237_v35, %v12520_v56  ;;  %v7023_v63 = vpop.f32.mrb[141].mxu1 }
0x1818   :  { %9628 = vrcp.f32 %v7099_v58  ;;  %v7024_v52 = vadd.f32 %v12520_v56, %v7023_v63 }
0x1819   :  { %9630 = vrcp.f32 %v7098_v10  ;;  %v7422_v23 = vmul.f32 -1.442695, %v7029_v16 }
0x181a   :  { %v9621_v25 = vpop.eup %9620  ;;  %v7421_v18 = vmul.f32 -1.442695, %v7024_v52 }
0x181b   :  { %v9623_v38 = vpop.eup %9622  ;;  %7145 = vst [vmem:[#allocation25 + $0x38] sm:$0xff] %v9621_v25  ;;  %9632 = vpow2.f32 %v7422_v23 }
0x181c   :  { %7144 = vst [vmem:[#allocation25 + $0x30] sm:$0xff] %v9623_v38  ;;  %9634 = vpow2.f32 %v7421_v18 }
0x181d   :  { %v9625_v42 = vpop.eup %9624 }
0x181e   :  { %v9627_v8 = vpop.eup %9626  ;;  %v7101_v46 = vadd.f32 1.0, %v9625_v42  ;;  %v8240_v50 = vpop.f32.mrb[142].mxu1 }
0x181f   :  { %v7100_v54 = vadd.f32 1.0, %v9627_v8  ;;  %v7039_v30 = vadd.f32 %v8240_v50, %v12520_v56  ;;  %v7033_v17 = vpop.f32.mrb[143].mxu1 }
0x1820   :  { %9636 = vrcp.f32 %v7101_v46  ;;  %v7034_v44 = vadd.f32 %v12520_v56, %v7033_v17 }
0x1821   :  { %9638 = vrcp.f32 %v7100_v54  ;;  %v7424_v21 = vmul.f32 -1.442695, %v7039_v30 }
0x1822   :  { %v9629_v48 = vpop.eup %9628  ;;  %v7423_v32 = vmul.f32 -1.442695, %v7034_v44 }
0x1823   :  { %v9631_v34 = vpop.eup %9630  ;;  %7147 = vst [vmem:[#allocation25 + $0x48] sm:$0xff] %v9629_v48  ;;  %9640 = vpow2.f32 %v7424_v21 }
0x1824   :  { %7146 = vst [vmem:[#allocation25 + $0x40] sm:$0xff] %v9631_v34  ;;  %9642 = vpow2.f32 %v7423_v32 }
0x1825   :  { %v9633_v19 = vpop.eup %9632 }
0x1826   :  { %v9635_v47 = vpop.eup %9634  ;;  %v7103_v14 = vadd.f32 1.0, %v9633_v19 }
0x1827   :  { %v7102_v53 = vadd.f32 1.0, %v9635_v47 }
0x1828   :  { %9644 = vrcp.f32 %v7103_v14 }
0x1829   :  { %9646 = vrcp.f32 %v7102_v53 }
0x182a   :  { %v9637_v31 = vpop.eup %9636 }
0x182b   :  { %v9639_v59 = vpop.eup %9638  ;;  %7149 = vst [vmem:[#allocation25 + $0x58] sm:$0xff] %v9637_v31 }
0x182c   :  { %7148 = vst [vmem:[#allocation25 + $0x50] sm:$0xff] %v9639_v59 }
0x182d   :  { %v9641_v56 = vpop.eup %9640 }
0x182e   :  { %v9643_v7 = vpop.eup %9642  ;;  %v7105_v36 = vadd.f32 1.0, %v9641_v56 }
0x182f   :  { %v7104_v51 = vadd.f32 1.0, %v9643_v7 }
0x1830   :  { %9648 = vrcp.f32 %v7105_v36 }
0x1831   :  { %9650 = vrcp.f32 %v7104_v51 }
0x1832   :  { %v9645_v27 = vpop.eup %9644 }
0x1833   :  { %v9647_v15 = vpop.eup %9646  ;;  %7151 = vst [vmem:[#allocation25 + $0x68] sm:$0xff] %v9645_v27 }
0x1834   :  { %7150 = vst [vmem:[#allocation25 + $0x60] sm:$0xff] %v9647_v15 }
0x183a   :  { %v9649_v37 = vpop.eup %9648 }
0x183b   :  { %v9651_v6 = vpop.eup %9650  ;;  %7153 = vst [vmem:[#allocation25 + $0x78] sm:$0xff] %v9649_v37 }
0x183c   :  { %7152 = vst [vmem:[#allocation25 + $0x70] sm:$0xff] %v9651_v6 }
0x183d   :  { %9971 = shalt.err (!%p9968_p4)
}
0x183e   :  { %s9972_s24 = scalar_lea.hbm %s10252_s21, 2048 }
0x183f   :  { %p9973_p5 = scmp.ne.s32.totalorder %s10252_s21, %s9972_s24  ;;  %p9976_p6 = scmp.lt.u32.totalorder %s9972_s24, %s10252_s21 }
0x1841   :  { %p9978_p7 = pnand %p9976_p6, %p9973_p5 }
0x1843   :  { %9981 = shalt.err (!%p9978_p7)
}
0x1844   :  { %7165 = dma.vmem_to_hbm [thread:$0]  %s7160_s27, 2048, %s10252_s21, [#allocation4], %s10039_s18, %s10039_s18, %s10040_s22  }
0x1845   :  { %9998 = dma.done.wait [#allocation4], 2048  }
0x1846   :  { %9999 = vsyncadd [#allocation4], 4294965248 }
0x1847   :  { %7169 = vsyncpa [#allocation3], 1 }
0x1848   :  { %7170 = vsyncpa [#allocation6], 1 }
0x1849   :  { %7171 = vsyncpa [#allocation9], 1 }
0x184a   :  { %7172 = vsyncpa [#allocation12], 1 }
0x184b   :  { %7173 = vsyncpa [#allocation15], 1 }
0x184c   :  { %7174 = vsyncpa [#allocation18], 1 }
0x184d   :  { %7175 = vsyncpa [#allocation21], 1 }
0x184e   :  { %7176 = vsyncpa [#allocation24], 1 }
0x184f   :  { %7177 = vsyncpa [#allocation4], 1 }

</bundles_post_ra>
